<compile_context>
chip_gen: v6e
topology: v6e:2x2x1
jax: 0.10.0
libtpu: 0.0.40
codegen_flags: <defaults>
</compile_context>

<pallas_src>
import numpy as np
import jax
import jax.numpy as jnp
from jax import lax
from jax.experimental import pallas as pl
from jax.experimental.pallas import tpu as pltpu


# ----------------------------- Pallas kernel --------------------------------

def _make_illunet_kernel(H, W, C):
    """Builds the fused 4-layer IlluNet kernel for an (H, W, C) image."""

    def _set_padded(pad_ref, v):
        """Write an (H, W, c) activation into the replicate-padded scratch."""
        pad_ref[1:H + 1, 1:W + 1, :] = v
        pad_ref[0:1, 1:W + 1, :] = v[0:1]                      # top row
        pad_ref[H + 1:H + 2, 1:W + 1, :] = v[H - 1:H]          # bottom row
        pad_ref[:, 0:1, :] = pad_ref[:, 1:2, :]                # left col (+corners)
        pad_ref[:, W + 1:W + 2, :] = pad_ref[:, W:W + 1, :]    # right col (+corners)

    def _conv3x3(pad_ref, w_ref, b_ref):
        """3x3 conv over the padded scratch. Returns (H*W, Cout) float32."""
        cin = w_ref.shape[2]
        cout = w_ref.shape[3]
        acc = jnp.zeros((H * W, cout), jnp.float32)
        for kh in range(3):
            for kw in range(3):
                tap = pad_ref[kh:kh + H, kw:kw + W, :].reshape(H * W, cin)
                acc = acc + jnp.dot(tap, w_ref[kh, kw],
                                    preferred_element_type=jnp.float32)
        return acc + b_ref[...]

    def kernel(x_ref, w1, b1, w2, b2, w3, b3, w4, b4, o_ref, pad_ref):
        _set_padded(pad_ref, x_ref[0])                         # (H, W, C)
        h = jnp.maximum(_conv3x3(pad_ref, w1, b1), 0.0)        # (H*W, C)
        _set_padded(pad_ref, h.reshape(H, W, C))
        h = jnp.maximum(_conv3x3(pad_ref, w2, b2), 0.0)
        _set_padded(pad_ref, h.reshape(H, W, C))
        h = jnp.maximum(_conv3x3(pad_ref, w3, b3), 0.0)
        _set_padded(pad_ref, h.reshape(H, W, C))
        h = _conv3x3(pad_ref, w4, b4)                          # (H*W, 1)
        o_ref[0] = (1.0 / (1.0 + jnp.exp(-h))).reshape(H, W, 1)

    return kernel


def illunet_forward(x_nchw, P):
    """x_nchw: (B, C, H, W) float32 (PyTorch layout) -> (B, 1, H, W) float32."""
    B, C, H, W = x_nchw.shape
    x = jnp.transpose(x_nchw, (0, 2, 3, 1)).astype(jnp.float32)   # NHWC

    operands = [x]
    in_specs = [pl.BlockSpec((1, H, W, C), lambda b: (b, 0, 0, 0))]
    for i in (1, 2, 3, 4):
        # torch layout (Cout, Cin, K, K) -> HWIO (K, K, Cin, Cout)
        w = jnp.transpose(P[f'w{i}'], (2, 3, 1, 0)).astype(jnp.float32)
        bias = P[f'b{i}'].reshape(1, -1).astype(jnp.float32)          # (1, Cout)
        operands += [w, bias]
        in_specs.append(pl.BlockSpec(w.shape, lambda b: (0, 0, 0, 0)))
        in_specs.append(pl.BlockSpec(bias.shape, lambda b: (0, 0)))

    out = pl.pallas_call(
        _make_illunet_kernel(H, W, C),
        out_shape=jax.ShapeDtypeStruct((B, H, W, 1), jnp.float32),
        grid=(B,),
        in_specs=in_specs,
        out_specs=pl.BlockSpec((1, H, W, 1), lambda b: (b, 0, 0, 0)),
        scratch_shapes=[pltpu.VMEM((H + 2, W + 2, C), jnp.float32)],
        compiler_params=pltpu.CompilerParams(
            dimension_semantics=("parallel",)),
    )(*operands)

    # (B, H, W, 1) -> (B, 1, H, W): channel dim is 1 so this is a pure reshape.
    return out.reshape(B, 1, H, W)


# ------------------------- pure-JAX reference --------------------------------

def ref_forward(x, P):
    def conv(h, w, b):
        hp = jnp.pad(h, ((0, 0), (0, 0), (1, 1), (1, 1)), mode='edge')
        out = lax.conv_general_dilated(
            hp, w, window_strides=(1, 1), padding='VALID',
            dimension_numbers=('NCHW', 'OIHW', 'NCHW'),
            precision=jax.lax.Precision.HIGHEST)
        return out + b[None, :, None, None]

    h = jnp.maximum(conv(x, P['w1'], P['b1']), 0.0)
    h = jnp.maximum(conv(h, P['w2'], P['b2']), 0.0)
    h = jnp.maximum(conv(h, P['w3'], P['b3']), 0.0)
    h = conv(h, P['w4'], P['b4'])
    return jax.nn.sigmoid(h)


# ------------------------------ params ---------------------------------------

def init_params(key, channel):
    ks = jax.random.split(key, 8)

    def w(k, shape, scale=0.1):
        return (scale * jax.random.normal(k, shape)).astype(jnp.float32)

    return {
        'w1': w(ks[0], (channel, channel, 3, 3)), 'b1': w(ks[1], (channel,), 0.05),
        'w2': w(ks[2], (channel, channel, 3, 3)), 'b2': w(ks[3], (channel,), 0.05),
        'w3': w(ks[4], (channel, channel, 3, 3)), 'b3': w(ks[5], (channel,), 0.05),
        'w4': w(ks[6], (1, channel, 3, 3)),       'b4': w(ks[7], (1,), 0.05),
    }


if __name__ == "__main__":
    B, C, H, W = 2, 4, 16, 16
    key = jax.random.PRNGKey(0)
    kx, kp = jax.random.split(key)
    x = jax.random.normal(kx, (B, C, H, W), jnp.float32)   # NCHW like torch
    P = init_params(kp, C)

    out = jax.block_until_ready(illunet_forward(x, P))
    ref = jax.block_until_ready(ref_forward(x, P))

    # Kernel runs the MXU at default precision (per perf review); reference is
    # HIGHEST precision, so allow bf16-pass rounding slack.
    np.testing.assert_allclose(np.asarray(out), np.asarray(ref),
                               rtol=1e-2, atol=1e-2)
    print("KERNEL_OK")
</pallas_src>

<mosaic_0001>
module attributes {stable_mosaic.version = 11 : i64} {
  func.func @kernel(%arg0: i32, %arg1: memref<1x16x16x4xf32, #tpu.memory_space<vmem>>, %arg2: memref<3x3x4x4xf32, #tpu.memory_space<vmem>>, %arg3: memref<1x4xf32, #tpu.memory_space<vmem>>, %arg4: memref<3x3x4x4xf32, #tpu.memory_space<vmem>>, %arg5: memref<1x4xf32, #tpu.memory_space<vmem>>, %arg6: memref<3x3x4x4xf32, #tpu.memory_space<vmem>>, %arg7: memref<1x4xf32, #tpu.memory_space<vmem>>, %arg8: memref<3x3x4x1xf32, #tpu.memory_space<vmem>>, %arg9: memref<1x1xf32, #tpu.memory_space<vmem>>, %arg10: memref<1x16x16x1xf32, #tpu.memory_space<vmem>>, %arg11: memref<18x18x4xf32, #tpu.memory_space<vmem>>) attributes {dimension_semantics = [#tpu.dimension_semantics<parallel>], iteration_bounds = array<i64: 2>, scalar_prefetch = 0 : i64, scratch_operands = 1 : i64, tpu.core_type = #tpu.core_type<tc>, window_params = [{transform_indices = @transform_0, window_bounds = array<i64: 1, 16, 16, 4>}, {pipeline_mode = #tpu.pipeline_mode<synchronous>, transform_indices = @transform_1, window_bounds = array<i64: 3, 3, 4, 4>}, {pipeline_mode = #tpu.pipeline_mode<synchronous>, transform_indices = @transform_2, window_bounds = array<i64: 1, 4>}, {pipeline_mode = #tpu.pipeline_mode<synchronous>, transform_indices = @transform_3, window_bounds = array<i64: 3, 3, 4, 4>}, {pipeline_mode = #tpu.pipeline_mode<synchronous>, transform_indices = @transform_4, window_bounds = array<i64: 1, 4>}, {pipeline_mode = #tpu.pipeline_mode<synchronous>, transform_indices = @transform_5, window_bounds = array<i64: 3, 3, 4, 4>}, {pipeline_mode = #tpu.pipeline_mode<synchronous>, transform_indices = @transform_6, window_bounds = array<i64: 1, 4>}, {pipeline_mode = #tpu.pipeline_mode<synchronous>, transform_indices = @transform_7, window_bounds = array<i64: 3, 3, 4, 1>}, {pipeline_mode = #tpu.pipeline_mode<synchronous>, transform_indices = @transform_8, window_bounds = array<i64: 1, 1>}, {transform_indices = @transform_9, window_bounds = array<i64: 1, 16, 16, 1>}]} {
    %c0 = arith.constant 0 : index
    %c0_0 = arith.constant 0 : index
    %c0_1 = arith.constant 0 : index
    %c0_2 = arith.constant 0 : index
    %0 = vector.load %arg1[%c0, %c0_0, %c0_1, %c0_2] : memref<1x16x16x4xf32, #tpu.memory_space<vmem>>, vector<1x16x16x4xf32>
    %1 = vector.shape_cast %0 : vector<1x16x16x4xf32> to vector<16x16x4xf32>
    %c1 = arith.constant 1 : index
    %c1_3 = arith.constant 1 : index
    %c0_4 = arith.constant 0 : index
    %2 = vector.load %arg11[%c1, %c1_3, %c0_4] : memref<18x18x4xf32, #tpu.memory_space<vmem>>, vector<16x16x4xf32>
    tpu.vector_store %arg11[%c1, %c1_3, %c0_4], %1 {strides = array<i32>} : memref<18x18x4xf32, #tpu.memory_space<vmem>>, vector<16x16x4xf32>,
    %3 = vector.extract_strided_slice %1 {offsets = [0, 0, 0], sizes = [1, 16, 4], strides = [1, 1, 1]} : vector<16x16x4xf32> to vector<1x16x4xf32>
    %c0_5 = arith.constant 0 : index
    %c1_6 = arith.constant 1 : index
    %c0_7 = arith.constant 0 : index
    %4 = vector.load %arg11[%c0_5, %c1_6, %c0_7] : memref<18x18x4xf32, #tpu.memory_space<vmem>>, vector<1x16x4xf32>
    tpu.vector_store %arg11[%c0_5, %c1_6, %c0_7], %3 {strides = array<i32>} : memref<18x18x4xf32, #tpu.memory_space<vmem>>, vector<1x16x4xf32>,
    %5 = vector.extract_strided_slice %1 {offsets = [15, 0, 0], sizes = [1, 16, 4], strides = [1, 1, 1]} : vector<16x16x4xf32> to vector<1x16x4xf32>
    %c17 = arith.constant 17 : index
    %c1_8 = arith.constant 1 : index
    %c0_9 = arith.constant 0 : index
    %6 = vector.load %arg11[%c17, %c1_8, %c0_9] : memref<18x18x4xf32, #tpu.memory_space<vmem>>, vector<1x16x4xf32>
    tpu.vector_store %arg11[%c17, %c1_8, %c0_9], %5 {strides = array<i32>} : memref<18x18x4xf32, #tpu.memory_space<vmem>>, vector<1x16x4xf32>,
    %c0_10 = arith.constant 0 : index
    %c1_11 = arith.constant 1 : index
    %c0_12 = arith.constant 0 : index
    %7 = vector.load %arg11[%c0_10, %c1_11, %c0_12] : memref<18x18x4xf32, #tpu.memory_space<vmem>>, vector<18x1x4xf32>
    %c0_13 = arith.constant 0 : index
    %c0_14 = arith.constant 0 : index
    %c0_15 = arith.constant 0 : index
    %8 = vector.load %arg11[%c0_13, %c0_14, %c0_15] : memref<18x18x4xf32, #tpu.memory_space<vmem>>, vector<18x1x4xf32>
    tpu.vector_store %arg11[%c0_13, %c0_14, %c0_15], %7 {strides = array<i32>} : memref<18x18x4xf32, #tpu.memory_space<vmem>>, vector<18x1x4xf32>,
    %c0_16 = arith.constant 0 : index
    %c16 = arith.constant 16 : index
    %c0_17 = arith.constant 0 : index
    %9 = vector.load %arg11[%c0_16, %c16, %c0_17] : memref<18x18x4xf32, #tpu.memory_space<vmem>>, vector<18x1x4xf32>
    %c0_18 = arith.constant 0 : index
    %c17_19 = arith.constant 17 : index
    %c0_20 = arith.constant 0 : index
    %10 = vector.load %arg11[%c0_18, %c17_19, %c0_20] : memref<18x18x4xf32, #tpu.memory_space<vmem>>, vector<18x1x4xf32>
    tpu.vector_store %arg11[%c0_18, %c17_19, %c0_20], %9 {strides = array<i32>} : memref<18x18x4xf32, #tpu.memory_space<vmem>>, vector<18x1x4xf32>,
    %cst = arith.constant 0.000000e+00 : f32
    %11 = vector.broadcast %cst : f32 to vector<256x4xf32>
    %c0_21 = arith.constant 0 : index
    %c0_22 = arith.constant 0 : index
    %c0_23 = arith.constant 0 : index
    %12 = vector.load %arg11[%c0_21, %c0_22, %c0_23] : memref<18x18x4xf32, #tpu.memory_space<vmem>>, vector<16x16x4xf32>
    %13 = vector.shape_cast %12 : vector<16x16x4xf32> to vector<256x4xf32>
    %c0_24 = arith.constant 0 : index
    %c0_25 = arith.constant 0 : index
    %c0_26 = arith.constant 0 : index
    %c0_27 = arith.constant 0 : index
    %14 = vector.load %arg2[%c0_24, %c0_25, %c0_26, %c0_27] : memref<3x3x4x4xf32, #tpu.memory_space<vmem>>, vector<1x1x4x4xf32>
    %15 = vector.shape_cast %14 : vector<1x1x4x4xf32> to vector<4x4xf32>
    %cst_28 = arith.constant dense<0.000000e+00> : vector<256x4xf32>
    %16 = tpu.matmul %13, %15, %cst_28 {dimension_numbers = #tpu.dot_dimension_numbers<[1], [0], [0], [1], [0, 0, 1, 1], [], []>} : vector<256x4xf32>, vector<4x4xf32>, vector<256x4xf32> -> vector<256x4xf32>
    %17 = arith.addf %11, %16 : vector<256x4xf32>
    %c0_29 = arith.constant 0 : index
    %c1_30 = arith.constant 1 : index
    %c0_31 = arith.constant 0 : index
    %18 = vector.load %arg11[%c0_29, %c1_30, %c0_31] : memref<18x18x4xf32, #tpu.memory_space<vmem>>, vector<16x16x4xf32>
    %19 = vector.shape_cast %18 : vector<16x16x4xf32> to vector<256x4xf32>
    %c0_32 = arith.constant 0 : index
    %c1_33 = arith.constant 1 : index
    %c0_34 = arith.constant 0 : index
    %c0_35 = arith.constant 0 : index
    %20 = vector.load %arg2[%c0_32, %c1_33, %c0_34, %c0_35] : memref<3x3x4x4xf32, #tpu.memory_space<vmem>>, vector<1x1x4x4xf32>
    %21 = vector.shape_cast %20 : vector<1x1x4x4xf32> to vector<4x4xf32>
    %cst_36 = arith.constant dense<0.000000e+00> : vector<256x4xf32>
    %22 = tpu.matmul %19, %21, %cst_36 {dimension_numbers = #tpu.dot_dimension_numbers<[1], [0], [0], [1], [0, 0, 1, 1], [], []>} : vector<256x4xf32>, vector<4x4xf32>, vector<256x4xf32> -> vector<256x4xf32>
    %23 = arith.addf %17, %22 : vector<256x4xf32>
    %c0_37 = arith.constant 0 : index
    %c2 = arith.constant 2 : index
    %c0_38 = arith.constant 0 : index
    %24 = vector.load %arg11[%c0_37, %c2, %c0_38] : memref<18x18x4xf32, #tpu.memory_space<vmem>>, vector<16x16x4xf32>
    %25 = vector.shape_cast %24 : vector<16x16x4xf32> to vector<256x4xf32>
    %c0_39 = arith.constant 0 : index
    %c2_40 = arith.constant 2 : index
    %c0_41 = arith.constant 0 : index
    %c0_42 = arith.constant 0 : index
    %26 = vector.load %arg2[%c0_39, %c2_40, %c0_41, %c0_42] : memref<3x3x4x4xf32, #tpu.memory_space<vmem>>, vector<1x1x4x4xf32>
    %27 = vector.shape_cast %26 : vector<1x1x4x4xf32> to vector<4x4xf32>
    %cst_43 = arith.constant dense<0.000000e+00> : vector<256x4xf32>
    %28 = tpu.matmul %25, %27, %cst_43 {dimension_numbers = #tpu.dot_dimension_numbers<[1], [0], [0], [1], [0, 0, 1, 1], [], []>} : vector<256x4xf32>, vector<4x4xf32>, vector<256x4xf32> -> vector<256x4xf32>
    %29 = arith.addf %23, %28 : vector<256x4xf32>
    %c1_44 = arith.constant 1 : index
    %c0_45 = arith.constant 0 : index
    %c0_46 = arith.constant 0 : index
    %30 = vector.load %arg11[%c1_44, %c0_45, %c0_46] : memref<18x18x4xf32, #tpu.memory_space<vmem>>, vector<16x16x4xf32>
    %31 = vector.shape_cast %30 : vector<16x16x4xf32> to vector<256x4xf32>
    %c1_47 = arith.constant 1 : index
    %c0_48 = arith.constant 0 : index
    %c0_49 = arith.constant 0 : index
    %c0_50 = arith.constant 0 : index
    %32 = vector.load %arg2[%c1_47, %c0_48, %c0_49, %c0_50] : memref<3x3x4x4xf32, #tpu.memory_space<vmem>>, vector<1x1x4x4xf32>
    %33 = vector.shape_cast %32 : vector<1x1x4x4xf32> to vector<4x4xf32>
    %cst_51 = arith.constant dense<0.000000e+00> : vector<256x4xf32>
    %34 = tpu.matmul %31, %33, %cst_51 {dimension_numbers = #tpu.dot_dimension_numbers<[1], [0], [0], [1], [0, 0, 1, 1], [], []>} : vector<256x4xf32>, vector<4x4xf32>, vector<256x4xf32> -> vector<256x4xf32>
    %35 = arith.addf %29, %34 : vector<256x4xf32>
    %c1_52 = arith.constant 1 : index
    %c1_53 = arith.constant 1 : index
    %c0_54 = arith.constant 0 : index
    %36 = vector.load %arg11[%c1_52, %c1_53, %c0_54] : memref<18x18x4xf32, #tpu.memory_space<vmem>>, vector<16x16x4xf32>
    %37 = vector.shape_cast %36 : vector<16x16x4xf32> to vector<256x4xf32>
    %c1_55 = arith.constant 1 : index
    %c1_56 = arith.constant 1 : index
    %c0_57 = arith.constant 0 : index
    %c0_58 = arith.constant 0 : index
    %38 = vector.load %arg2[%c1_55, %c1_56, %c0_57, %c0_58] : memref<3x3x4x4xf32, #tpu.memory_space<vmem>>, vector<1x1x4x4xf32>
    %39 = vector.shape_cast %38 : vector<1x1x4x4xf32> to vector<4x4xf32>
    %cst_59 = arith.constant dense<0.000000e+00> : vector<256x4xf32>
    %40 = tpu.matmul %37, %39, %cst_59 {dimension_numbers = #tpu.dot_dimension_numbers<[1], [0], [0], [1], [0, 0, 1, 1], [], []>} : vector<256x4xf32>, vector<4x4xf32>, vector<256x4xf32> -> vector<256x4xf32>
    %41 = arith.addf %35, %40 : vector<256x4xf32>
    %c1_60 = arith.constant 1 : index
    %c2_61 = arith.constant 2 : index
    %c0_62 = arith.constant 0 : index
    %42 = vector.load %arg11[%c1_60, %c2_61, %c0_62] : memref<18x18x4xf32, #tpu.memory_space<vmem>>, vector<16x16x4xf32>
    %43 = vector.shape_cast %42 : vector<16x16x4xf32> to vector<256x4xf32>
    %c1_63 = arith.constant 1 : index
    %c2_64 = arith.constant 2 : index
    %c0_65 = arith.constant 0 : index
    %c0_66 = arith.constant 0 : index
    %44 = vector.load %arg2[%c1_63, %c2_64, %c0_65, %c0_66] : memref<3x3x4x4xf32, #tpu.memory_space<vmem>>, vector<1x1x4x4xf32>
    %45 = vector.shape_cast %44 : vector<1x1x4x4xf32> to vector<4x4xf32>
    %cst_67 = arith.constant dense<0.000000e+00> : vector<256x4xf32>
    %46 = tpu.matmul %43, %45, %cst_67 {dimension_numbers = #tpu.dot_dimension_numbers<[1], [0], [0], [1], [0, 0, 1, 1], [], []>} : vector<256x4xf32>, vector<4x4xf32>, vector<256x4xf32> -> vector<256x4xf32>
    %47 = arith.addf %41, %46 : vector<256x4xf32>
    %c2_68 = arith.constant 2 : index
    %c0_69 = arith.constant 0 : index
    %c0_70 = arith.constant 0 : index
    %48 = vector.load %arg11[%c2_68, %c0_69, %c0_70] : memref<18x18x4xf32, #tpu.memory_space<vmem>>, vector<16x16x4xf32>
    %49 = vector.shape_cast %48 : vector<16x16x4xf32> to vector<256x4xf32>
    %c2_71 = arith.constant 2 : index
    %c0_72 = arith.constant 0 : index
    %c0_73 = arith.constant 0 : index
    %c0_74 = arith.constant 0 : index
    %50 = vector.load %arg2[%c2_71, %c0_72, %c0_73, %c0_74] : memref<3x3x4x4xf32, #tpu.memory_space<vmem>>, vector<1x1x4x4xf32>
    %51 = vector.shape_cast %50 : vector<1x1x4x4xf32> to vector<4x4xf32>
    %cst_75 = arith.constant dense<0.000000e+00> : vector<256x4xf32>
    %52 = tpu.matmul %49, %51, %cst_75 {dimension_numbers = #tpu.dot_dimension_numbers<[1], [0], [0], [1], [0, 0, 1, 1], [], []>} : vector<256x4xf32>, vector<4x4xf32>, vector<256x4xf32> -> vector<256x4xf32>
    %53 = arith.addf %47, %52 : vector<256x4xf32>
    %c2_76 = arith.constant 2 : index
    %c1_77 = arith.constant 1 : index
    %c0_78 = arith.constant 0 : index
    %54 = vector.load %arg11[%c2_76, %c1_77, %c0_78] : memref<18x18x4xf32, #tpu.memory_space<vmem>>, vector<16x16x4xf32>
    %55 = vector.shape_cast %54 : vector<16x16x4xf32> to vector<256x4xf32>
    %c2_79 = arith.constant 2 : index
    %c1_80 = arith.constant 1 : index
    %c0_81 = arith.constant 0 : index
    %c0_82 = arith.constant 0 : index
    %56 = vector.load %arg2[%c2_79, %c1_80, %c0_81, %c0_82] : memref<3x3x4x4xf32, #tpu.memory_space<vmem>>, vector<1x1x4x4xf32>
    %57 = vector.shape_cast %56 : vector<1x1x4x4xf32> to vector<4x4xf32>
    %cst_83 = arith.constant dense<0.000000e+00> : vector<256x4xf32>
    %58 = tpu.matmul %55, %57, %cst_83 {dimension_numbers = #tpu.dot_dimension_numbers<[1], [0], [0], [1], [0, 0, 1, 1], [], []>} : vector<256x4xf32>, vector<4x4xf32>, vector<256x4xf32> -> vector<256x4xf32>
    %59 = arith.addf %53, %58 : vector<256x4xf32>
    %c2_84 = arith.constant 2 : index
    %c2_85 = arith.constant 2 : index
    %c0_86 = arith.constant 0 : index
    %60 = vector.load %arg11[%c2_84, %c2_85, %c0_86] : memref<18x18x4xf32, #tpu.memory_space<vmem>>, vector<16x16x4xf32>
    %61 = vector.shape_cast %60 : vector<16x16x4xf32> to vector<256x4xf32>
    %c2_87 = arith.constant 2 : index
    %c2_88 = arith.constant 2 : index
    %c0_89 = arith.constant 0 : index
    %c0_90 = arith.constant 0 : index
    %62 = vector.load %arg2[%c2_87, %c2_88, %c0_89, %c0_90] : memref<3x3x4x4xf32, #tpu.memory_space<vmem>>, vector<1x1x4x4xf32>
    %63 = vector.shape_cast %62 : vector<1x1x4x4xf32> to vector<4x4xf32>
    %cst_91 = arith.constant dense<0.000000e+00> : vector<256x4xf32>
    %64 = tpu.matmul %61, %63, %cst_91 {dimension_numbers = #tpu.dot_dimension_numbers<[1], [0], [0], [1], [0, 0, 1, 1], [], []>} : vector<256x4xf32>, vector<4x4xf32>, vector<256x4xf32> -> vector<256x4xf32>
    %65 = arith.addf %59, %64 : vector<256x4xf32>
    %c0_92 = arith.constant 0 : index
    %c0_93 = arith.constant 0 : index
    %66 = vector.load %arg3[%c0_92, %c0_93] : memref<1x4xf32, #tpu.memory_space<vmem>>, vector<1x4xf32>
    %67 = vector.broadcast %66 : vector<1x4xf32> to vector<256x4xf32>
    %68 = arith.addf %65, %67 : vector<256x4xf32>
    %cst_94 = arith.constant 0.000000e+00 : f32
    %69 = vector.broadcast %cst_94 : f32 to vector<256x4xf32>
    %70 = arith.maximumf %68, %69 : vector<256x4xf32>
    %71 = vector.shape_cast %70 : vector<256x4xf32> to vector<16x16x4xf32>
    %c1_95 = arith.constant 1 : index
    %c1_96 = arith.constant 1 : index
    %c0_97 = arith.constant 0 : index
    %72 = vector.load %arg11[%c1_95, %c1_96, %c0_97] : memref<18x18x4xf32, #tpu.memory_space<vmem>>, vector<16x16x4xf32>
    tpu.vector_store %arg11[%c1_95, %c1_96, %c0_97], %71 {strides = array<i32>} : memref<18x18x4xf32, #tpu.memory_space<vmem>>, vector<16x16x4xf32>,
    %73 = vector.extract_strided_slice %71 {offsets = [0, 0, 0], sizes = [1, 16, 4], strides = [1, 1, 1]} : vector<16x16x4xf32> to vector<1x16x4xf32>
    %c0_98 = arith.constant 0 : index
    %c1_99 = arith.constant 1 : index
    %c0_100 = arith.constant 0 : index
    %74 = vector.load %arg11[%c0_98, %c1_99, %c0_100] : memref<18x18x4xf32, #tpu.memory_space<vmem>>, vector<1x16x4xf32>
    tpu.vector_store %arg11[%c0_98, %c1_99, %c0_100], %73 {strides = array<i32>} : memref<18x18x4xf32, #tpu.memory_space<vmem>>, vector<1x16x4xf32>,
    %75 = vector.extract_strided_slice %71 {offsets = [15, 0, 0], sizes = [1, 16, 4], strides = [1, 1, 1]} : vector<16x16x4xf32> to vector<1x16x4xf32>
    %c17_101 = arith.constant 17 : index
    %c1_102 = arith.constant 1 : index
    %c0_103 = arith.constant 0 : index
    %76 = vector.load %arg11[%c17_101, %c1_102, %c0_103] : memref<18x18x4xf32, #tpu.memory_space<vmem>>, vector<1x16x4xf32>
    tpu.vector_store %arg11[%c17_101, %c1_102, %c0_103], %75 {strides = array<i32>} : memref<18x18x4xf32, #tpu.memory_space<vmem>>, vector<1x16x4xf32>,
    %c0_104 = arith.constant 0 : index
    %c1_105 = arith.constant 1 : index
    %c0_106 = arith.constant 0 : index
    %77 = vector.load %arg11[%c0_104, %c1_105, %c0_106] : memref<18x18x4xf32, #tpu.memory_space<vmem>>, vector<18x1x4xf32>
    %c0_107 = arith.constant 0 : index
    %c0_108 = arith.constant 0 : index
    %c0_109 = arith.constant 0 : index
    %78 = vector.load %arg11[%c0_107, %c0_108, %c0_109] : memref<18x18x4xf32, #tpu.memory_space<vmem>>, vector<18x1x4xf32>
    tpu.vector_store %arg11[%c0_107, %c0_108, %c0_109], %77 {strides = array<i32>} : memref<18x18x4xf32, #tpu.memory_space<vmem>>, vector<18x1x4xf32>,
    %c0_110 = arith.constant 0 : index
    %c16_111 = arith.constant 16 : index
    %c0_112 = arith.constant 0 : index
    %79 = vector.load %arg11[%c0_110, %c16_111, %c0_112] : memref<18x18x4xf32, #tpu.memory_space<vmem>>, vector<18x1x4xf32>
    %c0_113 = arith.constant 0 : index
    %c17_114 = arith.constant 17 : index
    %c0_115 = arith.constant 0 : index
    %80 = vector.load %arg11[%c0_113, %c17_114, %c0_115] : memref<18x18x4xf32, #tpu.memory_space<vmem>>, vector<18x1x4xf32>
    tpu.vector_store %arg11[%c0_113, %c17_114, %c0_115], %79 {strides = array<i32>} : memref<18x18x4xf32, #tpu.memory_space<vmem>>, vector<18x1x4xf32>,
    %cst_116 = arith.constant 0.000000e+00 : f32
    %81 = vector.broadcast %cst_116 : f32 to vector<256x4xf32>
    %c0_117 = arith.constant 0 : index
    %c0_118 = arith.constant 0 : index
    %c0_119 = arith.constant 0 : index
    %82 = vector.load %arg11[%c0_117, %c0_118, %c0_119] : memref<18x18x4xf32, #tpu.memory_space<vmem>>, vector<16x16x4xf32>
    %83 = vector.shape_cast %82 : vector<16x16x4xf32> to vector<256x4xf32>
    %c0_120 = arith.constant 0 : index
    %c0_121 = arith.constant 0 : index
    %c0_122 = arith.constant 0 : index
    %c0_123 = arith.constant 0 : index
    %84 = vector.load %arg4[%c0_120, %c0_121, %c0_122, %c0_123] : memref<3x3x4x4xf32, #tpu.memory_space<vmem>>, vector<1x1x4x4xf32>
    %85 = vector.shape_cast %84 : vector<1x1x4x4xf32> to vector<4x4xf32>
    %cst_124 = arith.constant dense<0.000000e+00> : vector<256x4xf32>
    %86 = tpu.matmul %83, %85, %cst_124 {dimension_numbers = #tpu.dot_dimension_numbers<[1], [0], [0], [1], [0, 0, 1, 1], [], []>} : vector<256x4xf32>, vector<4x4xf32>, vector<256x4xf32> -> vector<256x4xf32>
    %87 = arith.addf %81, %86 : vector<256x4xf32>
    %c0_125 = arith.constant 0 : index
    %c1_126 = arith.constant 1 : index
    %c0_127 = arith.constant 0 : index
    %88 = vector.load %arg11[%c0_125, %c1_126, %c0_127] : memref<18x18x4xf32, #tpu.memory_space<vmem>>, vector<16x16x4xf32>
    %89 = vector.shape_cast %88 : vector<16x16x4xf32> to vector<256x4xf32>
    %c0_128 = arith.constant 0 : index
    %c1_129 = arith.constant 1 : index
    %c0_130 = arith.constant 0 : index
    %c0_131 = arith.constant 0 : index
    %90 = vector.load %arg4[%c0_128, %c1_129, %c0_130, %c0_131] : memref<3x3x4x4xf32, #tpu.memory_space<vmem>>, vector<1x1x4x4xf32>
    %91 = vector.shape_cast %90 : vector<1x1x4x4xf32> to vector<4x4xf32>
    %cst_132 = arith.constant dense<0.000000e+00> : vector<256x4xf32>
    %92 = tpu.matmul %89, %91, %cst_132 {dimension_numbers = #tpu.dot_dimension_numbers<[1], [0], [0], [1], [0, 0, 1, 1], [], []>} : vector<256x4xf32>, vector<4x4xf32>, vector<256x4xf32> -> vector<256x4xf32>
    %93 = arith.addf %87, %92 : vector<256x4xf32>
    %c0_133 = arith.constant 0 : index
    %c2_134 = arith.constant 2 : index
    %c0_135 = arith.constant 0 : index
    %94 = vector.load %arg11[%c0_133, %c2_134, %c0_135] : memref<18x18x4xf32, #tpu.memory_space<vmem>>, vector<16x16x4xf32>
    %95 = vector.shape_cast %94 : vector<16x16x4xf32> to vector<256x4xf32>
    %c0_136 = arith.constant 0 : index
    %c2_137 = arith.constant 2 : index
    %c0_138 = arith.constant 0 : index
    %c0_139 = arith.constant 0 : index
    %96 = vector.load %arg4[%c0_136, %c2_137, %c0_138, %c0_139] : memref<3x3x4x4xf32, #tpu.memory_space<vmem>>, vector<1x1x4x4xf32>
    %97 = vector.shape_cast %96 : vector<1x1x4x4xf32> to vector<4x4xf32>
    %cst_140 = arith.constant dense<0.000000e+00> : vector<256x4xf32>
    %98 = tpu.matmul %95, %97, %cst_140 {dimension_numbers = #tpu.dot_dimension_numbers<[1], [0], [0], [1], [0, 0, 1, 1], [], []>} : vector<256x4xf32>, vector<4x4xf32>, vector<256x4xf32> -> vector<256x4xf32>
    %99 = arith.addf %93, %98 : vector<256x4xf32>
    %c1_141 = arith.constant 1 : index
    %c0_142 = arith.constant 0 : index
    %c0_143 = arith.constant 0 : index
    %100 = vector.load %arg11[%c1_141, %c0_142, %c0_143] : memref<18x18x4xf32, #tpu.memory_space<vmem>>, vector<16x16x4xf32>
    %101 = vector.shape_cast %100 : vector<16x16x4xf32> to vector<256x4xf32>
    %c1_144 = arith.constant 1 : index
    %c0_145 = arith.constant 0 : index
    %c0_146 = arith.constant 0 : index
    %c0_147 = arith.constant 0 : index
    %102 = vector.load %arg4[%c1_144, %c0_145, %c0_146, %c0_147] : memref<3x3x4x4xf32, #tpu.memory_space<vmem>>, vector<1x1x4x4xf32>
    %103 = vector.shape_cast %102 : vector<1x1x4x4xf32> to vector<4x4xf32>
    %cst_148 = arith.constant dense<0.000000e+00> : vector<256x4xf32>
    %104 = tpu.matmul %101, %103, %cst_148 {dimension_numbers = #tpu.dot_dimension_numbers<[1], [0], [0], [1], [0, 0, 1, 1], [], []>} : vector<256x4xf32>, vector<4x4xf32>, vector<256x4xf32> -> vector<256x4xf32>
    %105 = arith.addf %99, %104 : vector<256x4xf32>
    %c1_149 = arith.constant 1 : index
    %c1_150 = arith.constant 1 : index
    %c0_151 = arith.constant 0 : index
    %106 = vector.load %arg11[%c1_149, %c1_150, %c0_151] : memref<18x18x4xf32, #tpu.memory_space<vmem>>, vector<16x16x4xf32>
    %107 = vector.shape_cast %106 : vector<16x16x4xf32> to vector<256x4xf32>
    %c1_152 = arith.constant 1 : index
    %c1_153 = arith.constant 1 : index
    %c0_154 = arith.constant 0 : index
    %c0_155 = arith.constant 0 : index
    %108 = vector.load %arg4[%c1_152, %c1_153, %c0_154, %c0_155] : memref<3x3x4x4xf32, #tpu.memory_space<vmem>>, vector<1x1x4x4xf32>
    %109 = vector.shape_cast %108 : vector<1x1x4x4xf32> to vector<4x4xf32>
    %cst_156 = arith.constant dense<0.000000e+00> : vector<256x4xf32>
    %110 = tpu.matmul %107, %109, %cst_156 {dimension_numbers = #tpu.dot_dimension_numbers<[1], [0], [0], [1], [0, 0, 1, 1], [], []>} : vector<256x4xf32>, vector<4x4xf32>, vector<256x4xf32> -> vector<256x4xf32>
    %111 = arith.addf %105, %110 : vector<256x4xf32>
    %c1_157 = arith.constant 1 : index
    %c2_158 = arith.constant 2 : index
    %c0_159 = arith.constant 0 : index
    %112 = vector.load %arg11[%c1_157, %c2_158, %c0_159] : memref<18x18x4xf32, #tpu.memory_space<vmem>>, vector<16x16x4xf32>
    %113 = vector.shape_cast %112 : vector<16x16x4xf32> to vector<256x4xf32>
    %c1_160 = arith.constant 1 : index
    %c2_161 = arith.constant 2 : index
    %c0_162 = arith.constant 0 : index
    %c0_163 = arith.constant 0 : index
    %114 = vector.load %arg4[%c1_160, %c2_161, %c0_162, %c0_163] : memref<3x3x4x4xf32, #tpu.memory_space<vmem>>, vector<1x1x4x4xf32>
    %115 = vector.shape_cast %114 : vector<1x1x4x4xf32> to vector<4x4xf32>
    %cst_164 = arith.constant dense<0.000000e+00> : vector<256x4xf32>
    %116 = tpu.matmul %113, %115, %cst_164 {dimension_numbers = #tpu.dot_dimension_numbers<[1], [0], [0], [1], [0, 0, 1, 1], [], []>} : vector<256x4xf32>, vector<4x4xf32>, vector<256x4xf32> -> vector<256x4xf32>
    %117 = arith.addf %111, %116 : vector<256x4xf32>
    %c2_165 = arith.constant 2 : index
    %c0_166 = arith.constant 0 : index
    %c0_167 = arith.constant 0 : index
    %118 = vector.load %arg11[%c2_165, %c0_166, %c0_167] : memref<18x18x4xf32, #tpu.memory_space<vmem>>, vector<16x16x4xf32>
    %119 = vector.shape_cast %118 : vector<16x16x4xf32> to vector<256x4xf32>
    %c2_168 = arith.constant 2 : index
    %c0_169 = arith.constant 0 : index
    %c0_170 = arith.constant 0 : index
    %c0_171 = arith.constant 0 : index
    %120 = vector.load %arg4[%c2_168, %c0_169, %c0_170, %c0_171] : memref<3x3x4x4xf32, #tpu.memory_space<vmem>>, vector<1x1x4x4xf32>
    %121 = vector.shape_cast %120 : vector<1x1x4x4xf32> to vector<4x4xf32>
    %cst_172 = arith.constant dense<0.000000e+00> : vector<256x4xf32>
    %122 = tpu.matmul %119, %121, %cst_172 {dimension_numbers = #tpu.dot_dimension_numbers<[1], [0], [0], [1], [0, 0, 1, 1], [], []>} : vector<256x4xf32>, vector<4x4xf32>, vector<256x4xf32> -> vector<256x4xf32>
    %123 = arith.addf %117, %122 : vector<256x4xf32>
    %c2_173 = arith.constant 2 : index
    %c1_174 = arith.constant 1 : index
    %c0_175 = arith.constant 0 : index
    %124 = vector.load %arg11[%c2_173, %c1_174, %c0_175] : memref<18x18x4xf32, #tpu.memory_space<vmem>>, vector<16x16x4xf32>
    %125 = vector.shape_cast %124 : vector<16x16x4xf32> to vector<256x4xf32>
    %c2_176 = arith.constant 2 : index
    %c1_177 = arith.constant 1 : index
    %c0_178 = arith.constant 0 : index
    %c0_179 = arith.constant 0 : index
    %126 = vector.load %arg4[%c2_176, %c1_177, %c0_178, %c0_179] : memref<3x3x4x4xf32, #tpu.memory_space<vmem>>, vector<1x1x4x4xf32>
    %127 = vector.shape_cast %126 : vector<1x1x4x4xf32> to vector<4x4xf32>
    %cst_180 = arith.constant dense<0.000000e+00> : vector<256x4xf32>
    %128 = tpu.matmul %125, %127, %cst_180 {dimension_numbers = #tpu.dot_dimension_numbers<[1], [0], [0], [1], [0, 0, 1, 1], [], []>} : vector<256x4xf32>, vector<4x4xf32>, vector<256x4xf32> -> vector<256x4xf32>
    %129 = arith.addf %123, %128 : vector<256x4xf32>
    %c2_181 = arith.constant 2 : index
    %c2_182 = arith.constant 2 : index
    %c0_183 = arith.constant 0 : index
    %130 = vector.load %arg11[%c2_181, %c2_182, %c0_183] : memref<18x18x4xf32, #tpu.memory_space<vmem>>, vector<16x16x4xf32>
    %131 = vector.shape_cast %130 : vector<16x16x4xf32> to vector<256x4xf32>
    %c2_184 = arith.constant 2 : index
    %c2_185 = arith.constant 2 : index
    %c0_186 = arith.constant 0 : index
    %c0_187 = arith.constant 0 : index
    %132 = vector.load %arg4[%c2_184, %c2_185, %c0_186, %c0_187] : memref<3x3x4x4xf32, #tpu.memory_space<vmem>>, vector<1x1x4x4xf32>
    %133 = vector.shape_cast %132 : vector<1x1x4x4xf32> to vector<4x4xf32>
    %cst_188 = arith.constant dense<0.000000e+00> : vector<256x4xf32>
    %134 = tpu.matmul %131, %133, %cst_188 {dimension_numbers = #tpu.dot_dimension_numbers<[1], [0], [0], [1], [0, 0, 1, 1], [], []>} : vector<256x4xf32>, vector<4x4xf32>, vector<256x4xf32> -> vector<256x4xf32>
    %135 = arith.addf %129, %134 : vector<256x4xf32>
    %c0_189 = arith.constant 0 : index
    %c0_190 = arith.constant 0 : index
    %136 = vector.load %arg5[%c0_189, %c0_190] : memref<1x4xf32, #tpu.memory_space<vmem>>, vector<1x4xf32>
    %137 = vector.broadcast %136 : vector<1x4xf32> to vector<256x4xf32>
    %138 = arith.addf %135, %137 : vector<256x4xf32>
    %cst_191 = arith.constant 0.000000e+00 : f32
    %139 = vector.broadcast %cst_191 : f32 to vector<256x4xf32>
    %140 = arith.maximumf %138, %139 : vector<256x4xf32>
    %141 = vector.shape_cast %140 : vector<256x4xf32> to vector<16x16x4xf32>
    %c1_192 = arith.constant 1 : index
    %c1_193 = arith.constant 1 : index
    %c0_194 = arith.constant 0 : index
    %142 = vector.load %arg11[%c1_192, %c1_193, %c0_194] : memref<18x18x4xf32, #tpu.memory_space<vmem>>, vector<16x16x4xf32>
    tpu.vector_store %arg11[%c1_192, %c1_193, %c0_194], %141 {strides = array<i32>} : memref<18x18x4xf32, #tpu.memory_space<vmem>>, vector<16x16x4xf32>,
    %143 = vector.extract_strided_slice %141 {offsets = [0, 0, 0], sizes = [1, 16, 4], strides = [1, 1, 1]} : vector<16x16x4xf32> to vector<1x16x4xf32>
    %c0_195 = arith.constant 0 : index
    %c1_196 = arith.constant 1 : index
    %c0_197 = arith.constant 0 : index
    %144 = vector.load %arg11[%c0_195, %c1_196, %c0_197] : memref<18x18x4xf32, #tpu.memory_space<vmem>>, vector<1x16x4xf32>
    tpu.vector_store %arg11[%c0_195, %c1_196, %c0_197], %143 {strides = array<i32>} : memref<18x18x4xf32, #tpu.memory_space<vmem>>, vector<1x16x4xf32>,
    %145 = vector.extract_strided_slice %141 {offsets = [15, 0, 0], sizes = [1, 16, 4], strides = [1, 1, 1]} : vector<16x16x4xf32> to vector<1x16x4xf32>
    %c17_198 = arith.constant 17 : index
    %c1_199 = arith.constant 1 : index
    %c0_200 = arith.constant 0 : index
    %146 = vector.load %arg11[%c17_198, %c1_199, %c0_200] : memref<18x18x4xf32, #tpu.memory_space<vmem>>, vector<1x16x4xf32>
    tpu.vector_store %arg11[%c17_198, %c1_199, %c0_200], %145 {strides = array<i32>} : memref<18x18x4xf32, #tpu.memory_space<vmem>>, vector<1x16x4xf32>,
    %c0_201 = arith.constant 0 : index
    %c1_202 = arith.constant 1 : index
    %c0_203 = arith.constant 0 : index
    %147 = vector.load %arg11[%c0_201, %c1_202, %c0_203] : memref<18x18x4xf32, #tpu.memory_space<vmem>>, vector<18x1x4xf32>
    %c0_204 = arith.constant 0 : index
    %c0_205 = arith.constant 0 : index
    %c0_206 = arith.constant 0 : index
    %148 = vector.load %arg11[%c0_204, %c0_205, %c0_206] : memref<18x18x4xf32, #tpu.memory_space<vmem>>, vector<18x1x4xf32>
    tpu.vector_store %arg11[%c0_204, %c0_205, %c0_206], %147 {strides = array<i32>} : memref<18x18x4xf32, #tpu.memory_space<vmem>>, vector<18x1x4xf32>,
    %c0_207 = arith.constant 0 : index
    %c16_208 = arith.constant 16 : index
    %c0_209 = arith.constant 0 : index
    %149 = vector.load %arg11[%c0_207, %c16_208, %c0_209] : memref<18x18x4xf32, #tpu.memory_space<vmem>>, vector<18x1x4xf32>
    %c0_210 = arith.constant 0 : index
    %c17_211 = arith.constant 17 : index
    %c0_212 = arith.constant 0 : index
    %150 = vector.load %arg11[%c0_210, %c17_211, %c0_212] : memref<18x18x4xf32, #tpu.memory_space<vmem>>, vector<18x1x4xf32>
    tpu.vector_store %arg11[%c0_210, %c17_211, %c0_212], %149 {strides = array<i32>} : memref<18x18x4xf32, #tpu.memory_space<vmem>>, vector<18x1x4xf32>,
    %cst_213 = arith.constant 0.000000e+00 : f32
    %151 = vector.broadcast %cst_213 : f32 to vector<256x4xf32>
    %c0_214 = arith.constant 0 : index
    %c0_215 = arith.constant 0 : index
    %c0_216 = arith.constant 0 : index
    %152 = vector.load %arg11[%c0_214, %c0_215, %c0_216] : memref<18x18x4xf32, #tpu.memory_space<vmem>>, vector<16x16x4xf32>
    %153 = vector.shape_cast %152 : vector<16x16x4xf32> to vector<256x4xf32>
    %c0_217 = arith.constant 0 : index
    %c0_218 = arith.constant 0 : index
    %c0_219 = arith.constant 0 : index
    %c0_220 = arith.constant 0 : index
    %154 = vector.load %arg6[%c0_217, %c0_218, %c0_219, %c0_220] : memref<3x3x4x4xf32, #tpu.memory_space<vmem>>, vector<1x1x4x4xf32>
    %155 = vector.shape_cast %154 : vector<1x1x4x4xf32> to vector<4x4xf32>
    %cst_221 = arith.constant dense<0.000000e+00> : vector<256x4xf32>
    %156 = tpu.matmul %153, %155, %cst_221 {dimension_numbers = #tpu.dot_dimension_numbers<[1], [0], [0], [1], [0, 0, 1, 1], [], []>} : vector<256x4xf32>, vector<4x4xf32>, vector<256x4xf32> -> vector<256x4xf32>
    %157 = arith.addf %151, %156 : vector<256x4xf32>
    %c0_222 = arith.constant 0 : index
    %c1_223 = arith.constant 1 : index
    %c0_224 = arith.constant 0 : index
    %158 = vector.load %arg11[%c0_222, %c1_223, %c0_224] : memref<18x18x4xf32, #tpu.memory_space<vmem>>, vector<16x16x4xf32>
    %159 = vector.shape_cast %158 : vector<16x16x4xf32> to vector<256x4xf32>
    %c0_225 = arith.constant 0 : index
    %c1_226 = arith.constant 1 : index
    %c0_227 = arith.constant 0 : index
    %c0_228 = arith.constant 0 : index
    %160 = vector.load %arg6[%c0_225, %c1_226, %c0_227, %c0_228] : memref<3x3x4x4xf32, #tpu.memory_space<vmem>>, vector<1x1x4x4xf32>
    %161 = vector.shape_cast %160 : vector<1x1x4x4xf32> to vector<4x4xf32>
    %cst_229 = arith.constant dense<0.000000e+00> : vector<256x4xf32>
    %162 = tpu.matmul %159, %161, %cst_229 {dimension_numbers = #tpu.dot_dimension_numbers<[1], [0], [0], [1], [0, 0, 1, 1], [], []>} : vector<256x4xf32>, vector<4x4xf32>, vector<256x4xf32> -> vector<256x4xf32>
    %163 = arith.addf %157, %162 : vector<256x4xf32>
    %c0_230 = arith.constant 0 : index
    %c2_231 = arith.constant 2 : index
    %c0_232 = arith.constant 0 : index
    %164 = vector.load %arg11[%c0_230, %c2_231, %c0_232] : memref<18x18x4xf32, #tpu.memory_space<vmem>>, vector<16x16x4xf32>
    %165 = vector.shape_cast %164 : vector<16x16x4xf32> to vector<256x4xf32>
    %c0_233 = arith.constant 0 : index
    %c2_234 = arith.constant 2 : index
    %c0_235 = arith.constant 0 : index
    %c0_236 = arith.constant 0 : index
    %166 = vector.load %arg6[%c0_233, %c2_234, %c0_235, %c0_236] : memref<3x3x4x4xf32, #tpu.memory_space<vmem>>, vector<1x1x4x4xf32>
    %167 = vector.shape_cast %166 : vector<1x1x4x4xf32> to vector<4x4xf32>
    %cst_237 = arith.constant dense<0.000000e+00> : vector<256x4xf32>
    %168 = tpu.matmul %165, %167, %cst_237 {dimension_numbers = #tpu.dot_dimension_numbers<[1], [0], [0], [1], [0, 0, 1, 1], [], []>} : vector<256x4xf32>, vector<4x4xf32>, vector<256x4xf32> -> vector<256x4xf32>
    %169 = arith.addf %163, %168 : vector<256x4xf32>
    %c1_238 = arith.constant 1 : index
    %c0_239 = arith.constant 0 : index
    %c0_240 = arith.constant 0 : index
    %170 = vector.load %arg11[%c1_238, %c0_239, %c0_240] : memref<18x18x4xf32, #tpu.memory_space<vmem>>, vector<16x16x4xf32>
    %171 = vector.shape_cast %170 : vector<16x16x4xf32> to vector<256x4xf32>
    %c1_241 = arith.constant 1 : index
    %c0_242 = arith.constant 0 : index
    %c0_243 = arith.constant 0 : index
    %c0_244 = arith.constant 0 : index
    %172 = vector.load %arg6[%c1_241, %c0_242, %c0_243, %c0_244] : memref<3x3x4x4xf32, #tpu.memory_space<vmem>>, vector<1x1x4x4xf32>
    %173 = vector.shape_cast %172 : vector<1x1x4x4xf32> to vector<4x4xf32>
    %cst_245 = arith.constant dense<0.000000e+00> : vector<256x4xf32>
    %174 = tpu.matmul %171, %173, %cst_245 {dimension_numbers = #tpu.dot_dimension_numbers<[1], [0], [0], [1], [0, 0, 1, 1], [], []>} : vector<256x4xf32>, vector<4x4xf32>, vector<256x4xf32> -> vector<256x4xf32>
    %175 = arith.addf %169, %174 : vector<256x4xf32>
    %c1_246 = arith.constant 1 : index
    %c1_247 = arith.constant 1 : index
    %c0_248 = arith.constant 0 : index
    %176 = vector.load %arg11[%c1_246, %c1_247, %c0_248] : memref<18x18x4xf32, #tpu.memory_space<vmem>>, vector<16x16x4xf32>
    %177 = vector.shape_cast %176 : vector<16x16x4xf32> to vector<256x4xf32>
    %c1_249 = arith.constant 1 : index
    %c1_250 = arith.constant 1 : index
    %c0_251 = arith.constant 0 : index
    %c0_252 = arith.constant 0 : index
    %178 = vector.load %arg6[%c1_249, %c1_250, %c0_251, %c0_252] : memref<3x3x4x4xf32, #tpu.memory_space<vmem>>, vector<1x1x4x4xf32>
    %179 = vector.shape_cast %178 : vector<1x1x4x4xf32> to vector<4x4xf32>
    %cst_253 = arith.constant dense<0.000000e+00> : vector<256x4xf32>
    %180 = tpu.matmul %177, %179, %cst_253 {dimension_numbers = #tpu.dot_dimension_numbers<[1], [0], [0], [1], [0, 0, 1, 1], [], []>} : vector<256x4xf32>, vector<4x4xf32>, vector<256x4xf32> -> vector<256x4xf32>
    %181 = arith.addf %175, %180 : vector<256x4xf32>
    %c1_254 = arith.constant 1 : index
    %c2_255 = arith.constant 2 : index
    %c0_256 = arith.constant 0 : index
    %182 = vector.load %arg11[%c1_254, %c2_255, %c0_256] : memref<18x18x4xf32, #tpu.memory_space<vmem>>, vector<16x16x4xf32>
    %183 = vector.shape_cast %182 : vector<16x16x4xf32> to vector<256x4xf32>
    %c1_257 = arith.constant 1 : index
    %c2_258 = arith.constant 2 : index
    %c0_259 = arith.constant 0 : index
    %c0_260 = arith.constant 0 : index
    %184 = vector.load %arg6[%c1_257, %c2_258, %c0_259, %c0_260] : memref<3x3x4x4xf32, #tpu.memory_space<vmem>>, vector<1x1x4x4xf32>
    %185 = vector.shape_cast %184 : vector<1x1x4x4xf32> to vector<4x4xf32>
    %cst_261 = arith.constant dense<0.000000e+00> : vector<256x4xf32>
    %186 = tpu.matmul %183, %185, %cst_261 {dimension_numbers = #tpu.dot_dimension_numbers<[1], [0], [0], [1], [0, 0, 1, 1], [], []>} : vector<256x4xf32>, vector<4x4xf32>, vector<256x4xf32> -> vector<256x4xf32>
    %187 = arith.addf %181, %186 : vector<256x4xf32>
    %c2_262 = arith.constant 2 : index
    %c0_263 = arith.constant 0 : index
    %c0_264 = arith.constant 0 : index
    %188 = vector.load %arg11[%c2_262, %c0_263, %c0_264] : memref<18x18x4xf32, #tpu.memory_space<vmem>>, vector<16x16x4xf32>
    %189 = vector.shape_cast %188 : vector<16x16x4xf32> to vector<256x4xf32>
    %c2_265 = arith.constant 2 : index
    %c0_266 = arith.constant 0 : index
    %c0_267 = arith.constant 0 : index
    %c0_268 = arith.constant 0 : index
    %190 = vector.load %arg6[%c2_265, %c0_266, %c0_267, %c0_268] : memref<3x3x4x4xf32, #tpu.memory_space<vmem>>, vector<1x1x4x4xf32>
    %191 = vector.shape_cast %190 : vector<1x1x4x4xf32> to vector<4x4xf32>
    %cst_269 = arith.constant dense<0.000000e+00> : vector<256x4xf32>
    %192 = tpu.matmul %189, %191, %cst_269 {dimension_numbers = #tpu.dot_dimension_numbers<[1], [0], [0], [1], [0, 0, 1, 1], [], []>} : vector<256x4xf32>, vector<4x4xf32>, vector<256x4xf32> -> vector<256x4xf32>
    %193 = arith.addf %187, %192 : vector<256x4xf32>
    %c2_270 = arith.constant 2 : index
    %c1_271 = arith.constant 1 : index
    %c0_272 = arith.constant 0 : index
    %194 = vector.load %arg11[%c2_270, %c1_271, %c0_272] : memref<18x18x4xf32, #tpu.memory_space<vmem>>, vector<16x16x4xf32>
    %195 = vector.shape_cast %194 : vector<16x16x4xf32> to vector<256x4xf32>
    %c2_273 = arith.constant 2 : index
    %c1_274 = arith.constant 1 : index
    %c0_275 = arith.constant 0 : index
    %c0_276 = arith.constant 0 : index
    %196 = vector.load %arg6[%c2_273, %c1_274, %c0_275, %c0_276] : memref<3x3x4x4xf32, #tpu.memory_space<vmem>>, vector<1x1x4x4xf32>
    %197 = vector.shape_cast %196 : vector<1x1x4x4xf32> to vector<4x4xf32>
    %cst_277 = arith.constant dense<0.000000e+00> : vector<256x4xf32>
    %198 = tpu.matmul %195, %197, %cst_277 {dimension_numbers = #tpu.dot_dimension_numbers<[1], [0], [0], [1], [0, 0, 1, 1], [], []>} : vector<256x4xf32>, vector<4x4xf32>, vector<256x4xf32> -> vector<256x4xf32>
    %199 = arith.addf %193, %198 : vector<256x4xf32>
    %c2_278 = arith.constant 2 : index
    %c2_279 = arith.constant 2 : index
    %c0_280 = arith.constant 0 : index
    %200 = vector.load %arg11[%c2_278, %c2_279, %c0_280] : memref<18x18x4xf32, #tpu.memory_space<vmem>>, vector<16x16x4xf32>
    %201 = vector.shape_cast %200 : vector<16x16x4xf32> to vector<256x4xf32>
    %c2_281 = arith.constant 2 : index
    %c2_282 = arith.constant 2 : index
    %c0_283 = arith.constant 0 : index
    %c0_284 = arith.constant 0 : index
    %202 = vector.load %arg6[%c2_281, %c2_282, %c0_283, %c0_284] : memref<3x3x4x4xf32, #tpu.memory_space<vmem>>, vector<1x1x4x4xf32>
    %203 = vector.shape_cast %202 : vector<1x1x4x4xf32> to vector<4x4xf32>
    %cst_285 = arith.constant dense<0.000000e+00> : vector<256x4xf32>
    %204 = tpu.matmul %201, %203, %cst_285 {dimension_numbers = #tpu.dot_dimension_numbers<[1], [0], [0], [1], [0, 0, 1, 1], [], []>} : vector<256x4xf32>, vector<4x4xf32>, vector<256x4xf32> -> vector<256x4xf32>
    %205 = arith.addf %199, %204 : vector<256x4xf32>
    %c0_286 = arith.constant 0 : index
    %c0_287 = arith.constant 0 : index
    %206 = vector.load %arg7[%c0_286, %c0_287] : memref<1x4xf32, #tpu.memory_space<vmem>>, vector<1x4xf32>
    %207 = vector.broadcast %206 : vector<1x4xf32> to vector<256x4xf32>
    %208 = arith.addf %205, %207 : vector<256x4xf32>
    %cst_288 = arith.constant 0.000000e+00 : f32
    %209 = vector.broadcast %cst_288 : f32 to vector<256x4xf32>
    %210 = arith.maximumf %208, %209 : vector<256x4xf32>
    %211 = vector.shape_cast %210 : vector<256x4xf32> to vector<16x16x4xf32>
    %c1_289 = arith.constant 1 : index
    %c1_290 = arith.constant 1 : index
    %c0_291 = arith.constant 0 : index
    %212 = vector.load %arg11[%c1_289, %c1_290, %c0_291] : memref<18x18x4xf32, #tpu.memory_space<vmem>>, vector<16x16x4xf32>
    tpu.vector_store %arg11[%c1_289, %c1_290, %c0_291], %211 {strides = array<i32>} : memref<18x18x4xf32, #tpu.memory_space<vmem>>, vector<16x16x4xf32>,
    %213 = vector.extract_strided_slice %211 {offsets = [0, 0, 0], sizes = [1, 16, 4], strides = [1, 1, 1]} : vector<16x16x4xf32> to vector<1x16x4xf32>
    %c0_292 = arith.constant 0 : index
    %c1_293 = arith.constant 1 : index
    %c0_294 = arith.constant 0 : index
    %214 = vector.load %arg11[%c0_292, %c1_293, %c0_294] : memref<18x18x4xf32, #tpu.memory_space<vmem>>, vector<1x16x4xf32>
    tpu.vector_store %arg11[%c0_292, %c1_293, %c0_294], %213 {strides = array<i32>} : memref<18x18x4xf32, #tpu.memory_space<vmem>>, vector<1x16x4xf32>,
    %215 = vector.extract_strided_slice %211 {offsets = [15, 0, 0], sizes = [1, 16, 4], strides = [1, 1, 1]} : vector<16x16x4xf32> to vector<1x16x4xf32>
    %c17_295 = arith.constant 17 : index
    %c1_296 = arith.constant 1 : index
    %c0_297 = arith.constant 0 : index
    %216 = vector.load %arg11[%c17_295, %c1_296, %c0_297] : memref<18x18x4xf32, #tpu.memory_space<vmem>>, vector<1x16x4xf32>
    tpu.vector_store %arg11[%c17_295, %c1_296, %c0_297], %215 {strides = array<i32>} : memref<18x18x4xf32, #tpu.memory_space<vmem>>, vector<1x16x4xf32>,
    %c0_298 = arith.constant 0 : index
    %c1_299 = arith.constant 1 : index
    %c0_300 = arith.constant 0 : index
    %217 = vector.load %arg11[%c0_298, %c1_299, %c0_300] : memref<18x18x4xf32, #tpu.memory_space<vmem>>, vector<18x1x4xf32>
    %c0_301 = arith.constant 0 : index
    %c0_302 = arith.constant 0 : index
    %c0_303 = arith.constant 0 : index
    %218 = vector.load %arg11[%c0_301, %c0_302, %c0_303] : memref<18x18x4xf32, #tpu.memory_space<vmem>>, vector<18x1x4xf32>
    tpu.vector_store %arg11[%c0_301, %c0_302, %c0_303], %217 {strides = array<i32>} : memref<18x18x4xf32, #tpu.memory_space<vmem>>, vector<18x1x4xf32>,
    %c0_304 = arith.constant 0 : index
    %c16_305 = arith.constant 16 : index
    %c0_306 = arith.constant 0 : index
    %219 = vector.load %arg11[%c0_304, %c16_305, %c0_306] : memref<18x18x4xf32, #tpu.memory_space<vmem>>, vector<18x1x4xf32>
    %c0_307 = arith.constant 0 : index
    %c17_308 = arith.constant 17 : index
    %c0_309 = arith.constant 0 : index
    %220 = vector.load %arg11[%c0_307, %c17_308, %c0_309] : memref<18x18x4xf32, #tpu.memory_space<vmem>>, vector<18x1x4xf32>
    tpu.vector_store %arg11[%c0_307, %c17_308, %c0_309], %219 {strides = array<i32>} : memref<18x18x4xf32, #tpu.memory_space<vmem>>, vector<18x1x4xf32>,
    %cst_310 = arith.constant 0.000000e+00 : f32
    %221 = vector.broadcast %cst_310 : f32 to vector<256x1xf32>
    %c0_311 = arith.constant 0 : index
    %c0_312 = arith.constant 0 : index
    %c0_313 = arith.constant 0 : index
    %222 = vector.load %arg11[%c0_311, %c0_312, %c0_313] : memref<18x18x4xf32, #tpu.memory_space<vmem>>, vector<16x16x4xf32>
    %223 = vector.shape_cast %222 : vector<16x16x4xf32> to vector<256x4xf32>
    %c0_314 = arith.constant 0 : index
    %c0_315 = arith.constant 0 : index
    %c0_316 = arith.constant 0 : index
    %c0_317 = arith.constant 0 : index
    %224 = vector.load %arg8[%c0_314, %c0_315, %c0_316, %c0_317] : memref<3x3x4x1xf32, #tpu.memory_space<vmem>>, vector<1x1x4x1xf32>
    %225 = vector.shape_cast %224 : vector<1x1x4x1xf32> to vector<4x1xf32>
    %cst_318 = arith.constant dense<0.000000e+00> : vector<256x1xf32>
    %226 = tpu.matmul %223, %225, %cst_318 {dimension_numbers = #tpu.dot_dimension_numbers<[1], [0], [0], [1], [0, 0, 1, 1], [], []>} : vector<256x4xf32>, vector<4x1xf32>, vector<256x1xf32> -> vector<256x1xf32>
    %227 = arith.addf %221, %226 : vector<256x1xf32>
    %c0_319 = arith.constant 0 : index
    %c1_320 = arith.constant 1 : index
    %c0_321 = arith.constant 0 : index
    %228 = vector.load %arg11[%c0_319, %c1_320, %c0_321] : memref<18x18x4xf32, #tpu.memory_space<vmem>>, vector<16x16x4xf32>
    %229 = vector.shape_cast %228 : vector<16x16x4xf32> to vector<256x4xf32>
    %c0_322 = arith.constant 0 : index
    %c1_323 = arith.constant 1 : index
    %c0_324 = arith.constant 0 : index
    %c0_325 = arith.constant 0 : index
    %230 = vector.load %arg8[%c0_322, %c1_323, %c0_324, %c0_325] : memref<3x3x4x1xf32, #tpu.memory_space<vmem>>, vector<1x1x4x1xf32>
    %231 = vector.shape_cast %230 : vector<1x1x4x1xf32> to vector<4x1xf32>
    %cst_326 = arith.constant dense<0.000000e+00> : vector<256x1xf32>
    %232 = tpu.matmul %229, %231, %cst_326 {dimension_numbers = #tpu.dot_dimension_numbers<[1], [0], [0], [1], [0, 0, 1, 1], [], []>} : vector<256x4xf32>, vector<4x1xf32>, vector<256x1xf32> -> vector<256x1xf32>
    %233 = arith.addf %227, %232 : vector<256x1xf32>
    %c0_327 = arith.constant 0 : index
    %c2_328 = arith.constant 2 : index
    %c0_329 = arith.constant 0 : index
    %234 = vector.load %arg11[%c0_327, %c2_328, %c0_329] : memref<18x18x4xf32, #tpu.memory_space<vmem>>, vector<16x16x4xf32>
    %235 = vector.shape_cast %234 : vector<16x16x4xf32> to vector<256x4xf32>
    %c0_330 = arith.constant 0 : index
    %c2_331 = arith.constant 2 : index
    %c0_332 = arith.constant 0 : index
    %c0_333 = arith.constant 0 : index
    %236 = vector.load %arg8[%c0_330, %c2_331, %c0_332, %c0_333] : memref<3x3x4x1xf32, #tpu.memory_space<vmem>>, vector<1x1x4x1xf32>
    %237 = vector.shape_cast %236 : vector<1x1x4x1xf32> to vector<4x1xf32>
    %cst_334 = arith.constant dense<0.000000e+00> : vector<256x1xf32>
    %238 = tpu.matmul %235, %237, %cst_334 {dimension_numbers = #tpu.dot_dimension_numbers<[1], [0], [0], [1], [0, 0, 1, 1], [], []>} : vector<256x4xf32>, vector<4x1xf32>, vector<256x1xf32> -> vector<256x1xf32>
    %239 = arith.addf %233, %238 : vector<256x1xf32>
    %c1_335 = arith.constant 1 : index
    %c0_336 = arith.constant 0 : index
    %c0_337 = arith.constant 0 : index
    %240 = vector.load %arg11[%c1_335, %c0_336, %c0_337] : memref<18x18x4xf32, #tpu.memory_space<vmem>>, vector<16x16x4xf32>
    %241 = vector.shape_cast %240 : vector<16x16x4xf32> to vector<256x4xf32>
    %c1_338 = arith.constant 1 : index
    %c0_339 = arith.constant 0 : index
    %c0_340 = arith.constant 0 : index
    %c0_341 = arith.constant 0 : index
    %242 = vector.load %arg8[%c1_338, %c0_339, %c0_340, %c0_341] : memref<3x3x4x1xf32, #tpu.memory_space<vmem>>, vector<1x1x4x1xf32>
    %243 = vector.shape_cast %242 : vector<1x1x4x1xf32> to vector<4x1xf32>
    %cst_342 = arith.constant dense<0.000000e+00> : vector<256x1xf32>
    %244 = tpu.matmul %241, %243, %cst_342 {dimension_numbers = #tpu.dot_dimension_numbers<[1], [0], [0], [1], [0, 0, 1, 1], [], []>} : vector<256x4xf32>, vector<4x1xf32>, vector<256x1xf32> -> vector<256x1xf32>
    %245 = arith.addf %239, %244 : vector<256x1xf32>
    %c1_343 = arith.constant 1 : index
    %c1_344 = arith.constant 1 : index
    %c0_345 = arith.constant 0 : index
    %246 = vector.load %arg11[%c1_343, %c1_344, %c0_345] : memref<18x18x4xf32, #tpu.memory_space<vmem>>, vector<16x16x4xf32>
    %247 = vector.shape_cast %246 : vector<16x16x4xf32> to vector<256x4xf32>
    %c1_346 = arith.constant 1 : index
    %c1_347 = arith.constant 1 : index
    %c0_348 = arith.constant 0 : index
    %c0_349 = arith.constant 0 : index
    %248 = vector.load %arg8[%c1_346, %c1_347, %c0_348, %c0_349] : memref<3x3x4x1xf32, #tpu.memory_space<vmem>>, vector<1x1x4x1xf32>
    %249 = vector.shape_cast %248 : vector<1x1x4x1xf32> to vector<4x1xf32>
    %cst_350 = arith.constant dense<0.000000e+00> : vector<256x1xf32>
    %250 = tpu.matmul %247, %249, %cst_350 {dimension_numbers = #tpu.dot_dimension_numbers<[1], [0], [0], [1], [0, 0, 1, 1], [], []>} : vector<256x4xf32>, vector<4x1xf32>, vector<256x1xf32> -> vector<256x1xf32>
    %251 = arith.addf %245, %250 : vector<256x1xf32>
    %c1_351 = arith.constant 1 : index
    %c2_352 = arith.constant 2 : index
    %c0_353 = arith.constant 0 : index
    %252 = vector.load %arg11[%c1_351, %c2_352, %c0_353] : memref<18x18x4xf32, #tpu.memory_space<vmem>>, vector<16x16x4xf32>
    %253 = vector.shape_cast %252 : vector<16x16x4xf32> to vector<256x4xf32>
    %c1_354 = arith.constant 1 : index
    %c2_355 = arith.constant 2 : index
    %c0_356 = arith.constant 0 : index
    %c0_357 = arith.constant 0 : index
    %254 = vector.load %arg8[%c1_354, %c2_355, %c0_356, %c0_357] : memref<3x3x4x1xf32, #tpu.memory_space<vmem>>, vector<1x1x4x1xf32>
    %255 = vector.shape_cast %254 : vector<1x1x4x1xf32> to vector<4x1xf32>
    %cst_358 = arith.constant dense<0.000000e+00> : vector<256x1xf32>
    %256 = tpu.matmul %253, %255, %cst_358 {dimension_numbers = #tpu.dot_dimension_numbers<[1], [0], [0], [1], [0, 0, 1, 1], [], []>} : vector<256x4xf32>, vector<4x1xf32>, vector<256x1xf32> -> vector<256x1xf32>
    %257 = arith.addf %251, %256 : vector<256x1xf32>
    %c2_359 = arith.constant 2 : index
    %c0_360 = arith.constant 0 : index
    %c0_361 = arith.constant 0 : index
    %258 = vector.load %arg11[%c2_359, %c0_360, %c0_361] : memref<18x18x4xf32, #tpu.memory_space<vmem>>, vector<16x16x4xf32>
    %259 = vector.shape_cast %258 : vector<16x16x4xf32> to vector<256x4xf32>
    %c2_362 = arith.constant 2 : index
    %c0_363 = arith.constant 0 : index
    %c0_364 = arith.constant 0 : index
    %c0_365 = arith.constant 0 : index
    %260 = vector.load %arg8[%c2_362, %c0_363, %c0_364, %c0_365] : memref<3x3x4x1xf32, #tpu.memory_space<vmem>>, vector<1x1x4x1xf32>
    %261 = vector.shape_cast %260 : vector<1x1x4x1xf32> to vector<4x1xf32>
    %cst_366 = arith.constant dense<0.000000e+00> : vector<256x1xf32>
    %262 = tpu.matmul %259, %261, %cst_366 {dimension_numbers = #tpu.dot_dimension_numbers<[1], [0], [0], [1], [0, 0, 1, 1], [], []>} : vector<256x4xf32>, vector<4x1xf32>, vector<256x1xf32> -> vector<256x1xf32>
    %263 = arith.addf %257, %262 : vector<256x1xf32>
    %c2_367 = arith.constant 2 : index
    %c1_368 = arith.constant 1 : index
    %c0_369 = arith.constant 0 : index
    %264 = vector.load %arg11[%c2_367, %c1_368, %c0_369] : memref<18x18x4xf32, #tpu.memory_space<vmem>>, vector<16x16x4xf32>
    %265 = vector.shape_cast %264 : vector<16x16x4xf32> to vector<256x4xf32>
    %c2_370 = arith.constant 2 : index
    %c1_371 = arith.constant 1 : index
    %c0_372 = arith.constant 0 : index
    %c0_373 = arith.constant 0 : index
    %266 = vector.load %arg8[%c2_370, %c1_371, %c0_372, %c0_373] : memref<3x3x4x1xf32, #tpu.memory_space<vmem>>, vector<1x1x4x1xf32>
    %267 = vector.shape_cast %266 : vector<1x1x4x1xf32> to vector<4x1xf32>
    %cst_374 = arith.constant dense<0.000000e+00> : vector<256x1xf32>
    %268 = tpu.matmul %265, %267, %cst_374 {dimension_numbers = #tpu.dot_dimension_numbers<[1], [0], [0], [1], [0, 0, 1, 1], [], []>} : vector<256x4xf32>, vector<4x1xf32>, vector<256x1xf32> -> vector<256x1xf32>
    %269 = arith.addf %263, %268 : vector<256x1xf32>
    %c2_375 = arith.constant 2 : index
    %c2_376 = arith.constant 2 : index
    %c0_377 = arith.constant 0 : index
    %270 = vector.load %arg11[%c2_375, %c2_376, %c0_377] : memref<18x18x4xf32, #tpu.memory_space<vmem>>, vector<16x16x4xf32>
    %271 = vector.shape_cast %270 : vector<16x16x4xf32> to vector<256x4xf32>
    %c2_378 = arith.constant 2 : index
    %c2_379 = arith.constant 2 : index
    %c0_380 = arith.constant 0 : index
    %c0_381 = arith.constant 0 : index
    %272 = vector.load %arg8[%c2_378, %c2_379, %c0_380, %c0_381] : memref<3x3x4x1xf32, #tpu.memory_space<vmem>>, vector<1x1x4x1xf32>
    %273 = vector.shape_cast %272 : vector<1x1x4x1xf32> to vector<4x1xf32>
    %cst_382 = arith.constant dense<0.000000e+00> : vector<256x1xf32>
    %274 = tpu.matmul %271, %273, %cst_382 {dimension_numbers = #tpu.dot_dimension_numbers<[1], [0], [0], [1], [0, 0, 1, 1], [], []>} : vector<256x4xf32>, vector<4x1xf32>, vector<256x1xf32> -> vector<256x1xf32>
    %275 = arith.addf %269, %274 : vector<256x1xf32>
    %c0_383 = arith.constant 0 : index
    %c0_384 = arith.constant 0 : index
    %276 = vector.load %arg9[%c0_383, %c0_384] : memref<1x1xf32, #tpu.memory_space<vmem>>, vector<1x1xf32>
    %277 = vector.broadcast %276 : vector<1x1xf32> to vector<256x1xf32>
    %278 = arith.addf %275, %277 : vector<256x1xf32>
    %cst_385 = arith.constant 0.000000e+00 : f32
    %279 = vector.broadcast %cst_385 : f32 to vector<256x1xf32>
    %280 = arith.subf %279, %278 : vector<256x1xf32>
    %281 = math.exp %280 : vector<256x1xf32>
    %cst_386 = arith.constant 1.000000e+00 : f32
    %282 = vector.broadcast %cst_386 : f32 to vector<256x1xf32>
    %283 = arith.addf %282, %281 : vector<256x1xf32>
    %cst_387 = arith.constant 1.000000e+00 : f32
    %284 = vector.broadcast %cst_387 : f32 to vector<256x1xf32>
    %285 = arith.divf %284, %283 : vector<256x1xf32>
    %286 = vector.shape_cast %285 : vector<256x1xf32> to vector<16x16x1xf32>
    %c0_388 = arith.constant 0 : index
    %c0_389 = arith.constant 0 : index
    %c0_390 = arith.constant 0 : index
    %c0_391 = arith.constant 0 : index
    %287 = vector.load %arg10[%c0_388, %c0_389, %c0_390, %c0_391] : memref<1x16x16x1xf32, #tpu.memory_space<vmem>>, vector<1x16x16x1xf32>
    %288 = vector.shape_cast %287 : vector<1x16x16x1xf32> to vector<16x16x1xf32>
    %289 = vector.shape_cast %286 : vector<16x16x1xf32> to vector<1x16x16x1xf32>
    tpu.vector_store %arg10[%c0_388, %c0_389, %c0_390, %c0_391], %289 {strides = array<i32>} : memref<1x16x16x1xf32, #tpu.memory_space<vmem>>, vector<1x16x16x1xf32>,
    return
  }
  func.func @transform_0(%arg0: i32) -> (i32, i32, i32, i32) {
    %c0_i32 = arith.constant 0 : i32
    %c0_i32_0 = arith.constant 0 : i32
    %c0_i32_1 = arith.constant 0 : i32
    %c0_i32_2 = arith.constant 0 : i32
    return %arg0, %c0_i32, %c0_i32_0, %c0_i32_1 : i32, i32, i32, i32
  }
  func.func @transform_1(%arg0: i32) -> (i32, i32, i32, i32) {
    %c0_i32 = arith.constant 0 : i32
    %c0_i32_0 = arith.constant 0 : i32
    %c0_i32_1 = arith.constant 0 : i32
    %c0_i32_2 = arith.constant 0 : i32
    %c0_i32_3 = arith.constant 0 : i32
    return %c0_i32, %c0_i32_0, %c0_i32_1, %c0_i32_2 : i32, i32, i32, i32
  }
  func.func @transform_2(%arg0: i32) -> (i32, i32) {
    %c0_i32 = arith.constant 0 : i32
    %c0_i32_0 = arith.constant 0 : i32
    %c0_i32_1 = arith.constant 0 : i32
    return %c0_i32, %c0_i32_0 : i32, i32
  }
  func.func @transform_3(%arg0: i32) -> (i32, i32, i32, i32) {
    %c0_i32 = arith.constant 0 : i32
    %c0_i32_0 = arith.constant 0 : i32
    %c0_i32_1 = arith.constant 0 : i32
    %c0_i32_2 = arith.constant 0 : i32
    %c0_i32_3 = arith.constant 0 : i32
    return %c0_i32, %c0_i32_0, %c0_i32_1, %c0_i32_2 : i32, i32, i32, i32
  }
  func.func @transform_4(%arg0: i32) -> (i32, i32) {
    %c0_i32 = arith.constant 0 : i32
    %c0_i32_0 = arith.constant 0 : i32
    %c0_i32_1 = arith.constant 0 : i32
    return %c0_i32, %c0_i32_0 : i32, i32
  }
  func.func @transform_5(%arg0: i32) -> (i32, i32, i32, i32) {
    %c0_i32 = arith.constant 0 : i32
    %c0_i32_0 = arith.constant 0 : i32
    %c0_i32_1 = arith.constant 0 : i32
    %c0_i32_2 = arith.constant 0 : i32
    %c0_i32_3 = arith.constant 0 : i32
    return %c0_i32, %c0_i32_0, %c0_i32_1, %c0_i32_2 : i32, i32, i32, i32
  }
  func.func @transform_6(%arg0: i32) -> (i32, i32) {
    %c0_i32 = arith.constant 0 : i32
    %c0_i32_0 = arith.constant 0 : i32
    %c0_i32_1 = arith.constant 0 : i32
    return %c0_i32, %c0_i32_0 : i32, i32
  }
  func.func @transform_7(%arg0: i32) -> (i32, i32, i32, i32) {
    %c0_i32 = arith.constant 0 : i32
    %c0_i32_0 = arith.constant 0 : i32
    %c0_i32_1 = arith.constant 0 : i32
    %c0_i32_2 = arith.constant 0 : i32
    %c0_i32_3 = arith.constant 0 : i32
    return %c0_i32, %c0_i32_0, %c0_i32_1, %c0_i32_2 : i32, i32, i32, i32
  }
  func.func @transform_8(%arg0: i32) -> (i32, i32) {
    %c0_i32 = arith.constant 0 : i32
    %c0_i32_0 = arith.constant 0 : i32
    %c0_i32_1 = arith.constant 0 : i32
    return %c0_i32, %c0_i32_0 : i32, i32
  }
  func.func @transform_9(%arg0: i32) -> (i32, i32, i32, i32) {
    %c0_i32 = arith.constant 0 : i32
    %c0_i32_0 = arith.constant 0 : i32
    %c0_i32_1 = arith.constant 0 : i32
    %c0_i32_2 = arith.constant 0 : i32
    return %arg0, %c0_i32, %c0_i32_0, %c0_i32_1 : i32, i32, i32, i32
  }
}

</mosaic_0001>

<bundles_post_ra>
// kernel: tpu_custom_call.1
= control target key start
LH: loop header
LB: loop body
LE: loop exit
PB: predicated region body
PF: predicated region fallthrough
CT: control target
= control target key end

     0   :  { %s19542_s11 = smov 0   ;;  %s25797_s0 = inlined_call_operand.vmem [shape: f32[2,16,16,4], index: 0, kind: input, shape index: {}]   ;;  %s25798_s1 = inlined_call_operand.vmem [shape: f32[3,3,4,4], index: 1, kind: input, shape index: {}]   ;;  %s25799_s2 = inlined_call_operand.vmem [shape: f32[1,4], index: 2, kind: input, shape index: {}]   ;;  %s25800_s3 = inlined_call_operand.vmem [shape: f32[3,3,4,4], index: 3, kind: input, shape index: {}]   ;;  %s25801_s4 = inlined_call_operand.vmem [shape: f32[1,4], index: 4, kind: input, shape index: {}]   ;;  %s25802_s5 = inlined_call_operand.vmem [shape: f32[3,3,4,4], index: 5, kind: input, shape index: {}]   ;;  %s25803_s6 = inlined_call_operand.vmem [shape: f32[1,4], index: 6, kind: input, shape index: {}]   ;;  %s25804_s7 = inlined_call_operand.vmem [shape: f32[3,3,4,1], index: 7, kind: input, shape index: {}]   ;;  %s25805_s8 = inlined_call_operand.<no memory space> [shape: f32[1,1], index: 8, kind: input, shape index: {}]   ;;  %s25806_s9 = inlined_call_operand.vmem [shape: f32[2,16,16,1], index: 9, kind: output, shape index: {}]  }
   0x1   :  { %v14_v0 = vstv %s25805_s8 }
   0x2   :  { %15 = vst [vmem:[#allocation3] sm:$0x1] %v14_v0 }
   0x3 LB: > { %s15117_s12 = sadd.s32 4294967295, %s19487_s11   ;;  %p15121_p0 = scmp.ge.s32.totalorder %s19487_s11, 1  ;;  %s19487_s11 = sphi %s19542_s11, %s21_s11  }
   0x4   : > { %p289_p1 = scmp.lt.s32.totalorder %s19487_s11, 3 }
   0x6   : > { %p290_p2 = pnand %p15121_p0, %p289_p1 }
   0x8   : > { %293 = sbr.rel (%p290_p2) target bundleno = 2007 (0x7d7), region = 56 }
   0xd   : > { %v15126_v1 = vld [vmem:[%s25798_s1 + $0x4] sm:$0xf]  ;;  %vm642_vm0 = vcmask 1043456   ;;  %p325_p3 = scmp.lt.s32.totalorder %s15117_s12, 1  ;;  %v19557_v2 = vld [vmem:[%s25798_s1 + $0x8] sm:$0xf] }
   0xe   : > { %17542 = vmatprep.subr.msk.mxu0 %vm642_vm0, %v15126_v1  ;;  %v511_v3 = vld [vmem:[%s25798_s1] sm:$0xf]  ;;  %v19565_v4 = vld [vmem:[%s25798_s1 + $0xc] sm:$0xf]  ;;  %vm368_vm1 = vcmask 31744   ;;  %vm424_vm2 = vcmask 24576  }
   0xf   : > { %17543 = vmatpush3.msk.msra.mxu0 %vm642_vm0, %v15126_v1  ;;  %s26880_s12 = smov (!%p325_p3, %s15117_s12), 1  ;;  %17592 = vmatprep.subr.msk.mxu1 %vm642_vm0, %v511_v3  ;;  %v19640_v33 = vld [vmem:[%s25798_s1 + $0x10] sm:$0xf]  ;;  %vm15029_vm3 = vcmask 7168  }
  0x10   : > { %17642 = vmatprep.subr.msk.mxu0 %vm642_vm0, %v19557_v2  ;;  %17593 = vmatpush3.msk.msra.mxu1 %vm642_vm0, %v511_v3  ;;  %s16352_s20 = sshll.u32 %s26880_s12, 8 }
  0x11   : > { %17692 = vmatprep.subr.msk.mxu1 %vm642_vm0, %v19565_v4  ;;  %s19582_s23 = scalar_lea.vmem %s25797_s0, %s16352_s20  ;;  %s25680_s19 = scalar_lea.vmem %s25806_s9, %s16352_s20 }
  0x12   : > { %v335_v5 = vld [vmem:[%s19582_s23] sm:$0xff]  ;;  %v336_v6 = vld [vmem:[%s19582_s23 + $0x8] sm:$0xff]  ;;  %v337_v7 = vld [vmem:[%s19582_s23 + $0x10] sm:$0xff] }
  0x13   : > { %369 = vst.msk [vmem:[#allocation2 + $0x19] sm:$0xff] %vm368_vm1, %v335_v5  ;;  %401 = vst.msk [vmem:[#allocation2 + $0x1] sm:$0xff] %vm368_vm1, %v335_v5  ;;  %v338_v8 = vld [vmem:[%s19582_s23 + $0x18] sm:$0xff]  ;;  %v339_v9 = vld [vmem:[%s19582_s23 + $0x20] sm:$0xff] }
  0x14   : > { %402 = vst.msk [vmem:[#allocation2 + $0x9] sm:$0xff] %vm368_vm1, %v336_v6  ;;  %370 = vst.msk [vmem:[#allocation2 + $0x21] sm:$0xff] %vm368_vm1, %v336_v6  ;;  %v340_v10 = vld [vmem:[%s19582_s23 + $0x28] sm:$0xff]  ;;  %v341_v11 = vld [vmem:[%s19582_s23 + $0x30] sm:$0xff] }
  0x15   : > { %371 = vst.msk [vmem:[#allocation2 + $0x31] sm:$0xff] %vm368_vm1, %v337_v7  ;;  %372 = vst.msk [vmem:[#allocation2 + $0x39] sm:$0xff] %vm368_vm1, %v338_v8  ;;  %v342_v12 = vld [vmem:[%s19582_s23 + $0x38] sm:$0xff]  ;;  %v343_v13 = vld [vmem:[%s19582_s23 + $0x40] sm:$0xff] }
  0x16   : > { %373 = vst.msk [vmem:[#allocation2 + $0x49] sm:$0xff] %vm368_vm1, %v339_v9  ;;  %374 = vst.msk [vmem:[#allocation2 + $0x51] sm:$0xff] %vm368_vm1, %v340_v10  ;;  %v344_v14 = vld [vmem:[%s19582_s23 + $0x48] sm:$0xff]  ;;  %v345_v15 = vld [vmem:[%s19582_s23 + $0x50] sm:$0xff] }
  0x17   : > { %375 = vst.msk [vmem:[#allocation2 + $0x61] sm:$0xff] %vm368_vm1, %v341_v11  ;;  %376 = vst.msk [vmem:[#allocation2 + $0x69] sm:$0xff] %vm368_vm1, %v342_v12  ;;  %v346_v16 = vld [vmem:[%s19582_s23 + $0x58] sm:$0xff]  ;;  %v347_v17 = vld [vmem:[%s19582_s23 + $0x60] sm:$0xff] }
  0x18   : > { %377 = vst.msk [vmem:[#allocation2 + $0x79] sm:$0xff] %vm368_vm1, %v343_v13  ;;  %378 = vst.msk [vmem:[#allocation2 + $0x81] sm:$0xff] %vm368_vm1, %v344_v14  ;;  %v348_v18 = vld [vmem:[%s19582_s23 + $0x68] sm:$0xff]  ;;  %v349_v19 = vld [vmem:[%s19582_s23 + $0x70] sm:$0xff] }
  0x19   : > { %379 = vst.msk [vmem:[#allocation2 + $0x91] sm:$0xff] %vm368_vm1, %v345_v15  ;;  %380 = vst.msk [vmem:[#allocation2 + $0x99] sm:$0xff] %vm368_vm1, %v346_v16  ;;  %v350_v20 = vld [vmem:[%s19582_s23 + $0x78] sm:$0xff]  ;;  %v351_v21 = vld [vmem:[%s19582_s23 + $0x80] sm:$0xff] }
  0x1a   : > { %381 = vst.msk [vmem:[#allocation2 + $0xa9] sm:$0xff] %vm368_vm1, %v347_v17  ;;  %382 = vst.msk [vmem:[#allocation2 + $0xb1] sm:$0xff] %vm368_vm1, %v348_v18  ;;  %v352_v22 = vld [vmem:[%s19582_s23 + $0x88] sm:$0xff]  ;;  %v353_v23 = vld [vmem:[%s19582_s23 + $0x90] sm:$0xff] }
  0x1b   : > { %383 = vst.msk [vmem:[#allocation2 + $0xc1] sm:$0xff] %vm368_vm1, %v349_v19  ;;  %384 = vst.msk [vmem:[#allocation2 + $0xc9] sm:$0xff] %vm368_vm1, %v350_v20  ;;  %v354_v24 = vld [vmem:[%s19582_s23 + $0x98] sm:$0xff]  ;;  %v355_v25 = vld [vmem:[%s19582_s23 + $0xa0] sm:$0xff] }
  0x1c   : > { %385 = vst.msk [vmem:[#allocation2 + $0xd9] sm:$0xff] %vm368_vm1, %v351_v21  ;;  %386 = vst.msk [vmem:[#allocation2 + $0xe1] sm:$0xff] %vm368_vm1, %v352_v22  ;;  %v356_v26 = vld [vmem:[%s19582_s23 + $0xa8] sm:$0xff]  ;;  %v357_v27 = vld [vmem:[%s19582_s23 + $0xb0] sm:$0xff] }
  0x1d   : > { %387 = vst.msk [vmem:[#allocation2 + $0xf1] sm:$0xff] %vm368_vm1, %v353_v23  ;;  %388 = vst.msk [vmem:[#allocation2 + $0xf9] sm:$0xff] %vm368_vm1, %v354_v24  ;;  %v358_v28 = vld [vmem:[%s19582_s23 + $0xb8] sm:$0xff]  ;;  %v512_v29 = vld [vmem:[#allocation2 + $0x1] sm:$0xff] }
  0x1e   : > { %389 = vst.msk [vmem:[#allocation2 + $0x109] sm:$0xff] %vm368_vm1, %v355_v25  ;;  %v513_v30 = vld [vmem:[#allocation2 + $0x9] sm:$0xff]  ;;  %v19631_v31 = vld [vmem:[#allocation2 + $0x19] sm:$0xff]  ;;  %390 = vst.msk [vmem:[#allocation2 + $0x111] sm:$0xff] %vm368_vm1, %v356_v26  ;;  %17544 = vmatprep.mubr.msk.f32.mxu0 %vm368_vm1, %v512_v29 }
  0x1f   : > { %391 = vst.msk [vmem:[#allocation2 + $0x121] sm:$0xff] %vm368_vm1, %v357_v27  ;;  %392 = vst.msk [vmem:[#allocation2 + $0x129] sm:$0xff] %vm368_vm1, %v358_v28  ;;  %v406_v32 = vld [vmem:[#allocation2 + $0x1] sm:$0x1]  ;;  %17545 = vmatmul.mubr.msk.f32.vlgmr.msra.gmra.mxu0 %vm368_vm1, %v513_v30  ;;  %v407_v35 = vld [vmem:[#allocation2 + $0x19] sm:$0x1] }
  0x20   : > { %425 = vst.msk [vmem:[#allocation2] sm:$0x1] %vm424_vm2, %v406_v32  ;;  %17643 = vmatpush3.msk.msra.mxu0 %vm642_vm0, %v19557_v2  ;;  %17547 = vmatprep.mubr.msk.f32.mxu0 %vm368_vm1, %v19631_v31  ;;  %v19648_v34 = vld [vmem:[#allocation2 + $0x21] sm:$0xff]  ;;  %v19650_v36 = vld [vmem:[#allocation2 + $0x31] sm:$0xff]  ;;  %426 = vst.msk [vmem:[#allocation2 + $0x18] sm:$0x1] %vm424_vm2, %v407_v35 }
  0x21   : > { %v408_v37 = vld [vmem:[#allocation2 + $0x31] sm:$0x1]  ;;  %17742 = vmatprep.subr.msk.mxu0 %vm642_vm0, %v19640_v33  ;;  %v409_v38 = vld [vmem:[#allocation2 + $0x49] sm:$0x1]  ;;  %v19661_v39 = vld [vmem:[#allocation2 + $0x39] sm:$0xff] }
  0x22   : > { %427 = vst.msk [vmem:[#allocation2 + $0x30] sm:$0x1] %vm424_vm2, %v408_v37  ;;  %428 = vst.msk [vmem:[#allocation2 + $0x48] sm:$0x1] %vm424_vm2, %v409_v38  ;;  %v410_v40 = vld [vmem:[#allocation2 + $0x61] sm:$0x1] }
  0x23   : > { %17548 = vmatmul.mubr.msk.f32.gmra.mxu0 %vm368_vm1, %v19648_v34  ;;  %v480_v41 = vld [vmem:[#allocation2 + $0x8] sm:$0xff]  ;;  %429 = vst.msk [vmem:[#allocation2 + $0x60] sm:$0x1] %vm424_vm2, %v410_v40  ;;  %v411_v43 = vld [vmem:[#allocation2 + $0x79] sm:$0x1]  ;;  %v19675_v47 = vld [vmem:[#allocation2 + $0x51] sm:$0xff] }
  0x24   : > { %17550 = vmatprep.mubr.msk.f32.mxu0 %vm368_vm1, %v19650_v36  ;;  %v19663_v42 = vld [vmem:[#allocation2 + $0x49] sm:$0xff]  ;;  %430 = vst.msk [vmem:[#allocation2 + $0x78] sm:$0x1] %vm424_vm2, %v411_v43  ;;  %v412_v45 = vld [vmem:[#allocation2 + $0x91] sm:$0x1]  ;;  %v19680_v49 = vld [vmem:[#allocation2 + $0x20] sm:$0xff] }
  0x25   : > { %431 = vst.msk [vmem:[#allocation2 + $0x90] sm:$0x1] %vm424_vm2, %v412_v45  ;;  %v413_v48 = vld [vmem:[#allocation2 + $0xa9] sm:$0x1]  ;;  %v19682_v50 = vld [vmem:[#allocation2 + $0x61] sm:$0xff]  ;;  %v19700_v55 = vld [vmem:[#allocation2 + $0x38] sm:$0xff] }
  0x26   : > { %432 = vst.msk [vmem:[#allocation2 + $0xa8] sm:$0x1] %vm424_vm2, %v413_v48  ;;  %v414_v52 = vld [vmem:[#allocation2 + $0xc1] sm:$0x1]  ;;  %v19696_v53 = vld [vmem:[#allocation2 + $0x69] sm:$0xff]  ;;  %25926 = vst [vmem:[#allocation5_spill] sm:$0xff] %v19700_v55 }
  0x27   : > { %v479_v44 = vld [vmem:[#allocation2] sm:$0xff]  ;;  %17551 = vmatmul.mubr.msk.f32.gmra.mxu0 %vm368_vm1, %v19661_v39  ;;  %v19673_v46 = vld [vmem:[#allocation2 + $0x18] sm:$0xff]  ;;  %433 = vst.msk [vmem:[#allocation2 + $0xc0] sm:$0x1] %vm424_vm2, %v414_v52  ;;  %v416_v58 = vld [vmem:[#allocation2 + $0xf1] sm:$0x1] }
  0x28   : > { %17594 = vmatprep.mubr.msk.f32.mxu1 %vm368_vm1, %v479_v44  ;;  %17553 = vmatprep.mubr.msk.f32.mxu0 %vm368_vm1, %v19663_v42  ;;  %v415_v54 = vld [vmem:[#allocation2 + $0xd9] sm:$0x1]  ;;  %v19709_v59 = vld [vmem:[#allocation2 + $0x81] sm:$0xff]  ;;  %435 = vst.msk [vmem:[#allocation2 + $0xf0] sm:$0x1] %vm424_vm2, %v416_v58  ;;  %v19717_v62 = vld [vmem:[#allocation2 + $0x50] sm:$0xff] }
  0x29   : > { %17595 = vmatmul.mubr.msk.f32.vlgmr.msra.gmra.mxu1 %vm368_vm1, %v480_v41  ;;  %v19687_v51 = vld [vmem:[#allocation2 + $0x30] sm:$0xff]  ;;  %v19702_v56 = vld [vmem:[#allocation2 + $0x79] sm:$0xff]  ;;  %434 = vst.msk [vmem:[#allocation2 + $0xd8] sm:$0x1] %vm424_vm2, %v415_v54  ;;  %v19705_v57 = vld [vmem:[#allocation2 + $0x48] sm:$0xff] }
  0x2a   : > { %17597 = vmatprep.mubr.msk.f32.mxu1 %vm368_vm1, %v19673_v46  ;;  %17693 = vmatpush3.msk.msra.mxu1 %vm642_vm0, %v19565_v4  ;;  %25925 = vst [vmem:[#allocation4_spill] sm:$0xff] %v19687_v51  ;;  %25927 = vst [vmem:[#allocation6_spill] sm:$0xff] %v19705_v57  ;;  %v359_v60 = vld [vmem:[%s19582_s23 + $0xc0] sm:$0xff]  ;;  %v417_v61 = vld [vmem:[#allocation2 + $0x109] sm:$0x1] }
  0x2b   : > { %17554 = vmatmul.mubr.msk.f32.gmra.mxu0 %vm368_vm1, %v19675_v47  ;;  %25928 = vst [vmem:[#allocation7_spill] sm:$0xff] %v19717_v62  ;;  %v19719_v63 = vld [vmem:[#allocation2 + $0x91] sm:$0xff]  ;;  %393 = vst.msk [vmem:[#allocation2 + $0x139] sm:$0xff] %vm368_vm1, %v359_v60  ;;  %v360_v0 = vld [vmem:[%s19582_s23 + $0xc8] sm:$0xff] }
  0x2c   : > { %17556 = vmatprep.mubr.msk.f32.mxu0 %vm368_vm1, %v19682_v50  ;;  %436 = vst.msk [vmem:[#allocation2 + $0x108] sm:$0x1] %vm424_vm2, %v417_v61  ;;  %v361_v1 = vld [vmem:[%s19582_s23 + $0xd0] sm:$0xff]  ;;  %v418_v2 = vld [vmem:[#allocation2 + $0x121] sm:$0x1]  ;;  %v362_v3 = vld [vmem:[%s19582_s23 + $0xd8] sm:$0xff] }
  0x2d   : > { %17598 = vmatmul.mubr.msk.f32.gmra.mxu1 %vm368_vm1, %v19680_v49  ;;  %394 = vst.msk [vmem:[#allocation2 + $0x141] sm:$0xff] %vm368_vm1, %v360_v0  ;;  %v19729_v4 = vld [vmem:[#allocation2 + $0x60] sm:$0xff]  ;;  %395 = vst.msk [vmem:[#allocation2 + $0x151] sm:$0xff] %vm368_vm1, %v361_v1  ;;  %v364_v6 = vld [vmem:[%s19582_s23 + $0xe8] sm:$0xff] }
  0x2e   : > { %17600 = vmatprep.mubr.msk.f32.mxu1 %vm368_vm1, %v19687_v51  ;;  %25929 = vst [vmem:[#allocation8_spill] sm:$0xff] %v19729_v4  ;;  %437 = vst.msk [vmem:[#allocation2 + $0x120] sm:$0x1] %vm424_vm2, %v418_v2  ;;  %v363_v5 = vld [vmem:[%s19582_s23 + $0xe0] sm:$0xff]  ;;  %v443_v7 = vld [vmem:[#allocation2 + $0x10] sm:$0x1] }
  0x2f   : > { %17557 = vmatmul.mubr.msk.f32.gmra.mxu0 %vm368_vm1, %v19696_v53  ;;  %396 = vst.msk [vmem:[#allocation2 + $0x159] sm:$0xff] %vm368_vm1, %v362_v3  ;;  %397 = vst.msk [vmem:[#allocation2 + $0x169] sm:$0xff] %vm368_vm1, %v363_v5  ;;  %v19743_v8 = vld [vmem:[#allocation2 + $0x99] sm:$0xff]  ;;  %v444_v9 = vld [vmem:[#allocation2 + $0x28] sm:$0x1] }
  0x30   : > { %17559 = vmatprep.mubr.msk.f32.mxu0 %vm368_vm1, %v19702_v56  ;;  %398 = vst.msk [vmem:[#allocation2 + $0x171] sm:$0xff] %vm368_vm1, %v364_v6  ;;  %v19749_v10 = vld [vmem:[#allocation2 + $0x68] sm:$0xff]  ;;  %v445_v12 = vld [vmem:[#allocation2 + $0x40] sm:$0x1]  ;;  %v19754_v13 = vld [vmem:[#allocation2 + $0x78] sm:$0xff] }
  0x31   : > { %17601 = vmatmul.mubr.msk.f32.gmra.mxu1 %vm368_vm1, %v19700_v55  ;;  %461 = vst.msk [vmem:[#allocation2 + $0x11] sm:$0x1] %vm424_vm2, %v443_v7  ;;  %25930 = vst [vmem:[#allocation9_spill] sm:$0xff] %v19749_v10  ;;  %v19751_v11 = vld [vmem:[#allocation2 + $0xa9] sm:$0xff]  ;;  %v446_v14 = vld [vmem:[#allocation2 + $0x58] sm:$0x1] }
  0x32   : > { %17603 = vmatprep.mubr.msk.f32.mxu1 %vm368_vm1, %v19705_v57  ;;  %462 = vst.msk [vmem:[#allocation2 + $0x29] sm:$0x1] %vm424_vm2, %v444_v9  ;;  %25931 = vst [vmem:[#allocation10_spill] sm:$0xff] %v19754_v13  ;;  %v419_v15 = vld [vmem:[#allocation2 + $0x139] sm:$0x1]  ;;  %v19764_v16 = vld [vmem:[#allocation2 + $0xb1] sm:$0xff] }
  0x33   : > { %17560 = vmatmul.mubr.msk.f32.gmra.mxu0 %vm368_vm1, %v19709_v59  ;;  %463 = vst.msk [vmem:[#allocation2 + $0x41] sm:$0x1] %vm424_vm2, %v445_v12  ;;  %464 = vst.msk [vmem:[#allocation2 + $0x59] sm:$0x1] %vm424_vm2, %v446_v14  ;;  %v447_v17 = vld [vmem:[#allocation2 + $0x70] sm:$0x1] }
  0x34   : > { %17562 = vmatprep.mubr.msk.f32.mxu0 %vm368_vm1, %v19719_v63  ;;  %438 = vst.msk [vmem:[#allocation2 + $0x138] sm:$0x1] %vm424_vm2, %v419_v15  ;;  %v19769_v18 = vld [vmem:[#allocation2 + $0x80] sm:$0xff]  ;;  %465 = vst.msk [vmem:[#allocation2 + $0x71] sm:$0x1] %vm424_vm2, %v447_v17  ;;  %v19774_v20 = vld [vmem:[#allocation2 + $0x90] sm:$0xff] }
  0x35   : > { %17604 = vmatmul.mubr.msk.f32.gmra.mxu1 %vm368_vm1, %v19717_v62  ;;  %25932 = vst [vmem:[#allocation11_spill] sm:$0xff] %v19769_v18  ;;  %v19771_v19 = vld [vmem:[#allocation2 + $0xc1] sm:$0xff]  ;;  %25933 = vst [vmem:[#allocation12_spill] sm:$0xff] %v19774_v20  ;;  %v420_v21 = vld [vmem:[#allocation2 + $0x151] sm:$0x1] }
  0x36   : > { %17606 = vmatprep.mubr.msk.f32.mxu1 %vm368_vm1, %v19729_v4  ;;  %439 = vst.msk [vmem:[#allocation2 + $0x150] sm:$0x1] %vm424_vm2, %v420_v21  ;;  %v421_v22 = vld [vmem:[#allocation2 + $0x169] sm:$0x1]  ;;  %v19788_v24 = vld [vmem:[#allocation2 + $0x98] sm:$0xff]  ;;  %v19802_v30 = vld [vmem:[#allocation2 + $0xe1] sm:$0xff] }
  0x37   : > { %17563 = vmatmul.mubr.msk.f32.gmra.mxu0 %vm368_vm1, %v19743_v8  ;;  %v19783_v23 = vld [vmem:[#allocation2 + $0xc9] sm:$0xff]  ;;  %440 = vst.msk [vmem:[#allocation2 + $0x168] sm:$0x1] %vm424_vm2, %v421_v22  ;;  %25934 = vst [vmem:[#allocation13_spill] sm:$0xff] %v19788_v24  ;;  %v19790_v25 = vld [vmem:[#allocation2 + $0xd9] sm:$0xff] }
  0x38   : > { %17565 = vmatprep.mubr.msk.f32.mxu0 %vm368_vm1, %v19751_v11  ;;  %v448_v26 = vld [vmem:[#allocation2 + $0x88] sm:$0x1]  ;;  %v449_v28 = vld [vmem:[#allocation2 + $0xa0] sm:$0x1]  ;;  %v450_v29 = vld [vmem:[#allocation2 + $0xb8] sm:$0x1] }
  0x39   : > { %17607 = vmatmul.mubr.msk.f32.gmra.mxu1 %vm368_vm1, %v19749_v10  ;;  %v19792_v27 = vld [vmem:[#allocation2 + $0xa8] sm:$0xff]  ;;  %466 = vst.msk [vmem:[#allocation2 + $0x89] sm:$0x1] %vm424_vm2, %v448_v26  ;;  %467 = vst.msk [vmem:[#allocation2 + $0xa1] sm:$0x1] %vm424_vm2, %v449_v28  ;;  %v19804_v32 = vld [vmem:[#allocation2 + $0xb0] sm:$0xff] }
  0x3a   : > { %17609 = vmatprep.mubr.msk.f32.mxu1 %vm368_vm1, %v19754_v13  ;;  %25935 = vst [vmem:[#allocation14_spill] sm:$0xff] %v19792_v27  ;;  %25936 = vst [vmem:[#allocation15_spill] sm:$0xff] %v19804_v32  ;;  %v451_v35 = vld [vmem:[#allocation2 + $0xd0] sm:$0x1]  ;;  %v19809_v37 = vld [vmem:[#allocation2 + $0xf1] sm:$0xff] }
  0x3b   : > { %17566 = vmatmul.mubr.msk.f32.gmra.mxu0 %vm368_vm1, %v19764_v16  ;;  %468 = vst.msk [vmem:[#allocation2 + $0xb9] sm:$0x1] %vm424_vm2, %v450_v29  ;;  %469 = vst.msk [vmem:[#allocation2 + $0xd1] sm:$0x1] %vm424_vm2, %v451_v35  ;;  %v452_v38 = vld [vmem:[#allocation2 + $0xe8] sm:$0x1] }
  0x3c   : > { %17568 = vmatprep.mubr.msk.f32.mxu0 %vm368_vm1, %v19771_v19  ;;  %v453_v40 = vld [vmem:[#allocation2 + $0x100] sm:$0x1]  ;;  %470 = vst.msk [vmem:[#allocation2 + $0xe9] sm:$0x1] %vm424_vm2, %v452_v38  ;;  %v454_v43 = vld [vmem:[#allocation2 + $0x118] sm:$0x1] }
  0x3d   : > { %17610 = vmatmul.mubr.msk.f32.gmra.mxu1 %vm368_vm1, %v19769_v18  ;;  %v19812_v41 = vld [vmem:[#allocation2 + $0xc0] sm:$0xff]  ;;  %471 = vst.msk [vmem:[#allocation2 + $0x101] sm:$0x1] %vm424_vm2, %v453_v40  ;;  %472 = vst.msk [vmem:[#allocation2 + $0x119] sm:$0x1] %vm424_vm2, %v454_v43  ;;  %v19828_v52 = vld [vmem:[#allocation2 + $0xc8] sm:$0xff] }
  0x3e   : > { %17612 = vmatprep.mubr.msk.f32.mxu1 %vm368_vm1, %v19774_v20  ;;  %25937 = vst [vmem:[#allocation16_spill] sm:$0xff] %v19812_v41  ;;  %v455_v44 = vld [vmem:[#allocation2 + $0x130] sm:$0x1]  ;;  %v19823_v45 = vld [vmem:[#allocation2 + $0xf9] sm:$0xff]  ;;  %v456_v48 = vld [vmem:[#allocation2 + $0x148] sm:$0x1] }
  0x3f   : > { %17569 = vmatmul.mubr.msk.f32.gmra.mxu0 %vm368_vm1, %v19783_v23  ;;  %473 = vst.msk [vmem:[#allocation2 + $0x131] sm:$0x1] %vm424_vm2, %v455_v44  ;;  %25938 = vst [vmem:[#allocation17_spill] sm:$0xff] %v19828_v52  ;;  %v19830_v54 = vld [vmem:[#allocation2 + $0x109] sm:$0xff]  ;;  %v457_v58 = vld [vmem:[#allocation2 + $0x160] sm:$0x1] }
  0x40   : > { %17571 = vmatprep.mubr.msk.f32.mxu0 %vm368_vm1, %v19790_v25  ;;  %474 = vst.msk [vmem:[#allocation2 + $0x149] sm:$0x1] %vm424_vm2, %v456_v48  ;;  %v19833_v60 = vld [vmem:[#allocation2 + $0xd8] sm:$0xff]  ;;  %475 = vst.msk [vmem:[#allocation2 + $0x161] sm:$0x1] %vm424_vm2, %v457_v58  ;;  %v365_v1 = vld [vmem:[%s19582_s23 + $0xf0] sm:$0xff] }
  0x41   : > { %17613 = vmatmul.mubr.msk.f32.gmra.mxu1 %vm368_vm1, %v19788_v24  ;;  %25939 = vst [vmem:[#allocation18_spill] sm:$0xff] %v19833_v60  ;;  %v458_v61 = vld [vmem:[#allocation2 + $0x178] sm:$0x1]  ;;  %v19839_v0 = vld [vmem:[%s25798_s1 + $0x14] sm:$0xf]  ;;  %399 = vst.msk [vmem:[#allocation2 + $0x181] sm:$0xff] %vm368_vm1, %v365_v1 }
  0x42   : > { %17615 = vmatprep.mubr.msk.f32.mxu1 %vm368_vm1, %v19792_v27  ;;  %476 = vst.msk [vmem:[#allocation2 + $0x179] sm:$0x1] %vm424_vm2, %v458_v61  ;;  %17792 = vmatprep.subr.msk.mxu1 %vm642_vm0, %v19839_v0  ;;  %v19851_v2 = vld [vmem:[#allocation2 + $0x111] sm:$0xff]  ;;  %v19858_v5 = vld [vmem:[#allocation2 + $0xe0] sm:$0xff]  ;;  %v19872_v9 = vld [vmem:[#allocation2 + $0x129] sm:$0xff] }
  0x43   : > { %17572 = vmatmul.mubr.msk.f32.gmra.mxu0 %vm368_vm1, %v19802_v30  ;;  %404 = vst.msk [vmem:[#allocation2 + $0x199] sm:$0xff] %vm368_vm1, %v365_v1  ;;  %v366_v3 = vld [vmem:[%s19582_s23 + $0xf8] sm:$0xff]  ;;  %25940 = vst [vmem:[#allocation19_spill] sm:$0xff] %v19858_v5  ;;  %v19860_v6 = vld [vmem:[#allocation2 + $0x121] sm:$0xff] }
  0x44   : > { %17574 = vmatprep.mubr.msk.f32.mxu0 %vm368_vm1, %v19809_v37  ;;  %400 = vst.msk [vmem:[#allocation2 + $0x189] sm:$0xff] %vm368_vm1, %v366_v3  ;;  %405 = vst.msk [vmem:[#allocation2 + $0x1a1] sm:$0xff] %vm368_vm1, %v366_v3  ;;  %v19864_v7 = vld [vmem:[#allocation2 + $0xf0] sm:$0xff]  ;;  %v19876_v12 = vld [vmem:[#allocation2 + $0xf8] sm:$0xff] }
  0x45   : > { %17616 = vmatmul.mubr.msk.f32.gmra.mxu1 %vm368_vm1, %v19804_v32  ;;  %25941 = vst [vmem:[#allocation20_spill] sm:$0xff] %v19864_v7  ;;  %25942 = vst [vmem:[#allocation21_spill] sm:$0xff] %v19876_v12  ;;  %v19878_v14 = vld [vmem:[#allocation2 + $0x139] sm:$0xff]  ;;  %v19880_v15 = vld [vmem:[#allocation2 + $0x108] sm:$0xff] }
  0x46   : > { %17618 = vmatprep.mubr.msk.f32.mxu1 %vm368_vm1, %v19812_v41  ;;  %v19888_v21 = vld [vmem:[#allocation2 + $0x141] sm:$0xff]  ;;  %v19893_v22 = vld [vmem:[#allocation2 + $0x110] sm:$0xff]  ;;  %v19905_v29 = vld [vmem:[#allocation2 + $0x159] sm:$0xff] }
  0x47   : > { %17575 = vmatmul.mubr.msk.f32.gmra.mxu0 %vm368_vm1, %v19823_v45  ;;  %25943 = vst [vmem:[#allocation22_spill] sm:$0xff] %v19888_v21  ;;  %25944 = vst [vmem:[#allocation23_spill] sm:$0xff] %v19893_v22  ;;  %v19895_v26 = vld [vmem:[#allocation2 + $0x151] sm:$0xff]  ;;  %v19897_v28 = vld [vmem:[#allocation2 + $0x120] sm:$0xff] }
  0x48   : > { %17577 = vmatprep.mubr.msk.f32.mxu0 %vm368_vm1, %v19830_v54  ;;  %v422_v17 = vld [vmem:[#allocation2 + $0x181] sm:$0x1]  ;;  %25945 = vst [vmem:[#allocation24_spill] sm:$0xff] %v19895_v26  ;;  %25946 = vst [vmem:[#allocation25_spill] sm:$0xff] %v19897_v28  ;;  %v19909_v35 = vld [vmem:[#allocation2 + $0x128] sm:$0xff] }
  0x49   : > { %17619 = vmatmul.mubr.msk.f32.gmra.mxu1 %vm368_vm1, %v19828_v52  ;;  %441 = vst.msk [vmem:[#allocation2 + $0x180] sm:$0x1] %vm424_vm2, %v422_v17  ;;  %25947 = vst [vmem:[#allocation26_spill] sm:$0xff] %v19905_v29  ;;  %v19911_v38 = vld [vmem:[#allocation2 + $0x169] sm:$0xff]  ;;  %v19913_v40 = vld [vmem:[#allocation2 + $0x138] sm:$0xff] }
  0x4a   : > { %17621 = vmatprep.mubr.msk.f32.mxu1 %vm368_vm1, %v19833_v60  ;;  %25948 = vst [vmem:[#allocation27_spill] sm:$0xff] %v19911_v38  ;;  %v19921_v43 = vld [vmem:[#allocation2 + $0x171] sm:$0xff]  ;;  %v19925_v44 = vld [vmem:[#allocation2 + $0x140] sm:$0xff]  ;;  %v19939_v17 = vld [vmem:[#allocation2 + $0x168] sm:$0xff] }
  0x4b   : > { %17578 = vmatmul.mubr.msk.f32.gmra.mxu0 %vm368_vm1, %v19851_v2  ;;  %25949 = vst [vmem:[#allocation28_spill] sm:$0xff] %v19921_v43  ;;  %25950 = vst [vmem:[#allocation29_spill] sm:$0xff] %v19925_v44  ;;  %v1195_v48 = vld [vmem:[#allocation2 + $0x2] sm:$0xff]  ;;  %v19927_v58 = vld [vmem:[#allocation2 + $0x150] sm:$0xff] }
  0x4c   : > { %17580 = vmatprep.mubr.msk.f32.mxu0 %vm368_vm1, %v19860_v6  ;;  %25951 = vst [vmem:[#allocation30_spill] sm:$0xff] %v19927_v58  ;;  %v459_v61 = vld [vmem:[#allocation2 + $0x190] sm:$0x1]  ;;  %v19937_v3 = vld [vmem:[#allocation2 + $0x158] sm:$0xff] }
  0x4d   : > { %17622 = vmatmul.mubr.msk.f32.gmra.mxu1 %vm368_vm1, %v19858_v5  ;;  %v1196_v1 = vld [vmem:[#allocation2 + $0xa] sm:$0xff]  ;;  %477 = vst.msk [vmem:[#allocation2 + $0x191] sm:$0x1] %vm424_vm2, %v459_v61 }
  0x4e   : > { %17624 = vmatprep.mubr.msk.f32.mxu1 %vm368_vm1, %v19864_v7  ;;  %v19959_v61 = vld [vmem:[#allocation2 + $0x170] sm:$0xff] }
  0x4f   : > { %17581 = vmatmul.mubr.msk.f32.gmra.mxu0 %vm368_vm1, %v19872_v9 }
  0x50   : > { %17583 = vmatprep.mubr.msk.f32.mxu0 %vm368_vm1, %v19878_v14 }
  0x51   : > { %17625 = vmatmul.mubr.msk.f32.gmra.mxu1 %vm368_vm1, %v19876_v12 }
  0x52   : > { %17627 = vmatprep.mubr.msk.f32.mxu1 %vm368_vm1, %v19880_v15 }
  0x53   : > { %17584 = vmatmul.mubr.msk.f32.gmra.mxu0 %vm368_vm1, %v19888_v21  ;;  %v19988_v21 = vld [vmem:[#allocation2 + $0x52] sm:$0xff] }
  0x54   : > { %17586 = vmatprep.mubr.msk.f32.mxu0 %vm368_vm1, %v19895_v26  ;;  %v19982_v26 = vld [vmem:[%s25798_s1 + $0x1c] sm:$0xf] }
  0x55   : > { %17628 = vmatmul.mubr.msk.f32.gmra.mxu1 %vm368_vm1, %v19893_v22 }
  0x56   : > { %17630 = vmatprep.mubr.msk.f32.mxu1 %vm368_vm1, %v19897_v28 }
  0x57   : > { %17587 = vmatmul.mubr.msk.f32.gmra.mxu0 %vm368_vm1, %v19905_v29  ;;  %v19975_v29 = vld [vmem:[#allocation2 + $0x4a] sm:$0xff] }
  0x58   : > { %17589 = vmatprep.mubr.msk.f32.mxu0 %vm368_vm1, %v19911_v38  ;;  %v19941_v38 = vld [vmem:[#allocation2 + $0x1a] sm:$0xff] }
  0x59   : > { %17631 = vmatmul.mubr.msk.f32.gmra.mxu1 %vm368_vm1, %v19909_v35 }
  0x5a   : > { %17633 = vmatprep.mubr.msk.f32.mxu1 %vm368_vm1, %v19913_v40 }
  0x5b   : > { %17590 = vmatmul.mubr.msk.f32.gmra.mxu0 %vm368_vm1, %v19921_v43  ;;  %v19947_v43 = vld [vmem:[%s25798_s1 + $0x18] sm:$0xf] }
  0x5c   : > { %17644 = vmatprep.mubr.msk.f32.mxu0 %vm368_vm1, %v1195_v48  ;;  %v19953_v48 = vld [vmem:[#allocation2 + $0x22] sm:$0xff] }
  0x5d   : > { %17634 = vmatmul.mubr.msk.f32.gmra.mxu1 %vm368_vm1, %v19925_v44 }
  0x5e   : > { %17636 = vmatprep.mubr.msk.f32.mxu1 %vm368_vm1, %v19927_v58 }
  0x5f   : > { %17645 = vmatmul.mubr.msk.f32.vlgmr.msra.gmra.mxu0 %vm368_vm1, %v1196_v1  ;;  %v19961_v1 = vld [vmem:[#allocation2 + $0x32] sm:$0xff] }
  0x60   : > { %17743 = vmatpush3.msk.msra.mxu0 %vm642_vm0, %v19640_v33  ;;  %17647 = vmatprep.mubr.msk.f32.mxu0 %vm368_vm1, %v19941_v38  ;;  %v19971_v33 = vld [vmem:[#allocation2 + $0x3a] sm:$0xff] }
  0x61   : > { %17637 = vmatmul.mubr.msk.f32.gmra.mxu1 %vm368_vm1, %v19937_v3  ;;  %17842 = vmatprep.subr.msk.mxu0 %vm642_vm0, %v19947_v43 }
  0x62   : > { %17639 = vmatprep.mubr.msk.f32.mxu1 %vm368_vm1, %v19939_v17 }
  0x63   : > { %17648 = vmatmul.mubr.msk.f32.gmra.mxu0 %vm368_vm1, %v19953_v48 }
  0x64   : > { %17650 = vmatprep.mubr.msk.f32.mxu0 %vm368_vm1, %v19961_v1 }
  0x65   : > { %17640 = vmatmul.mubr.msk.f32.gmra.mxu1 %vm368_vm1, %v19959_v61 }
  0x66   : > { %17694 = vmatprep.mubr.msk.f32.mxu1 %vm368_vm1, %v19673_v46  ;;  %v19992_v46 = vld [vmem:[#allocation2 + $0x62] sm:$0xff] }
  0x67   : > { %17651 = vmatmul.mubr.msk.f32.gmra.mxu0 %vm368_vm1, %v19971_v33 }
  0x68   : > { %17653 = vmatprep.mubr.msk.f32.mxu0 %vm368_vm1, %v19975_v29 }
  0x69   : > { %17695 = vmatmul.mubr.msk.f32.vlgmr.msra.gmra.mxu1 %vm368_vm1, %v19680_v49  ;;  %v20004_v49 = vld [vmem:[#allocation2 + $0x6a] sm:$0xff] }
  0x6a   : > { %17697 = vmatprep.mubr.msk.f32.mxu1 %vm368_vm1, %v19687_v51  ;;  %17793 = vmatpush3.msk.msra.mxu1 %vm642_vm0, %v19839_v0  ;;  %v20008_v51 = vld [vmem:[#allocation2 + $0x7a] sm:$0xff]  ;;  %v20016_v0 = vld [vmem:[#allocation2 + $0x82] sm:$0xff] }
  0x6b   : > { %17892 = vmatprep.subr.msk.mxu1 %vm642_vm0, %v19982_v26  ;;  %17654 = vmatmul.mubr.msk.f32.gmra.mxu0 %vm368_vm1, %v19988_v21 }
  0x6c   : > { %17656 = vmatprep.mubr.msk.f32.mxu0 %vm368_vm1, %v19992_v46 }
  0x6d   : > { %17698 = vmatmul.mubr.msk.f32.gmra.mxu1 %vm368_vm1, %v19700_v55  ;;  %v20020_v55 = vld [vmem:[#allocation2 + $0x92] sm:$0xff] }
  0x6e   : > { %17700 = vmatprep.mubr.msk.f32.mxu1 %vm368_vm1, %v19705_v57  ;;  %v20032_v57 = vld [vmem:[#allocation2 + $0xaa] sm:$0xff] }
  0x6f   : > { %17657 = vmatmul.mubr.msk.f32.gmra.mxu0 %vm368_vm1, %v20004_v49 }
  0x70   : > { %17659 = vmatprep.mubr.msk.f32.mxu0 %vm368_vm1, %v20008_v51 }
  0x71   : > { %17701 = vmatmul.mubr.msk.f32.gmra.mxu1 %vm368_vm1, %v19717_v62  ;;  %v20028_v62 = vld [vmem:[#allocation2 + $0x9a] sm:$0xff] }
  0x72   : > { %17703 = vmatprep.mubr.msk.f32.mxu1 %vm368_vm1, %v19729_v4  ;;  %v20044_v4 = vld [vmem:[#allocation2 + $0xc2] sm:$0xff] }
  0x73   : > { %17660 = vmatmul.mubr.msk.f32.gmra.mxu0 %vm368_vm1, %v20016_v0 }
  0x74   : > { %17662 = vmatprep.mubr.msk.f32.mxu0 %vm368_vm1, %v20020_v55 }
  0x75   : > { %17704 = vmatmul.mubr.msk.f32.gmra.mxu1 %vm368_vm1, %v19749_v10  ;;  %v20040_v10 = vld [vmem:[#allocation2 + $0xb2] sm:$0xff] }
  0x76   : > { %17706 = vmatprep.mubr.msk.f32.mxu1 %vm368_vm1, %v19754_v13  ;;  %v20056_v13 = vld [vmem:[#allocation2 + $0xda] sm:$0xff] }
  0x77   : > { %17663 = vmatmul.mubr.msk.f32.gmra.mxu0 %vm368_vm1, %v20028_v62 }
  0x78   : > { %17665 = vmatprep.mubr.msk.f32.mxu0 %vm368_vm1, %v20032_v57 }
  0x79   : > { %17707 = vmatmul.mubr.msk.f32.gmra.mxu1 %vm368_vm1, %v19769_v18  ;;  %v20052_v18 = vld [vmem:[#allocation2 + $0xca] sm:$0xff] }
  0x7a   : > { %17709 = vmatprep.mubr.msk.f32.mxu1 %vm368_vm1, %v19774_v20  ;;  %v20068_v20 = vld [vmem:[#allocation2 + $0xf2] sm:$0xff] }
  0x7b   : > { %17666 = vmatmul.mubr.msk.f32.gmra.mxu0 %vm368_vm1, %v20040_v10 }
  0x7c   : > { %17668 = vmatprep.mubr.msk.f32.mxu0 %vm368_vm1, %v20044_v4 }
  0x7d   : > { %17710 = vmatmul.mubr.msk.f32.gmra.mxu1 %vm368_vm1, %v19788_v24  ;;  %v20064_v24 = vld [vmem:[#allocation2 + $0xe2] sm:$0xff] }
  0x7e   : > { %17712 = vmatprep.mubr.msk.f32.mxu1 %vm368_vm1, %v19792_v27  ;;  %v20080_v27 = vld [vmem:[#allocation2 + $0x10a] sm:$0xff] }
  0x7f   : > { %17669 = vmatmul.mubr.msk.f32.gmra.mxu0 %vm368_vm1, %v20052_v18 }
  0x80   : > { %17671 = vmatprep.mubr.msk.f32.mxu0 %vm368_vm1, %v20056_v13 }
  0x81   : > { %17713 = vmatmul.mubr.msk.f32.gmra.mxu1 %vm368_vm1, %v19804_v32  ;;  %v20076_v32 = vld [vmem:[#allocation2 + $0xfa] sm:$0xff] }
  0x82   : > { %17715 = vmatprep.mubr.msk.f32.mxu1 %vm368_vm1, %v19812_v41  ;;  %v20092_v41 = vld [vmem:[#allocation2 + $0x122] sm:$0xff] }
  0x83   : > { %17672 = vmatmul.mubr.msk.f32.gmra.mxu0 %vm368_vm1, %v20064_v24  ;;  %25952 = vst [vmem:[#allocation31_spill] sm:$0xff] %v20092_v41 }
  0x84   : > { %17674 = vmatprep.mubr.msk.f32.mxu0 %vm368_vm1, %v20068_v20 }
  0x85   : > { %17716 = vmatmul.mubr.msk.f32.gmra.mxu1 %vm368_vm1, %v19828_v52  ;;  %v20088_v52 = vld [vmem:[#allocation2 + $0x112] sm:$0xff] }
  0x86   : > { %17718 = vmatprep.mubr.msk.f32.mxu1 %vm368_vm1, %v19833_v60  ;;  %v20104_v60 = vld [vmem:[#allocation2 + $0x13a] sm:$0xff] }
  0x87   : > { %17675 = vmatmul.mubr.msk.f32.gmra.mxu0 %vm368_vm1, %v20076_v32 }
  0x88   : > { %17677 = vmatprep.mubr.msk.f32.mxu0 %vm368_vm1, %v20080_v27 }
  0x89   : > { %17719 = vmatmul.mubr.msk.f32.gmra.mxu1 %vm368_vm1, %v19858_v5  ;;  %v20100_v5 = vld [vmem:[#allocation2 + $0x12a] sm:$0xff] }
  0x8a   : > { %17721 = vmatprep.mubr.msk.f32.mxu1 %vm368_vm1, %v19864_v7  ;;  %v20116_v7 = vld [vmem:[#allocation2 + $0x152] sm:$0xff] }
  0x8b   : > { %17678 = vmatmul.mubr.msk.f32.gmra.mxu0 %vm368_vm1, %v20088_v52 }
  0x8c   : > { %17680 = vmatprep.mubr.msk.f32.mxu0 %vm368_vm1, %v20092_v41  ;;  %v423_v41 = vld [vmem:[#allocation2 + $0x199] sm:$0x1] }
  0x8d   : > { %17722 = vmatmul.mubr.msk.f32.gmra.mxu1 %vm368_vm1, %v19876_v12  ;;  %v20112_v12 = vld [vmem:[#allocation2 + $0x142] sm:$0xff]  ;;  %442 = vst.msk [vmem:[#allocation2 + $0x198] sm:$0x1] %vm424_vm2, %v423_v41  ;;  %v20137_v41 = vld [vmem:[#allocation2 + $0x172] sm:$0xff] }
  0x8e   : > { %17724 = vmatprep.mubr.msk.f32.mxu1 %vm368_vm1, %v19880_v15 }
  0x8f   : > { %17681 = vmatmul.mubr.msk.f32.gmra.mxu0 %vm368_vm1, %v20100_v5 }
  0x90   : > { %17683 = vmatprep.mubr.msk.f32.mxu0 %vm368_vm1, %v20104_v60 }
  0x91   : > { %17725 = vmatmul.mubr.msk.f32.gmra.mxu1 %vm368_vm1, %v19893_v22  ;;  %v20125_v22 = vld [vmem:[#allocation2 + $0x15a] sm:$0xff] }
  0x92   : > { %17727 = vmatprep.mubr.msk.f32.mxu1 %vm368_vm1, %v19897_v28  ;;  %v20129_v28 = vld [vmem:[#allocation2 + $0x16a] sm:$0xff] }
  0x93   : > { %17684 = vmatmul.mubr.msk.f32.gmra.mxu0 %vm368_vm1, %v20112_v12 }
  0x94   : > { %17686 = vmatprep.mubr.msk.f32.mxu0 %vm368_vm1, %v20116_v7 }
  0x95   : > { %17728 = vmatmul.mubr.msk.f32.gmra.mxu1 %vm368_vm1, %v19909_v35 }
  0x96   : > { %17730 = vmatprep.mubr.msk.f32.mxu1 %vm368_vm1, %v19913_v40 }
  0x97   : > { %17687 = vmatmul.mubr.msk.f32.gmra.mxu0 %vm368_vm1, %v20125_v22 }
  0x98   : > { %17689 = vmatprep.mubr.msk.f32.mxu0 %vm368_vm1, %v20129_v28 }
  0x99   : > { %17731 = vmatmul.mubr.msk.f32.gmra.mxu1 %vm368_vm1, %v19925_v44  ;;  %v20149_v44 = vld [vmem:[#allocation2 + $0x180] sm:$0xff] }
  0x9a   : > { %17733 = vmatprep.mubr.msk.f32.mxu1 %vm368_vm1, %v19927_v58  ;;  %v20156_v58 = vld [vmem:[%s25798_s1 + $0x20] sm:$0xf] }
  0x9b   : > { %17690 = vmatmul.mubr.msk.f32.gmra.mxu0 %vm368_vm1, %v20137_v41 }
  0x9c   : > { %17744 = vmatprep.mubr.msk.f32.mxu0 %vm368_vm1, %v19631_v31  ;;  %v20166_v31 = vld [vmem:[#allocation2 + $0x188] sm:$0xff] }
  0x9d   : > { %17734 = vmatmul.mubr.msk.f32.gmra.mxu1 %vm368_vm1, %v19937_v3 }
  0x9e   : > { %17736 = vmatprep.mubr.msk.f32.mxu1 %vm368_vm1, %v19939_v17 }
  0x9f   : > { %17745 = vmatmul.mubr.msk.f32.vlgmr.msra.gmra.mxu0 %vm368_vm1, %v19648_v34  ;;  %v25953_v34 = vld [vmem:[#allocation22_spill] sm:$0xff] }
  0xa0   : > { %17843 = vmatpush3.msk.msra.mxu0 %vm642_vm0, %v19947_v43  ;;  %17747 = vmatprep.mubr.msk.f32.mxu0 %vm368_vm1, %v19650_v36  ;;  %v25954_v36 = vld [vmem:[#allocation24_spill] sm:$0xff] }
  0xa1   : > { %17737 = vmatmul.mubr.msk.f32.gmra.mxu1 %vm368_vm1, %v19959_v61  ;;  %17942 = vmatprep.subr.msk.mxu0 %vm642_vm0, %v20156_v58 }
  0xa2   : > { %17739 = vmatprep.mubr.msk.f32.mxu1 %vm368_vm1, %v20149_v44 }
  0xa3   : > { %17748 = vmatmul.mubr.msk.f32.gmra.mxu0 %vm368_vm1, %v19661_v39  ;;  %v25955_v39 = vld [vmem:[#allocation31_spill] sm:$0xff] }
  0xa4   : > { %17750 = vmatprep.mubr.msk.f32.mxu0 %vm368_vm1, %v19663_v42  ;;  %v25956_v42 = vld [vmem:[#allocation26_spill] sm:$0xff] }
  0xa5   : > { %17740 = vmatmul.mubr.msk.f32.gmra.mxu1 %vm368_vm1, %v20166_v31 }
  0xa6   : > { %17794 = vmatprep.mubr.msk.f32.mxu1 %vm368_vm1, %v19941_v38  ;;  %v25969_v38 = vld [vmem:[#allocation14_spill] sm:$0xff] }
  0xa7   : > { %17751 = vmatmul.mubr.msk.f32.gmra.mxu0 %vm368_vm1, %v19675_v47  ;;  %v460_v47 = vld [vmem:[#allocation2 + $0x1a8] sm:$0x1] }
  0xa8   : > { %17753 = vmatprep.mubr.msk.f32.mxu0 %vm368_vm1, %v19682_v50  ;;  %v25957_v50 = vld [vmem:[#allocation27_spill] sm:$0xff]  ;;  %478 = vst.msk [vmem:[#allocation2 + $0x1a9] sm:$0x1] %vm424_vm2, %v460_v47 }
  0xa9   : > { %17795 = vmatmul.mubr.msk.f32.vlgmr.msra.gmra.mxu1 %vm368_vm1, %v19953_v48  ;;  %v3153_v48 = vld [vmem:[#allocation2 + $0x81] sm:$0xff] }
  0xaa   : > { %17797 = vmatprep.mubr.msk.f32.mxu1 %vm368_vm1, %v19961_v1  ;;  %17893 = vmatpush3.msk.msra.mxu1 %vm642_vm0, %v19982_v26 }
  0xab   : > { %17754 = vmatmul.mubr.msk.f32.gmra.mxu0 %vm368_vm1, %v19696_v53  ;;  %v25958_v53 = vld [vmem:[#allocation28_spill] sm:$0xff] }
  0xac   : > { %17756 = vmatprep.mubr.msk.f32.mxu0 %vm368_vm1, %v19702_v56  ;;  %v25959_v56 = vld [vmem:[#allocation4_spill] sm:$0xff] }
  0xad   : > { %17798 = vmatmul.mubr.msk.f32.gmra.mxu1 %vm368_vm1, %v19971_v33 }
  0xae   : > { %17800 = vmatprep.mubr.msk.f32.mxu1 %vm368_vm1, %v19975_v29 }
  0xaf   : > { %17757 = vmatmul.mubr.msk.f32.gmra.mxu0 %vm368_vm1, %v19709_v59 }
  0xb0   : > { %17759 = vmatprep.mubr.msk.f32.mxu0 %vm368_vm1, %v19719_v63 }
  0xb1   : > { %17801 = vmatmul.mubr.msk.f32.gmra.mxu1 %vm368_vm1, %v19988_v21  ;;  %v3152_v21 = vld [vmem:[#allocation2 + $0x79] sm:$0xff] }
  0xb2   : > { %17803 = vmatprep.mubr.msk.f32.mxu1 %vm368_vm1, %v19992_v46 }
  0xb3   : > { %17760 = vmatmul.mubr.msk.f32.gmra.mxu0 %vm368_vm1, %v19743_v8  ;;  %v20309_v8 = vld [vmem:[#allocation2 + $0x18a] sm:$0xff] }
  0xb4   : > { %17762 = vmatprep.mubr.msk.f32.mxu0 %vm368_vm1, %v19751_v11 }
  0xb5   : > { %17804 = vmatmul.mubr.msk.f32.gmra.mxu1 %vm368_vm1, %v20004_v49  ;;  %v3154_v49 = vld [vmem:[#allocation2 + $0x91] sm:$0xff] }
  0xb6   : > { %17806 = vmatprep.mubr.msk.f32.mxu1 %vm368_vm1, %v20008_v51  ;;  %v20277_v51 = vld [vmem:[#allocation2 + $0x181] sm:$0xff] }
  0xb7   : > { %17763 = vmatmul.mubr.msk.f32.gmra.mxu0 %vm368_vm1, %v19764_v16  ;;  %v25963_v16 = vld [vmem:[#allocation8_spill] sm:$0xff] }
  0xb8   : > { %17765 = vmatprep.mubr.msk.f32.mxu0 %vm368_vm1, %v19771_v19  ;;  %v3147_v19 = vld [vmem:[#allocation2 + $0x39] sm:$0xff] }
  0xb9   : > { %17807 = vmatmul.mubr.msk.f32.gmra.mxu1 %vm368_vm1, %v20016_v0 }
  0xba   : > { %17809 = vmatprep.mubr.msk.f32.mxu1 %vm368_vm1, %v20020_v55  ;;  %v20285_v55 = vld [vmem:[#allocation2 + $0x189] sm:$0xff] }
  0xbb   : > { %17766 = vmatmul.mubr.msk.f32.gmra.mxu0 %vm368_vm1, %v19783_v23 }
  0xbc   : > { %17768 = vmatprep.mubr.msk.f32.mxu0 %vm368_vm1, %v19790_v25 }
  0xbd   : > { %17810 = vmatmul.mubr.msk.f32.gmra.mxu1 %vm368_vm1, %v20028_v62  ;;  %v25960_v62 = vld [vmem:[#allocation5_spill] sm:$0xff] }
  0xbe   : > { %17812 = vmatprep.mubr.msk.f32.mxu1 %vm368_vm1, %v20032_v57  ;;  %v20297_v57 = vld [vmem:[#allocation2 + $0x182] sm:$0xff] }
  0xbf   : > { %17769 = vmatmul.mubr.msk.f32.gmra.mxu0 %vm368_vm1, %v19802_v30 }
  0xc0   : > { %17771 = vmatprep.mubr.msk.f32.mxu0 %vm368_vm1, %v19809_v37  ;;  %v3149_v37 = vld [vmem:[#allocation2 + $0x51] sm:$0xff] }
  0xc1   : > { %17813 = vmatmul.mubr.msk.f32.gmra.mxu1 %vm368_vm1, %v20040_v10  ;;  %v3146_v10 = vld [vmem:[#allocation2 + $0x31] sm:$0xff] }
  0xc2   : > { %17815 = vmatprep.mubr.msk.f32.mxu1 %vm368_vm1, %v20044_v4  ;;  %v25961_v4 = vld [vmem:[#allocation6_spill] sm:$0xff] }
  0xc3   : > { %17772 = vmatmul.mubr.msk.f32.gmra.mxu0 %vm368_vm1, %v19823_v45 }
  0xc4   : > { %17774 = vmatprep.mubr.msk.f32.mxu0 %vm368_vm1, %v19830_v54 }
  0xc5   : > { %17816 = vmatmul.mubr.msk.f32.gmra.mxu1 %vm368_vm1, %v20052_v18 }
  0xc6   : > { %17818 = vmatprep.mubr.msk.f32.mxu1 %vm368_vm1, %v20056_v13  ;;  %v25962_v13 = vld [vmem:[#allocation7_spill] sm:$0xff] }
  0xc7   : > { %17775 = vmatmul.mubr.msk.f32.gmra.mxu0 %vm368_vm1, %v19851_v2  ;;  %v25966_v2 = vld [vmem:[#allocation11_spill] sm:$0xff] }
  0xc8   : > { %17777 = vmatprep.mubr.msk.f32.mxu0 %vm368_vm1, %v19860_v6  ;;  %v25967_v6 = vld [vmem:[#allocation12_spill] sm:$0xff] }
  0xc9   : > { %17819 = vmatmul.mubr.msk.f32.gmra.mxu1 %vm368_vm1, %v20064_v24  ;;  %v25964_v24 = vld [vmem:[#allocation9_spill] sm:$0xff] }
  0xca   : > { %17821 = vmatprep.mubr.msk.f32.mxu1 %vm368_vm1, %v20068_v20  ;;  %v3148_v20 = vld [vmem:[#allocation2 + $0x49] sm:$0xff] }
  0xcb   : > { %17778 = vmatmul.mubr.msk.f32.gmra.mxu0 %vm368_vm1, %v19872_v9 }
  0xcc   : > { %17780 = vmatprep.mubr.msk.f32.mxu0 %vm368_vm1, %v19878_v14 }
  0xcd   : > { %17822 = vmatmul.mubr.msk.f32.gmra.mxu1 %vm368_vm1, %v20076_v32 }
  0xce   : > { %17824 = vmatprep.mubr.msk.f32.mxu1 %vm368_vm1, %v20080_v27  ;;  %v25965_v27 = vld [vmem:[#allocation10_spill] sm:$0xff] }
  0xcf   : > { %17781 = vmatmul.mubr.msk.f32.gmra.mxu0 %vm368_vm1, %v25953_v34  ;;  %v25970_v34 = vld [vmem:[#allocation15_spill] sm:$0xff] }
  0xd0   : > { %17783 = vmatprep.mubr.msk.f32.mxu0 %vm368_vm1, %v25954_v36 }
  0xd1   : > { %17825 = vmatmul.mubr.msk.f32.gmra.mxu1 %vm368_vm1, %v20088_v52  ;;  %v3150_v52 = vld [vmem:[#allocation2 + $0x61] sm:$0xff] }
  0xd2   : > { %17827 = vmatprep.mubr.msk.f32.mxu1 %vm368_vm1, %v25955_v39  ;;  %v25971_v39 = vld [vmem:[#allocation16_spill] sm:$0xff] }
  0xd3   : > { %17784 = vmatmul.mubr.msk.f32.gmra.mxu0 %vm368_vm1, %v25956_v42 }
  0xd4   : > { %17786 = vmatprep.mubr.msk.f32.mxu0 %vm368_vm1, %v25957_v50  ;;  %v3155_v50 = vld [vmem:[#allocation2 + $0x99] sm:$0xff] }
  0xd5   : > { %17828 = vmatmul.mubr.msk.f32.gmra.mxu1 %vm368_vm1, %v20100_v5 }
  0xd6   : > { %17830 = vmatprep.mubr.msk.f32.mxu1 %vm368_vm1, %v20104_v60 }
  0xd7   : > { %17787 = vmatmul.mubr.msk.f32.gmra.mxu0 %vm368_vm1, %v25958_v53 }
  0xd8   : > { %17789 = vmatprep.mubr.msk.f32.mxu0 %vm368_vm1, %v20277_v51 }
  0xd9   : > { %17831 = vmatmul.mubr.msk.f32.gmra.mxu1 %vm368_vm1, %v20112_v12  ;;  %v3151_v12 = vld [vmem:[#allocation2 + $0x69] sm:$0xff] }
  0xda   : > { %17833 = vmatprep.mubr.msk.f32.mxu1 %vm368_vm1, %v20116_v7 }
  0xdb   : > { %17790 = vmatmul.mubr.msk.f32.gmra.mxu0 %vm368_vm1, %v20285_v55 }
  0xdc   : > { %17844 = vmatprep.mubr.msk.f32.mxu0 %vm368_vm1, %v25959_v56  ;;  %v3156_v56 = vld [vmem:[#allocation2 + $0xa9] sm:$0xff] }
  0xdd   : > { %17834 = vmatmul.mubr.msk.f32.gmra.mxu1 %vm368_vm1, %v20125_v22 }
  0xde   : > { %17836 = vmatprep.mubr.msk.f32.mxu1 %vm368_vm1, %v20129_v28  ;;  %v25968_v28 = vld [vmem:[#allocation13_spill] sm:$0xff] }
  0xdf   : > { %v17546_v59 = vpop.f32.mrf.mxu0  ;;  %17845 = vmatmul.mubr.msk.f32.vlgmr.msra.gmra.mxu0 %vm368_vm1, %v25960_v62 }
  0xe0   : > { %17943 = vmatpush3.msk.msra.mxu0 %vm642_vm0, %v20156_v58  ;;  %17847 = vmatprep.mubr.msk.f32.mxu0 %vm368_vm1, %v25961_v4 }
  0xe1   : > { %17837 = vmatmul.mubr.msk.f32.gmra.mxu1 %vm368_vm1, %v20137_v41  ;;  %v712_v63 = vpop.f32.mrf.mxu0 }
  0xe2   : > { %17839 = vmatprep.mubr.msk.f32.mxu1 %vm368_vm1, %v20297_v57 }
  0xe3   : > { %v17549_v11 = vpop.f32.mrf.mxu0  ;;  %17848 = vmatmul.mubr.msk.f32.gmra.mxu0 %vm368_vm1, %v25962_v13 }
  0xe4   : > { %17850 = vmatprep.mubr.msk.f32.mxu0 %vm368_vm1, %v25963_v16  ;;  %v3157_v16 = vld [vmem:[#allocation2 + $0xb1] sm:$0xff] }
  0xe5   : > { %17840 = vmatmul.mubr.msk.f32.gmra.mxu1 %vm368_vm1, %v20309_v8  ;;  %v722_v18 = vpop.f32.mrf.mxu0 }
  0xe6   : > { %17894 = vmatprep.mubr.msk.f32.mxu1 %vm368_vm1, %v3146_v10  ;;  %v25973_v10 = vld [vmem:[#allocation18_spill] sm:$0xff] }
  0xe7   : > { %v17552_v23 = vpop.f32.mrf.mxu0  ;;  %17851 = vmatmul.mubr.msk.f32.gmra.mxu0 %vm368_vm1, %v25964_v24  ;;  %v25974_v24 = vld [vmem:[#allocation19_spill] sm:$0xff] }
  0xe8   : > { %17853 = vmatprep.mubr.msk.f32.mxu0 %vm368_vm1, %v25965_v27  ;;  %v25975_v27 = vld [vmem:[#allocation20_spill] sm:$0xff] }
  0xe9   : > { %v17596_v25 = vpop.f32.mrf.mxu1  ;;  %17895 = vmatmul.mubr.msk.f32.vlgmr.msra.gmra.mxu1 %vm368_vm1, %v3147_v19  ;;  %v732_v32 = vpop.f32.mrf.mxu0  ;;  %v3158_v19 = vld [vmem:[#allocation2 + $0xc1] sm:$0xff] }
  0xea   : > { %v20323_v30 = vadd.f32 %v17596_v25, %v17546_v59  ;;  %17897 = vmatprep.mubr.msk.f32.mxu1 %vm368_vm1, %v3148_v20 }
  0xeb   : > { %v1036_v45 = vpop.f32.mrf.mxu1  ;;  %v17555_v60 = vpop.f32.mrf.mxu0  ;;  %17854 = vmatmul.mubr.msk.f32.gmra.mxu0 %vm368_vm1, %v25966_v2 }
  0xec   : > { %v20326_v54 = vadd.f32 %v1036_v45, %v712_v63  ;;  %17856 = vmatprep.mubr.msk.f32.mxu0 %vm368_vm1, %v25967_v6  ;;  %v25972_v63 = vld [vmem:[#allocation17_spill] sm:$0xff]  ;;  %v3159_v45 = vld [vmem:[#allocation2 + $0xc9] sm:$0xff] }
  0xed   : > { %v17599_v5 = vpop.f32.mrf.mxu1  ;;  %17898 = vmatmul.mubr.msk.f32.gmra.mxu1 %vm368_vm1, %v3149_v37  ;;  %v742_v9 = vpop.f32.mrf.mxu0  ;;  %v25976_v6 = vld [vmem:[#allocation21_spill] sm:$0xff] }
  0xee   : > { %v20333_v7 = vadd.f32 %v17599_v5, %v17549_v11  ;;  %17900 = vmatprep.mubr.msk.f32.mxu1 %vm368_vm1, %v3150_v52 }
  0xef   : > { %v1046_v14 = vpop.f32.mrf.mxu1  ;;  %v17558_v26 = vpop.f32.mrf.mxu0  ;;  %17857 = vmatmul.mubr.msk.f32.gmra.mxu0 %vm368_vm1, %v25968_v28  ;;  %v3162_v28 = vld [vmem:[#allocation2 + $0xf1] sm:$0xff] }
  0xf0   : > { %v20336_v22 = vadd.f32 %v1046_v14, %v722_v18  ;;  %17859 = vmatprep.mubr.msk.f32.mxu0 %vm368_vm1, %v25969_v38 }
  0xf1   : > { %v17602_v29 = vpop.f32.mrf.mxu1  ;;  %17901 = vmatmul.mubr.msk.f32.gmra.mxu1 %vm368_vm1, %v3151_v12  ;;  %v752_v58 = vpop.f32.mrf.mxu0 }
  0xf2   : > { %v20343_v43 = vadd.f32 %v17602_v29, %v17552_v23  ;;  %17903 = vmatprep.mubr.msk.f32.mxu1 %vm368_vm1, %v3152_v21  ;;  %v3161_v21 = vld [vmem:[#allocation2 + $0xe1] sm:$0xff] }
  0xf3   : > { %v1056_v46 = vpop.f32.mrf.mxu1  ;;  %v17561_v41 = vpop.f32.mrf.mxu0  ;;  %17860 = vmatmul.mubr.msk.f32.gmra.mxu0 %vm368_vm1, %v25970_v34 }
  0xf4   : > { %v20346_v0 = vadd.f32 %v1056_v46, %v732_v32  ;;  %17862 = vmatprep.mubr.msk.f32.mxu0 %vm368_vm1, %v25971_v39  ;;  %v25978_v46 = vld [vmem:[#allocation25_spill] sm:$0xff] }
  0xf5   : > { %v17605_v36 = vpop.f32.mrf.mxu1  ;;  %17904 = vmatmul.mubr.msk.f32.gmra.mxu1 %vm368_vm1, %v3153_v48  ;;  %v762_v47 = vpop.f32.mrf.mxu0 }
  0xf6   : > { %v20353_v42 = vadd.f32 %v17605_v36, %v17555_v60  ;;  %17906 = vmatprep.mubr.msk.f32.mxu1 %vm368_vm1, %v3154_v49  ;;  %v3160_v60 = vld [vmem:[#allocation2 + $0xd9] sm:$0xff]  ;;  %v3164_v36 = vld [vmem:[#allocation2 + $0x109] sm:$0xff] }
  0xf7   : > { %v1066_v53 = vpop.f32.mrf.mxu1  ;;  %v17564_v62 = vpop.f32.mrf.mxu0  ;;  %17863 = vmatmul.mubr.msk.f32.gmra.mxu0 %vm368_vm1, %v25972_v63 }
  0xf8   : > { %v20356_v59 = vadd.f32 %v1066_v53, %v742_v9  ;;  %17865 = vmatprep.mubr.msk.f32.mxu0 %vm368_vm1, %v25973_v10 }
  0xf9   : > { %v17608_v4 = vpop.f32.mrf.mxu1  ;;  %17907 = vmatmul.mubr.msk.f32.gmra.mxu1 %vm368_vm1, %v3155_v50  ;;  %v772_v13 = vpop.f32.mrf.mxu0 }
  0xfa   : > { %v20363_v11 = vadd.f32 %v17608_v4, %v17558_v26  ;;  %17909 = vmatprep.mubr.msk.f32.mxu1 %vm368_vm1, %v3156_v56  ;;  %v3166_v4 = vld [vmem:[#allocation2 + $0x121] sm:$0xff] }
  0xfb   : > { %v1076_v18 = vpop.f32.mrf.mxu1  ;;  %v17567_v23 = vpop.f32.mrf.mxu0  ;;  %17866 = vmatmul.mubr.msk.f32.gmra.mxu0 %vm368_vm1, %v25974_v24  ;;  %v3168_v24 = vld [vmem:[#allocation2 + $0x139] sm:$0xff] }
  0xfc   : > { %v20366_v20 = vadd.f32 %v1076_v18, %v752_v58  ;;  %17868 = vmatprep.mubr.msk.f32.mxu0 %vm368_vm1, %v25975_v27  ;;  %v25977_v58 = vld [vmem:[#allocation23_spill] sm:$0xff] }
  0xfd   : > { %v17611_v25 = vpop.f32.mrf.mxu1  ;;  %17910 = vmatmul.mubr.msk.f32.gmra.mxu1 %vm368_vm1, %v3157_v16  ;;  %v782_v37 = vpop.f32.mrf.mxu0  ;;  %v25980_v16 = vld [vmem:[#allocation30_spill] sm:$0xff] }
  0xfe   : > { %v20373_v32 = vadd.f32 %v17611_v25, %v17561_v41  ;;  %17912 = vmatprep.mubr.msk.f32.mxu1 %vm368_vm1, %v3158_v19  ;;  %v3163_v41 = vld [vmem:[#allocation2 + $0xf9] sm:$0xff]  ;;  %v3167_v19 = vld [vmem:[#allocation2 + $0x129] sm:$0xff] }
  0xff   : > { %v1086_v52 = vpop.f32.mrf.mxu1  ;;  %v17570_v5 = vpop.f32.mrf.mxu0  ;;  %17869 = vmatmul.mubr.msk.f32.gmra.mxu0 %vm368_vm1, %v25976_v6 }
 0x100   : > { %v20376_v2 = vadd.f32 %v1086_v52, %v762_v47  ;;  %17871 = vmatprep.mubr.msk.f32.mxu0 %vm368_vm1, %v19880_v15  ;;  %v3169_v52 = vld [vmem:[#allocation2 + $0x141] sm:$0xff] }
 0x101   : > { %v17614_v9 = vpop.f32.mrf.mxu1  ;;  %17913 = vmatmul.mubr.msk.f32.gmra.mxu1 %vm368_vm1, %v3159_v45  ;;  %v20385_v14 = vpop.f32.mrf.mxu0 }
 0x102   : > { %v20383_v12 = vadd.f32 %v17614_v9, %v17564_v62  ;;  %17915 = vmatprep.mubr.msk.f32.mxu1 %vm368_vm1, %v3160_v60  ;;  %v3165_v62 = vld [vmem:[#allocation2 + $0x111] sm:$0xff] }
 0x103   : > { %v1096_v26 = vpop.f32.mrf.mxu1  ;;  %v17573_v38 = vpop.f32.mrf.mxu0  ;;  %17872 = vmatmul.mubr.msk.f32.gmra.mxu0 %vm368_vm1, %v25977_v58 }
 0x104   : > { %v20388_v29 = vadd.f32 %v1096_v26, %v772_v13  ;;  %17874 = vmatprep.mubr.msk.f32.mxu0 %vm368_vm1, %v25978_v46  ;;  %v25979_v13 = vld [vmem:[#allocation29_spill] sm:$0xff] }
 0x105   : > { %v17617_v48 = vpop.f32.mrf.mxu1  ;;  %17916 = vmatmul.mubr.msk.f32.gmra.mxu1 %vm368_vm1, %v3161_v21  ;;  %v20397_v49 = vpop.f32.mrf.mxu0  ;;  %v3171_v21 = vld [vmem:[#allocation2 + $0x159] sm:$0xff] }
 0x106   : > { %v20395_v15 = vadd.f32 %v17617_v48, %v17567_v23  ;;  %17918 = vmatprep.mubr.msk.f32.mxu1 %vm368_vm1, %v3162_v28  ;;  %v2786_v26 = vld [vmem:[#allocation2 + $0x198] sm:$0xff] }
 0x107   : > { %v1106_v34 = vpop.f32.mrf.mxu1  ;;  %v17576_v47 = vpop.f32.mrf.mxu0  ;;  %17875 = vmatmul.mubr.msk.f32.gmra.mxu0 %vm368_vm1, %v19909_v35 }
 0x108   : > { %v20400_v39 = vadd.f32 %v1106_v34, %v782_v37  ;;  %17877 = vmatprep.mubr.msk.f32.mxu0 %vm368_vm1, %v19913_v40 }
 0x109   : > { %v17620_v50 = vpop.f32.mrf.mxu1  ;;  %17919 = vmatmul.mubr.msk.f32.gmra.mxu1 %vm368_vm1, %v3163_v41  ;;  %v20409_v56 = vpop.f32.mrf.mxu0  ;;  %v3173_v41 = vld [vmem:[#allocation2 + $0x171] sm:$0xff] }
 0x10a   : > { %v20407_v53 = vadd.f32 %v17620_v50, %v17570_v5  ;;  %17921 = vmatprep.mubr.msk.f32.mxu1 %vm368_vm1, %v3164_v36  ;;  %v3170_v5 = vld [vmem:[#allocation2 + $0x151] sm:$0xff] }
 0x10b   : > { %v20412_v63 = vpop.f32.mrf.mxu1  ;;  %v17579_v10 = vpop.f32.mrf.mxu0  ;;  %17878 = vmatmul.mubr.msk.f32.gmra.mxu0 %vm368_vm1, %v25979_v13 }
 0x10c   : > { %17880 = vmatprep.mubr.msk.f32.mxu0 %vm368_vm1, %v25980_v16 }
 0x10d   : > { %v17623_v35 = vpop.f32.mrf.mxu1  ;;  %17922 = vmatmul.mubr.msk.f32.gmra.mxu1 %vm368_vm1, %v3165_v62  ;;  %v20421_v18 = vpop.f32.mrf.mxu0  ;;  %v3538_v62 = vld [vmem:[#allocation2 + $0x4a] sm:$0xff] }
 0x10e   : > { %v20419_v40 = vadd.f32 %v17623_v35, %v17573_v38  ;;  %17924 = vmatprep.mubr.msk.f32.mxu1 %vm368_vm1, %v3166_v4  ;;  %v3172_v38 = vld [vmem:[#allocation2 + $0x169] sm:$0xff] }
 0x10f   : > { %v20424_v23 = vpop.f32.mrf.mxu1  ;;  %v17582_v25 = vpop.f32.mrf.mxu0  ;;  %17881 = vmatmul.mubr.msk.f32.gmra.mxu0 %vm368_vm1, %v19937_v3 }
 0x110   : > { %17883 = vmatprep.mubr.msk.f32.mxu0 %vm368_vm1, %v19939_v17 }
 0x111   : > { %v17626_v27 = vpop.f32.mrf.mxu1  ;;  %17925 = vmatmul.mubr.msk.f32.gmra.mxu1 %vm368_vm1, %v3167_v19  ;;  %v20433_v45 = vpop.f32.mrf.mxu0 }
 0x112   : > { %v20431_v37 = vadd.f32 %v17626_v27, %v17576_v47  ;;  %25981 = vst [vmem:[#allocation22_spill] sm:$0xff] %v20433_v45  ;;  %17927 = vmatprep.mubr.msk.f32.mxu1 %vm368_vm1, %v3168_v24  ;;  %v3177_v24 = vld [vmem:[#allocation2 + $0x1a1] sm:$0xff] }
 0x113   : > { %v20436_v60 = vpop.f32.mrf.mxu1  ;;  %v17585_v6 = vpop.f32.mrf.mxu0  ;;  %17884 = vmatmul.mubr.msk.f32.gmra.mxu0 %vm368_vm1, %v19959_v61 }
 0x114   : > { %17886 = vmatprep.mubr.msk.f32.mxu0 %vm368_vm1, %v20149_v44  ;;  %v2787_v44 = vld [vmem:[#allocation2 + $0x1a0] sm:$0xff] }
 0x115   : > { %v17629_v3 = vpop.f32.mrf.mxu1  ;;  %17928 = vmatmul.mubr.msk.f32.gmra.mxu1 %vm368_vm1, %v3169_v52  ;;  %v20445_v9 = vpop.f32.mrf.mxu0 }
 0x116   : > { %v20443_v17 = vadd.f32 %v17629_v3, %v17579_v10  ;;  %25982 = vst [vmem:[#allocation24_spill] sm:$0xff] %v20445_v9  ;;  %17930 = vmatprep.mubr.msk.f32.mxu1 %vm368_vm1, %v3170_v5  ;;  %v3176_v10 = vld [vmem:[#allocation2 + $0x199] sm:$0xff]  ;;  %v3541_v5 = vld [vmem:[#allocation2 + $0x6a] sm:$0xff] }
 0x117   : > { %v20448_v28 = vpop.f32.mrf.mxu1  ;;  %v17588_v58 = vpop.f32.mrf.mxu0  ;;  %17887 = vmatmul.mubr.msk.f32.gmra.mxu0 %vm368_vm1, %v20166_v31 }
 0x118   : > { %17889 = vmatprep.mubr.msk.f32.mxu0 %vm368_vm1, %v2786_v26 }
 0x119   : > { %v17632_v61 = vpop.f32.mrf.mxu1  ;;  %17931 = vmatmul.mubr.msk.f32.gmra.mxu1 %vm368_vm1, %v3171_v21  ;;  %v20456_v46 = vpop.f32.mrf.mxu0  ;;  %v3542_v21 = vld [vmem:[#allocation2 + $0x7a] sm:$0xff] }
 0x11a   : > { %v20454_v48 = vadd.f32 %v17632_v61, %v17582_v25  ;;  %25983 = vst [vmem:[#allocation31_spill] sm:$0xff] %v20456_v46  ;;  %17933 = vmatprep.mubr.msk.f32.mxu1 %vm368_vm1, %v3172_v38  ;;  %v3540_v25 = vld [vmem:[#allocation2 + $0x62] sm:$0xff] }
 0x11b   : > { %v20459_v34 = vpop.f32.mrf.mxu1  ;;  %v17591_v36 = vpop.f32.mrf.mxu0  ;;  %17890 = vmatmul.mubr.msk.f32.gmra.mxu0 %vm368_vm1, %v2787_v44  ;;  %v3543_v61 = vld [vmem:[#allocation2 + $0x82] sm:$0xff] }
 0x11c   : > { %25984 = vst [vmem:[#allocation26_spill] sm:$0xff] %v20459_v34  ;;  %17944 = vmatprep.mubr.msk.f32.mxu0 %vm368_vm1, %v19961_v1  ;;  %v3539_v1 = vld [vmem:[#allocation2 + $0x52] sm:$0xff] }
 0x11d   : > { %v17635_v47 = vpop.f32.mrf.mxu1  ;;  %17934 = vmatmul.mubr.msk.f32.gmra.mxu1 %vm368_vm1, %v3173_v41  ;;  %v20467_v50 = vpop.f32.mrf.mxu0 }
 0x11e   : > { %v20465_v31 = vadd.f32 %v17635_v47, %v17585_v6  ;;  %25985 = vst [vmem:[#allocation27_spill] sm:$0xff] %v20467_v50  ;;  %17936 = vmatprep.mubr.msk.f32.mxu1 %vm368_vm1, %v20277_v51 }
 0x11f   : > { %v20471_v4 = vpop.f32.mrf.mxu1  ;;  %v17646_v13 = vpop.f32.mrf.mxu0  ;;  %17945 = vmatmul.mubr.msk.f32.vlgmr.msra.gmra.mxu0 %vm368_vm1, %v19971_v33 }
 0x120   : > { %25986 = vst [vmem:[#allocation28_spill] sm:$0xff] %v20471_v4  ;;  %v1554_v16 = vadd.f32 %v17646_v13, %v20323_v30  ;;  %17947 = vmatprep.mubr.msk.f32.mxu0 %vm368_vm1, %v3538_v62 }
 0x121   : > { %v17638_v35 = vpop.f32.mrf.mxu1  ;;  %17937 = vmatmul.mubr.msk.f32.gmra.mxu1 %vm368_vm1, %v20285_v55  ;;  %v1394_v51 = vpop.f32.mrf.mxu0 }
 0x122   : > { %v20479_v19 = vadd.f32 %v17638_v35, %v17588_v58  ;;  %17939 = vmatprep.mubr.msk.f32.mxu1 %vm368_vm1, %v3176_v10  ;;  %v20485_v33 = vadd.f32 %v1394_v51, %v20326_v54 }
 0x123   : > { %v20482_v27 = vpop.f32.mrf.mxu1  ;;  %v17649_v52 = vpop.f32.mrf.mxu0  ;;  %17948 = vmatmul.mubr.msk.f32.gmra.mxu0 %vm368_vm1, %v3539_v1  ;;  %v3546_v1 = vld [vmem:[#allocation2 + $0xaa] sm:$0xff] }
 0x124   : > { %25987 = vst [vmem:[#allocation4_spill] sm:$0xff] %v20482_v27  ;;  %v1556_v55 = vadd.f32 %v17649_v52, %v20333_v7  ;;  %17950 = vmatprep.mubr.msk.f32.mxu0 %vm368_vm1, %v3540_v25 }
 0x125   : > { %v17641_v30 = vpop.f32.mrf.mxu1  ;;  %17940 = vmatmul.mubr.msk.f32.gmra.mxu1 %vm368_vm1, %v3177_v24  ;;  %v1404_v3 = vpop.f32.mrf.mxu0 }
 0x126   : > { %v20491_v6 = vadd.f32 %v17641_v30, %v17591_v36  ;;  %v20496_v54 = vadd.f32 %v1404_v3, %v20336_v22  ;;  %v3544_v36 = vld [vmem:[#allocation2 + $0x92] sm:$0xff] }
 0x127   : > { %v20493_v26 = vpop.f32.mrf.mxu1  ;;  %v17652_v38 = vpop.f32.mrf.mxu0  ;;  %17951 = vmatmul.mubr.msk.f32.gmra.mxu0 %vm368_vm1, %v3541_v5  ;;  %v3548_v5 = vld [vmem:[#allocation2 + $0xc2] sm:$0xff] }
 0x128   : > { %25988 = vst [vmem:[#allocation5_spill] sm:$0xff] %v20493_v26  ;;  %v1558_v58 = vadd.f32 %v17652_v38, %v20343_v43  ;;  %17953 = vmatprep.mubr.msk.f32.mxu0 %vm368_vm1, %v3542_v21  ;;  %v3545_v43 = vld [vmem:[#allocation2 + $0x9a] sm:$0xff] }
 0x129   : > { %v17696_v7 = vpop.f32.mrf.mxu1  ;;  %v1414_v41 = vpop.f32.mrf.mxu0 }
 0x12a   : > { %v20501_v44 = vadd.f32 %v17696_v7, %v1554_v16  ;;  %v20504_v47 = vadd.f32 %v1414_v41, %v20346_v0  ;;  %v3549_v7 = vld [vmem:[#allocation2 + $0xca] sm:$0xff] }
 0x12b   : > { %v20506_v62 = vpop.f32.mrf.mxu1  ;;  %v17655_v22 = vpop.f32.mrf.mxu0  ;;  %17954 = vmatmul.mubr.msk.f32.gmra.mxu0 %vm368_vm1, %v3543_v61 }
 0x12c   : > { %v1560_v10 = vadd.f32 %v17655_v22, %v20353_v42  ;;  %17956 = vmatprep.mubr.msk.f32.mxu0 %vm368_vm1, %v3544_v36  ;;  %v3547_v42 = vld [vmem:[#allocation2 + $0xb2] sm:$0xff] }
 0x12d   : > { %v17699_v13 = vpop.f32.mrf.mxu1  ;;  %v1424_v16 = vpop.f32.mrf.mxu0 }
 0x12e   : > { %v20511_v35 = vadd.f32 %v17699_v13, %v1556_v55  ;;  %v20514_v51 = vadd.f32 %v1424_v16, %v20356_v59  ;;  %v15432_v59 = vld [vmem:[%s25800_s3 + $0x4] sm:$0xf] }
 0x12f   : > { %v20516_v0 = vpop.f32.mrf.mxu1  ;;  %v17658_v24 = vpop.f32.mrf.mxu0  ;;  %17957 = vmatmul.mubr.msk.f32.gmra.mxu0 %vm368_vm1, %v3545_v43  ;;  %17992 = vmatprep.subr.msk.mxu1 %vm642_vm0, %v15432_v59 }
 0x130   : > { %v1562_v25 = vadd.f32 %v17658_v24, %v20363_v11  ;;  %17959 = vmatprep.mubr.msk.f32.mxu0 %vm368_vm1, %v3546_v1  ;;  %17993 = vmatpush3.msk.msra.mxu1 %vm642_vm0, %v15432_v59  ;;  %v3552_v24 = vld [vmem:[#allocation2 + $0xf2] sm:$0xff] }
 0x131   : > { %v17702_v52 = vpop.f32.mrf.mxu1  ;;  %v1434_v55 = vpop.f32.mrf.mxu0 }
 0x132   : > { %v20521_v30 = vadd.f32 %v17702_v52, %v1558_v58  ;;  %v20527_v3 = vadd.f32 %v1434_v55, %v20366_v20  ;;  %v3550_v20 = vld [vmem:[#allocation2 + $0xda] sm:$0xff] }
 0x133   : > { %v20529_v21 = vpop.f32.mrf.mxu1  ;;  %v17661_v11 = vpop.f32.mrf.mxu0  ;;  %17960 = vmatmul.mubr.msk.f32.gmra.mxu0 %vm368_vm1, %v3547_v42 }
 0x134   : > { %v1564_v38 = vadd.f32 %v17661_v11, %v20373_v32  ;;  %17962 = vmatprep.mubr.msk.f32.mxu0 %vm368_vm1, %v3548_v5  ;;  %v3551_v32 = vld [vmem:[#allocation2 + $0xe2] sm:$0xff]  ;;  %v3554_v11 = vld [vmem:[#allocation2 + $0x10a] sm:$0xff] }
 0x135   : > { %v17705_v58 = vpop.f32.mrf.mxu1  ;;  %v1444_v41 = vpop.f32.mrf.mxu0 }
 0x136   : > { %v20536_v61 = vadd.f32 %v17705_v58, %v1560_v10  ;;  %v20539_v36 = vadd.f32 %v1444_v41, %v20376_v2 }
 0x137   : > { %v20541_v22 = vpop.f32.mrf.mxu1  ;;  %v17664_v13 = vpop.f32.mrf.mxu0  ;;  %17963 = vmatmul.mubr.msk.f32.gmra.mxu0 %vm368_vm1, %v3549_v7 }
 0x138   : > { %v1566_v43 = vadd.f32 %v17664_v13, %v20383_v12  ;;  %17965 = vmatprep.mubr.msk.f32.mxu0 %vm368_vm1, %v3550_v20  ;;  %v3553_v12 = vld [vmem:[#allocation2 + $0xfa] sm:$0xff] }
 0x139   : > { %v17708_v16 = vpop.f32.mrf.mxu1  ;;  %v1454_v10 = vpop.f32.mrf.mxu0 }
 0x13a   : > { %v20546_v1 = vadd.f32 %v17708_v16, %v1562_v25  ;;  %v20549_v52 = vadd.f32 %v1454_v10, %v20388_v29  ;;  %v3556_v16 = vld [vmem:[#allocation2 + $0x122] sm:$0xff] }
 0x13b   : > { %v20551_v2 = vpop.f32.mrf.mxu1  ;;  %v17667_v42 = vpop.f32.mrf.mxu0  ;;  %17966 = vmatmul.mubr.msk.f32.gmra.mxu0 %vm368_vm1, %v3551_v32 }
 0x13c   : > { %25989 = vst [vmem:[#allocation6_spill] sm:$0xff] %v20549_v52  ;;  %v1568_v55 = vadd.f32 %v17667_v42, %v20395_v15  ;;  %17968 = vmatprep.mubr.msk.f32.mxu0 %vm368_vm1, %v3552_v24  ;;  %v3555_v15 = vld [vmem:[#allocation2 + $0x112] sm:$0xff] }
 0x13d   : > { %v17711_v5 = vpop.f32.mrf.mxu1  ;;  %v1464_v25 = vpop.f32.mrf.mxu0 }
 0x13e   : > { %v20556_v59 = vadd.f32 %v17711_v5, %v1564_v38  ;;  %v20559_v58 = vadd.f32 %v1464_v25, %v20400_v39 }
 0x13f   : > { %v20561_v29 = vpop.f32.mrf.mxu1  ;;  %v17670_v7 = vpop.f32.mrf.mxu0  ;;  %17969 = vmatmul.mubr.msk.f32.gmra.mxu0 %vm368_vm1, %v3553_v12 }
 0x140   : > { %25990 = vst [vmem:[#allocation7_spill] sm:$0xff] %v20559_v58  ;;  %25991 = vst [vmem:[#allocation8_spill] sm:$0xff] %v20561_v29  ;;  %v1570_v41 = vadd.f32 %v17670_v7, %v20407_v53  ;;  %17971 = vmatprep.mubr.msk.f32.mxu0 %vm368_vm1, %v3554_v11  ;;  %v3557_v53 = vld [vmem:[#allocation2 + $0x12a] sm:$0xff] }
 0x141   : > { %v17714_v20 = vpop.f32.mrf.mxu1  ;;  %v20568_v38 = vpop.f32.mrf.mxu0 }
 0x142   : > { %v20566_v13 = vadd.f32 %v17714_v20, %v1566_v43  ;;  %25992 = vst [vmem:[#allocation9_spill] sm:$0xff] %v20568_v38  ;;  %v3558_v43 = vld [vmem:[#allocation2 + $0x13a] sm:$0xff] }
 0x143   : > { %v20570_v32 = vpop.f32.mrf.mxu1  ;;  %v17673_v39 = vpop.f32.mrf.mxu0  ;;  %17972 = vmatmul.mubr.msk.f32.gmra.mxu0 %vm368_vm1, %v3555_v15 }
 0x144   : > { %25993 = vst [vmem:[#allocation10_spill] sm:$0xff] %v20570_v32  ;;  %v1572_v10 = vadd.f32 %v17673_v39, %v20419_v40  ;;  %17974 = vmatprep.mubr.msk.f32.mxu0 %vm368_vm1, %v3556_v16  ;;  %v3559_v40 = vld [vmem:[#allocation2 + $0x142] sm:$0xff] }
 0x145   : > { %v17717_v24 = vpop.f32.mrf.mxu1  ;;  %v20577_v5 = vpop.f32.mrf.mxu0 }
 0x146   : > { %v20575_v42 = vadd.f32 %v17717_v24, %v1568_v55  ;;  %25994 = vst [vmem:[#allocation11_spill] sm:$0xff] %v20577_v5  ;;  %v3560_v55 = vld [vmem:[#allocation2 + $0x152] sm:$0xff] }
 0x147   : > { %v20579_v12 = vpop.f32.mrf.mxu1  ;;  %v17676_v25 = vpop.f32.mrf.mxu0  ;;  %17975 = vmatmul.mubr.msk.f32.gmra.mxu0 %vm368_vm1, %v3557_v53 }
 0x148   : > { %25995 = vst [vmem:[#allocation12_spill] sm:$0xff] %v20579_v12  ;;  %v1574_v11 = vadd.f32 %v17676_v25, %v20431_v37  ;;  %17977 = vmatprep.mubr.msk.f32.mxu0 %vm368_vm1, %v3558_v43  ;;  %v3561_v37 = vld [vmem:[#allocation2 + $0x15a] sm:$0xff] }
 0x149   : > { %v17720_v7 = vpop.f32.mrf.mxu1  ;;  %v20586_v15 = vpop.f32.mrf.mxu0  ;;  %v4137_v12 = vld [vmem:[%s25800_s3] sm:$0xf] }
 0x14a   : > { %v20584_v20 = vadd.f32 %v17720_v7, %v1570_v41  ;;  %25996 = vst [vmem:[#allocation13_spill] sm:$0xff] %v20586_v15  ;;  %v3562_v41 = vld [vmem:[#allocation2 + $0x16a] sm:$0xff]  ;;  %18042 = vmatprep.subr.msk.mxu0 %vm642_vm0, %v4137_v12 }
 0x14b   : > { %v20588_v16 = vpop.f32.mrf.mxu1  ;;  %v17679_v39 = vpop.f32.mrf.mxu0  ;;  %17978 = vmatmul.mubr.msk.f32.gmra.mxu0 %vm368_vm1, %v3559_v40 }
 0x14c   : > { %25997 = vst [vmem:[#allocation14_spill] sm:$0xff] %v20588_v16  ;;  %v1576_v24 = vadd.f32 %v17679_v39, %v20443_v17  ;;  %17980 = vmatprep.mubr.msk.f32.mxu0 %vm368_vm1, %v3560_v55  ;;  %v3563_v17 = vld [vmem:[#allocation2 + $0x172] sm:$0xff]  ;;  %18043 = vmatpush3.msk.msra.mxu0 %vm642_vm0, %v4137_v12 }
 0x14d   : > { %v17723_v5 = vpop.f32.mrf.mxu1  ;;  %v20595_v43 = vpop.f32.mrf.mxu0 }
 0x14e   : > { %v20593_v53 = vadd.f32 %v17723_v5, %v1572_v10  ;;  %25998 = vst [vmem:[#allocation15_spill] sm:$0xff] %v20595_v43 }
 0x14f   : > { %v20597_v25 = vpop.f32.mrf.mxu1  ;;  %v17682_v7 = vpop.f32.mrf.mxu0  ;;  %17981 = vmatmul.mubr.msk.f32.gmra.mxu0 %vm368_vm1, %v3561_v37 }
 0x150   : > { %25999 = vst [vmem:[#allocation16_spill] sm:$0xff] %v20597_v25  ;;  %v1578_v15 = vadd.f32 %v17682_v7, %v20454_v48  ;;  %17983 = vmatprep.mubr.msk.f32.mxu0 %vm368_vm1, %v3562_v41  ;;  %v3566_v41 = vld [vmem:[#allocation2 + $0x19a] sm:$0xff] }
 0x151   : > { %v17726_v16 = vpop.f32.mrf.mxu1  ;;  %v20604_v55 = vpop.f32.mrf.mxu0 }
 0x152   : > { %v20602_v40 = vadd.f32 %v17726_v16, %v1574_v11  ;;  %26000 = vst [vmem:[#allocation17_spill] sm:$0xff] %v20604_v55 }
 0x153   : > { %v20606_v10 = vpop.f32.mrf.mxu1  ;;  %v17685_v5 = vpop.f32.mrf.mxu0  ;;  %17984 = vmatmul.mubr.msk.f32.gmra.mxu0 %vm368_vm1, %v3563_v17 }
 0x154   : > { %26001 = vst [vmem:[#allocation18_spill] sm:$0xff] %v20606_v10  ;;  %v1580_v39 = vadd.f32 %v17685_v5, %v20465_v31  ;;  %17986 = vmatprep.mubr.msk.f32.mxu0 %vm368_vm1, %v20297_v57  ;;  %v3567_v31 = vld [vmem:[#allocation2 + $0x1a2] sm:$0xff] }
 0x155   : > { %v17729_v43 = vpop.f32.mrf.mxu1  ;;  %v20614_v37 = vpop.f32.mrf.mxu0 }
 0x156   : > { %v20612_v48 = vadd.f32 %v17729_v43, %v1576_v24  ;;  %26002 = vst [vmem:[#allocation19_spill] sm:$0xff] %v20614_v37 }
 0x157   : > { %v20616_v11 = vpop.f32.mrf.mxu1  ;;  %v17688_v16 = vpop.f32.mrf.mxu0  ;;  %17987 = vmatmul.mubr.msk.f32.gmra.mxu0 %vm368_vm1, %v20309_v8 }
 0x158   : > { %26003 = vst [vmem:[#allocation20_spill] sm:$0xff] %v20616_v11  ;;  %v1582_v7 = vadd.f32 %v17688_v16, %v20479_v19  ;;  %17989 = vmatprep.mubr.msk.f32.mxu0 %vm368_vm1, %v3566_v41 }
 0x159   : > { %v17732_v17 = vpop.f32.mrf.mxu1  ;;  %v20624_v57 = vpop.f32.mrf.mxu0 }
 0x15a   : > { %v20622_v5 = vadd.f32 %v17732_v17, %v1578_v15  ;;  %26004 = vst [vmem:[#allocation21_spill] sm:$0xff] %v20624_v57 }
 0x15b   : > { %v20626_v24 = vpop.f32.mrf.mxu1  ;;  %v17691_v43 = vpop.f32.mrf.mxu0  ;;  %17990 = vmatmul.mubr.msk.f32.gmra.mxu0 %vm368_vm1, %v3567_v31 }
 0x15c   : > { %26005 = vst [vmem:[#allocation23_spill] sm:$0xff] %v20626_v24  ;;  %v1584_v37 = vadd.f32 %v17691_v43, %v20491_v6 }
 0x15d   : > { %v17735_v11 = vpop.f32.mrf.mxu1  ;;  %v20632_v8 = vpop.f32.mrf.mxu0 }
 0x15e   : > { %v20630_v55 = vadd.f32 %v17735_v11, %v1580_v39  ;;  %26006 = vst [vmem:[#allocation25_spill] sm:$0xff] %v20632_v8 }
 0x15f   : > { %v20634_v19 = vpop.f32.mrf.mxu1  ;;  %v17746_v41 = vpop.f32.mrf.mxu0 }
 0x160   : > { %26007 = vst [vmem:[#allocation29_spill] sm:$0xff] %v20634_v19  ;;  %v20637_v15 = vadd.f32 %v17746_v41, %v20501_v44 }
 0x161   : > { %v17738_v16 = vpop.f32.mrf.mxu1  ;;  %v20641_v57 = vpop.f32.mrf.mxu0 }
 0x162   : > { %v20639_v17 = vadd.f32 %v17738_v16, %v1582_v7 }
 0x163   : > { %v20643_v24 = vpop.f32.mrf.mxu1  ;;  %v17749_v31 = vpop.f32.mrf.mxu0 }
 0x164   : > { %26008 = vst [vmem:[#allocation30_spill] sm:$0xff] %v20643_v24  ;;  %v20646_v39 = vadd.f32 %v17749_v31, %v20511_v35 }
 0x165   : > { %v17741_v6 = vpop.f32.mrf.mxu1  ;;  %v20650_v43 = vpop.f32.mrf.mxu0 }
 0x166   : > { %v20648_v11 = vadd.f32 %v17741_v6, %v1584_v37 }
 0x167   : > { %v20652_v8 = vpop.f32.mrf.mxu1  ;;  %v17752_v19 = vpop.f32.mrf.mxu0 }
 0x168   : > { %26009 = vst [vmem:[#allocation32_spill] sm:$0xff] %v20652_v8  ;;  %v20655_v44 = vadd.f32 %v17752_v19, %v20521_v30 }
 0x169   : > { %v20657_v7 = vpop.f32.mrf.mxu1  ;;  %v20659_v41 = vpop.f32.mrf.mxu0 }
 0x16b   : > { %v20661_v16 = vpop.f32.mrf.mxu1  ;;  %v17755_v24 = vpop.f32.mrf.mxu0 }
 0x16c   : > { %v20664_v35 = vadd.f32 %v17755_v24, %v20536_v61 }
 0x16d   : > { %v20666_v37 = vpop.f32.mrf.mxu1  ;;  %v20668_v31 = vpop.f32.mrf.mxu0 }
 0x16f   : > { %v20670_v6 = vpop.f32.mrf.mxu1  ;;  %v17758_v8 = vpop.f32.mrf.mxu0 }
 0x170   : > { %v20673_v30 = vadd.f32 %v17758_v8, %v20546_v1  ;;  %v20698_v8 = vld [vmem:[%s25800_s3 + $0x8] sm:$0xf] }
 0x171   : > { %v20675_v19 = vpop.f32.mrf.mxu1  ;;  %v20677_v10 = vpop.f32.mrf.mxu0  ;;  %26012 = vst [vmem:[#allocation35_spill] sm:$0xff] %v20698_v8  ;;  %18092 = vmatprep.subr.msk.mxu1 %vm642_vm0, %v20698_v8 }
 0x173   : > { %v20679_v25 = vpop.f32.mrf.mxu1  ;;  %v17761_v38 = vpop.f32.mrf.mxu0 }
 0x174   : > { %v20682_v61 = vadd.f32 %v17761_v38, %v20556_v59 }
 0x175   : > { %v20684_v24 = vpop.f32.mrf.mxu1  ;;  %v20689_v58 = vpop.f32.mrf.mxu0 }
 0x176   : > { %26010 = vst [vmem:[#allocation33_spill] sm:$0xff] %v20682_v61  ;;  %26011 = vst [vmem:[#allocation34_spill] sm:$0xff] %v20689_v58 }
 0x177   : > { %v20692_v1 = vpop.f32.mrf.mxu1  ;;  %v17764_v59 = vpop.f32.mrf.mxu0 }
 0x178   : > { %v20703_v38 = vadd.f32 %v17764_v59, %v20566_v13 }
 0x179   : > { %v20705_v26 = vpop.f32.mrf.mxu1  ;;  %v20707_v50 = vpop.f32.mrf.mxu0 }
 0x17a   : > { %26013 = vst [vmem:[#allocation36_spill] sm:$0xff] %v20703_v38  ;;  %26014 = vst [vmem:[#allocation37_spill] sm:$0xff] %v20707_v50 }
 0x17b   : > { %v20709_v27 = vpop.f32.mrf.mxu1  ;;  %v17767_v46 = vpop.f32.mrf.mxu0 }
 0x17c   : > { %26015 = vst [vmem:[#allocation38_spill] sm:$0xff] %v20709_v27  ;;  %v20712_v12 = vadd.f32 %v17767_v46, %v20575_v42 }
 0x17d   : > { %v20714_v32 = vpop.f32.mrf.mxu1  ;;  %v20716_v52 = vpop.f32.mrf.mxu0 }
 0x17e   : > { %26016 = vst [vmem:[#allocation39_spill] sm:$0xff] %v20712_v12  ;;  %26017 = vst [vmem:[#allocation40_spill] sm:$0xff] %v20714_v32 }
 0x17f   : > { %26018 = vst [vmem:[#allocation41_spill] sm:$0xff] %v20716_v52  ;;  %v20718_v4 = vpop.f32.mrf.mxu1  ;;  %v17770_v8 = vpop.f32.mrf.mxu0 }
 0x180   : > { %26019 = vst [vmem:[#allocation42_spill] sm:$0xff] %v20718_v4  ;;  %v20721_v13 = vadd.f32 %v17770_v8, %v20584_v20 }
 0x181   : > { %v20723_v59 = vpop.f32.mrf.mxu1  ;;  %v20725_v38 = vpop.f32.mrf.mxu0 }
 0x182   : > { %26020 = vst [vmem:[#allocation43_spill] sm:$0xff] %v20721_v13  ;;  %26021 = vst [vmem:[#allocation44_spill] sm:$0xff] %v20723_v59 }
 0x183   : > { %26022 = vst [vmem:[#allocation45_spill] sm:$0xff] %v20725_v38  ;;  %v20727_v50 = vpop.f32.mrf.mxu1  ;;  %v17773_v9 = vpop.f32.mrf.mxu0 }
 0x184   : > { %26023 = vst [vmem:[#allocation46_spill] sm:$0xff] %v20727_v50  ;;  %v20730_v46 = vadd.f32 %v17773_v9, %v20593_v53 }
 0x185   : > { %v20732_v42 = vpop.f32.mrf.mxu1  ;;  %v20734_v12 = vpop.f32.mrf.mxu0 }
 0x186   : > { %26024 = vst [vmem:[#allocation47_spill] sm:$0xff] %v20730_v46  ;;  %26025 = vst [vmem:[#allocation48_spill] sm:$0xff] %v20732_v42 }
 0x187   : > { %26026 = vst [vmem:[#allocation49_spill] sm:$0xff] %v20734_v12  ;;  %v20736_v52 = vpop.f32.mrf.mxu1  ;;  %v17776_v4 = vpop.f32.mrf.mxu0 }
 0x188   : > { %26027 = vst [vmem:[#allocation50_spill] sm:$0xff] %v20736_v52  ;;  %v20739_v20 = vadd.f32 %v17776_v4, %v20602_v40 }
 0x189   : > { %v20741_v8 = vpop.f32.mrf.mxu1  ;;  %v20743_v13 = vpop.f32.mrf.mxu0 }
 0x18a   : > { %26028 = vst [vmem:[#allocation51_spill] sm:$0xff] %v20739_v20  ;;  %26029 = vst [vmem:[#allocation52_spill] sm:$0xff] %v20741_v8 }
 0x18b   : > { %26030 = vst [vmem:[#allocation53_spill] sm:$0xff] %v20743_v13  ;;  %v20745_v38 = vpop.f32.mrf.mxu1  ;;  %v17779_v50 = vpop.f32.mrf.mxu0 }
 0x18c   : > { %26031 = vst [vmem:[#allocation54_spill] sm:$0xff] %v20745_v38  ;;  %v20748_v9 = vadd.f32 %v17779_v50, %v20612_v48 }
 0x18d   : > { %v20750_v53 = vpop.f32.mrf.mxu1  ;;  %v20752_v46 = vpop.f32.mrf.mxu0 }
 0x18e   : > { %26032 = vst [vmem:[#allocation55_spill] sm:$0xff] %v20748_v9  ;;  %26033 = vst [vmem:[#allocation56_spill] sm:$0xff] %v20750_v53 }
 0x18f   : > { %26034 = vst [vmem:[#allocation57_spill] sm:$0xff] %v20752_v46  ;;  %v20754_v12 = vpop.f32.mrf.mxu1  ;;  %v17782_v52 = vpop.f32.mrf.mxu0 }
 0x190   : > { %26035 = vst [vmem:[#allocation58_spill] sm:$0xff] %v20754_v12  ;;  %v20757_v4 = vadd.f32 %v17782_v52, %v20622_v5 }
 0x191   : > { %v20759_v40 = vpop.f32.mrf.mxu1  ;;  %v20761_v20 = vpop.f32.mrf.mxu0 }
 0x192   : > { %26036 = vst [vmem:[#allocation59_spill] sm:$0xff] %v20757_v4  ;;  %26037 = vst [vmem:[#allocation60_spill] sm:$0xff] %v20759_v40 }
 0x193   : > { %26038 = vst [vmem:[#allocation61_spill] sm:$0xff] %v20761_v20  ;;  %v20763_v13 = vpop.f32.mrf.mxu1  ;;  %v17785_v38 = vpop.f32.mrf.mxu0 }
 0x194   : > { %26039 = vst [vmem:[#allocation62_spill] sm:$0xff] %v20763_v13  ;;  %v20766_v50 = vadd.f32 %v17785_v38, %v20630_v55 }
 0x195   : > { %v20768_v48 = vpop.f32.mrf.mxu1  ;;  %v20770_v9 = vpop.f32.mrf.mxu0 }
 0x196   : > { %26040 = vst [vmem:[#allocation63_spill] sm:$0xff] %v20766_v50  ;;  %26041 = vst [vmem:[#allocation64_spill] sm:$0xff] %v20768_v48 }
 0x197   : > { %26042 = vst [vmem:[#allocation65_spill] sm:$0xff] %v20770_v9  ;;  %v20772_v46 = vpop.f32.mrf.mxu1  ;;  %v17788_v12 = vpop.f32.mrf.mxu0 }
 0x198   : > { %26043 = vst [vmem:[#allocation66_spill] sm:$0xff] %v20772_v46  ;;  %v20775_v52 = vadd.f32 %v17788_v12, %v20639_v17 }
 0x199   : > { %v20777_v5 = vpop.f32.mrf.mxu1  ;;  %v20779_v4 = vpop.f32.mrf.mxu0 }
 0x19a   : > { %26044 = vst [vmem:[#allocation67_spill] sm:$0xff] %v20775_v52  ;;  %26045 = vst [vmem:[#allocation68_spill] sm:$0xff] %v20777_v5 }
 0x19b   : > { %26046 = vst [vmem:[#allocation69_spill] sm:$0xff] %v20779_v4  ;;  %v20781_v20 = vpop.f32.mrf.mxu1  ;;  %v17791_v13 = vpop.f32.mrf.mxu0 }
 0x19c   : > { %26047 = vst [vmem:[#allocation70_spill] sm:$0xff] %v20781_v20  ;;  %v20784_v55 = vadd.f32 %v17791_v13, %v20648_v11 }
 0x19d   : > { %v20786_v38 = vpop.f32.mrf.mxu1  ;;  %v20788_v50 = vpop.f32.mrf.mxu0 }
 0x19e   : > { %26048 = vst [vmem:[#allocation71_spill] sm:$0xff] %v20784_v55  ;;  %26049 = vst [vmem:[#allocation72_spill] sm:$0xff] %v20786_v38 }
 0x19f   : > { %26050 = vst [vmem:[#allocation73_spill] sm:$0xff] %v20788_v50  ;;  %v20790_v9 = vpop.f32.mrf.mxu1  ;;  %v17846_v46 = vpop.f32.mrf.mxu0 }
 0x1a0   : > { %26051 = vst [vmem:[#allocation74_spill] sm:$0xff] %v20790_v9 }
 0x1a1   : > { %v20792_v48 = vpop.f32.mrf.mxu1  ;;  %v2955_v17 = vpop.f32.mrf.mxu0 }
 0x1a2   : > { %26052 = vst [vmem:[#allocation75_spill] sm:$0xff] %v20792_v48 }
 0x1a3   : > { %v20794_v12 = vpop.f32.mrf.mxu1  ;;  %v20796_v52 = vpop.f32.mrf.mxu0 }
 0x1a4   : > { %26053 = vst [vmem:[#allocation76_spill] sm:$0xff] %v20794_v12 }
 0x1a5   : > { %v20798_v4 = vpop.f32.mrf.mxu1  ;;  %v20800_v20 = vpop.f32.mrf.mxu0 }
 0x1a6   : > { %26054 = vst [vmem:[#allocation77_spill] sm:$0xff] %v20798_v4  ;;  %v20819_v4 = vld [vmem:[%s25800_s3 + $0xc] sm:$0xf] }
 0x1a7   : > { %v20802_v11 = vpop.f32.mrf.mxu1  ;;  %v20804_v13 = vpop.f32.mrf.mxu0  ;;  %26056 = vst [vmem:[#allocation79_spill] sm:$0xff] %v20819_v4  ;;  %18142 = vmatprep.subr.msk.mxu0 %vm642_vm0, %v20819_v4 }
 0x1a8   : > { %26055 = vst [vmem:[#allocation78_spill] sm:$0xff] %v20802_v11 }
 0x1a9   : > { %v17896_v55 = vpop.f32.mrf.mxu1  ;;  %v20806_v50 = vpop.f32.mrf.mxu0 }
 0x1ab   : > { %v3345_v9 = vpop.f32.mrf.mxu1  ;;  %v20808_v38 = vpop.f32.mrf.mxu0 }
 0x1ad   : > { %v20810_v48 = vpop.f32.mrf.mxu1  ;;  %v20812_v5 = vpop.f32.mrf.mxu0 }
 0x1af   : > { %v20814_v12 = vpop.f32.mrf.mxu1  ;;  %v20821_v11 = vpop.f32.mrf.mxu0 }
 0x1b0   : > { %26057 = vst [vmem:[#allocation80_spill] sm:$0xff] %v20821_v11 }
 0x1b1   : > { %v20825_v40 = vpop.f32.mrf.mxu1  ;;  %v20827_v53 = vpop.f32.mrf.mxu0 }
 0x1b2   : > { %26058 = vst [vmem:[#allocation81_spill] sm:$0xff] %v20827_v53 }
 0x1b3   : > { %v20829_v8 = vpop.f32.mrf.mxu1  ;;  %v20831_v42 = vpop.f32.mrf.mxu0 }
 0x1b4   : > { %26059 = vst [vmem:[#allocation82_spill] sm:$0xff] %v20831_v42 }
 0x1b5   : > { %v20833_v59 = vpop.f32.mrf.mxu1  ;;  %v20835_v32 = vpop.f32.mrf.mxu0 }
 0x1b6   : > { %26060 = vst [vmem:[#allocation83_spill] sm:$0xff] %v20835_v32 }
 0x1b7   : > { %v20837_v61 = vpop.f32.mrf.mxu0  ;;  %v20839_v58 = vpop.f32.mrf.mxu1 }
 0x1b8   : > { %26061 = vst [vmem:[#allocation84_spill] sm:$0xff] %v20837_v61  ;;  %26062 = vst [vmem:[#allocation85_spill] sm:$0xff] %v20839_v58 }
 0x1b9   : > { %v20841_v34 = vpop.f32.mrf.mxu0  ;;  %v20845_v4 = vpop.f32.mrf.mxu1 }
 0x1ba   : > { %26063 = vst [vmem:[#allocation86_spill] sm:$0xff] %v20841_v34  ;;  %26065 = vst [vmem:[#allocation88_spill] sm:$0xff] %v20845_v4 }
 0x1bb   : > { %v20843_v45 = vpop.f32.mrf.mxu0  ;;  %v20851_v27 = vpop.f32.mrf.mxu1 }
 0x1bc   : > { %26064 = vst [vmem:[#allocation87_spill] sm:$0xff] %v20843_v45  ;;  %26068 = vst [vmem:[#allocation91_spill] sm:$0xff] %v20851_v27 }
 0x1bd   : > { %v20847_v11 = vpop.f32.mrf.mxu0  ;;  %v20857_v32 = vpop.f32.mrf.mxu1 }
 0x1be   : > { %26066 = vst [vmem:[#allocation89_spill] sm:$0xff] %v20847_v11  ;;  %26071 = vst [vmem:[#allocation94_spill] sm:$0xff] %v20857_v32 }
 0x1bf   : > { %v20849_v53 = vpop.f32.mrf.mxu0  ;;  %v20863_v34 = vpop.f32.mrf.mxu1 }
 0x1c0   : > { %26067 = vst [vmem:[#allocation90_spill] sm:$0xff] %v20849_v53  ;;  %26074 = vst [vmem:[#allocation97_spill] sm:$0xff] %v20863_v34 }
 0x1c1   : > { %v20853_v42 = vpop.f32.mrf.mxu0  ;;  %v20869_v11 = vpop.f32.mrf.mxu1 }
 0x1c2   : > { %26069 = vst [vmem:[#allocation92_spill] sm:$0xff] %v20853_v42 }
 0x1c3   : > { %v20855_v29 = vpop.f32.mrf.mxu0  ;;  %v20875_v42 = vpop.f32.mrf.mxu1 }
 0x1c4   : > { %26070 = vst [vmem:[#allocation93_spill] sm:$0xff] %v20855_v29  ;;  %26079 = vst [vmem:[#allocation102_spill] sm:$0xff] %v20875_v42 }
 0x1c5   : > { %v20859_v61 = vpop.f32.mrf.mxu0 }
 0x1c6   : > { %26072 = vst [vmem:[#allocation95_spill] sm:$0xff] %v20859_v61  ;;  %v20881_v61 = vpop.f32.mrf.mxu1 }
 0x1c7   : > { %v20861_v58 = vpop.f32.mrf.mxu0  ;;  %26082 = vst [vmem:[#allocation105_spill] sm:$0xff] %v20881_v61 }
 0x1c8   : > { %26073 = vst [vmem:[#allocation96_spill] sm:$0xff] %v20861_v58 }
 0x1c9   : > { %v20865_v45 = vpop.f32.mrf.mxu0 }
 0x1ca   : > { %26075 = vst [vmem:[#allocation98_spill] sm:$0xff] %v20865_v45  ;;  %v20889_v45 = vpop.f32.mrf.mxu1 }
 0x1cb   : > { %v20867_v4 = vpop.f32.mrf.mxu0 }
 0x1cc   : > { %26076 = vst [vmem:[#allocation99_spill] sm:$0xff] %v20867_v4  ;;  %v1943_v4 = vadd.f32 %v20506_v62, %v20485_v33  ;;  %v20901_v61 = vpop.f32.mrf.mxu1 }
 0x1cd   : > { %v20871_v53 = vpop.f32.mrf.mxu0 }
 0x1ce   : > { %26077 = vst [vmem:[#allocation100_spill] sm:$0xff] %v20871_v53 }
 0x1cf   : > { %v20873_v27 = vpop.f32.mrf.mxu0 }
 0x1d0   : > { %26078 = vst [vmem:[#allocation101_spill] sm:$0xff] %v20873_v27  ;;  %v2333_v27 = vadd.f32 %v20641_v57, %v1943_v4  ;;  %v2726_v57 = vadd.f32 %v20666_v37, %v20646_v39 }
 0x1d1   : > { %v20877_v29 = vpop.f32.mrf.mxu0 }
 0x1d2   : > { %26080 = vst [vmem:[#allocation103_spill] sm:$0xff] %v20877_v29  ;;  %v2724_v29 = vadd.f32 %v20657_v7, %v20637_v15  ;;  %v1947_v15 = vadd.f32 %v20529_v21, %v20504_v47 }
 0x1d3   : > { %v20879_v32 = vpop.f32.mrf.mxu0 }
 0x1d4   : > { %26081 = vst [vmem:[#allocation104_spill] sm:$0xff] %v20879_v32  ;;  %v1945_v32 = vadd.f32 %v20516_v0, %v20496_v54  ;;  %v3117_v0 = vadd.f32 %v20796_v52, %v2726_v57 }
 0x1d5   : > { %v20883_v58 = vpop.f32.mrf.mxu0 }
 0x1d6   : > { %26083 = vst [vmem:[#allocation106_spill] sm:$0xff] %v20883_v58  ;;  %v2723_v58 = vadd.f32 %v20661_v16, %v2333_v27  ;;  %v2335_v62 = vadd.f32 %v20650_v43, %v1945_v32  ;;  %v20913_v27 = vld [vmem:[%s25799_s2] ss:$0 sm:$0xff]  ;;  %v2337_v43 = vadd.f32 %v20659_v41, %v1947_v15  ;;  %v3507_v39 = vadd.f32 %v20810_v48, %v3117_v0 }
 0x1d7   : > { %v20885_v34 = vpop.f32.mrf.mxu0 }
 0x1d8   : > { %26084 = vst [vmem:[#allocation107_spill] sm:$0xff] %v20885_v34  ;;  %v3115_v34 = vadd.f32 %v17846_v46, %v2724_v29  ;;  %v3114_v4 = vadd.f32 %v2955_v17, %v2723_v58  ;;  %v2725_v54 = vadd.f32 %v20670_v6, %v2335_v62  ;;  %v20920_v58 = vpop.f32.mrf.mxu1  ;;  %v1949_v6 = vadd.f32 %v20541_v22, %v20514_v51 }
 0x1d9   : > { %v20891_v53 = vpop.f32.mrf.mxu0  ;;  %v2727_v46 = vadd.f32 %v20679_v25, %v2337_v43  ;;  %v2730_v51 = vadd.f32 %v20684_v24, %v20664_v35  ;;  %v1951_v35 = vadd.f32 %v20551_v2, %v20527_v3  ;;  %v2732_v3 = vadd.f32 %v20705_v26, %v20673_v30 }
 0x1da   : > { %26085 = vst [vmem:[#allocation108_spill] sm:$0xff] %v20891_v53  ;;  %v3505_v53 = vadd.f32 %v17896_v55, %v3115_v34  ;;  %v3504_v29 = vadd.f32 %v3345_v9, %v3114_v4  ;;  %v2728_v34 = vadd.f32 %v20675_v19, %v20655_v44  ;;  %v3116_v21 = vadd.f32 %v20800_v20, %v2725_v54  ;;  %v20939_v25 = vpop.f32.mrf.mxu1 }
 0x1db   : > { %v20896_v42 = vpop.f32.mrf.mxu0  ;;  %v20933_v20 = vadd.f32 %v20412_v63, %v20385_v14  ;;  %v2339_v48 = vadd.f32 %v20668_v31, %v1949_v6  ;;  %v3118_v22 = vadd.f32 %v20806_v50, %v2727_v46  ;;  %v20947_v31 = vadd.f32 %v20424_v23, %v20397_v49  ;;  %v26095_v46 = vld [vmem:[#allocation81_spill] sm:$0xff] }
 0x1dc   : > { %v3119_v41 = vadd.f32 %v20804_v13, %v2728_v34  ;;  %v3506_v44 = vadd.f32 %v20814_v12, %v3116_v21  ;;  %v3121_v50 = vadd.f32 %v20808_v38, %v2730_v51  ;;  %v20959_v49 = vadd.f32 %v20436_v60, %v20409_v56  ;;  %v26086_v60 = vld [vmem:[#allocation8_spill] sm:$0xff]  ;;  %v26090_v21 = vld [vmem:[#allocation22_spill] sm:$0xff] }
 0x1dd   : > { %v20903_v33 = vpop.f32.mrf.mxu0  ;;  %v2729_v24 = vadd.f32 %v20692_v1, %v2339_v48  ;;  %v3508_v13 = vadd.f32 %v20829_v8, %v3118_v22  ;;  %v2341_v23 = vadd.f32 %v20677_v10, %v1951_v35  ;;  %v20965_v1 = vpop.f32.mrf.mxu1  ;;  %v20972_v56 = vadd.f32 %v20448_v28, %v20421_v18  ;;  %v26087_v10 = vld [vmem:[#allocation38_spill] sm:$0xff] }
 0x1de   : > { %v3509_v17 = vadd.f32 %v20825_v40, %v3119_v41  ;;  %v3511_v38 = vadd.f32 %v20833_v59, %v3121_v50  ;;  %v1953_v26 = vadd.f32 %v26086_v60, %v20539_v36  ;;  %v26092_v28 = vld [vmem:[#allocation34_spill] sm:$0xff]  ;;  %v26093_v36 = vld [vmem:[#allocation33_spill] sm:$0xff]  ;;  %v21012_v60 = vld [vmem:[%s25800_s3 + $0x10] sm:$0xf] }
 0x1df   : > { %v17946_v7 = vpop.f32.mrf.mxu0  ;;  %v3120_v2 = vadd.f32 %v20812_v5, %v2729_v24  ;;  %v2731_v30 = vadd.f32 %v26087_v10, %v2341_v23  ;;  %v26088_v5 = vld [vmem:[#allocation80_spill] sm:$0xff]  ;;  %v26100_v35 = vld [vmem:[#allocation10_spill] sm:$0xff] }
 0x1e0   : > { %v3895_v32 = vadd.f32 %v17946_v7, %v3505_v53  ;;  %v3123_v0 = vadd.f32 %v26088_v5, %v2732_v3  ;;  %v26101_v50 = vld [vmem:[#allocation42_spill] sm:$0xff]  ;;  %v26103_v3 = vld [vmem:[#allocation91_spill] sm:$0xff]  ;;  %v26105_v10 = vld [vmem:[#allocation4_spill] sm:$0xff] }
 0x1e1   : > { %v3735_v47 = vpop.f32.mrf.mxu0  ;;  %v3122_v41 = vadd.f32 %v26095_v46, %v2731_v30  ;;  %v26106_v5 = vld [vmem:[#allocation37_spill] sm:$0xff]  ;;  %v26111_v46 = vld [vmem:[#allocation35_spill] sm:$0xff] }
 0x1e2   : > { %v3934_v16 = vadd.f32 %v20913_v27, %v3895_v32  ;;  %v3894_v37 = vadd.f32 %v3735_v47, %v3504_v29  ;;  %v26089_v32 = vld [vmem:[#allocation85_spill] sm:$0xff] }
 0x1e3   : > { %v17949_v9 = vpop.f32.mrf.mxu0  ;;  %v3510_v59 = vadd.f32 %v26089_v32, %v3120_v2  ;;  %v3512_v2 = vadd.f32 %v26103_v3, %v3122_v41  ;;  %v26108_v32 = vld [vmem:[#allocation44_spill] sm:$0xff]  ;;  %v26120_v3 = vld [vmem:[#allocation41_spill] sm:$0xff] }
 0x1e4   : > { %v3966_v19 = vmax.f32 %v3934_v16, 0.0  ;;  %v3933_v53 = vadd.f32 %v20913_v27, %v3894_v37  ;;  %v3897_v52 = vadd.f32 %v17949_v9, %v3507_v39  ;;  %v26091_v39 = vld [vmem:[#allocation26_spill] sm:$0xff]  ;;  %v2343_v16 = vadd.f32 %v26092_v28, %v1953_v26  ;;  %v26094_v37 = vld [vmem:[#allocation40_spill] sm:$0xff]  ;;  %v20989_v9 = vpop.f32.mrf.mxu1  ;;  %v26104_v26 = vld [vmem:[#allocation31_spill] sm:$0xff] }
 0x1e5   : > { %v3745_v55 = vpop.f32.mrf.mxu0  ;;  %v20983_v18 = vadd.f32 %v26091_v39, %v26090_v21  ;;  %v2734_v6 = vadd.f32 %v26094_v37, %v26093_v36  ;;  %v21016_v30 = vadd.f32 %v26105_v10, %v26104_v26  ;;  %v26110_v28 = vld [vmem:[#allocation94_spill] sm:$0xff] }
 0x1e6   : > { %4030 = vst.msk [vmem:[#allocation2 + $0x9] sm:$0xff] %vm368_vm1, %v3966_v19  ;;  %3998 = vst.msk [vmem:[#allocation2 + $0x21] sm:$0xff] %vm368_vm1, %v3966_v19  ;;  %v3965_v12 = vmax.f32 %v3933_v53, 0.0  ;;  %v3936_v14 = vadd.f32 %v20913_v27, %v3897_v52  ;;  %v3896_v63 = vadd.f32 %v3745_v55, %v3506_v44  ;;  %v26096_v53 = vld [vmem:[#allocation88_spill] sm:$0xff] }
 0x1e7   : > { %v17952_v40 = vpop.f32.mrf.mxu0  ;;  %v3513_v52 = vadd.f32 %v26096_v53, %v3123_v0 }
 0x1e8   : > { %3997 = vst.msk [vmem:[#allocation2 + $0x19] sm:$0xff] %vm368_vm1, %v3965_v12  ;;  %4029 = vst.msk [vmem:[#allocation2 + $0x1] sm:$0xff] %vm368_vm1, %v3965_v12  ;;  %v3968_v62 = vmax.f32 %v3936_v14, 0.0  ;;  %v3935_v57 = vadd.f32 %v20913_v27, %v3896_v63  ;;  %v3899_v4 = vadd.f32 %v17952_v40, %v3509_v17  ;;  %v26097_v17 = vld [vmem:[#allocation24_spill] sm:$0xff]  ;;  %v26099_v63 = vld [vmem:[#allocation6_spill] sm:$0xff]  ;;  %v2733_v40 = vadd.f32 %v26101_v50, %v2343_v16 }
 0x1e9   : > { %v3755_v8 = vpop.f32.mrf.mxu0  ;;  %v26098_v12 = vld [vmem:[#allocation28_spill] sm:$0xff]  ;;  %v1955_v24 = vadd.f32 %v26100_v35, %v26099_v63 }
 0x1ea   : > { %4000 = vst.msk [vmem:[#allocation2 + $0x39] sm:$0xff] %vm368_vm1, %v3968_v62  ;;  %v3967_v15 = vmax.f32 %v3935_v57, 0.0  ;;  %v3938_v7 = vadd.f32 %v20913_v27, %v3899_v4  ;;  %v3898_v54 = vadd.f32 %v3755_v8, %v3508_v13  ;;  %v20997_v14 = vadd.f32 %v26098_v12, %v26097_v17  ;;  %v26102_v13 = vld [vmem:[#allocation82_spill] sm:$0xff]  ;;  %v26117_v17 = vld [vmem:[#allocation84_spill] sm:$0xff] }
 0x1eb   : > { %v17955_v29 = vpop.f32.mrf.mxu0  ;;  %v3125_v62 = vadd.f32 %v26102_v13, %v2734_v6  ;;  %v2345_v0 = vadd.f32 %v26106_v5, %v1955_v24  ;;  %v26118_v24 = vld [vmem:[#allocation97_spill] sm:$0xff] }
 0x1ec   : > { %3999 = vst.msk [vmem:[#allocation2 + $0x31] sm:$0xff] %vm368_vm1, %v3967_v15  ;;  %v3970_v43 = vmax.f32 %v3938_v7, 0.0  ;;  %v3937_v34 = vadd.f32 %v20913_v27, %v3898_v54  ;;  %v3901_v47 = vadd.f32 %v17955_v29, %v3511_v38  ;;  %v26107_v29 = vld [vmem:[#allocation36_spill] sm:$0xff] }
 0x1ed   : > { %v3765_v44 = vpop.f32.mrf.mxu0  ;;  %v4069_v19 = vld [vmem:[#allocation2 + $0x10] sm:$0x1]  ;;  %v4070_v55 = vld [vmem:[#allocation2 + $0x28] sm:$0x1]  ;;  %v3515_v16 = vadd.f32 %v26110_v28, %v3125_v62 }
 0x1ee   : > { %4002 = vst.msk [vmem:[#allocation2 + $0x51] sm:$0xff] %vm368_vm1, %v3970_v43  ;;  %v3969_v48 = vmax.f32 %v3937_v34, 0.0  ;;  %v3940_v51 = vadd.f32 %v20913_v27, %v3901_v47  ;;  %v3900_v22 = vadd.f32 %v3765_v44, %v3510_v59  ;;  %v4139_v7 = vld [vmem:[#allocation2 + $0x9] sm:$0xff]  ;;  %v2736_v59 = vadd.f32 %v26108_v32, %v26107_v29  ;;  %v21022_v47 = vpop.f32.mrf.mxu1  ;;  %v26126_v28 = vld [vmem:[#allocation50_spill] sm:$0xff] }
 0x1ef   : > { %4087 = vst.msk [vmem:[#allocation2 + $0x11] sm:$0x1] %vm424_vm2, %v4069_v19  ;;  %v17958_v57 = vpop.f32.mrf.mxu0  ;;  %v4138_v4 = vld [vmem:[#allocation2 + $0x1] sm:$0xff]  ;;  %4088 = vst.msk [vmem:[#allocation2 + $0x29] sm:$0x1] %vm424_vm2, %v4070_v55  ;;  %v26109_v43 = vld [vmem:[#allocation83_spill] sm:$0xff] }
 0x1f0   : > { %v4033_v23 = vld [vmem:[#allocation2 + $0x1] sm:$0x1]  ;;  %4001 = vst.msk [vmem:[#allocation2 + $0x49] sm:$0xff] %vm368_vm1, %v3969_v48  ;;  %v3972_v8 = vmax.f32 %v3940_v51, 0.0  ;;  %v3939_v38 = vadd.f32 %v20913_v27, %v3900_v22  ;;  %v3903_v15 = vadd.f32 %v17958_v57, %v3513_v52  ;;  %17994 = vmatprep.mubr.msk.f32.mxu1 %vm368_vm1, %v4138_v4  ;;  %v4034_v54 = vld [vmem:[#allocation2 + $0x19] sm:$0x1]  ;;  %v3124_v34 = vadd.f32 %v26109_v43, %v2733_v40  ;;  %v21055_v26 = vpop.f32.mrf.mxu1 }
 0x1f1   : > { %4051 = vst.msk [vmem:[#allocation2] sm:$0x1] %vm424_vm2, %v4033_v23  ;;  %v3775_v21 = vpop.f32.mrf.mxu0  ;;  %17995 = vmatmul.mubr.msk.f32.vlgmr.msra.gmra.mxu1 %vm368_vm1, %v4139_v7  ;;  %v4140_v39 = vld [vmem:[#allocation2 + $0x19] sm:$0xff]  ;;  %4052 = vst.msk [vmem:[#allocation2 + $0x18] sm:$0x1] %vm424_vm2, %v4034_v54  ;;  %v26112_v44 = vld [vmem:[#allocation27_spill] sm:$0xff]  ;;  %v3127_v12 = vadd.f32 %v26117_v17, %v2736_v59 }
 0x1f2   : > { %4004 = vst.msk [vmem:[#allocation2 + $0x69] sm:$0xff] %vm368_vm1, %v3972_v8  ;;  %v3971_v36 = vmax.f32 %v3939_v38, 0.0  ;;  %v3942_v37 = vadd.f32 %v20913_v27, %v3903_v15  ;;  %v3902_v6 = vadd.f32 %v3775_v21, %v3512_v2  ;;  %18093 = vmatpush3.msk.msra.mxu1 %vm642_vm0, %v26111_v46  ;;  %17997 = vmatprep.mubr.msk.f32.mxu1 %vm368_vm1, %v4140_v39  ;;  %v4071_v41 = vld [vmem:[#allocation2 + $0x40] sm:$0x1]  ;;  %v26114_v52 = vld [vmem:[#allocation7_spill] sm:$0xff]  ;;  %v26115_v48 = vld [vmem:[#allocation12_spill] sm:$0xff] }
 0x1f3   : > { %v26113_v19 = vld [vmem:[#allocation5_spill] sm:$0xff]  ;;  %v1957_v51 = vadd.f32 %v26115_v48, %v26114_v52  ;;  %v26116_v22 = vld [vmem:[#allocation46_spill] sm:$0xff]  ;;  %v17961_v63 = vpop.f32.mrf.mxu0  ;;  %v4035_v35 = vld [vmem:[#allocation2 + $0x31] sm:$0x1]  ;;  %18192 = vmatprep.subr.msk.mxu1 %vm642_vm0, %v21012_v60  ;;  %4089 = vst.msk [vmem:[#allocation2 + $0x41] sm:$0x1] %vm424_vm2, %v4071_v41  ;;  %v3514_v50 = vadd.f32 %v26118_v24, %v3124_v34  ;;  %v3517_v29 = vadd.f32 %v20869_v11, %v3127_v12 }
 0x1f4   : > { %v21034_v53 = vadd.f32 %v26113_v19, %v26112_v44  ;;  %v2735_v55 = vadd.f32 %v26116_v22, %v2345_v0  ;;  %4003 = vst.msk [vmem:[#allocation2 + $0x61] sm:$0xff] %vm368_vm1, %v3971_v36  ;;  %v3974_v40 = vmax.f32 %v3942_v37, 0.0  ;;  %v3941_v13 = vadd.f32 %v20913_v27, %v3902_v6  ;;  %v21046_v57 = vld [vmem:[#allocation2 + $0x21] sm:$0xff]  ;;  %v26119_v4 = vld [vmem:[#allocation9_spill] sm:$0xff]  ;;  %v26121_v8 = vld [vmem:[#allocation39_spill] sm:$0xff] }
 0x1f5   : > { %v3905_v62 = vadd.f32 %v17961_v63, %v3515_v16  ;;  %4053 = vst.msk [vmem:[#allocation2 + $0x30] sm:$0x1] %vm424_vm2, %v4035_v35  ;;  %v1569_v23 = vadd.f32 %v26119_v4, %v20933_v20  ;;  %v2347_v2 = vadd.f32 %v26120_v3, %v1957_v51  ;;  %v26122_v38 = vld [vmem:[#allocation48_spill] sm:$0xff]  ;;  %v26123_v7 = vld [vmem:[#allocation86_spill] sm:$0xff]  ;;  %v3785_v10 = vpop.f32.mrf.mxu0  ;;  %17998 = vmatmul.mubr.msk.f32.gmra.mxu1 %vm368_vm1, %v21046_v57  ;;  %v26124_v43 = vld [vmem:[#allocation11_spill] sm:$0xff] }
 0x1f6   : > { %v2738_v15 = vadd.f32 %v26122_v38, %v26121_v8  ;;  %v3126_v54 = vadd.f32 %v26123_v7, %v2735_v55  ;;  %v21059_v5 = vld [vmem:[#allocation2 + $0x31] sm:$0xff]  ;;  %4006 = vst.msk [vmem:[#allocation2 + $0x81] sm:$0xff] %vm368_vm1, %v3974_v40  ;;  %v3973_v20 = vmax.f32 %v3941_v13, 0.0  ;;  %v3904_v59 = vadd.f32 %v3785_v10, %v3514_v50  ;;  %v26125_v21 = vld [vmem:[#allocation14_spill] sm:$0xff]  ;;  %v26127_v36 = vld [vmem:[#allocation87_spill] sm:$0xff]  ;;  %v21088_v40 = vpop.f32.mrf.mxu1 }
 0x1f7   : > { %v4072_v0 = vld [vmem:[#allocation2 + $0x58] sm:$0x1]  ;;  %v3944_v32 = vadd.f32 %v20913_v27, %v3905_v62  ;;  %18000 = vmatprep.mubr.msk.f32.mxu1 %vm368_vm1, %v21059_v5  ;;  %v1571_v34 = vadd.f32 %v26124_v43, %v20947_v31  ;;  %v1959_v39 = vadd.f32 %v26125_v21, %v1569_v23  ;;  %v2737_v16 = vadd.f32 %v26126_v28, %v2347_v2  ;;  %v17964_v37 = vpop.f32.mrf.mxu0  ;;  %v4036_v46 = vld [vmem:[#allocation2 + $0x49] sm:$0x1]  ;;  %v26128_v41 = vld [vmem:[#allocation102_spill] sm:$0xff] }
 0x1f8   : > { %4090 = vst.msk [vmem:[#allocation2 + $0x59] sm:$0x1] %vm424_vm2, %v4072_v0  ;;  %v3129_v11 = vadd.f32 %v26127_v36, %v2738_v15  ;;  %v4105_v6 = vld [vmem:[#allocation2] sm:$0xff]  ;;  %v3516_v44 = vadd.f32 %v26128_v41, %v3126_v54  ;;  %v3943_v52 = vadd.f32 %v20913_v27, %v3904_v59  ;;  %v3907_v48 = vadd.f32 %v17964_v37, %v3517_v29  ;;  %v4106_v51 = vld [vmem:[#allocation2 + $0x8] sm:$0xff]  ;;  %v21082_v22 = vld [vmem:[%s25800_s3 + $0x14] sm:$0xf] }
 0x1f9   : > { %4005 = vst.msk [vmem:[#allocation2 + $0x79] sm:$0xff] %vm368_vm1, %v3973_v20  ;;  %v3976_v19 = vmax.f32 %v3944_v32, 0.0  ;;  %18044 = vmatprep.mubr.msk.f32.mxu0 %vm368_vm1, %v4105_v6  ;;  %v21076_v31 = vld [vmem:[#allocation2 + $0x39] sm:$0xff]  ;;  %v26130_v12 = vld [vmem:[#allocation43_spill] sm:$0xff]  ;;  %v26131_v63 = vld [vmem:[#allocation52_spill] sm:$0xff]  ;;  %v3795_v13 = vpop.f32.mrf.mxu0 }
 0x1fa   : > { %4054 = vst.msk [vmem:[#allocation2 + $0x48] sm:$0x1] %vm424_vm2, %v4036_v46  ;;  %v26129_v55 = vld [vmem:[#allocation45_spill] sm:$0xff]  ;;  %v2740_v35 = vadd.f32 %v26131_v63, %v26130_v12  ;;  %18001 = vmatmul.mubr.msk.f32.gmra.mxu1 %vm368_vm1, %v21076_v31  ;;  %18045 = vmatmul.mubr.msk.f32.vlgmr.msra.gmra.mxu0 %vm368_vm1, %v4106_v51  ;;  %v21093_v62 = vld [vmem:[#allocation2 + $0x49] sm:$0xff]  ;;  %v3975_v8 = vmax.f32 %v3943_v52, 0.0  ;;  %v3946_v38 = vadd.f32 %v20913_v27, %v3907_v48  ;;  %v26135_v10 = vld [vmem:[#allocation16_spill] sm:$0xff]  ;;  %v21126_v52 = vpop.f32.mrf.mxu1 }
 0x1fb   : > { %v2349_v17 = vadd.f32 %v26129_v55, %v1959_v39  ;;  %v26132_v24 = vld [vmem:[#allocation89_spill] sm:$0xff]  ;;  %v4073_v23 = vld [vmem:[#allocation2 + $0x70] sm:$0x1]  ;;  %4008 = vst.msk [vmem:[#allocation2 + $0x99] sm:$0xff] %vm368_vm1, %v3976_v19  ;;  %v3906_v15 = vadd.f32 %v3795_v13, %v3516_v44  ;;  %18003 = vmatprep.mubr.msk.f32.mxu1 %vm368_vm1, %v21093_v62  ;;  %v1961_v0 = vadd.f32 %v26135_v10, %v1571_v34  ;;  %v26136_v29 = vld [vmem:[#allocation54_spill] sm:$0xff]  ;;  %v17967_v43 = vpop.f32.mrf.mxu0 }
 0x1fc   : > { %v3128_v50 = vadd.f32 %v26132_v24, %v2737_v16  ;;  %v21095_v4 = vld [vmem:[#allocation2 + $0x18] sm:$0xff]  ;;  %4091 = vst.msk [vmem:[#allocation2 + $0x71] sm:$0x1] %vm424_vm2, %v4073_v23  ;;  %v26137_v32 = vld [vmem:[#allocation90_spill] sm:$0xff]  ;;  %v26138_v39 = vld [vmem:[#allocation79_spill] sm:$0xff]  ;;  %v3978_v16 = vmax.f32 %v3946_v38, 0.0 }
 0x1fd   : > { %v26133_v3 = vld [vmem:[#allocation105_spill] sm:$0xff]  ;;  %18047 = vmatprep.mubr.msk.f32.mxu0 %vm368_vm1, %v21095_v4  ;;  %v2739_v20 = vadd.f32 %v26136_v29, %v2349_v17  ;;  %v3131_v59 = vadd.f32 %v26137_v32, %v2740_v35  ;;  %v4037_v21 = vld [vmem:[#allocation2 + $0x61] sm:$0x1]  ;;  %18143 = vmatpush3.msk.msra.mxu0 %vm642_vm0, %v26138_v39  ;;  %4007 = vst.msk [vmem:[#allocation2 + $0x91] sm:$0xff] %vm368_vm1, %v3975_v8  ;;  %v26140_v46 = vld [vmem:[#allocation47_spill] sm:$0xff]  ;;  %v3805_v48 = vpop.f32.mrf.mxu0 }
 0x1fe   : > { %v3519_v2 = vadd.f32 %v26133_v3, %v3129_v11  ;;  %v26134_v7 = vld [vmem:[#allocation13_spill] sm:$0xff]  ;;  %v3518_v28 = vadd.f32 %v20889_v45, %v3128_v50  ;;  %v3945_v36 = vadd.f32 %v20913_v27, %v3906_v15  ;;  %4055 = vst.msk [vmem:[#allocation2 + $0x60] sm:$0x1] %vm424_vm2, %v4037_v21  ;;  %18242 = vmatprep.subr.msk.mxu0 %vm642_vm0, %v21082_v22  ;;  %v26141_v41 = vld [vmem:[#allocation56_spill] sm:$0xff]  ;;  %v21132_v51 = vld [vmem:[#allocation2 + $0x61] sm:$0xff] }
 0x1ff   : > { %v1573_v54 = vadd.f32 %v26134_v7, %v20959_v49  ;;  %v21115_v49 = vld [vmem:[#allocation2 + $0x51] sm:$0xff]  ;;  %v21117_v34 = vld [vmem:[#allocation2 + $0x20] sm:$0xff]  ;;  %v2742_v45 = vadd.f32 %v26141_v41, %v26140_v46  ;;  %v4074_v17 = vld [vmem:[#allocation2 + $0x88] sm:$0x1]  ;;  %v3521_v12 = vadd.f32 %v20901_v61, %v3131_v59  ;;  %4010 = vst.msk [vmem:[#allocation2 + $0xb1] sm:$0xff] %vm368_vm1, %v3978_v16  ;;  %v17970_v15 = vpop.f32.mrf.mxu0 }
 0x200   : > { %v3909_v11 = vadd.f32 %v17967_v43, %v3519_v2  ;;  %v26139_v37 = vld [vmem:[#allocation49_spill] sm:$0xff]  ;;  %v26142_v44 = vld [vmem:[#allocation92_spill] sm:$0xff]  ;;  %18004 = vmatmul.mubr.msk.f32.gmra.mxu1 %vm368_vm1, %v21115_v49  ;;  %18048 = vmatmul.mubr.msk.f32.gmra.mxu0 %vm368_vm1, %v21117_v34  ;;  %v3977_v63 = vmax.f32 %v3945_v36, 0.0  ;;  %v3908_v24 = vadd.f32 %v3805_v48, %v3518_v28  ;;  %4092 = vst.msk [vmem:[#allocation2 + $0x89] sm:$0x1] %vm424_vm2, %v4074_v17  ;;  %v26144_v50 = vld [vmem:[#allocation15_spill] sm:$0xff] }
 0x201   : > { %v2351_v6 = vadd.f32 %v26139_v37, %v1961_v0  ;;  %v3130_v19 = vadd.f32 %v26142_v44, %v2739_v20  ;;  %v21134_v55 = vld [vmem:[#allocation2 + $0x30] sm:$0xff]  ;;  %18006 = vmatprep.mubr.msk.f32.mxu1 %vm368_vm1, %v21132_v51  ;;  %v1575_v13 = vadd.f32 %v26144_v50, %v20972_v56  ;;  %v26145_v23 = vld [vmem:[#allocation18_spill] sm:$0xff]  ;;  %v26147_v8 = vld [vmem:[#allocation93_spill] sm:$0xff]  ;;  %v3911_v20 = vadd.f32 %v17970_v15, %v3521_v12  ;;  %v3815_v36 = vpop.f32.mrf.mxu0 }
 0x202   : > { %26143 = vst [vmem:[#allocation8_spill] sm:$0xff] %v21134_v55  ;;  %v3948_v35 = vadd.f32 %v20913_v27, %v3909_v11  ;;  %18050 = vmatprep.mubr.msk.f32.mxu0 %vm368_vm1, %v21134_v55  ;;  %v1963_v3 = vadd.f32 %v26145_v23, %v1573_v54  ;;  %v26146_v61 = vld [vmem:[#allocation58_spill] sm:$0xff]  ;;  %v3133_v38 = vadd.f32 %v26147_v8, %v2742_v45  ;;  %v4038_v7 = vld [vmem:[#allocation2 + $0x79] sm:$0x1]  ;;  %4009 = vst.msk [vmem:[#allocation2 + $0xa9] sm:$0xff] %vm368_vm1, %v3977_v63 }
 0x203   : > { %v2741_v2 = vadd.f32 %v26146_v61, %v2351_v6  ;;  %v3520_v10 = vadd.f32 %v20920_v58, %v3130_v19  ;;  %v3947_v29 = vadd.f32 %v20913_v27, %v3908_v24  ;;  %v21152_v32 = vld [vmem:[#allocation2 + $0x69] sm:$0xff]  ;;  %v21154_v59 = vld [vmem:[#allocation2 + $0x38] sm:$0xff]  ;;  %4056 = vst.msk [vmem:[#allocation2 + $0x78] sm:$0x1] %vm424_vm2, %v4038_v7  ;;  %v21161_v58 = vpop.f32.mrf.mxu1  ;;  %v4075_v6 = vld [vmem:[#allocation2 + $0xa0] sm:$0x1]  ;;  %v3950_v45 = vadd.f32 %v20913_v27, %v3911_v20  ;;  %v17973_v50 = vpop.f32.mrf.mxu0 }
 0x204   : > { %v3980_v0 = vmax.f32 %v3948_v35, 0.0  ;;  %26148 = vst [vmem:[#allocation38_spill] sm:$0xff] %v21154_v59  ;;  %v26149_v56 = vld [vmem:[#allocation53_spill] sm:$0xff]  ;;  %v26150_v43 = vld [vmem:[#allocation51_spill] sm:$0xff]  ;;  %v26151_v21 = vld [vmem:[#allocation60_spill] sm:$0xff]  ;;  %18007 = vmatmul.mubr.msk.f32.gmra.mxu1 %vm368_vm1, %v21152_v32  ;;  %18051 = vmatmul.mubr.msk.f32.gmra.mxu0 %vm368_vm1, %v21154_v59  ;;  %v3523_v46 = vadd.f32 %v20939_v25, %v3133_v38 }
 0x205   : > { %v2353_v54 = vadd.f32 %v26149_v56, %v1963_v3  ;;  %v2744_v39 = vadd.f32 %v26151_v21, %v26150_v43  ;;  %v26152_v28 = vld [vmem:[#allocation95_spill] sm:$0xff]  ;;  %v21167_v11 = vld [vmem:[#allocation2 + $0x79] sm:$0xff]  ;;  %v3979_v41 = vmax.f32 %v3947_v29, 0.0  ;;  %v3910_v44 = vadd.f32 %v3815_v36, %v3520_v10  ;;  %4093 = vst.msk [vmem:[#allocation2 + $0xa1] sm:$0x1] %vm424_vm2, %v4075_v6  ;;  %v26155_v17 = vld [vmem:[#allocation20_spill] sm:$0xff]  ;;  %v3825_v56 = vpop.f32.mrf.mxu0 }
 0x206   : > { %v3132_v16 = vadd.f32 %v26152_v28, %v2741_v2  ;;  %v21169_v37 = vld [vmem:[#allocation2 + $0x48] sm:$0xff]  ;;  %4012 = vst.msk [vmem:[#allocation2 + $0xc9] sm:$0xff] %vm368_vm1, %v3980_v0  ;;  %18009 = vmatprep.mubr.msk.f32.mxu1 %vm368_vm1, %v21167_v11  ;;  %v26154_v19 = vld [vmem:[#allocation17_spill] sm:$0xff]  ;;  %v1965_v12 = vadd.f32 %v26155_v17, %v1575_v13  ;;  %v26157_v35 = vld [vmem:[#allocation96_spill] sm:$0xff]  ;;  %v3982_v61 = vmax.f32 %v3950_v45, 0.0  ;;  %v3913_v8 = vadd.f32 %v17973_v50, %v3523_v46 }
 0x207   : > { %26153 = vst [vmem:[#allocation80_spill] sm:$0xff] %v21169_v37  ;;  %18053 = vmatprep.mubr.msk.f32.mxu0 %vm368_vm1, %v21169_v37  ;;  %v1577_v48 = vadd.f32 %v26154_v19, %v20983_v18  ;;  %v26156_v25 = vld [vmem:[#allocation62_spill] sm:$0xff]  ;;  %v3135_v24 = vadd.f32 %v26157_v35, %v2744_v39  ;;  %v4039_v23 = vld [vmem:[#allocation2 + $0x91] sm:$0x1]  ;;  %4011 = vst.msk [vmem:[#allocation2 + $0xc1] sm:$0xff] %vm368_vm1, %v3979_v41  ;;  %v3949_v2 = vadd.f32 %v20913_v27, %v3910_v44 }
 0x208   : > { %v2743_v63 = vadd.f32 %v26156_v25, %v2353_v54  ;;  %v3522_v3 = vadd.f32 %v20965_v1, %v3132_v16  ;;  %v21187_v38 = vld [vmem:[#allocation2 + $0x81] sm:$0xff]  ;;  %v21189_v15 = vld [vmem:[#allocation2 + $0x50] sm:$0xff]  ;;  %4057 = vst.msk [vmem:[#allocation2 + $0x90] sm:$0x1] %vm424_vm2, %v4039_v23  ;;  %v26159_v18 = vld [vmem:[#allocation57_spill] sm:$0xff]  ;;  %v21196_v1 = vpop.f32.mrf.mxu1  ;;  %v3952_v16 = vadd.f32 %v20913_v27, %v3913_v8 }
 0x209   : > { %26158 = vst [vmem:[#allocation85_spill] sm:$0xff] %v21189_v15  ;;  %v2355_v13 = vadd.f32 %v26159_v18, %v1965_v12  ;;  %v26160_v7 = vld [vmem:[#allocation55_spill] sm:$0xff]  ;;  %v26161_v10 = vld [vmem:[#allocation64_spill] sm:$0xff]  ;;  %v26162_v29 = vld [vmem:[#allocation98_spill] sm:$0xff]  ;;  %18010 = vmatmul.mubr.msk.f32.gmra.mxu1 %vm368_vm1, %v21187_v38  ;;  %18054 = vmatmul.mubr.msk.f32.gmra.mxu0 %vm368_vm1, %v21189_v15  ;;  %v3525_v39 = vadd.f32 %v20989_v9, %v3135_v24  ;;  %v3981_v28 = vmax.f32 %v3949_v2, 0.0  ;;  %v17976_v12 = vpop.f32.mrf.mxu0 }
 0x20a   : > { %v2746_v0 = vadd.f32 %v26161_v10, %v26160_v7  ;;  %v3134_v20 = vadd.f32 %v26162_v29, %v2743_v63  ;;  %v21202_v54 = vld [vmem:[#allocation2 + $0x91] sm:$0xff]  ;;  %v21204_v43 = vld [vmem:[#allocation2 + $0x60] sm:$0xff]  ;;  %4014 = vst.msk [vmem:[#allocation2 + $0xe1] sm:$0xff] %vm368_vm1, %v3982_v61  ;;  %v3912_v36 = vadd.f32 %v3825_v56, %v3522_v3  ;;  %v26164_v6 = vld [vmem:[#allocation19_spill] sm:$0xff]  ;;  %v3984_v35 = vmax.f32 %v3952_v16, 0.0 }
 0x20b   : > { %26163 = vst [vmem:[#allocation22_spill] sm:$0xff] %v21204_v43  ;;  %v4076_v21 = vld [vmem:[#allocation2 + $0xb8] sm:$0x1]  ;;  %18012 = vmatprep.mubr.msk.f32.mxu1 %vm368_vm1, %v21202_v54  ;;  %18056 = vmatprep.mubr.msk.f32.mxu0 %vm368_vm1, %v21204_v43  ;;  %v1579_v46 = vadd.f32 %v26164_v6, %v20997_v14  ;;  %v26165_v41 = vld [vmem:[#allocation23_spill] sm:$0xff]  ;;  %v26166_v9 = vld [vmem:[#allocation66_spill] sm:$0xff]  ;;  %v3915_v50 = vadd.f32 %v17976_v12, %v3525_v39  ;;  %v3835_v7 = vpop.f32.mrf.mxu0 }
 0x20c   : > { %4094 = vst.msk [vmem:[#allocation2 + $0xb9] sm:$0x1] %vm424_vm2, %v4076_v21  ;;  %v1967_v45 = vadd.f32 %v26165_v41, %v1577_v48  ;;  %v2745_v44 = vadd.f32 %v26166_v9, %v2355_v13  ;;  %v26167_v19 = vld [vmem:[#allocation99_spill] sm:$0xff]  ;;  %v3524_v63 = vadd.f32 %v21022_v47, %v3134_v20  ;;  %v3951_v24 = vadd.f32 %v20913_v27, %v3912_v36  ;;  %v21222_v23 = vld [vmem:[#allocation2 + $0x99] sm:$0xff]  ;;  %v26171_v2 = vld [vmem:[#allocation68_spill] sm:$0xff]  ;;  %v21231_v47 = vpop.f32.mrf.mxu1 }
 0x20d   : > { %v3137_v17 = vadd.f32 %v26167_v19, %v2746_v0  ;;  %v4040_v25 = vld [vmem:[#allocation2 + $0xa9] sm:$0x1]  ;;  %4013 = vst.msk [vmem:[#allocation2 + $0xd9] sm:$0xff] %vm368_vm1, %v3981_v28  ;;  %v26169_v14 = vld [vmem:[#allocation61_spill] sm:$0xff]  ;;  %v26172_v18 = vld [vmem:[#allocation100_spill] sm:$0xff]  ;;  %18013 = vmatmul.mubr.msk.f32.gmra.mxu1 %vm368_vm1, %v21222_v23  ;;  %v3954_v21 = vadd.f32 %v20913_v27, %v3915_v50 }
 0x20e   : > { %v21224_v3 = vld [vmem:[#allocation2 + $0x68] sm:$0xff]  ;;  %4058 = vst.msk [vmem:[#allocation2 + $0xa8] sm:$0x1] %vm424_vm2, %v4040_v25  ;;  %v2357_v48 = vadd.f32 %v26169_v14, %v1967_v45  ;;  %v3136_v13 = vadd.f32 %v26172_v18, %v2745_v44  ;;  %v21239_v0 = vld [vmem:[#allocation2 + $0x78] sm:$0xff]  ;;  %v4077_v29 = vld [vmem:[#allocation2 + $0xd0] sm:$0x1]  ;;  %v3914_v39 = vadd.f32 %v3835_v7, %v3524_v63  ;;  %v17979_v44 = vpop.f32.mrf.mxu0 }
 0x20f   : > { %26168 = vst [vmem:[#allocation26_spill] sm:$0xff] %v21224_v3  ;;  %v26170_v61 = vld [vmem:[#allocation59_spill] sm:$0xff]  ;;  %18057 = vmatmul.mubr.msk.f32.gmra.mxu0 %vm368_vm1, %v21224_v3  ;;  %26173 = vst [vmem:[#allocation34_spill] sm:$0xff] %v21239_v0  ;;  %v3527_v20 = vadd.f32 %v21055_v26, %v3137_v17  ;;  %v3983_v56 = vmax.f32 %v3951_v24, 0.0  ;;  %v26174_v28 = vld [vmem:[#allocation21_spill] sm:$0xff]  ;;  %v3986_v12 = vmax.f32 %v3954_v21, 0.0 }
 0x210   : > { %v2748_v8 = vadd.f32 %v26171_v2, %v26170_v61  ;;  %v21237_v10 = vld [vmem:[#allocation2 + $0xa9] sm:$0xff]  ;;  %4016 = vst.msk [vmem:[#allocation2 + $0xf9] sm:$0xff] %vm368_vm1, %v3984_v35  ;;  %18059 = vmatprep.mubr.msk.f32.mxu0 %vm368_vm1, %v21239_v0  ;;  %v1581_v16 = vadd.f32 %v26174_v28, %v21016_v30  ;;  %v26175_v36 = vld [vmem:[#allocation29_spill] sm:$0xff]  ;;  %v26176_v26 = vld [vmem:[#allocation70_spill] sm:$0xff]  ;;  %v3526_v17 = vadd.f32 %v21088_v40, %v3136_v13  ;;  %v21266_v40 = vpop.f32.mrf.mxu1 }
 0x211   : > { %18015 = vmatprep.mubr.msk.f32.mxu1 %vm368_vm1, %v21237_v10  ;;  %4095 = vst.msk [vmem:[#allocation2 + $0xd1] sm:$0x1] %vm424_vm2, %v4077_v29  ;;  %v1969_v6 = vadd.f32 %v26175_v36, %v1579_v46  ;;  %v2747_v41 = vadd.f32 %v26176_v26, %v2357_v48  ;;  %v26177_v45 = vld [vmem:[#allocation101_spill] sm:$0xff]  ;;  %v4041_v19 = vld [vmem:[#allocation2 + $0xc1] sm:$0x1]  ;;  %v3953_v25 = vadd.f32 %v20913_v27, %v3914_v39  ;;  %v21257_v35 = vld [vmem:[#allocation2 + $0xb1] sm:$0xff] }
 0x212   : > { %v3139_v9 = vadd.f32 %v26177_v45, %v2748_v8  ;;  %4015 = vst.msk [vmem:[#allocation2 + $0xf1] sm:$0xff] %vm368_vm1, %v3983_v56  ;;  %v3917_v63 = vadd.f32 %v17979_v44, %v3527_v20  ;;  %v21259_v24 = vld [vmem:[#allocation2 + $0x80] sm:$0xff]  ;;  %v26180_v50 = vld [vmem:[#allocation63_spill] sm:$0xff]  ;;  %v26181_v14 = vld [vmem:[#allocation72_spill] sm:$0xff]  ;;  %v3845_v8 = vpop.f32.mrf.mxu0  ;;  %18016 = vmatmul.mubr.msk.f32.gmra.mxu1 %vm368_vm1, %v21257_v35 }
 0x213   : > { %26178 = vst [vmem:[#allocation33_spill] sm:$0xff] %v21259_v24  ;;  %4059 = vst.msk [vmem:[#allocation2 + $0xc0] sm:$0x1] %vm424_vm2, %v4041_v19  ;;  %v26179_v30 = vld [vmem:[#allocation65_spill] sm:$0xff]  ;;  %v2750_v48 = vadd.f32 %v26181_v14, %v26180_v50  ;;  %v26182_v61 = vld [vmem:[#allocation103_spill] sm:$0xff]  ;;  %18060 = vmatmul.mubr.msk.f32.gmra.mxu0 %vm368_vm1, %v21259_v24  ;;  %v3985_v20 = vmax.f32 %v3953_v25, 0.0  ;;  %v3916_v21 = vadd.f32 %v3845_v8, %v3526_v17 }
 0x214   : > { %v2359_v46 = vadd.f32 %v26179_v30, %v1969_v6  ;;  %v3138_v2 = vadd.f32 %v26182_v61, %v2747_v41  ;;  %v21272_v18 = vld [vmem:[#allocation2 + $0xc1] sm:$0xff]  ;;  %v21274_v13 = vld [vmem:[#allocation2 + $0x90] sm:$0xff]  ;;  %v3529_v29 = vadd.f32 %v21126_v52, %v3139_v9  ;;  %4018 = vst.msk [vmem:[#allocation2 + $0x111] sm:$0xff] %vm368_vm1, %v3986_v12  ;;  %v3956_v56 = vadd.f32 %v20913_v27, %v3917_v63  ;;  %v26184_v39 = vld [vmem:[#allocation25_spill] sm:$0xff]  ;;  %v17982_v9 = vpop.f32.mrf.mxu0 }
 0x215   : > { %26183 = vst [vmem:[#allocation40_spill] sm:$0xff] %v21274_v13  ;;  %v4078_v7 = vld [vmem:[#allocation2 + $0xe8] sm:$0x1]  ;;  %18018 = vmatprep.mubr.msk.f32.mxu1 %vm368_vm1, %v21272_v18  ;;  %18062 = vmatprep.mubr.msk.f32.mxu0 %vm368_vm1, %v21274_v13  ;;  %v1583_v28 = vadd.f32 %v26184_v39, %v21034_v53  ;;  %v26187_v41 = vld [vmem:[#allocation104_spill] sm:$0xff]  ;;  %v4042_v44 = vld [vmem:[#allocation2 + $0xd9] sm:$0x1]  ;;  %v3955_v12 = vadd.f32 %v20913_v27, %v3916_v21 }
 0x216   : > { %4096 = vst.msk [vmem:[#allocation2 + $0xe9] sm:$0x1] %vm424_vm2, %v4078_v7  ;;  %v26185_v36 = vld [vmem:[#allocation30_spill] sm:$0xff]  ;;  %v3141_v45 = vadd.f32 %v26187_v41, %v2750_v48  ;;  %v3528_v19 = vadd.f32 %v21161_v58, %v3138_v2  ;;  %v3988_v17 = vmax.f32 %v3956_v56, 0.0  ;;  %v3919_v25 = vadd.f32 %v17982_v9, %v3529_v29  ;;  %v21292_v63 = vld [vmem:[#allocation2 + $0xc9] sm:$0xff]  ;;  %v21294_v30 = vld [vmem:[#allocation2 + $0x98] sm:$0xff]  ;;  %v3485_v58 = vpop.f32.mrf.mxu1  ;;  %v3855_v2 = vpop.f32.mrf.mxu0 }
 0x217   : > { %v1971_v6 = vadd.f32 %v26185_v36, %v1581_v16  ;;  %v26186_v52 = vld [vmem:[#allocation74_spill] sm:$0xff]  ;;  %4017 = vst.msk [vmem:[#allocation2 + $0x109] sm:$0xff] %vm368_vm1, %v3985_v20  ;;  %26188 = vst [vmem:[#allocation81_spill] sm:$0xff] %v21294_v30  ;;  %v26189_v53 = vld [vmem:[#allocation69_spill] sm:$0xff]  ;;  %18019 = vmatmul.mubr.msk.f32.gmra.mxu1 %vm368_vm1, %v21292_v63  ;;  %18063 = vmatmul.mubr.msk.f32.gmra.mxu0 %vm368_vm1, %v21294_v30  ;;  %v3987_v56 = vmax.f32 %v3955_v12, 0.0 }
 0x218   : > { %v2749_v26 = vadd.f32 %v26186_v52, %v2359_v46  ;;  %4060 = vst.msk [vmem:[#allocation2 + $0xd8] sm:$0x1] %vm424_vm2, %v4042_v44  ;;  %v26190_v46 = vld [vmem:[#allocation67_spill] sm:$0xff]  ;;  %v26192_v48 = vld [vmem:[#allocation106_spill] sm:$0xff]  ;;  %v21305_v8 = vld [vmem:[#allocation2 + $0xd9] sm:$0xff]  ;;  %v3531_v20 = vadd.f32 %v21196_v1, %v3141_v45  ;;  %v3958_v21 = vadd.f32 %v20913_v27, %v3919_v25  ;;  %v3918_v39 = vadd.f32 %v3855_v2, %v3528_v19  ;;  %v17985_v45 = vpop.f32.mrf.mxu0 }
 0x219   : > { %v2361_v16 = vadd.f32 %v26189_v53, %v1971_v6  ;;  %v26191_v50 = vld [vmem:[#allocation75_spill] sm:$0xff]  ;;  %v4079_v29 = vld [vmem:[#allocation2 + $0x100] sm:$0x1]  ;;  %4020 = vst.msk [vmem:[#allocation2 + $0x129] sm:$0xff] %vm368_vm1, %v3988_v17  ;;  %18021 = vmatprep.mubr.msk.f32.mxu1 %vm368_vm1, %v21305_v8  ;;  %v26194_v36 = vld [vmem:[#allocation32_spill] sm:$0xff] }
 0x21a   : > { %v2752_v14 = vadd.f32 %v26191_v50, %v26190_v46  ;;  %v3140_v61 = vadd.f32 %v26192_v48, %v2749_v26  ;;  %v21307_v7 = vld [vmem:[#allocation2 + $0xa8] sm:$0xff]  ;;  %4097 = vst.msk [vmem:[#allocation2 + $0x101] sm:$0x1] %vm424_vm2, %v4079_v29  ;;  %v1973_v6 = vadd.f32 %v26194_v36, %v1583_v28  ;;  %v26195_v52 = vld [vmem:[#allocation76_spill] sm:$0xff]  ;;  %v3990_v19 = vmax.f32 %v3958_v21, 0.0  ;;  %v26198_v28 = vld [vmem:[#allocation73_spill] sm:$0xff] }
 0x21b   : > { %26193 = vst [vmem:[#allocation88_spill] sm:$0xff] %v21307_v7  ;;  %18065 = vmatprep.mubr.msk.f32.mxu0 %vm368_vm1, %v21307_v7  ;;  %v2751_v26 = vadd.f32 %v26195_v52, %v2361_v16  ;;  %v26196_v41 = vld [vmem:[#allocation107_spill] sm:$0xff]  ;;  %v4043_v9 = vld [vmem:[#allocation2 + $0xf1] sm:$0x1]  ;;  %4019 = vst.msk [vmem:[#allocation2 + $0x121] sm:$0xff] %vm368_vm1, %v3987_v56  ;;  %v3957_v17 = vadd.f32 %v20913_v27, %v3918_v39  ;;  %v3921_v12 = vadd.f32 %v17985_v45, %v3531_v20 }
 0x21c   : > { %v3143_v1 = vadd.f32 %v26196_v41, %v2752_v14  ;;  %v3530_v44 = vadd.f32 %v21231_v47, %v3140_v61  ;;  %v21323_v25 = vld [vmem:[#allocation2 + $0xe1] sm:$0xff]  ;;  %v21325_v53 = vld [vmem:[#allocation2 + $0xb0] sm:$0xff]  ;;  %4061 = vst.msk [vmem:[#allocation2 + $0xf0] sm:$0x1] %vm424_vm2, %v4043_v9  ;;  %v2363_v16 = vadd.f32 %v26198_v28, %v1973_v6  ;;  %v26200_v50 = vld [vmem:[#allocation77_spill] sm:$0xff]  ;;  %v17941_v47 = vpop.f32.mrf.mxu1  ;;  %v3865_v61 = vpop.f32.mrf.mxu0 }
 0x21d   : > { %26197 = vst [vmem:[#allocation24_spill] sm:$0xff] %v21325_v53  ;;  %v26199_v46 = vld [vmem:[#allocation71_spill] sm:$0xff]  ;;  %v26201_v48 = vld [vmem:[#allocation108_spill] sm:$0xff]  ;;  %18022 = vmatmul.mubr.msk.f32.gmra.mxu1 %vm368_vm1, %v21323_v25  ;;  %18066 = vmatmul.mubr.msk.f32.gmra.mxu0 %vm368_vm1, %v21325_v53  ;;  %v21338_v20 = vld [vmem:[#allocation2 + $0xc0] sm:$0xff]  ;;  %v3989_v39 = vmax.f32 %v3957_v17, 0.0  ;;  %v3960_v36 = vadd.f32 %v20913_v27, %v3921_v12 }
 0x21e   : > { %v2754_v14 = vadd.f32 %v26200_v50, %v26199_v46  ;;  %v3142_v2 = vadd.f32 %v26201_v48, %v2751_v26  ;;  %v21336_v29 = vld [vmem:[#allocation2 + $0xf1] sm:$0xff]  ;;  %26202 = vst [vmem:[#allocation28_spill] sm:$0xff] %v21338_v20  ;;  %v3533_v21 = vadd.f32 %v21266_v40, %v3143_v1  ;;  %4022 = vst.msk [vmem:[#allocation2 + $0x141] sm:$0xff] %vm368_vm1, %v3990_v19  ;;  %18068 = vmatprep.mubr.msk.f32.mxu0 %vm368_vm1, %v21338_v20  ;;  %v26203_v52 = vld [vmem:[#allocation78_spill] sm:$0xff]  ;;  %v17988_v45 = vpop.f32.mrf.mxu0 }
 0x21f   : > { %v4080_v56 = vld [vmem:[#allocation2 + $0x118] sm:$0x1]  ;;  %v3920_v6 = vadd.f32 %v3865_v61, %v3530_v44  ;;  %18024 = vmatprep.mubr.msk.f32.mxu1 %vm368_vm1, %v21336_v29  ;;  %v2753_v26 = vadd.f32 %v26203_v52, %v2363_v16  ;;  %v4044_v40 = vld [vmem:[#allocation2 + $0x109] sm:$0x1]  ;;  %4021 = vst.msk [vmem:[#allocation2 + $0x139] sm:$0xff] %vm368_vm1, %v3989_v39  ;;  %v3992_v9 = vmax.f32 %v3960_v36, 0.0  ;;  %v3495_v16 = vpop.f32.mrf.mxu1 }
 0x220   : > { %4098 = vst.msk [vmem:[#allocation2 + $0x119] sm:$0x1] %vm424_vm2, %v4080_v56  ;;  %v3145_v41 = vadd.f32 %v20896_v42, %v2754_v14  ;;  %v3532_v1 = vadd.f32 %v3485_v58, %v3142_v2  ;;  %v3923_v19 = vadd.f32 %v17988_v45, %v3533_v21  ;;  %v21352_v17 = vld [vmem:[#allocation2 + $0xf9] sm:$0xff]  ;;  %v21354_v12 = vld [vmem:[#allocation2 + $0xc8] sm:$0xff]  ;;  %4062 = vst.msk [vmem:[#allocation2 + $0x108] sm:$0x1] %vm424_vm2, %v4044_v40  ;;  %v3875_v46 = vpop.f32.mrf.mxu0 }
 0x221   : > { %v3959_v44 = vadd.f32 %v20913_v27, %v3920_v6  ;;  %26204 = vst [vmem:[#allocation6_spill] sm:$0xff] %v21354_v12  ;;  %v3144_v28 = vadd.f32 %v20903_v33, %v2753_v26  ;;  %18025 = vmatmul.mubr.msk.f32.gmra.mxu1 %vm368_vm1, %v21352_v17  ;;  %18069 = vmatmul.mubr.msk.f32.gmra.mxu0 %vm368_vm1, %v21354_v12  ;;  %v21362_v42 = vld [vmem:[#allocation2 + $0x109] sm:$0xff]  ;;  %v21364_v58 = vld [vmem:[#allocation2 + $0xd8] sm:$0xff]  ;;  %4024 = vst.msk [vmem:[#allocation2 + $0x159] sm:$0xff] %vm368_vm1, %v3992_v9 }
 0x222   : > { %26205 = vst [vmem:[#allocation10_spill] sm:$0xff] %v21364_v58  ;;  %v4081_v50 = vld [vmem:[#allocation2 + $0x130] sm:$0x1]  ;;  %v3535_v14 = vadd.f32 %v17941_v47, %v3145_v41  ;;  %v3962_v2 = vadd.f32 %v20913_v27, %v3923_v19  ;;  %v3922_v33 = vadd.f32 %v3875_v46, %v3532_v1  ;;  %18027 = vmatprep.mubr.msk.f32.mxu1 %vm368_vm1, %v21362_v42  ;;  %v17991_v61 = vpop.f32.mrf.mxu0  ;;  %v4045_v56 = vld [vmem:[#allocation2 + $0x121] sm:$0x1]  ;;  %v21375_v6 = vld [vmem:[#allocation2 + $0x111] sm:$0xff] }
 0x223   : > { %v3991_v48 = vmax.f32 %v3959_v44, 0.0  ;;  %18071 = vmatprep.mubr.msk.f32.mxu0 %vm368_vm1, %v21364_v58  ;;  %4099 = vst.msk [vmem:[#allocation2 + $0x131] sm:$0x1] %vm424_vm2, %v4081_v50  ;;  %v3534_v21 = vadd.f32 %v3495_v16, %v3144_v28  ;;  %v21377_v52 = vld [vmem:[#allocation2 + $0xe0] sm:$0xff]  ;;  %4063 = vst.msk [vmem:[#allocation2 + $0x120] sm:$0x1] %vm424_vm2, %v4045_v56 }
 0x224   : > { %v3994_v47 = vmax.f32 %v3962_v2, 0.0  ;;  %v3961_v39 = vadd.f32 %v20913_v27, %v3922_v33  ;;  %v3925_v36 = vadd.f32 %v17991_v61, %v3535_v14  ;;  %26206 = vst [vmem:[#allocation42_spill] sm:$0xff] %v21377_v52  ;;  %v3885_v26 = vpop.f32.mrf.mxu0  ;;  %v21384_v41 = vld [vmem:[#allocation2 + $0x121] sm:$0xff]  ;;  %v21386_v45 = vld [vmem:[#allocation2 + $0xf0] sm:$0xff]  ;;  %v21399_v50 = vld [vmem:[#allocation2 + $0xf8] sm:$0xff] }
 0x225   : > { %4023 = vst.msk [vmem:[#allocation2 + $0x151] sm:$0xff] %vm368_vm1, %v3991_v48  ;;  %18028 = vmatmul.mubr.msk.f32.gmra.mxu1 %vm368_vm1, %v21375_v6  ;;  %18072 = vmatmul.mubr.msk.f32.gmra.mxu0 %vm368_vm1, %v21377_v52  ;;  %26207 = vst [vmem:[#allocation82_spill] sm:$0xff] %v21386_v45  ;;  %v4082_v40 = vld [vmem:[#allocation2 + $0x148] sm:$0x1]  ;;  %v3924_v44 = vadd.f32 %v3885_v26, %v3534_v21  ;;  %v21397_v46 = vld [vmem:[#allocation2 + $0x129] sm:$0xff] }
 0x226   : > { %4026 = vst.msk [vmem:[#allocation2 + $0x171] sm:$0xff] %vm368_vm1, %v3994_v47  ;;  %v3993_v1 = vmax.f32 %v3961_v39, 0.0  ;;  %v3964_v9 = vadd.f32 %v20913_v27, %v3925_v36  ;;  %18030 = vmatprep.mubr.msk.f32.mxu1 %vm368_vm1, %v21384_v41  ;;  %18074 = vmatprep.mubr.msk.f32.mxu0 %vm368_vm1, %v21386_v45  ;;  %v4046_v19 = vld [vmem:[#allocation2 + $0x139] sm:$0x1]  ;;  %26208 = vst [vmem:[#allocation91_spill] sm:$0xff] %v21399_v50  ;;  %v21419_v61 = vld [vmem:[#allocation2 + $0x141] sm:$0xff] }
 0x227   : > { %4100 = vst.msk [vmem:[#allocation2 + $0x149] sm:$0x1] %vm424_vm2, %v4082_v40  ;;  %v3963_v16 = vadd.f32 %v20913_v27, %v3924_v44  ;;  %4064 = vst.msk [vmem:[#allocation2 + $0x138] sm:$0x1] %vm424_vm2, %v4046_v19  ;;  %v21406_v14 = vld [vmem:[#allocation2 + $0x139] sm:$0xff]  ;;  %v21408_v48 = vld [vmem:[#allocation2 + $0x108] sm:$0xff] }
 0x228   : > { %4025 = vst.msk [vmem:[#allocation2 + $0x169] sm:$0xff] %vm368_vm1, %v3993_v1  ;;  %v3996_v28 = vmax.f32 %v3964_v9, 0.0  ;;  %26209 = vst [vmem:[#allocation31_spill] sm:$0xff] %v21408_v48  ;;  %v4083_v2 = vld [vmem:[#allocation2 + $0x160] sm:$0x1]  ;;  %v21421_v56 = vld [vmem:[#allocation2 + $0x110] sm:$0xff] }
 0x229   : > { %18031 = vmatmul.mubr.msk.f32.gmra.mxu1 %vm368_vm1, %v21397_v46  ;;  %18075 = vmatmul.mubr.msk.f32.gmra.mxu0 %vm368_vm1, %v21399_v50  ;;  %v3995_v27 = vmax.f32 %v3963_v16, 0.0  ;;  %4101 = vst.msk [vmem:[#allocation2 + $0x161] sm:$0x1] %vm424_vm2, %v4083_v2  ;;  %26210 = vst [vmem:[#allocation4_spill] sm:$0xff] %v21421_v56  ;;  %v21437_v26 = vld [vmem:[#allocation2 + $0x159] sm:$0xff]  ;;  %v21439_v40 = vld [vmem:[#allocation2 + $0x128] sm:$0xff] }
 0x22a   : > { %4032 = vst.msk [vmem:[#allocation2 + $0x1a1] sm:$0xff] %vm368_vm1, %v3996_v28  ;;  %4028 = vst.msk [vmem:[#allocation2 + $0x189] sm:$0xff] %vm368_vm1, %v3996_v28  ;;  %18033 = vmatprep.mubr.msk.f32.mxu1 %vm368_vm1, %v21406_v14  ;;  %18077 = vmatprep.mubr.msk.f32.mxu0 %vm368_vm1, %v21408_v48  ;;  %v21430_v47 = vld [vmem:[#allocation2 + $0x120] sm:$0xff] }
 0x22b   : > { %4031 = vst.msk [vmem:[#allocation2 + $0x199] sm:$0xff] %vm368_vm1, %v3995_v27  ;;  %4027 = vst.msk [vmem:[#allocation2 + $0x181] sm:$0xff] %vm368_vm1, %v3995_v27  ;;  %v21457_v16 = vld [vmem:[#allocation2 + $0x140] sm:$0xff] }
 0x22c   : > { %v4047_v33 = vld [vmem:[#allocation2 + $0x151] sm:$0x1]  ;;  %26211 = vst [vmem:[#allocation37_spill] sm:$0xff] %v21430_v47  ;;  %26212 = vst [vmem:[#allocation36_spill] sm:$0xff] %v21437_v26 }
 0x22d   : > { %4065 = vst.msk [vmem:[#allocation2 + $0x150] sm:$0x1] %vm424_vm2, %v4047_v33  ;;  %18034 = vmatmul.mubr.msk.f32.gmra.mxu1 %vm368_vm1, %v21419_v61  ;;  %18078 = vmatmul.mubr.msk.f32.gmra.mxu0 %vm368_vm1, %v21421_v56  ;;  %v21428_v21 = vld [vmem:[#allocation2 + $0x151] sm:$0xff]  ;;  %26213 = vst [vmem:[#allocation44_spill] sm:$0xff] %v21439_v40  ;;  %v4820_v33 = vld [vmem:[#allocation2 + $0x2] sm:$0xff] }
 0x22e   : > { %v4084_v39 = vld [vmem:[#allocation2 + $0x178] sm:$0x1]  ;;  %18036 = vmatprep.mubr.msk.f32.mxu1 %vm368_vm1, %v21428_v21  ;;  %18080 = vmatprep.mubr.msk.f32.mxu0 %vm368_vm1, %v21430_v47  ;;  %26217 = vst [vmem:[#allocation27_spill] sm:$0xff] %v21457_v16 }
 0x22f   : > { %4102 = vst.msk [vmem:[#allocation2 + $0x179] sm:$0x1] %vm424_vm2, %v4084_v39  ;;  %v4048_v36 = vld [vmem:[#allocation2 + $0x169] sm:$0x1]  ;;  %v21448_v9 = vld [vmem:[#allocation2 + $0x138] sm:$0xff] }
 0x230   : > { %4066 = vst.msk [vmem:[#allocation2 + $0x168] sm:$0x1] %vm424_vm2, %v4048_v36  ;;  %v21446_v1 = vld [vmem:[#allocation2 + $0x169] sm:$0xff]  ;;  %26215 = vst [vmem:[#allocation94_spill] sm:$0xff] %v21448_v9  ;;  %v21455_v28 = vld [vmem:[#allocation2 + $0x171] sm:$0xff] }
 0x231   : > { %18037 = vmatmul.mubr.msk.f32.gmra.mxu1 %vm368_vm1, %v21437_v26  ;;  %18081 = vmatmul.mubr.msk.f32.gmra.mxu0 %vm368_vm1, %v21439_v40  ;;  %26214 = vst [vmem:[#allocation83_spill] sm:$0xff] %v21446_v1  ;;  %v4085_v44 = vld [vmem:[#allocation2 + $0x190] sm:$0x1]  ;;  %26216 = vst [vmem:[#allocation35_spill] sm:$0xff] %v21455_v28  ;;  %v4086_v39 = vld [vmem:[#allocation2 + $0x1a8] sm:$0x1] }
 0x232   : > { %18039 = vmatprep.mubr.msk.f32.mxu1 %vm368_vm1, %v21446_v1  ;;  %18083 = vmatprep.mubr.msk.f32.mxu0 %vm368_vm1, %v21448_v9  ;;  %4103 = vst.msk [vmem:[#allocation2 + $0x191] sm:$0x1] %vm424_vm2, %v4085_v44  ;;  %v4049_v19 = vld [vmem:[#allocation2 + $0x181] sm:$0x1]  ;;  %v4050_v2 = vld [vmem:[#allocation2 + $0x199] sm:$0x1] }
 0x233   : > { %4067 = vst.msk [vmem:[#allocation2 + $0x180] sm:$0x1] %vm424_vm2, %v4049_v19  ;;  %4068 = vst.msk [vmem:[#allocation2 + $0x198] sm:$0x1] %vm424_vm2, %v4050_v2  ;;  %v21470_v36 = vld [vmem:[#allocation2 + $0x158] sm:$0xff]  ;;  %v4821_v44 = vld [vmem:[#allocation2 + $0xa] sm:$0xff] }
 0x234   : > { %v21464_v27 = vld [vmem:[#allocation2 + $0x150] sm:$0xff]  ;;  %v21475_v19 = vld [vmem:[%s25800_s3 + $0x18] sm:$0xf]  ;;  %4104 = vst.msk [vmem:[#allocation2 + $0x1a9] sm:$0x1] %vm424_vm2, %v4086_v39 }
 0x235   : > { %18040 = vmatmul.mubr.msk.f32.gmra.mxu1 %vm368_vm1, %v21455_v28  ;;  %18084 = vmatmul.mubr.msk.f32.gmra.mxu0 %vm368_vm1, %v21457_v16  ;;  %26218 = vst [vmem:[#allocation5_spill] sm:$0xff] %v21464_v27  ;;  %v21493_v39 = vld [vmem:[#allocation2 + $0x170] sm:$0xff]  ;;  %v21495_v28 = vld [vmem:[#allocation2 + $0x22] sm:$0xff]  ;;  %v21518_v26 = vld [vmem:[%s25800_s3 + $0x1c] sm:$0xf] }
 0x236   : > { %18086 = vmatprep.mubr.msk.f32.mxu0 %vm368_vm1, %v21464_v27  ;;  %18094 = vmatprep.mubr.msk.f32.mxu1 %vm368_vm1, %v4820_v33  ;;  %v21487_v33 = vld [vmem:[#allocation2 + $0x1a] sm:$0xff]  ;;  %v21513_v1 = vld [vmem:[#allocation2 + $0x4a] sm:$0xff] }
 0x237   : > { %v21481_v2 = vld [vmem:[#allocation2 + $0x168] sm:$0xff] }
 0x239   : > { %18087 = vmatmul.mubr.msk.f32.gmra.mxu0 %vm368_vm1, %v21470_v36  ;;  %18095 = vmatmul.mubr.msk.f32.vlgmr.msra.gmra.mxu1 %vm368_vm1, %v4821_v44  ;;  %v21507_v44 = vld [vmem:[#allocation2 + $0x3a] sm:$0xff] }
 0x23a   : > { %18193 = vmatpush3.msk.msra.mxu1 %vm642_vm0, %v21012_v60  ;;  %18089 = vmatprep.mubr.msk.f32.mxu0 %vm368_vm1, %v21481_v2  ;;  %v21501_v60 = vld [vmem:[#allocation2 + $0x32] sm:$0xff] }
 0x23b   : > { %18097 = vmatprep.mubr.msk.f32.mxu1 %vm368_vm1, %v21487_v33  ;;  %18292 = vmatprep.subr.msk.mxu1 %vm642_vm0, %v21475_v19 }
 0x23d   : > { %18090 = vmatmul.mubr.msk.f32.gmra.mxu0 %vm368_vm1, %v21493_v39  ;;  %18098 = vmatmul.mubr.msk.f32.gmra.mxu1 %vm368_vm1, %v21495_v28 }
 0x23e   : > { %18100 = vmatprep.mubr.msk.f32.mxu1 %vm368_vm1, %v21501_v60  ;;  %18144 = vmatprep.mubr.msk.f32.mxu0 %vm368_vm1, %v21095_v4  ;;  %v21526_v4 = vld [vmem:[#allocation2 + $0x52] sm:$0xff] }
 0x241   : > { %18101 = vmatmul.mubr.msk.f32.gmra.mxu1 %vm368_vm1, %v21507_v44  ;;  %18145 = vmatmul.mubr.msk.f32.vlgmr.msra.gmra.mxu0 %vm368_vm1, %v21117_v34  ;;  %v21534_v34 = vld [vmem:[#allocation2 + $0x62] sm:$0xff] }
 0x242   : > { %18103 = vmatprep.mubr.msk.f32.mxu1 %vm368_vm1, %v21513_v1  ;;  %18147 = vmatprep.mubr.msk.f32.mxu0 %vm368_vm1, %v21134_v55  ;;  %v21546_v55 = vld [vmem:[#allocation2 + $0x7a] sm:$0xff] }
 0x243   : > { %18243 = vmatpush3.msk.msra.mxu0 %vm642_vm0, %v21082_v22  ;;  %v21540_v22 = vld [vmem:[#allocation2 + $0x6a] sm:$0xff] }
 0x244   : > { %18342 = vmatprep.subr.msk.mxu0 %vm642_vm0, %v21518_v26 }
 0x245   : > { %18104 = vmatmul.mubr.msk.f32.gmra.mxu1 %vm368_vm1, %v21526_v4  ;;  %18148 = vmatmul.mubr.msk.f32.gmra.mxu0 %vm368_vm1, %v21154_v59  ;;  %v21552_v59 = vld [vmem:[#allocation2 + $0x82] sm:$0xff] }
 0x246   : > { %18106 = vmatprep.mubr.msk.f32.mxu1 %vm368_vm1, %v21534_v34  ;;  %18150 = vmatprep.mubr.msk.f32.mxu0 %vm368_vm1, %v21169_v37  ;;  %v21558_v37 = vld [vmem:[#allocation2 + $0x92] sm:$0xff] }
 0x249   : > { %18107 = vmatmul.mubr.msk.f32.gmra.mxu1 %vm368_vm1, %v21540_v22  ;;  %18151 = vmatmul.mubr.msk.f32.gmra.mxu0 %vm368_vm1, %v21189_v15  ;;  %v21564_v15 = vld [vmem:[#allocation2 + $0x9a] sm:$0xff] }
 0x24a   : > { %18109 = vmatprep.mubr.msk.f32.mxu1 %vm368_vm1, %v21546_v55  ;;  %18153 = vmatprep.mubr.msk.f32.mxu0 %vm368_vm1, %v21204_v43  ;;  %v21570_v43 = vld [vmem:[#allocation2 + $0xaa] sm:$0xff] }
 0x24d   : > { %18110 = vmatmul.mubr.msk.f32.gmra.mxu1 %vm368_vm1, %v21552_v59  ;;  %18154 = vmatmul.mubr.msk.f32.gmra.mxu0 %vm368_vm1, %v21224_v3  ;;  %v21576_v3 = vld [vmem:[#allocation2 + $0xb2] sm:$0xff] }
 0x24e   : > { %18112 = vmatprep.mubr.msk.f32.mxu1 %vm368_vm1, %v21558_v37  ;;  %18156 = vmatprep.mubr.msk.f32.mxu0 %vm368_vm1, %v21239_v0  ;;  %v21582_v0 = vld [vmem:[#allocation2 + $0xc2] sm:$0xff] }
 0x251   : > { %18113 = vmatmul.mubr.msk.f32.gmra.mxu1 %vm368_vm1, %v21564_v15  ;;  %18157 = vmatmul.mubr.msk.f32.gmra.mxu0 %vm368_vm1, %v21259_v24  ;;  %v21588_v24 = vld [vmem:[#allocation2 + $0xca] sm:$0xff] }
 0x252   : > { %18115 = vmatprep.mubr.msk.f32.mxu1 %vm368_vm1, %v21570_v43  ;;  %18159 = vmatprep.mubr.msk.f32.mxu0 %vm368_vm1, %v21274_v13  ;;  %v21594_v13 = vld [vmem:[#allocation2 + $0xda] sm:$0xff] }
 0x255   : > { %18116 = vmatmul.mubr.msk.f32.gmra.mxu1 %vm368_vm1, %v21576_v3  ;;  %18160 = vmatmul.mubr.msk.f32.gmra.mxu0 %vm368_vm1, %v21294_v30  ;;  %v21600_v30 = vld [vmem:[#allocation2 + $0xe2] sm:$0xff] }
 0x256   : > { %18118 = vmatprep.mubr.msk.f32.mxu1 %vm368_vm1, %v21582_v0  ;;  %18162 = vmatprep.mubr.msk.f32.mxu0 %vm368_vm1, %v21307_v7  ;;  %v21606_v7 = vld [vmem:[#allocation2 + $0xf2] sm:$0xff] }
 0x259   : > { %18119 = vmatmul.mubr.msk.f32.gmra.mxu1 %vm368_vm1, %v21588_v24  ;;  %18163 = vmatmul.mubr.msk.f32.gmra.mxu0 %vm368_vm1, %v21325_v53  ;;  %v21612_v53 = vld [vmem:[#allocation2 + $0xfa] sm:$0xff] }
 0x25a   : > { %18121 = vmatprep.mubr.msk.f32.mxu1 %vm368_vm1, %v21594_v13  ;;  %18165 = vmatprep.mubr.msk.f32.mxu0 %vm368_vm1, %v21338_v20  ;;  %v21618_v20 = vld [vmem:[#allocation2 + $0x10a] sm:$0xff] }
 0x25d   : > { %18122 = vmatmul.mubr.msk.f32.gmra.mxu1 %vm368_vm1, %v21600_v30  ;;  %18166 = vmatmul.mubr.msk.f32.gmra.mxu0 %vm368_vm1, %v21354_v12  ;;  %v21624_v12 = vld [vmem:[#allocation2 + $0x112] sm:$0xff] }
 0x25e   : > { %18124 = vmatprep.mubr.msk.f32.mxu1 %vm368_vm1, %v21606_v7  ;;  %18168 = vmatprep.mubr.msk.f32.mxu0 %vm368_vm1, %v21364_v58  ;;  %v21630_v58 = vld [vmem:[#allocation2 + $0x122] sm:$0xff] }
 0x261   : > { %18125 = vmatmul.mubr.msk.f32.gmra.mxu1 %vm368_vm1, %v21612_v53  ;;  %18169 = vmatmul.mubr.msk.f32.gmra.mxu0 %vm368_vm1, %v21377_v52  ;;  %v21636_v52 = vld [vmem:[#allocation2 + $0x12a] sm:$0xff] }
 0x262   : > { %18127 = vmatprep.mubr.msk.f32.mxu1 %vm368_vm1, %v21618_v20  ;;  %18171 = vmatprep.mubr.msk.f32.mxu0 %vm368_vm1, %v21386_v45  ;;  %v21642_v45 = vld [vmem:[#allocation2 + $0x13a] sm:$0xff] }
 0x265   : > { %18128 = vmatmul.mubr.msk.f32.gmra.mxu1 %vm368_vm1, %v21624_v12  ;;  %18172 = vmatmul.mubr.msk.f32.gmra.mxu0 %vm368_vm1, %v21399_v50  ;;  %v21648_v50 = vld [vmem:[#allocation2 + $0x142] sm:$0xff] }
 0x266   : > { %18130 = vmatprep.mubr.msk.f32.mxu1 %vm368_vm1, %v21630_v58  ;;  %18174 = vmatprep.mubr.msk.f32.mxu0 %vm368_vm1, %v21408_v48  ;;  %v21654_v48 = vld [vmem:[#allocation2 + $0x152] sm:$0xff] }
 0x269   : > { %18131 = vmatmul.mubr.msk.f32.gmra.mxu1 %vm368_vm1, %v21636_v52  ;;  %18175 = vmatmul.mubr.msk.f32.gmra.mxu0 %vm368_vm1, %v21421_v56  ;;  %v21660_v56 = vld [vmem:[#allocation2 + $0x15a] sm:$0xff] }
 0x26a   : > { %18133 = vmatprep.mubr.msk.f32.mxu1 %vm368_vm1, %v21642_v45  ;;  %18177 = vmatprep.mubr.msk.f32.mxu0 %vm368_vm1, %v21430_v47  ;;  %v21666_v47 = vld [vmem:[#allocation2 + $0x16a] sm:$0xff] }
 0x26d   : > { %18134 = vmatmul.mubr.msk.f32.gmra.mxu1 %vm368_vm1, %v21648_v50  ;;  %18178 = vmatmul.mubr.msk.f32.gmra.mxu0 %vm368_vm1, %v21439_v40  ;;  %v21672_v40 = vld [vmem:[#allocation2 + $0x172] sm:$0xff] }
 0x26e   : > { %18136 = vmatprep.mubr.msk.f32.mxu1 %vm368_vm1, %v21654_v48  ;;  %18180 = vmatprep.mubr.msk.f32.mxu0 %vm368_vm1, %v21448_v9  ;;  %v21684_v9 = vld [vmem:[%s25800_s3 + $0x20] sm:$0xf] }
 0x271   : > { %18137 = vmatmul.mubr.msk.f32.gmra.mxu1 %vm368_vm1, %v21660_v56  ;;  %18181 = vmatmul.mubr.msk.f32.gmra.mxu0 %vm368_vm1, %v21457_v16  ;;  %v19478_v16 = vld [vmem:[#allocation2 + $0x19] sm:$0xff] }
 0x272   : > { %18139 = vmatprep.mubr.msk.f32.mxu1 %vm368_vm1, %v21666_v47  ;;  %18183 = vmatprep.mubr.msk.f32.mxu0 %vm368_vm1, %v21464_v27  ;;  %v21690_v27 = vld [vmem:[#allocation2 + $0x180] sm:$0xff] }
 0x275   : > { %18140 = vmatmul.mubr.msk.f32.gmra.mxu1 %vm368_vm1, %v21672_v40  ;;  %18184 = vmatmul.mubr.msk.f32.gmra.mxu0 %vm368_vm1, %v21470_v36 }
 0x276   : > { %18186 = vmatprep.mubr.msk.f32.mxu0 %vm368_vm1, %v21481_v2  ;;  %18194 = vmatprep.mubr.msk.f32.mxu1 %vm368_vm1, %v19478_v16  ;;  %v21700_v16 = vld [vmem:[#allocation2 + $0x188] sm:$0xff] }
 0x279   : > { %18187 = vmatmul.mubr.msk.f32.gmra.mxu0 %vm368_vm1, %v21493_v39  ;;  %18195 = vmatmul.mubr.msk.f32.vlgmr.msra.gmra.mxu1 %vm368_vm1, %v21046_v57  ;;  %v26219_v57 = vld [vmem:[#allocation36_spill] sm:$0xff] }
 0x27a   : > { %18293 = vmatpush3.msk.msra.mxu1 %vm642_vm0, %v21475_v19  ;;  %18189 = vmatprep.mubr.msk.f32.mxu0 %vm368_vm1, %v21690_v27  ;;  %v26233_v19 = vld [vmem:[#allocation24_spill] sm:$0xff] }
 0x27b   : > { %18197 = vmatprep.mubr.msk.f32.mxu1 %vm368_vm1, %v21059_v5  ;;  %18392 = vmatprep.subr.msk.mxu1 %vm642_vm0, %v21684_v9  ;;  %v26220_v5 = vld [vmem:[#allocation83_spill] sm:$0xff] }
 0x27d   : > { %18190 = vmatmul.mubr.msk.f32.gmra.mxu0 %vm368_vm1, %v21700_v16  ;;  %18198 = vmatmul.mubr.msk.f32.gmra.mxu1 %vm368_vm1, %v21076_v31  ;;  %v26221_v31 = vld [vmem:[#allocation35_spill] sm:$0xff] }
 0x27e   : > { %18200 = vmatprep.mubr.msk.f32.mxu1 %vm368_vm1, %v21093_v62  ;;  %18244 = vmatprep.mubr.msk.f32.mxu0 %vm368_vm1, %v21487_v33  ;;  %v21812_v62 = vld [vmem:[#allocation2 + $0x181] sm:$0xff]  ;;  %v6778_v33 = vld [vmem:[#allocation2 + $0x91] sm:$0xff] }
 0x281   : > { %18201 = vmatmul.mubr.msk.f32.gmra.mxu1 %vm368_vm1, %v21115_v49  ;;  %18245 = vmatmul.mubr.msk.f32.vlgmr.msra.gmra.mxu0 %vm368_vm1, %v21495_v28  ;;  %v21818_v49 = vld [vmem:[#allocation2 + $0x189] sm:$0xff] }
 0x282   : > { %18203 = vmatprep.mubr.msk.f32.mxu1 %vm368_vm1, %v21132_v51  ;;  %18247 = vmatprep.mubr.msk.f32.mxu0 %vm368_vm1, %v21501_v60  ;;  %v26222_v51 = vld [vmem:[#allocation8_spill] sm:$0xff] }
 0x283   : > { %18343 = vmatpush3.msk.msra.mxu0 %vm642_vm0, %v21518_v26 }
 0x285   : > { %18204 = vmatmul.mubr.msk.f32.gmra.mxu1 %vm368_vm1, %v21152_v32  ;;  %18248 = vmatmul.mubr.msk.f32.gmra.mxu0 %vm368_vm1, %v21507_v44 }
 0x286   : > { %18206 = vmatprep.mubr.msk.f32.mxu1 %vm368_vm1, %v21167_v11  ;;  %18250 = vmatprep.mubr.msk.f32.mxu0 %vm368_vm1, %v21513_v1  ;;  %v21832_v11 = vld [vmem:[#allocation2 + $0x182] sm:$0xff] }
 0x289   : > { %18207 = vmatmul.mubr.msk.f32.gmra.mxu1 %vm368_vm1, %v21187_v38  ;;  %18251 = vmatmul.mubr.msk.f32.gmra.mxu0 %vm368_vm1, %v21526_v4 }
 0x28a   : > { %18209 = vmatprep.mubr.msk.f32.mxu1 %vm368_vm1, %v21202_v54  ;;  %18253 = vmatprep.mubr.msk.f32.mxu0 %vm368_vm1, %v21534_v34 }
 0x28d   : > { %18210 = vmatmul.mubr.msk.f32.gmra.mxu1 %vm368_vm1, %v21222_v23  ;;  %18254 = vmatmul.mubr.msk.f32.gmra.mxu0 %vm368_vm1, %v21540_v22  ;;  %v6770_v23 = vld [vmem:[#allocation2 + $0x31] sm:$0xff] }
 0x28e   : > { %18212 = vmatprep.mubr.msk.f32.mxu1 %vm368_vm1, %v21237_v10  ;;  %18256 = vmatprep.mubr.msk.f32.mxu0 %vm368_vm1, %v21546_v55 }
 0x291   : > { %18213 = vmatmul.mubr.msk.f32.gmra.mxu1 %vm368_vm1, %v21257_v35  ;;  %18257 = vmatmul.mubr.msk.f32.gmra.mxu0 %vm368_vm1, %v21552_v59  ;;  %v26223_v59 = vld [vmem:[#allocation38_spill] sm:$0xff] }
 0x292   : > { %18215 = vmatprep.mubr.msk.f32.mxu1 %vm368_vm1, %v21272_v18  ;;  %18259 = vmatprep.mubr.msk.f32.mxu0 %vm368_vm1, %v21558_v37  ;;  %v26224_v37 = vld [vmem:[#allocation80_spill] sm:$0xff]  ;;  %v26227_v18 = vld [vmem:[#allocation26_spill] sm:$0xff] }
 0x295   : > { %18216 = vmatmul.mubr.msk.f32.gmra.mxu1 %vm368_vm1, %v21292_v63  ;;  %18260 = vmatmul.mubr.msk.f32.gmra.mxu0 %vm368_vm1, %v21564_v15  ;;  %v21840_v15 = vld [vmem:[#allocation2 + $0x18a] sm:$0xff] }
 0x296   : > { %18218 = vmatprep.mubr.msk.f32.mxu1 %vm368_vm1, %v21305_v8  ;;  %18262 = vmatprep.mubr.msk.f32.mxu0 %vm368_vm1, %v21570_v43  ;;  %v26225_v43 = vld [vmem:[#allocation85_spill] sm:$0xff] }
 0x299   : > { %18219 = vmatmul.mubr.msk.f32.gmra.mxu1 %vm368_vm1, %v21323_v25  ;;  %18263 = vmatmul.mubr.msk.f32.gmra.mxu0 %vm368_vm1, %v21576_v3  ;;  %v26226_v3 = vld [vmem:[#allocation22_spill] sm:$0xff] }
 0x29a   : > { %18221 = vmatprep.mubr.msk.f32.mxu1 %vm368_vm1, %v21336_v29  ;;  %18265 = vmatprep.mubr.msk.f32.mxu0 %vm368_vm1, %v21582_v0  ;;  %v6771_v0 = vld [vmem:[#allocation2 + $0x39] sm:$0xff] }
 0x29d   : > { %18222 = vmatmul.mubr.msk.f32.gmra.mxu1 %vm368_vm1, %v21352_v17  ;;  %18266 = vmatmul.mubr.msk.f32.gmra.mxu0 %vm368_vm1, %v21588_v24  ;;  %v26229_v17 = vld [vmem:[#allocation33_spill] sm:$0xff] }
 0x29e   : > { %18224 = vmatprep.mubr.msk.f32.mxu1 %vm368_vm1, %v21362_v42  ;;  %18268 = vmatprep.mubr.msk.f32.mxu0 %vm368_vm1, %v21594_v13  ;;  %v6772_v13 = vld [vmem:[#allocation2 + $0x49] sm:$0xff] }
 0x2a1   : > { %18225 = vmatmul.mubr.msk.f32.gmra.mxu1 %vm368_vm1, %v21375_v6  ;;  %18269 = vmatmul.mubr.msk.f32.gmra.mxu0 %vm368_vm1, %v21600_v30  ;;  %v26228_v30 = vld [vmem:[#allocation34_spill] sm:$0xff] }
 0x2a2   : > { %18227 = vmatprep.mubr.msk.f32.mxu1 %vm368_vm1, %v21384_v41  ;;  %18271 = vmatprep.mubr.msk.f32.mxu0 %vm368_vm1, %v21606_v7 }
 0x2a5   : > { %18228 = vmatmul.mubr.msk.f32.gmra.mxu1 %vm368_vm1, %v21397_v46  ;;  %18272 = vmatmul.mubr.msk.f32.gmra.mxu0 %vm368_vm1, %v21612_v53  ;;  %v6773_v53 = vld [vmem:[#allocation2 + $0x51] sm:$0xff] }
 0x2a6   : > { %18230 = vmatprep.mubr.msk.f32.mxu1 %vm368_vm1, %v21406_v14  ;;  %18274 = vmatprep.mubr.msk.f32.mxu0 %vm368_vm1, %v21618_v20  ;;  %v26231_v14 = vld [vmem:[#allocation81_spill] sm:$0xff] }
 0x2a9   : > { %18231 = vmatmul.mubr.msk.f32.gmra.mxu1 %vm368_vm1, %v21419_v61  ;;  %18275 = vmatmul.mubr.msk.f32.gmra.mxu0 %vm368_vm1, %v21624_v12  ;;  %v6774_v12 = vld [vmem:[#allocation2 + $0x61] sm:$0xff] }
 0x2aa   : > { %18233 = vmatprep.mubr.msk.f32.mxu1 %vm368_vm1, %v21428_v21  ;;  %18277 = vmatprep.mubr.msk.f32.mxu0 %vm368_vm1, %v21630_v58  ;;  %v26230_v58 = vld [vmem:[#allocation40_spill] sm:$0xff] }
 0x2ad   : > { %18234 = vmatmul.mubr.msk.f32.gmra.mxu1 %vm368_vm1, %v26219_v57  ;;  %18278 = vmatmul.mubr.msk.f32.gmra.mxu0 %vm368_vm1, %v21636_v52  ;;  %v26234_v57 = vld [vmem:[#allocation28_spill] sm:$0xff] }
 0x2ae   : > { %18236 = vmatprep.mubr.msk.f32.mxu1 %vm368_vm1, %v26220_v5  ;;  %18280 = vmatprep.mubr.msk.f32.mxu0 %vm368_vm1, %v21642_v45  ;;  %v6775_v45 = vld [vmem:[#allocation2 + $0x69] sm:$0xff] }
 0x2b1   : > { %18237 = vmatmul.mubr.msk.f32.gmra.mxu1 %vm368_vm1, %v26221_v31  ;;  %18281 = vmatmul.mubr.msk.f32.gmra.mxu0 %vm368_vm1, %v21648_v50  ;;  %v17996_v32 = vpop.f32.mrf.mxu1 }
 0x2b2   : > { %18239 = vmatprep.mubr.msk.f32.mxu1 %vm368_vm1, %v21812_v62  ;;  %18283 = vmatprep.mubr.msk.f32.mxu0 %vm368_vm1, %v21654_v48  ;;  %v6776_v48 = vld [vmem:[#allocation2 + $0x79] sm:$0xff] }
 0x2b3   : > { %v4337_v38 = vpop.f32.mrf.mxu1 }
 0x2b5   : > { %18240 = vmatmul.mubr.msk.f32.gmra.mxu1 %vm368_vm1, %v21818_v49  ;;  %18284 = vmatmul.mubr.msk.f32.gmra.mxu0 %vm368_vm1, %v21660_v56  ;;  %v17999_v54 = vpop.f32.mrf.mxu1  ;;  %v26232_v56 = vld [vmem:[#allocation88_spill] sm:$0xff] }
 0x2b6   : > { %18286 = vmatprep.mubr.msk.f32.mxu0 %vm368_vm1, %v21666_v47  ;;  %18294 = vmatprep.mubr.msk.f32.mxu1 %vm368_vm1, %v26222_v51 }
 0x2b7   : > { %v4347_v10 = vpop.f32.mrf.mxu1 }
 0x2b9   : > { %18287 = vmatmul.mubr.msk.f32.gmra.mxu0 %vm368_vm1, %v21672_v40  ;;  %18295 = vmatmul.mubr.msk.f32.vlgmr.msra.gmra.mxu1 %vm368_vm1, %v26223_v59  ;;  %v6777_v40 = vld [vmem:[#allocation2 + $0x81] sm:$0xff] }
 0x2ba   : > { %18393 = vmatpush3.msk.msra.mxu1 %vm642_vm0, %v21684_v9  ;;  %18289 = vmatprep.mubr.msk.f32.mxu0 %vm368_vm1, %v21832_v11  ;;  %v18002_v35 = vpop.f32.mrf.mxu1  ;;  %v18046_v24 = vpop.f32.mrf.mxu0 }
 0x2bb   : > { %18297 = vmatprep.mubr.msk.f32.mxu1 %vm368_vm1, %v26224_v37  ;;  %v21852_v63 = vadd.f32 %v18046_v24, %v17996_v32  ;;  %v6779_v32 = vld [vmem:[#allocation2 + $0x99] sm:$0xff] }
 0x2bc   : > { %v4357_v8 = vpop.f32.mrf.mxu1  ;;  %v4661_v7 = vpop.f32.mrf.mxu0 }
 0x2bd   : > { %18290 = vmatmul.mubr.msk.f32.gmra.mxu0 %vm368_vm1, %v21840_v15  ;;  %18298 = vmatmul.mubr.msk.f32.gmra.mxu1 %vm368_vm1, %v26225_v43  ;;  %v21857_v25 = vadd.f32 %v4661_v7, %v4337_v38  ;;  %v26235_v38 = vld [vmem:[#allocation6_spill] sm:$0xff] }
 0x2be   : > { %18300 = vmatprep.mubr.msk.f32.mxu1 %vm368_vm1, %v26226_v3  ;;  %18344 = vmatprep.mubr.msk.f32.mxu0 %vm368_vm1, %v6770_v23  ;;  %v26236_v23 = vld [vmem:[#allocation10_spill] sm:$0xff] }
 0x2bf   : > { %v26238_v7 = vld [vmem:[#allocation82_spill] sm:$0xff] }
 0x2c0   : > { %v18005_v29 = vpop.f32.mrf.mxu1  ;;  %v18049_v20 = vpop.f32.mrf.mxu0 }
 0x2c1   : > { %18301 = vmatmul.mubr.msk.f32.gmra.mxu1 %vm368_vm1, %v26227_v18  ;;  %18345 = vmatmul.mubr.msk.f32.vlgmr.msra.gmra.mxu0 %vm368_vm1, %v6771_v0  ;;  %v21862_v42 = vadd.f32 %v18049_v20, %v17999_v54  ;;  %v6780_v54 = vld [vmem:[#allocation2 + $0xa9] sm:$0xff] }
 0x2c2   : > { %18303 = vmatprep.mubr.msk.f32.mxu1 %vm368_vm1, %v26228_v30  ;;  %18347 = vmatprep.mubr.msk.f32.mxu0 %vm368_vm1, %v6772_v13  ;;  %v4367_v6 = vpop.f32.mrf.mxu1  ;;  %v4671_v52 = vpop.f32.mrf.mxu0  ;;  %v26237_v13 = vld [vmem:[#allocation42_spill] sm:$0xff] }
 0x2c3   : > { %v21867_v41 = vadd.f32 %v4671_v52, %v4347_v10  ;;  %v6782_v30 = vld [vmem:[#allocation2 + $0xc1] sm:$0xff]  ;;  %v6784_v52 = vld [vmem:[#allocation2 + $0xd9] sm:$0xff] }
 0x2c4   : > { %v18008_v46 = vpop.f32.mrf.mxu1  ;;  %v18052_v50 = vpop.f32.mrf.mxu0 }
 0x2c5   : > { %18304 = vmatmul.mubr.msk.f32.gmra.mxu1 %vm368_vm1, %v26229_v17  ;;  %18348 = vmatmul.mubr.msk.f32.gmra.mxu0 %vm368_vm1, %v6773_v53  ;;  %v21872_v61 = vadd.f32 %v18052_v50, %v18002_v35  ;;  %v6781_v35 = vld [vmem:[#allocation2 + $0xb1] sm:$0xff]  ;;  %v6783_v17 = vld [vmem:[#allocation2 + $0xc9] sm:$0xff] }
 0x2c6   : > { %18306 = vmatprep.mubr.msk.f32.mxu1 %vm368_vm1, %v26230_v58  ;;  %18350 = vmatprep.mubr.msk.f32.mxu0 %vm368_vm1, %v6774_v12  ;;  %v4377_v21 = vpop.f32.mrf.mxu1  ;;  %v4681_v47 = vpop.f32.mrf.mxu0 }
 0x2c7   : > { %v21877_v26 = vadd.f32 %v4681_v47, %v4357_v8 }
 0x2c9   : > { %18307 = vmatmul.mubr.msk.f32.gmra.mxu1 %vm368_vm1, %v26231_v14  ;;  %18351 = vmatmul.mubr.msk.f32.gmra.mxu0 %vm368_vm1, %v6775_v45  ;;  %v18011_v9 = vpop.f32.mrf.mxu1  ;;  %v18055_v28 = vpop.f32.mrf.mxu0 }
 0x2ca   : > { %18309 = vmatprep.mubr.msk.f32.mxu1 %vm368_vm1, %v26232_v56  ;;  %18353 = vmatprep.mubr.msk.f32.mxu0 %vm368_vm1, %v6776_v48  ;;  %v21882_v22 = vadd.f32 %v18055_v28, %v18005_v29  ;;  %v6785_v56 = vld [vmem:[#allocation2 + $0xe1] sm:$0xff] }
 0x2cb   : > { %v4387_v5 = vpop.f32.mrf.mxu1  ;;  %v4691_v31 = vpop.f32.mrf.mxu0 }
 0x2cc   : > { %v21887_v51 = vadd.f32 %v4691_v31, %v4367_v6  ;;  %v26239_v6 = vld [vmem:[#allocation91_spill] sm:$0xff]  ;;  %v6787_v31 = vld [vmem:[#allocation2 + $0xf9] sm:$0xff] }
 0x2cd   : > { %18310 = vmatmul.mubr.msk.f32.gmra.mxu1 %vm368_vm1, %v26233_v19  ;;  %18354 = vmatmul.mubr.msk.f32.gmra.mxu0 %vm368_vm1, %v6777_v40  ;;  %v18014_v59 = vpop.f32.mrf.mxu1  ;;  %v26241_v40 = vld [vmem:[#allocation4_spill] sm:$0xff]  ;;  %v26242_v19 = vld [vmem:[#allocation37_spill] sm:$0xff] }
 0x2ce   : > { %18312 = vmatprep.mubr.msk.f32.mxu1 %vm368_vm1, %v26234_v57  ;;  %18356 = vmatprep.mubr.msk.f32.mxu0 %vm368_vm1, %v6778_v33 }
 0x2cf   : > { %v18058_v37 = vpop.f32.mrf.mxu0  ;;  %v4397_v3 = vpop.f32.mrf.mxu1 }
 0x2d0   : > { %v21892_v43 = vadd.f32 %v18058_v37, %v18008_v46  ;;  %v26240_v46 = vld [vmem:[#allocation31_spill] sm:$0xff]  ;;  %v26243_v37 = vld [vmem:[#allocation44_spill] sm:$0xff] }
 0x2d1   : > { %18313 = vmatmul.mubr.msk.f32.gmra.mxu1 %vm368_vm1, %v26235_v38  ;;  %18357 = vmatmul.mubr.msk.f32.gmra.mxu0 %vm368_vm1, %v6779_v32  ;;  %v4701_v10 = vpop.f32.mrf.mxu0  ;;  %v6788_v38 = vld [vmem:[#allocation2 + $0x109] sm:$0xff] }
 0x2d2   : > { %18315 = vmatprep.mubr.msk.f32.mxu1 %vm368_vm1, %v26236_v23  ;;  %18359 = vmatprep.mubr.msk.f32.mxu0 %vm368_vm1, %v6780_v54  ;;  %v21897_v0 = vadd.f32 %v4701_v10, %v4377_v21  ;;  %v18017_v24 = vpop.f32.mrf.mxu1  ;;  %v26244_v23 = vld [vmem:[#allocation94_spill] sm:$0xff] }
 0x2d3   : > { %v18061_v18 = vpop.f32.mrf.mxu0 }
 0x2d4   : > { %v21902_v8 = vadd.f32 %v18061_v18, %v18011_v9  ;;  %v4407_v53 = vpop.f32.mrf.mxu1  ;;  %v6786_v9 = vld [vmem:[#allocation2 + $0xf1] sm:$0xff] }
 0x2d5   : > { %18316 = vmatmul.mubr.msk.f32.gmra.mxu1 %vm368_vm1, %v26237_v13  ;;  %18360 = vmatmul.mubr.msk.f32.gmra.mxu0 %vm368_vm1, %v6781_v35  ;;  %v4711_v29 = vpop.f32.mrf.mxu0  ;;  %v6789_v35 = vld [vmem:[#allocation2 + $0x111] sm:$0xff]  ;;  %v26245_v13 = vld [vmem:[#allocation27_spill] sm:$0xff] }
 0x2d6   : > { %18318 = vmatprep.mubr.msk.f32.mxu1 %vm368_vm1, %v26238_v7  ;;  %18362 = vmatprep.mubr.msk.f32.mxu0 %vm368_vm1, %v6782_v30  ;;  %v21907_v20 = vadd.f32 %v4711_v29, %v4387_v5  ;;  %v6790_v30 = vld [vmem:[#allocation2 + $0x121] sm:$0xff] }
 0x2d7   : > { %v18020_v12 = vpop.f32.mrf.mxu1  ;;  %v18064_v58 = vpop.f32.mrf.mxu0 }
 0x2d8   : > { %v21912_v45 = vadd.f32 %v18064_v58, %v18014_v59 }
 0x2d9   : > { %18319 = vmatmul.mubr.msk.f32.gmra.mxu1 %vm368_vm1, %v26239_v6  ;;  %18363 = vmatmul.mubr.msk.f32.gmra.mxu0 %vm368_vm1, %v6783_v17  ;;  %v21917_v50 = vpop.f32.mrf.mxu1  ;;  %v4721_v14 = vpop.f32.mrf.mxu0 }
 0x2da   : > { %18321 = vmatprep.mubr.msk.f32.mxu1 %vm368_vm1, %v26240_v46  ;;  %18365 = vmatprep.mubr.msk.f32.mxu0 %vm368_vm1, %v6784_v52  ;;  %v21919_v48 = vadd.f32 %v4721_v14, %v4397_v3  ;;  %v6792_v52 = vld [vmem:[#allocation2 + $0x139] sm:$0xff] }
 0x2dd   : > { %v18023_v21 = vpop.f32.mrf.mxu1  ;;  %v18067_v47 = vpop.f32.mrf.mxu0  ;;  %18322 = vmatmul.mubr.msk.f32.gmra.mxu1 %vm368_vm1, %v26241_v40  ;;  %18366 = vmatmul.mubr.msk.f32.gmra.mxu0 %vm368_vm1, %v6785_v56 }
 0x2de   : > { %v21924_v28 = vadd.f32 %v18067_v47, %v18017_v24  ;;  %18324 = vmatprep.mubr.msk.f32.mxu1 %vm368_vm1, %v26242_v19  ;;  %18368 = vmatprep.mubr.msk.f32.mxu0 %vm368_vm1, %v6786_v9 }
 0x2df   : > { %v21929_v33 = vpop.f32.mrf.mxu1  ;;  %v4731_v57 = vpop.f32.mrf.mxu0 }
 0x2e0   : > { %v21931_v5 = vadd.f32 %v4731_v57, %v4407_v53  ;;  %v26246_v53 = vld [vmem:[#allocation5_spill] sm:$0xff] }
 0x2e1   : > { %v18026_v32 = vpop.f32.mrf.mxu1  ;;  %v18070_v59 = vpop.f32.mrf.mxu0  ;;  %18325 = vmatmul.mubr.msk.f32.gmra.mxu1 %vm368_vm1, %v26243_v37  ;;  %18369 = vmatmul.mubr.msk.f32.gmra.mxu0 %vm368_vm1, %v6787_v31  ;;  %v6795_v57 = vld [vmem:[#allocation2 + $0x159] sm:$0xff] }
 0x2e2   : > { %v21936_v54 = vadd.f32 %v18070_v59, %v18020_v12  ;;  %18327 = vmatprep.mubr.msk.f32.mxu1 %vm368_vm1, %v26244_v23  ;;  %18371 = vmatprep.mubr.msk.f32.mxu0 %vm368_vm1, %v6788_v38  ;;  %v6791_v12 = vld [vmem:[#allocation2 + $0x129] sm:$0xff]  ;;  %v6411_v23 = vld [vmem:[#allocation2 + $0x1a0] sm:$0xff] }
 0x2e3   : > { %v21941_v3 = vpop.f32.mrf.mxu1  ;;  %v21943_v10 = vpop.f32.mrf.mxu0  ;;  %v6796_v59 = vld [vmem:[#allocation2 + $0x169] sm:$0xff] }
 0x2e5   : > { %v18029_v24 = vpop.f32.mrf.mxu1  ;;  %v18073_v18 = vpop.f32.mrf.mxu0  ;;  %18328 = vmatmul.mubr.msk.f32.gmra.mxu1 %vm368_vm1, %v26245_v13  ;;  %18372 = vmatmul.mubr.msk.f32.gmra.mxu0 %vm368_vm1, %v6789_v35  ;;  %v6797_v35 = vld [vmem:[#allocation2 + $0x171] sm:$0xff] }
 0x2e6   : > { %v21948_v7 = vadd.f32 %v18073_v18, %v18023_v21  ;;  %18330 = vmatprep.mubr.msk.f32.mxu1 %vm368_vm1, %v26246_v53  ;;  %18374 = vmatprep.mubr.msk.f32.mxu0 %vm368_vm1, %v6790_v30  ;;  %v6793_v21 = vld [vmem:[#allocation2 + $0x141] sm:$0xff] }
 0x2e7   : > { %v21953_v29 = vpop.f32.mrf.mxu1  ;;  %v21955_v17 = vpop.f32.mrf.mxu0 }
 0x2e9   : > { %v18032_v58 = vpop.f32.mrf.mxu1  ;;  %v18076_v6 = vpop.f32.mrf.mxu0  ;;  %18331 = vmatmul.mubr.msk.f32.gmra.mxu1 %vm368_vm1, %v21470_v36  ;;  %18375 = vmatmul.mubr.msk.f32.gmra.mxu0 %vm368_vm1, %v6791_v12  ;;  %v6794_v36 = vld [vmem:[#allocation2 + $0x151] sm:$0xff] }
 0x2ea   : > { %v21960_v46 = vadd.f32 %v18076_v6, %v18026_v32  ;;  %18333 = vmatprep.mubr.msk.f32.mxu1 %vm368_vm1, %v21481_v2  ;;  %18377 = vmatprep.mubr.msk.f32.mxu0 %vm368_vm1, %v6792_v52 }
 0x2eb   : > { %v21965_v14 = vpop.f32.mrf.mxu1  ;;  %v21967_v56 = vpop.f32.mrf.mxu0 }
 0x2ec   : > { %26247 = vst [vmem:[#allocation7_spill] sm:$0xff] %v21965_v14 }
 0x2ed   : > { %v18035_v47 = vpop.f32.mrf.mxu1  ;;  %v18079_v40 = vpop.f32.mrf.mxu0  ;;  %18334 = vmatmul.mubr.msk.f32.gmra.mxu1 %vm368_vm1, %v21493_v39  ;;  %18378 = vmatmul.mubr.msk.f32.gmra.mxu0 %vm368_vm1, %v6793_v21  ;;  %v6410_v39 = vld [vmem:[#allocation2 + $0x198] sm:$0xff] }
 0x2ee   : > { %v21972_v9 = vadd.f32 %v18079_v40, %v18029_v24  ;;  %18336 = vmatprep.mubr.msk.f32.mxu1 %vm368_vm1, %v21690_v27  ;;  %18380 = vmatprep.mubr.msk.f32.mxu0 %vm368_vm1, %v6794_v36 }
 0x2ef   : > { %v21977_v2 = vpop.f32.mrf.mxu1  ;;  %v21979_v19 = vpop.f32.mrf.mxu0 }
 0x2f0   : > { %26248 = vst [vmem:[#allocation12_spill] sm:$0xff] %v21977_v2 }
 0x2f1   : > { %v18038_v31 = vpop.f32.mrf.mxu1  ;;  %v18082_v32 = vpop.f32.mrf.mxu0  ;;  %18337 = vmatmul.mubr.msk.f32.gmra.mxu1 %vm368_vm1, %v21700_v16  ;;  %18381 = vmatmul.mubr.msk.f32.gmra.mxu0 %vm368_vm1, %v6795_v57  ;;  %v7165_v57 = vld [vmem:[#allocation2 + $0x6a] sm:$0xff] }
 0x2f2   : > { %v21984_v37 = vadd.f32 %v18082_v32, %v18032_v58  ;;  %18339 = vmatprep.mubr.msk.f32.mxu1 %vm368_vm1, %v6410_v39  ;;  %18383 = vmatprep.mubr.msk.f32.mxu0 %vm368_vm1, %v6796_v59  ;;  %v6800_v58 = vld [vmem:[#allocation2 + $0x199] sm:$0xff] }
 0x2f3   : > { %v21988_v27 = vpop.f32.mrf.mxu1  ;;  %v21990_v38 = vpop.f32.mrf.mxu0 }
 0x2f4   : > { %26249 = vst [vmem:[#allocation46_spill] sm:$0xff] %v21988_v27  ;;  %26250 = vst [vmem:[#allocation84_spill] sm:$0xff] %v21990_v38 }
 0x2f5   : > { %v18041_v24 = vpop.f32.mrf.mxu1  ;;  %v18085_v18 = vpop.f32.mrf.mxu0  ;;  %18340 = vmatmul.mubr.msk.f32.gmra.mxu1 %vm368_vm1, %v6411_v23  ;;  %18384 = vmatmul.mubr.msk.f32.gmra.mxu0 %vm368_vm1, %v6797_v35 }
 0x2f6   : > { %v21994_v16 = vadd.f32 %v18085_v18, %v18035_v47  ;;  %18386 = vmatprep.mubr.msk.f32.mxu0 %vm368_vm1, %v21812_v62  ;;  %18394 = vmatprep.mubr.msk.f32.mxu1 %vm368_vm1, %v21501_v60 }
 0x2f7   : > { %v22000_v13 = vpop.f32.mrf.mxu1  ;;  %v22002_v30 = vpop.f32.mrf.mxu0 }
 0x2f8   : > { %26251 = vst [vmem:[#allocation97_spill] sm:$0xff] %v22000_v13  ;;  %26252 = vst [vmem:[#allocation9_spill] sm:$0xff] %v22002_v30 }
 0x2f9   : > { %v18088_v53 = vpop.f32.mrf.mxu0  ;;  %v18096_v12 = vpop.f32.mrf.mxu1  ;;  %18387 = vmatmul.mubr.msk.f32.gmra.mxu0 %vm368_vm1, %v21818_v49  ;;  %18395 = vmatmul.mubr.msk.f32.vlgmr.msra.gmra.mxu1 %vm368_vm1, %v21507_v44  ;;  %v6801_v49 = vld [vmem:[#allocation2 + $0x1a1] sm:$0xff] }
 0x2fa   : > { %v22008_v6 = vadd.f32 %v18088_v53, %v18038_v31  ;;  %v5179_v62 = vadd.f32 %v18096_v12, %v21852_v63  ;;  %18389 = vmatprep.mubr.msk.f32.mxu0 %vm368_vm1, %v6800_v58  ;;  %18397 = vmatprep.mubr.msk.f32.mxu1 %vm368_vm1, %v21513_v1 }
 0x2fb   : > { %v22014_v60 = vpop.f32.mrf.mxu0  ;;  %v5019_v52 = vpop.f32.mrf.mxu1 }
 0x2fc   : > { %26253 = vst [vmem:[#allocation41_spill] sm:$0xff] %v22014_v60  ;;  %v22017_v21 = vadd.f32 %v5019_v52, %v21857_v25  ;;  %v7170_v52 = vld [vmem:[#allocation2 + $0xaa] sm:$0xff] }
 0x2fd   : > { %v18091_v47 = vpop.f32.mrf.mxu0  ;;  %v18099_v40 = vpop.f32.mrf.mxu1  ;;  %18390 = vmatmul.mubr.msk.f32.gmra.mxu0 %vm368_vm1, %v6801_v49  ;;  %18398 = vmatmul.mubr.msk.f32.gmra.mxu1 %vm368_vm1, %v21526_v4 }
 0x2fe   : > { %v22022_v44 = vadd.f32 %v18091_v47, %v18041_v24  ;;  %v5181_v63 = vadd.f32 %v18099_v40, %v21862_v42  ;;  %18400 = vmatprep.mubr.msk.f32.mxu1 %vm368_vm1, %v21534_v34  ;;  %v7168_v24 = vld [vmem:[#allocation2 + $0x92] sm:$0xff] }
 0x2ff   : > { %v22027_v1 = vpop.f32.mrf.mxu0  ;;  %v5029_v36 = vpop.f32.mrf.mxu1 }
 0x300   : > { %26254 = vst [vmem:[#allocation39_spill] sm:$0xff] %v22027_v1  ;;  %v22030_v25 = vadd.f32 %v5029_v36, %v21867_v41  ;;  %v7167_v41 = vld [vmem:[#allocation2 + $0x82] sm:$0xff]  ;;  %v7171_v36 = vld [vmem:[#allocation2 + $0xb2] sm:$0xff] }
 0x301   : > { %v18102_v31 = vpop.f32.mrf.mxu1  ;;  %v18146_v32 = vpop.f32.mrf.mxu0  ;;  %18401 = vmatmul.mubr.msk.f32.gmra.mxu1 %vm368_vm1, %v7165_v57 }
 0x302   : > { %v5183_v4 = vadd.f32 %v18102_v31, %v21872_v61  ;;  %v22034_v39 = vadd.f32 %v18146_v32, %v5179_v62  ;;  %18403 = vmatprep.mubr.msk.f32.mxu1 %vm368_vm1, %v21546_v55  ;;  %v7172_v31 = vld [vmem:[#allocation2 + $0xc2] sm:$0xff] }
 0x303   : > { %v5039_v42 = vpop.f32.mrf.mxu1  ;;  %v22038_v34 = vpop.f32.mrf.mxu0 }
 0x304   : > { %v22041_v59 = vadd.f32 %v5039_v42, %v21877_v26  ;;  %v7169_v26 = vld [vmem:[#allocation2 + $0x9a] sm:$0xff] }
 0x305   : > { %v18105_v23 = vpop.f32.mrf.mxu1  ;;  %v18149_v35 = vpop.f32.mrf.mxu0  ;;  %18404 = vmatmul.mubr.msk.f32.gmra.mxu1 %vm368_vm1, %v7167_v41 }
 0x306   : > { %v5185_v18 = vadd.f32 %v18105_v23, %v21882_v22  ;;  %v22045_v61 = vadd.f32 %v18149_v35, %v5181_v63  ;;  %18406 = vmatprep.mubr.msk.f32.mxu1 %vm368_vm1, %v7168_v24  ;;  %v15738_v22 = vld [vmem:[%s25802_s5 + $0x4] sm:$0xf]  ;;  %v7173_v23 = vld [vmem:[#allocation2 + $0xca] sm:$0xff] }
 0x307   : > { %v5049_v53 = vpop.f32.mrf.mxu1  ;;  %v22048_v55 = vpop.f32.mrf.mxu0  ;;  %18442 = vmatprep.subr.msk.mxu0 %vm642_vm0, %v15738_v22 }
 0x308   : > { %v22051_v12 = vadd.f32 %v5049_v53, %v21887_v51  ;;  %18443 = vmatpush3.msk.msra.mxu0 %vm642_vm0, %v15738_v22  ;;  %v7174_v53 = vld [vmem:[#allocation2 + $0xda] sm:$0xff] }
 0x309   : > { %v18108_v58 = vpop.f32.mrf.mxu1  ;;  %v18152_v62 = vpop.f32.mrf.mxu0  ;;  %18407 = vmatmul.mubr.msk.f32.gmra.mxu1 %vm368_vm1, %v7169_v26 }
 0x30a   : > { %v5187_v49 = vadd.f32 %v18108_v58, %v21892_v43  ;;  %v22055_v47 = vadd.f32 %v18152_v62, %v5183_v4  ;;  %18409 = vmatprep.mubr.msk.f32.mxu1 %vm368_vm1, %v7170_v52 }
 0x30b   : > { %v5059_v40 = vpop.f32.mrf.mxu1  ;;  %v22061_v63 = vpop.f32.mrf.mxu0 }
 0x30c   : > { %v22065_v51 = vadd.f32 %v5059_v40, %v21897_v0  ;;  %v7176_v40 = vld [vmem:[#allocation2 + $0xf2] sm:$0xff] }
 0x30d   : > { %v18111_v43 = vpop.f32.mrf.mxu1  ;;  %v18155_v57 = vpop.f32.mrf.mxu0  ;;  %18410 = vmatmul.mubr.msk.f32.gmra.mxu1 %vm368_vm1, %v7171_v36 }
 0x30e   : > { %v5189_v32 = vadd.f32 %v18111_v43, %v21902_v8  ;;  %v22070_v4 = vadd.f32 %v18155_v57, %v5185_v18  ;;  %18412 = vmatprep.mubr.msk.f32.mxu1 %vm368_vm1, %v7172_v31 }
 0x30f   : > { %v5069_v42 = vpop.f32.mrf.mxu1  ;;  %v22073_v41 = vpop.f32.mrf.mxu0 }
 0x310   : > { %v22076_v0 = vadd.f32 %v5069_v42, %v21907_v20  ;;  %v7175_v20 = vld [vmem:[#allocation2 + $0xe2] sm:$0xff] }
 0x311   : > { %v18114_v35 = vpop.f32.mrf.mxu1  ;;  %v18158_v24 = vpop.f32.mrf.mxu0  ;;  %18413 = vmatmul.mubr.msk.f32.gmra.mxu1 %vm368_vm1, %v7173_v23  ;;  %v7178_v23 = vld [vmem:[#allocation2 + $0x10a] sm:$0xff] }
 0x312   : > { %v5191_v26 = vadd.f32 %v18114_v35, %v21912_v45  ;;  %v22080_v58 = vadd.f32 %v18158_v24, %v5187_v49  ;;  %18415 = vmatprep.mubr.msk.f32.mxu1 %vm368_vm1, %v7174_v53  ;;  %v7179_v53 = vld [vmem:[#allocation2 + $0x112] sm:$0xff] }
 0x313   : > { %v5079_v8 = vpop.f32.mrf.mxu1  ;;  %v22083_v18 = vpop.f32.mrf.mxu0 }
 0x314   : > { %v22086_v62 = vadd.f32 %v5079_v8, %v21919_v48  ;;  %v7177_v48 = vld [vmem:[#allocation2 + $0xfa] sm:$0xff] }
 0x315   : > { %v18117_v52 = vpop.f32.mrf.mxu1  ;;  %v18161_v22 = vpop.f32.mrf.mxu0  ;;  %18416 = vmatmul.mubr.msk.f32.gmra.mxu1 %vm368_vm1, %v7175_v20  ;;  %v7180_v20 = vld [vmem:[#allocation2 + $0x122] sm:$0xff] }
 0x316   : > { %26255 = vst [vmem:[#allocation48_spill] sm:$0xff] %v22086_v62  ;;  %v5193_v36 = vadd.f32 %v18117_v52, %v21924_v28  ;;  %v22090_v43 = vadd.f32 %v18161_v22, %v5189_v32  ;;  %18418 = vmatprep.mubr.msk.f32.mxu1 %vm368_vm1, %v7176_v40  ;;  %v7181_v40 = vld [vmem:[#allocation2 + $0x12a] sm:$0xff] }
 0x317   : > { %v5089_v45 = vpop.f32.mrf.mxu1  ;;  %v22093_v49 = vpop.f32.mrf.mxu0 }
 0x318   : > { %26256 = vst [vmem:[#allocation86_spill] sm:$0xff] %v22093_v49  ;;  %v22096_v57 = vadd.f32 %v5089_v45, %v21931_v5 }
 0x319   : > { %v18120_v31 = vpop.f32.mrf.mxu1  ;;  %v18164_v42 = vpop.f32.mrf.mxu0  ;;  %18419 = vmatmul.mubr.msk.f32.gmra.mxu1 %vm368_vm1, %v7177_v48 }
 0x31a   : > { %26257 = vst [vmem:[#allocation11_spill] sm:$0xff] %v22096_v57  ;;  %v5195_v35 = vadd.f32 %v18120_v31, %v21936_v54  ;;  %v22100_v24 = vadd.f32 %v18164_v42, %v5191_v26  ;;  %18421 = vmatprep.mubr.msk.f32.mxu1 %vm368_vm1, %v7178_v23  ;;  %v7182_v31 = vld [vmem:[#allocation2 + $0x13a] sm:$0xff] }
 0x31b   : > { %v22103_v28 = vpop.f32.mrf.mxu1  ;;  %v22105_v32 = vpop.f32.mrf.mxu0 }
 0x31c   : > { %26258 = vst [vmem:[#allocation14_spill] sm:$0xff] %v22103_v28  ;;  %26259 = vst [vmem:[#allocation50_spill] sm:$0xff] %v22105_v32 }
 0x31d   : > { %v18123_v8 = vpop.f32.mrf.mxu1  ;;  %v18167_v5 = vpop.f32.mrf.mxu0  ;;  %18422 = vmatmul.mubr.msk.f32.gmra.mxu1 %vm368_vm1, %v7179_v53  ;;  %v7183_v53 = vld [vmem:[#allocation2 + $0x142] sm:$0xff] }
 0x31e   : > { %v5197_v52 = vadd.f32 %v18123_v8, %v21948_v7  ;;  %v22109_v22 = vadd.f32 %v18167_v5, %v5193_v36  ;;  %18424 = vmatprep.mubr.msk.f32.mxu1 %vm368_vm1, %v7180_v20  ;;  %v7184_v20 = vld [vmem:[#allocation2 + $0x152] sm:$0xff] }
 0x31f   : > { %v22112_v54 = vpop.f32.mrf.mxu1  ;;  %v22114_v26 = vpop.f32.mrf.mxu0 }
 0x320   : > { %26260 = vst [vmem:[#allocation87_spill] sm:$0xff] %v22112_v54  ;;  %26261 = vst [vmem:[#allocation102_spill] sm:$0xff] %v22114_v26 }
 0x321   : > { %v18126_v45 = vpop.f32.mrf.mxu1  ;;  %v18170_v48 = vpop.f32.mrf.mxu0  ;;  %18425 = vmatmul.mubr.msk.f32.gmra.mxu1 %vm368_vm1, %v7181_v40 }
 0x322   : > { %v5199_v42 = vadd.f32 %v18126_v45, %v21960_v46  ;;  %v22118_v23 = vadd.f32 %v18170_v48, %v5195_v35  ;;  %18427 = vmatprep.mubr.msk.f32.mxu1 %vm368_vm1, %v7182_v31  ;;  %v7185_v45 = vld [vmem:[#allocation2 + $0x15a] sm:$0xff] }
 0x323   : > { %v22121_v7 = vpop.f32.mrf.mxu1  ;;  %v22123_v36 = vpop.f32.mrf.mxu0 }
 0x324   : > { %26262 = vst [vmem:[#allocation45_spill] sm:$0xff] %v22121_v7  ;;  %26263 = vst [vmem:[#allocation43_spill] sm:$0xff] %v22123_v36  ;;  %v7186_v7 = vld [vmem:[#allocation2 + $0x16a] sm:$0xff] }
 0x325   : > { %v18129_v8 = vpop.f32.mrf.mxu1  ;;  %v18173_v5 = vpop.f32.mrf.mxu0  ;;  %18428 = vmatmul.mubr.msk.f32.gmra.mxu1 %vm368_vm1, %v7183_v53 }
 0x326   : > { %v5201_v54 = vadd.f32 %v18129_v8, %v21972_v9  ;;  %v22127_v40 = vadd.f32 %v18173_v5, %v5197_v52  ;;  %18430 = vmatprep.mubr.msk.f32.mxu1 %vm368_vm1, %v7184_v20  ;;  %v7187_v8 = vld [vmem:[#allocation2 + $0x172] sm:$0xff] }
 0x327   : > { %v22130_v46 = vpop.f32.mrf.mxu1  ;;  %v22132_v35 = vpop.f32.mrf.mxu0 }
 0x328   : > { %26264 = vst [vmem:[#allocation52_spill] sm:$0xff] %v22130_v46  ;;  %26265 = vst [vmem:[#allocation89_spill] sm:$0xff] %v22132_v35 }
 0x329   : > { %v18132_v48 = vpop.f32.mrf.mxu1  ;;  %v18176_v31 = vpop.f32.mrf.mxu0  ;;  %18431 = vmatmul.mubr.msk.f32.gmra.mxu1 %vm368_vm1, %v7185_v45 }
 0x32a   : > { %v5203_v36 = vadd.f32 %v18132_v48, %v21984_v37  ;;  %v22136_v53 = vadd.f32 %v18176_v31, %v5199_v42  ;;  %18433 = vmatprep.mubr.msk.f32.mxu1 %vm368_vm1, %v7186_v7  ;;  %v7190_v48 = vld [vmem:[#allocation2 + $0x19a] sm:$0xff] }
 0x32b   : > { %v22139_v9 = vpop.f32.mrf.mxu1  ;;  %v22141_v52 = vpop.f32.mrf.mxu0 }
 0x32c   : > { %26266 = vst [vmem:[#allocation105_spill] sm:$0xff] %v22139_v9  ;;  %26267 = vst [vmem:[#allocation13_spill] sm:$0xff] %v22141_v52 }
 0x32d   : > { %v18135_v5 = vpop.f32.mrf.mxu1  ;;  %v18179_v20 = vpop.f32.mrf.mxu0  ;;  %18434 = vmatmul.mubr.msk.f32.gmra.mxu1 %vm368_vm1, %v7187_v8 }
 0x32e   : > { %v5205_v46 = vadd.f32 %v18135_v5, %v21994_v16  ;;  %v22145_v35 = vadd.f32 %v18179_v20, %v5201_v54  ;;  %18436 = vmatprep.mubr.msk.f32.mxu1 %vm368_vm1, %v21832_v11  ;;  %v7191_v11 = vld [vmem:[#allocation2 + $0x1a2] sm:$0xff] }
 0x32f   : > { %v22149_v37 = vpop.f32.mrf.mxu1  ;;  %v22151_v42 = vpop.f32.mrf.mxu0 }
 0x330   : > { %26268 = vst [vmem:[#allocation16_spill] sm:$0xff] %v22149_v37  ;;  %26269 = vst [vmem:[#allocation54_spill] sm:$0xff] %v22151_v42 }
 0x331   : > { %v18138_v7 = vpop.f32.mrf.mxu1  ;;  %v18182_v45 = vpop.f32.mrf.mxu0  ;;  %18437 = vmatmul.mubr.msk.f32.gmra.mxu1 %vm368_vm1, %v21840_v15 }
 0x332   : > { %v5207_v31 = vadd.f32 %v18138_v7, %v22008_v6  ;;  %v22156_v8 = vadd.f32 %v18182_v45, %v5203_v36  ;;  %18439 = vmatprep.mubr.msk.f32.mxu1 %vm368_vm1, %v7190_v48 }
 0x333   : > { %v22159_v16 = vpop.f32.mrf.mxu1  ;;  %v22161_v54 = vpop.f32.mrf.mxu0 }
 0x334   : > { %26270 = vst [vmem:[#allocation90_spill] sm:$0xff] %v22159_v16  ;;  %26271 = vst [vmem:[#allocation79_spill] sm:$0xff] %v22161_v54 }
 0x335   : > { %v18141_v5 = vpop.f32.mrf.mxu1  ;;  %v18185_v20 = vpop.f32.mrf.mxu0  ;;  %18440 = vmatmul.mubr.msk.f32.gmra.mxu1 %vm368_vm1, %v7191_v11 }
 0x336   : > { %v5209_v37 = vadd.f32 %v18141_v5, %v22022_v44  ;;  %v22165_v42 = vadd.f32 %v18185_v20, %v5205_v46 }
 0x337   : > { %v22167_v15 = vpop.f32.mrf.mxu1  ;;  %v22169_v6 = vpop.f32.mrf.mxu0 }
 0x338   : > { %26272 = vst [vmem:[#allocation49_spill] sm:$0xff] %v22167_v15  ;;  %26273 = vst [vmem:[#allocation47_spill] sm:$0xff] %v22169_v6 }
 0x339   : > { %v18188_v36 = vpop.f32.mrf.mxu0  ;;  %v18196_v7 = vpop.f32.mrf.mxu1 }
 0x33a   : > { %v22171_v45 = vadd.f32 %v18188_v36, %v5207_v31  ;;  %v22174_v48 = vadd.f32 %v18196_v7, %v22034_v39 }
 0x33b   : > { %v22176_v16 = vpop.f32.mrf.mxu0  ;;  %v22178_v54 = vpop.f32.mrf.mxu1 }
 0x33c   : > { %26274 = vst [vmem:[#allocation56_spill] sm:$0xff] %v22176_v16 }
 0x33d   : > { %v18191_v11 = vpop.f32.mrf.mxu0  ;;  %v18199_v9 = vpop.f32.mrf.mxu1 }
 0x33e   : > { %v22180_v44 = vadd.f32 %v18191_v11, %v5209_v37  ;;  %v22183_v46 = vadd.f32 %v18199_v9, %v22045_v61 }
 0x33f   : > { %v22185_v5 = vpop.f32.mrf.mxu0  ;;  %v22187_v20 = vpop.f32.mrf.mxu1 }
 0x340   : > { %26275 = vst [vmem:[#allocation92_spill] sm:$0xff] %v22185_v5 }
 0x341   : > { %v18202_v31 = vpop.f32.mrf.mxu1  ;;  %v22189_v36 = vpop.f32.mrf.mxu0 }
 0x342   : > { %v22192_v39 = vadd.f32 %v18202_v31, %v22055_v47 }
 0x343   : > { %v22194_v7 = vpop.f32.mrf.mxu1  ;;  %v22196_v16 = vpop.f32.mrf.mxu0 }
 0x345   : > { %v18205_v15 = vpop.f32.mrf.mxu1  ;;  %v22198_v37 = vpop.f32.mrf.mxu0 }
 0x346   : > { %v22201_v61 = vadd.f32 %v18205_v15, %v22070_v4  ;;  %v7761_v15 = vld [vmem:[%s25802_s5] sm:$0xf] }
 0x347   : > { %v22203_v9 = vpop.f32.mrf.mxu1  ;;  %v22205_v11 = vpop.f32.mrf.mxu0  ;;  %18492 = vmatprep.subr.msk.mxu1 %vm642_vm0, %v7761_v15 }
 0x348   : > { %18493 = vmatpush3.msk.msra.mxu1 %vm642_vm0, %v7761_v15 }
 0x349   : > { %v18208_v5 = vpop.f32.mrf.mxu1  ;;  %v22207_v6 = vpop.f32.mrf.mxu0 }
 0x34a   : > { %v22210_v47 = vadd.f32 %v18208_v5, %v22080_v58  ;;  %v22233_v58 = vld [vmem:[%s25802_s5 + $0x8] sm:$0xf] }
 0x34b   : > { %v22212_v31 = vpop.f32.mrf.mxu1  ;;  %v22214_v52 = vpop.f32.mrf.mxu0  ;;  %26278 = vst [vmem:[#allocation58_spill] sm:$0xff] %v22233_v58  ;;  %18542 = vmatprep.subr.msk.mxu0 %vm642_vm0, %v22233_v58 }
 0x34d   : > { %v18211_v28 = vpop.f32.mrf.mxu1  ;;  %v22216_v26 = vpop.f32.mrf.mxu0 }
 0x34e   : > { %v22219_v4 = vadd.f32 %v18211_v28, %v22090_v43 }
 0x34f   : > { %v22224_v57 = vpop.f32.mrf.mxu1  ;;  %v22226_v1 = vpop.f32.mrf.mxu0 }
 0x350   : > { %26276 = vst [vmem:[#allocation15_spill] sm:$0xff] %v22219_v4  ;;  %26277 = vst [vmem:[#allocation18_spill] sm:$0xff] %v22224_v57 }
 0x351   : > { %v18214_v5 = vpop.f32.mrf.mxu1  ;;  %v22235_v43 = vpop.f32.mrf.mxu0 }
 0x352   : > { %v22240_v28 = vadd.f32 %v18214_v5, %v22100_v24 }
 0x353   : > { %v22242_v13 = vpop.f32.mrf.mxu1  ;;  %v22244_v60 = vpop.f32.mrf.mxu0 }
 0x354   : > { %26279 = vst [vmem:[#allocation93_spill] sm:$0xff] %v22240_v28  ;;  %26280 = vst [vmem:[#allocation53_spill] sm:$0xff] %v22242_v13 }
 0x355   : > { %26281 = vst [vmem:[#allocation51_spill] sm:$0xff] %v22244_v60  ;;  %v18217_v27 = vpop.f32.mrf.mxu1  ;;  %v22246_v15 = vpop.f32.mrf.mxu0 }
 0x356   : > { %26282 = vst [vmem:[#allocation60_spill] sm:$0xff] %v22246_v15  ;;  %v22249_v32 = vadd.f32 %v18217_v27, %v22109_v22 }
 0x357   : > { %v22251_v62 = vpop.f32.mrf.mxu1  ;;  %v22253_v30 = vpop.f32.mrf.mxu0 }
 0x358   : > { %26283 = vst [vmem:[#allocation95_spill] sm:$0xff] %v22249_v32  ;;  %26284 = vst [vmem:[#allocation17_spill] sm:$0xff] %v22251_v62 }
 0x359   : > { %26285 = vst [vmem:[#allocation20_spill] sm:$0xff] %v22253_v30  ;;  %v18220_v2 = vpop.f32.mrf.mxu1  ;;  %v22255_v4 = vpop.f32.mrf.mxu0 }
 0x35a   : > { %26286 = vst [vmem:[#allocation62_spill] sm:$0xff] %v22255_v4  ;;  %v22258_v24 = vadd.f32 %v18220_v2, %v22118_v23 }
 0x35b   : > { %v22260_v5 = vpop.f32.mrf.mxu1  ;;  %v22262_v58 = vpop.f32.mrf.mxu0 }
 0x35c   : > { %26287 = vst [vmem:[#allocation96_spill] sm:$0xff] %v22258_v24  ;;  %26288 = vst [vmem:[#allocation57_spill] sm:$0xff] %v22260_v5 }
 0x35d   : > { %26289 = vst [vmem:[#allocation55_spill] sm:$0xff] %v22262_v58  ;;  %v18223_v28 = vpop.f32.mrf.mxu1  ;;  %v22264_v13 = vpop.f32.mrf.mxu0 }
 0x35e   : > { %26290 = vst [vmem:[#allocation64_spill] sm:$0xff] %v22264_v13  ;;  %v22267_v27 = vadd.f32 %v18223_v28, %v22127_v40 }
 0x35f   : > { %v22269_v22 = vpop.f32.mrf.mxu1  ;;  %v22271_v32 = vpop.f32.mrf.mxu0 }
 0x360   : > { %26291 = vst [vmem:[#allocation98_spill] sm:$0xff] %v22267_v27  ;;  %26292 = vst [vmem:[#allocation19_spill] sm:$0xff] %v22269_v22 }
 0x361   : > { %26293 = vst [vmem:[#allocation23_spill] sm:$0xff] %v22271_v32  ;;  %v18226_v62 = vpop.f32.mrf.mxu1  ;;  %v22273_v30 = vpop.f32.mrf.mxu0 }
 0x362   : > { %26294 = vst [vmem:[#allocation66_spill] sm:$0xff] %v22273_v30  ;;  %v22276_v2 = vadd.f32 %v18226_v62, %v22136_v53 }
 0x363   : > { %v22278_v23 = vpop.f32.mrf.mxu1  ;;  %v22280_v24 = vpop.f32.mrf.mxu0 }
 0x364   : > { %26295 = vst [vmem:[#allocation99_spill] sm:$0xff] %v22276_v2  ;;  %26296 = vst [vmem:[#allocation61_spill] sm:$0xff] %v22278_v23 }
 0x365   : > { %26297 = vst [vmem:[#allocation59_spill] sm:$0xff] %v22280_v24  ;;  %v18229_v5 = vpop.f32.mrf.mxu1  ;;  %v22282_v58 = vpop.f32.mrf.mxu0 }
 0x366   : > { %26298 = vst [vmem:[#allocation68_spill] sm:$0xff] %v22282_v58  ;;  %v22285_v40 = vadd.f32 %v18229_v5, %v22145_v35 }
 0x367   : > { %v22287_v28 = vpop.f32.mrf.mxu1  ;;  %v22289_v27 = vpop.f32.mrf.mxu0 }
 0x368   : > { %26299 = vst [vmem:[#allocation100_spill] sm:$0xff] %v22285_v40  ;;  %26300 = vst [vmem:[#allocation21_spill] sm:$0xff] %v22287_v28 }
 0x369   : > { %26301 = vst [vmem:[#allocation29_spill] sm:$0xff] %v22289_v27  ;;  %v18232_v22 = vpop.f32.mrf.mxu1  ;;  %v22291_v32 = vpop.f32.mrf.mxu0 }
 0x36a   : > { %26302 = vst [vmem:[#allocation70_spill] sm:$0xff] %v22291_v32  ;;  %v22294_v62 = vadd.f32 %v18232_v22, %v22156_v8 }
 0x36b   : > { %v22296_v53 = vpop.f32.mrf.mxu1  ;;  %v22298_v2 = vpop.f32.mrf.mxu0 }
 0x36c   : > { %26303 = vst [vmem:[#allocation101_spill] sm:$0xff] %v22294_v62  ;;  %26304 = vst [vmem:[#allocation65_spill] sm:$0xff] %v22296_v53 }
 0x36d   : > { %26305 = vst [vmem:[#allocation63_spill] sm:$0xff] %v22298_v2  ;;  %v18235_v23 = vpop.f32.mrf.mxu1  ;;  %v22300_v24 = vpop.f32.mrf.mxu0 }
 0x36e   : > { %26306 = vst [vmem:[#allocation72_spill] sm:$0xff] %v22300_v24  ;;  %v22303_v35 = vadd.f32 %v18235_v23, %v22165_v42 }
 0x36f   : > { %v22305_v5 = vpop.f32.mrf.mxu1  ;;  %v22307_v40 = vpop.f32.mrf.mxu0 }
 0x370   : > { %26307 = vst [vmem:[#allocation103_spill] sm:$0xff] %v22303_v35  ;;  %26308 = vst [vmem:[#allocation25_spill] sm:$0xff] %v22305_v5 }
 0x371   : > { %26309 = vst [vmem:[#allocation30_spill] sm:$0xff] %v22307_v40  ;;  %v18238_v28 = vpop.f32.mrf.mxu1  ;;  %v22309_v27 = vpop.f32.mrf.mxu0 }
 0x372   : > { %26310 = vst [vmem:[#allocation74_spill] sm:$0xff] %v22309_v27  ;;  %v22312_v8 = vadd.f32 %v18238_v28, %v22171_v45 }
 0x373   : > { %v22314_v22 = vpop.f32.mrf.mxu1  ;;  %v22316_v62 = vpop.f32.mrf.mxu0 }
 0x374   : > { %26311 = vst [vmem:[#allocation104_spill] sm:$0xff] %v22312_v8  ;;  %26312 = vst [vmem:[#allocation69_spill] sm:$0xff] %v22314_v22 }
 0x375   : > { %26313 = vst [vmem:[#allocation67_spill] sm:$0xff] %v22316_v62  ;;  %v18241_v53 = vpop.f32.mrf.mxu1  ;;  %v22318_v2 = vpop.f32.mrf.mxu0 }
 0x376   : > { %26314 = vst [vmem:[#allocation75_spill] sm:$0xff] %v22318_v2  ;;  %v22321_v42 = vadd.f32 %v18241_v53, %v22180_v44 }
 0x377   : > { %v22323_v23 = vpop.f32.mrf.mxu1  ;;  %v22325_v35 = vpop.f32.mrf.mxu0 }
 0x378   : > { %26315 = vst [vmem:[#allocation106_spill] sm:$0xff] %v22321_v42  ;;  %26316 = vst [vmem:[#allocation32_spill] sm:$0xff] %v22323_v23 }
 0x379   : > { %26317 = vst [vmem:[#allocation76_spill] sm:$0xff] %v22325_v35  ;;  %v22327_v5 = vpop.f32.mrf.mxu0  ;;  %v18296_v27 = vpop.f32.mrf.mxu1 }
 0x37a   : > { %26318 = vst [vmem:[#allocation107_spill] sm:$0xff] %v22327_v5 }
 0x37b   : > { %v22329_v40 = vpop.f32.mrf.mxu0  ;;  %v6579_v45 = vpop.f32.mrf.mxu1 }
 0x37c   : > { %26319 = vst [vmem:[#allocation73_spill] sm:$0xff] %v22329_v40 }
 0x37d   : > { %v22331_v28 = vpop.f32.mrf.mxu0  ;;  %v22333_v8 = vpop.f32.mrf.mxu1 }
 0x37e   : > { %26320 = vst [vmem:[#allocation71_spill] sm:$0xff] %v22331_v28 }
 0x37f   : > { %v22335_v22 = vpop.f32.mrf.mxu0  ;;  %v22337_v2 = vpop.f32.mrf.mxu1 }
 0x380   : > { %26321 = vst [vmem:[#allocation77_spill] sm:$0xff] %v22335_v22  ;;  %v22354_v22 = vld [vmem:[%s25802_s5 + $0xc] sm:$0xf] }
 0x381   : > { %v22339_v44 = vpop.f32.mrf.mxu1  ;;  %v18346_v53 = vpop.f32.mrf.mxu0  ;;  %26322 = vst [vmem:[#allocation108_spill] sm:$0xff] %v22354_v22  ;;  %18592 = vmatprep.subr.msk.mxu1 %vm642_vm0, %v22354_v22 }
 0x383   : > { %v22341_v42 = vpop.f32.mrf.mxu1  ;;  %v6969_v23 = vpop.f32.mrf.mxu0 }
 0x385   : > { %v22343_v35 = vpop.f32.mrf.mxu1  ;;  %v22345_v5 = vpop.f32.mrf.mxu0 }
 0x387   : > { %v22347_v40 = vpop.f32.mrf.mxu1  ;;  %v22349_v62 = vpop.f32.mrf.mxu0 }
 0x389   : > { %v22356_v28 = vpop.f32.mrf.mxu1  ;;  %v22358_v24 = vpop.f32.mrf.mxu0 }
 0x38a   : > { %26323 = vst [vmem:[#allocation78_spill] sm:$0xff] %v22356_v28 }
 0x38b   : > { %v22362_v32 = vpop.f32.mrf.mxu1  ;;  %v22364_v58 = vpop.f32.mrf.mxu0 }
 0x38c   : > { %26324 = vst [vmem:[#allocation36_spill] sm:$0xff] %v22362_v32 }
 0x38d   : > { %v22366_v30 = vpop.f32.mrf.mxu1  ;;  %v22368_v13 = vpop.f32.mrf.mxu0 }
 0x38e   : > { %26325 = vst [vmem:[#allocation83_spill] sm:$0xff] %v22366_v30 }
 0x38f   : > { %v22370_v4 = vpop.f32.mrf.mxu1  ;;  %v22374_v57 = vpop.f32.mrf.mxu0 }
 0x390   : > { %26326 = vst [vmem:[#allocation35_spill] sm:$0xff] %v22370_v4  ;;  %26328 = vst [vmem:[#allocation38_spill] sm:$0xff] %v22374_v57 }
 0x391   : > { %v22372_v15 = vpop.f32.mrf.mxu1  ;;  %v22380_v28 = vpop.f32.mrf.mxu0 }
 0x392   : > { %26327 = vst [vmem:[#allocation8_spill] sm:$0xff] %v22372_v15  ;;  %26331 = vst [vmem:[#allocation22_spill] sm:$0xff] %v22380_v28 }
 0x393   : > { %v22376_v38 = vpop.f32.mrf.mxu1  ;;  %v22386_v60 = vpop.f32.mrf.mxu0 }
 0x394   : > { %26329 = vst [vmem:[#allocation80_spill] sm:$0xff] %v22376_v38  ;;  %26334 = vst [vmem:[#allocation33_spill] sm:$0xff] %v22386_v60 }
 0x395   : > { %v22378_v14 = vpop.f32.mrf.mxu1  ;;  %v22392_v4 = vpop.f32.mrf.mxu0 }
 0x396   : > { %26330 = vst [vmem:[#allocation85_spill] sm:$0xff] %v22378_v14  ;;  %26337 = vst [vmem:[#allocation88_spill] sm:$0xff] %v22392_v4 }
 0x397   : > { %v22382_v22 = vpop.f32.mrf.mxu1  ;;  %v22398_v38 = vpop.f32.mrf.mxu0 }
 0x398   : > { %26332 = vst [vmem:[#allocation26_spill] sm:$0xff] %v22382_v22  ;;  %26340 = vst [vmem:[#allocation6_spill] sm:$0xff] %v22398_v38 }
 0x399   : > { %v22384_v32 = vpop.f32.mrf.mxu1  ;;  %v22404_v22 = vpop.f32.mrf.mxu0 }
 0x39a   : > { %26333 = vst [vmem:[#allocation34_spill] sm:$0xff] %v22384_v32 }
 0x39b   : > { %v22388_v30 = vpop.f32.mrf.mxu1 }
 0x39c   : > { %26335 = vst [vmem:[#allocation40_spill] sm:$0xff] %v22388_v30  ;;  %v22410_v30 = vpop.f32.mrf.mxu0 }
 0x39d   : > { %v22390_v49 = vpop.f32.mrf.mxu1  ;;  %26345 = vst [vmem:[#allocation31_spill] sm:$0xff] %v22410_v30 }
 0x39e   : > { %26336 = vst [vmem:[#allocation81_spill] sm:$0xff] %v22390_v49 }
 0x39f   : > { %v22394_v15 = vpop.f32.mrf.mxu1 }
 0x3a0   : > { %26338 = vst [vmem:[#allocation24_spill] sm:$0xff] %v22394_v15  ;;  %v22416_v15 = vpop.f32.mrf.mxu0 }
 0x3a1   : > { %v22396_v57 = vpop.f32.mrf.mxu1  ;;  %26348 = vst [vmem:[#allocation44_spill] sm:$0xff] %v22416_v15 }
 0x3a2   : > { %26339 = vst [vmem:[#allocation28_spill] sm:$0xff] %v22396_v57 }
 0x3a3   : > { %v22400_v14 = vpop.f32.mrf.mxu1 }
 0x3a4   : > { %26341 = vst [vmem:[#allocation10_spill] sm:$0xff] %v22400_v14  ;;  %v22424_v14 = vpop.f32.mrf.mxu0 }
 0x3a5   : > { %v22402_v28 = vpop.f32.mrf.mxu1 }
 0x3a6   : > { %26342 = vst [vmem:[#allocation42_spill] sm:$0xff] %v22402_v28  ;;  %v5568_v28 = vadd.f32 %v22038_v34, %v22017_v21  ;;  %v22436_v15 = vpop.f32.mrf.mxu0 }
 0x3a7   : > { %v22406_v32 = vpop.f32.mrf.mxu1 }
 0x3a8   : > { %26343 = vst [vmem:[#allocation82_spill] sm:$0xff] %v22406_v32 }
 0x3a9   : > { %v22408_v60 = vpop.f32.mrf.mxu1 }
 0x3aa   : > { %26344 = vst [vmem:[#allocation91_spill] sm:$0xff] %v22408_v60  ;;  %v5958_v60 = vadd.f32 %v22178_v54, %v5568_v28  ;;  %v6351_v54 = vadd.f32 %v22198_v37, %v22183_v46 }
 0x3ab   : > { %v22412_v49 = vpop.f32.mrf.mxu1 }
 0x3ac   : > { %26346 = vst [vmem:[#allocation4_spill] sm:$0xff] %v22412_v49  ;;  %v6349_v49 = vadd.f32 %v22189_v36, %v22174_v48  ;;  %v5572_v48 = vadd.f32 %v22061_v63, %v22041_v59 }
 0x3ad   : > { %v22414_v4 = vpop.f32.mrf.mxu1 }
 0x3ae   : > { %26347 = vst [vmem:[#allocation37_spill] sm:$0xff] %v22414_v4  ;;  %v5570_v4 = vadd.f32 %v22048_v55, %v22030_v25  ;;  %v6741_v55 = vadd.f32 %v22333_v8, %v6351_v54 }
 0x3af   : > { %v22418_v57 = vpop.f32.mrf.mxu1 }
 0x3b0   : > { %26349 = vst [vmem:[#allocation94_spill] sm:$0xff] %v22418_v57  ;;  %v6348_v57 = vadd.f32 %v22196_v16, %v5958_v60  ;;  %v5960_v34 = vadd.f32 %v22187_v20, %v5570_v4  ;;  %v22448_v60 = vld [vmem:[%s25801_s4] ss:$0 sm:$0xff]  ;;  %v5962_v20 = vadd.f32 %v22194_v7, %v5572_v48  ;;  %v7131_v46 = vadd.f32 %v22345_v5, %v6741_v55 }
 0x3b1   : > { %v22420_v38 = vpop.f32.mrf.mxu1 }
 0x3b2   : > { %26350 = vst [vmem:[#allocation27_spill] sm:$0xff] %v22420_v38  ;;  %v6739_v38 = vadd.f32 %v18296_v27, %v6349_v49  ;;  %v6738_v28 = vadd.f32 %v6579_v45, %v6348_v57  ;;  %v6350_v25 = vadd.f32 %v22205_v11, %v5960_v34  ;;  %v22455_v57 = vpop.f32.mrf.mxu0  ;;  %v5574_v11 = vadd.f32 %v22073_v41, %v22051_v12 }
 0x3b3   : > { %v22426_v32 = vpop.f32.mrf.mxu1  ;;  %v6355_v12 = vadd.f32 %v22216_v26, %v22201_v61  ;;  %v5576_v26 = vadd.f32 %v22083_v18, %v22065_v51 }
 0x3b4   : > { %26351 = vst [vmem:[#allocation5_spill] sm:$0xff] %v22426_v32  ;;  %v7129_v32 = vadd.f32 %v18346_v53, %v6739_v38  ;;  %v7128_v49 = vadd.f32 %v6969_v23, %v6738_v28  ;;  %v6353_v38 = vadd.f32 %v22207_v6, %v22192_v39  ;;  %v6740_v63 = vadd.f32 %v22337_v2, %v6350_v25 }
 0x3b5   : > { %v22431_v30 = vpop.f32.mrf.mxu1  ;;  %v22468_v2 = vadd.f32 %v21943_v10, %v21917_v50  ;;  %v5964_v5 = vadd.f32 %v22203_v9, %v5574_v11  ;;  %v22482_v9 = vadd.f32 %v21955_v17, %v21929_v33  ;;  %v22494_v33 = vadd.f32 %v21967_v56, %v21941_v3  ;;  %v26352_v56 = vld [vmem:[#allocation86_spill] sm:$0xff] }
 0x3b6   : > { %v6743_v7 = vadd.f32 %v22339_v44, %v6353_v38  ;;  %v7130_v6 = vadd.f32 %v22349_v62, %v6740_v63  ;;  %v5966_v17 = vadd.f32 %v22212_v31, %v5576_v26  ;;  %v22507_v3 = vadd.f32 %v21979_v19, %v21953_v29  ;;  %v26353_v31 = vld [vmem:[#allocation51_spill] sm:$0xff]  ;;  %v26358_v19 = vld [vmem:[#allocation18_spill] sm:$0xff] }
 0x3b7   : > { %v22438_v21 = vpop.f32.mrf.mxu1  ;;  %v6354_v61 = vadd.f32 %v22226_v1, %v5964_v5  ;;  %v6357_v1 = vadd.f32 %v22235_v43, %v22210_v47  ;;  %v5578_v47 = vadd.f32 %v26352_v56, %v22076_v0  ;;  %v26356_v63 = vld [vmem:[#allocation7_spill] sm:$0xff]  ;;  %v26366_v26 = vld [vmem:[#allocation50_spill] sm:$0xff] }
 0x3b8   : > { %v7133_v62 = vadd.f32 %v22358_v24, %v6743_v7  ;;  %v6356_v43 = vadd.f32 %v26353_v31, %v5966_v17  ;;  %v26359_v0 = vld [vmem:[#allocation15_spill] sm:$0xff]  ;;  %v26371_v31 = vld [vmem:[#allocation41_spill] sm:$0xff] }
 0x3b9   : > { %v18396_v36 = vpop.f32.mrf.mxu1  ;;  %v6744_v51 = vadd.f32 %v22347_v40, %v6354_v61  ;;  %v26354_v40 = vld [vmem:[#allocation78_spill] sm:$0xff]  ;;  %v22547_v56 = vld [vmem:[%s25802_s5 + $0x10] sm:$0xf] }
 0x3ba   : > { %v7519_v16 = vadd.f32 %v18396_v36, %v7129_v32  ;;  %v6352_v32 = vadd.f32 %v22214_v52, %v5962_v20  ;;  %v22474_v52 = vpop.f32.mrf.mxu0  ;;  %v6747_v55 = vadd.f32 %v26354_v40, %v6357_v1  ;;  %v26369_v1 = vld [vmem:[#allocation33_spill] sm:$0xff] }
 0x3bb   : > { %v7359_v59 = vpop.f32.mrf.mxu1  ;;  %v26372_v40 = vld [vmem:[#allocation53_spill] sm:$0xff] }
 0x3bc   : > { %v7558_v37 = vadd.f32 %v22448_v60, %v7519_v16  ;;  %v7518_v4 = vadd.f32 %v7359_v59, %v7128_v49  ;;  %v6742_v41 = vadd.f32 %v22341_v42, %v6352_v32  ;;  %v6745_v42 = vadd.f32 %v22343_v35, %v6355_v12  ;;  %v22500_v18 = vpop.f32.mrf.mxu0  ;;  %v26355_v16 = vld [vmem:[#allocation38_spill] sm:$0xff]  ;;  %v26361_v32 = vld [vmem:[#allocation36_spill] sm:$0xff] }
 0x3bd   : > { %v18399_v27 = vpop.f32.mrf.mxu1  ;;  %v6746_v7 = vadd.f32 %v26361_v32, %v6356_v43  ;;  %v26377_v32 = vld [vmem:[#allocation58_spill] sm:$0xff] }
 0x3be   : > { %v7590_v39 = vmax.f32 %v7558_v37, 0.0  ;;  %v7557_v8 = vadd.f32 %v22448_v60, %v7518_v4  ;;  %v7521_v23 = vadd.f32 %v18399_v27, %v7131_v46  ;;  %v7132_v53 = vadd.f32 %v22364_v58, %v6742_v41  ;;  %v26357_v46 = vld [vmem:[#allocation84_spill] sm:$0xff]  ;;  %v22524_v27 = vpop.f32.mrf.mxu0 }
 0x3bf   : > { %v7369_v45 = vpop.f32.mrf.mxu1  ;;  %v7135_v35 = vadd.f32 %v22368_v13, %v6745_v42  ;;  %v7134_v13 = vadd.f32 %v26355_v16, %v6744_v51  ;;  %v22518_v29 = vadd.f32 %v26357_v46, %v26356_v63  ;;  %v5968_v37 = vadd.f32 %v26358_v19, %v5578_v47  ;;  %v26360_v4 = vld [vmem:[#allocation60_spill] sm:$0xff]  ;;  %v26370_v47 = vld [vmem:[#allocation46_spill] sm:$0xff] }
 0x3c0   : > { %7622 = vst.msk [vmem:[#allocation2 + $0x21] sm:$0xff] %vm368_vm1, %v7590_v39  ;;  %7654 = vst.msk [vmem:[#allocation2 + $0x9] sm:$0xff] %vm368_vm1, %v7590_v39  ;;  %v7589_v44 = vmax.f32 %v7557_v8, 0.0  ;;  %v7560_v50 = vadd.f32 %v22448_v60, %v7521_v23  ;;  %v7520_v10 = vadd.f32 %v7369_v45, %v7130_v6  ;;  %v6359_v11 = vadd.f32 %v26360_v4, %v26359_v0  ;;  %v26362_v8 = vld [vmem:[#allocation22_spill] sm:$0xff]  ;;  %v26367_v42 = vld [vmem:[#allocation20_spill] sm:$0xff] }
 0x3c1   : > { %v18402_v24 = vpop.f32.mrf.mxu1  ;;  %v7137_v23 = vadd.f32 %v26362_v8, %v6747_v55  ;;  %v7136_v51 = vadd.f32 %v26369_v1, %v6746_v7  ;;  %v22551_v43 = vadd.f32 %v26371_v31, %v26370_v47  ;;  %v26374_v16 = vld [vmem:[#allocation62_spill] sm:$0xff]  ;;  %v26376_v19 = vld [vmem:[#allocation88_spill] sm:$0xff]  ;;  %v26386_v1 = vld [vmem:[#allocation17_spill] sm:$0xff] }
 0x3c2   : > { %7621 = vst.msk [vmem:[#allocation2 + $0x19] sm:$0xff] %vm368_vm1, %v7589_v44  ;;  %7653 = vst.msk [vmem:[#allocation2 + $0x1] sm:$0xff] %vm368_vm1, %v7589_v44  ;;  %v7592_v34 = vmax.f32 %v7560_v50, 0.0  ;;  %v7559_v54 = vadd.f32 %v22448_v60, %v7520_v10  ;;  %v7523_v28 = vadd.f32 %v18402_v24, %v7133_v62  ;;  %v26363_v62 = vld [vmem:[#allocation12_spill] sm:$0xff]  ;;  %v26364_v44 = vld [vmem:[#allocation9_spill] sm:$0xff]  ;;  %v6358_v24 = vadd.f32 %v26367_v42, %v5968_v37 }
 0x3c3   : > { %v7379_v58 = vpop.f32.mrf.mxu1  ;;  %v22532_v50 = vadd.f32 %v26364_v44, %v26363_v62  ;;  %v26365_v10 = vld [vmem:[#allocation48_spill] sm:$0xff] }
 0x3c4   : > { %7624 = vst.msk [vmem:[#allocation2 + $0x39] sm:$0xff] %vm368_vm1, %v7592_v34  ;;  %v7591_v48 = vmax.f32 %v7559_v54, 0.0  ;;  %v7562_v36 = vadd.f32 %v22448_v60, %v7523_v28  ;;  %v7522_v25 = vadd.f32 %v7379_v58, %v7132_v53  ;;  %v5580_v61 = vadd.f32 %v26366_v26, %v26365_v10  ;;  %v26368_v53 = vld [vmem:[#allocation83_spill] sm:$0xff]  ;;  %v26383_v62 = vld [vmem:[#allocation8_spill] sm:$0xff] }
 0x3c5   : > { %v18405_v49 = vpop.f32.mrf.mxu1  ;;  %v6749_v34 = vadd.f32 %v26368_v53, %v6359_v11 }
 0x3c6   : > { %7623 = vst.msk [vmem:[#allocation2 + $0x31] sm:$0xff] %vm368_vm1, %v7591_v48  ;;  %v7594_v20 = vmax.f32 %v7562_v36, 0.0  ;;  %v7561_v38 = vadd.f32 %v22448_v60, %v7522_v25  ;;  %v7525_v59 = vadd.f32 %v18405_v49, %v7135_v35  ;;  %v5970_v55 = vadd.f32 %v26372_v40, %v5580_v61  ;;  %v26373_v49 = vld [vmem:[#allocation93_spill] sm:$0xff]  ;;  %v26384_v61 = vld [vmem:[#allocation6_spill] sm:$0xff] }
 0x3c7   : > { %v7389_v6 = vpop.f32.mrf.mxu1  ;;  %v7693_v39 = vld [vmem:[#allocation2 + $0x10] sm:$0x1]  ;;  %v7694_v45 = vld [vmem:[#allocation2 + $0x28] sm:$0x1]  ;;  %v7139_v37 = vadd.f32 %v26376_v19, %v6749_v34 }
 0x3c8   : > { %7626 = vst.msk [vmem:[#allocation2 + $0x51] sm:$0xff] %vm368_vm1, %v7594_v20  ;;  %v7593_v5 = vmax.f32 %v7561_v38, 0.0  ;;  %v7564_v12 = vadd.f32 %v22448_v60, %v7525_v59  ;;  %v7524_v41 = vadd.f32 %v7389_v6, %v7134_v13  ;;  %v7763_v36 = vld [vmem:[#allocation2 + $0x9] sm:$0xff]  ;;  %v6361_v13 = vadd.f32 %v26374_v16, %v26373_v49  ;;  %v22557_v59 = vpop.f32.mrf.mxu0  ;;  %v26378_v6 = vld [vmem:[#allocation97_spill] sm:$0xff] }
 0x3c9   : > { %7711 = vst.msk [vmem:[#allocation2 + $0x11] sm:$0x1] %vm424_vm2, %v7693_v39  ;;  %v18408_v54 = vpop.f32.mrf.mxu1  ;;  %v7762_v28 = vld [vmem:[#allocation2 + $0x1] sm:$0xff]  ;;  %7712 = vst.msk [vmem:[#allocation2 + $0x29] sm:$0x1] %vm424_vm2, %v7694_v45  ;;  %v26375_v20 = vld [vmem:[#allocation35_spill] sm:$0xff] }
 0x3ca   : > { %v7657_v17 = vld [vmem:[#allocation2 + $0x1] sm:$0x1]  ;;  %7625 = vst.msk [vmem:[#allocation2 + $0x49] sm:$0xff] %vm368_vm1, %v7593_v5  ;;  %v7596_v58 = vmax.f32 %v7564_v12, 0.0  ;;  %v7563_v35 = vadd.f32 %v22448_v60, %v7524_v41  ;;  %v7527_v48 = vadd.f32 %v18408_v54, %v7137_v23  ;;  %18444 = vmatprep.mubr.msk.f32.mxu0 %vm368_vm1, %v7762_v28  ;;  %v7658_v25 = vld [vmem:[#allocation2 + $0x19] sm:$0x1]  ;;  %v6748_v38 = vadd.f32 %v26375_v20, %v6358_v24  ;;  %v22590_v47 = vpop.f32.mrf.mxu0 }
 0x3cb   : > { %7675 = vst.msk [vmem:[#allocation2] sm:$0x1] %vm424_vm2, %v7657_v17  ;;  %v7399_v63 = vpop.f32.mrf.mxu1  ;;  %18445 = vmatmul.mubr.msk.f32.vlgmr.msra.gmra.mxu0 %vm368_vm1, %v7763_v36  ;;  %v7764_v46 = vld [vmem:[#allocation2 + $0x19] sm:$0xff]  ;;  %7676 = vst.msk [vmem:[#allocation2 + $0x18] sm:$0x1] %vm424_vm2, %v7658_v25  ;;  %v26379_v39 = vld [vmem:[#allocation39_spill] sm:$0xff]  ;;  %v6751_v44 = vadd.f32 %v26383_v62, %v6361_v13 }
 0x3cc   : > { %7628 = vst.msk [vmem:[#allocation2 + $0x69] sm:$0xff] %vm368_vm1, %v7596_v58  ;;  %v7595_v0 = vmax.f32 %v7563_v35, 0.0  ;;  %v7566_v4 = vadd.f32 %v22448_v60, %v7527_v48  ;;  %v7526_v11 = vadd.f32 %v7399_v63, %v7136_v51  ;;  %18543 = vmatpush3.msk.msra.mxu0 %vm642_vm0, %v26377_v32  ;;  %18447 = vmatprep.mubr.msk.f32.mxu0 %vm368_vm1, %v7764_v46  ;;  %v7695_v7 = vld [vmem:[#allocation2 + $0x40] sm:$0x1]  ;;  %v26380_v23 = vld [vmem:[#allocation11_spill] sm:$0xff]  ;;  %v26381_v5 = vld [vmem:[#allocation102_spill] sm:$0xff] }
 0x3cd   : > { %v22569_v8 = vadd.f32 %v26379_v39, %v26378_v6  ;;  %v5582_v12 = vadd.f32 %v26381_v5, %v26380_v23  ;;  %v26382_v41 = vld [vmem:[#allocation55_spill] sm:$0xff]  ;;  %v18411_v10 = vpop.f32.mrf.mxu1  ;;  %v7659_v26 = vld [vmem:[#allocation2 + $0x31] sm:$0x1]  ;;  %18642 = vmatprep.subr.msk.mxu0 %vm642_vm0, %v22547_v56  ;;  %7713 = vst.msk [vmem:[#allocation2 + $0x41] sm:$0x1] %vm424_vm2, %v7695_v7  ;;  %v7138_v42 = vadd.f32 %v26384_v61, %v6748_v38  ;;  %v22581_v54 = vld [vmem:[#allocation2 + $0x21] sm:$0xff] }
 0x3ce   : > { %v6360_v45 = vadd.f32 %v26382_v41, %v5970_v55  ;;  %7627 = vst.msk [vmem:[#allocation2 + $0x61] sm:$0xff] %vm368_vm1, %v7595_v0  ;;  %v7598_v24 = vmax.f32 %v7566_v4, 0.0  ;;  %v7565_v53 = vadd.f32 %v22448_v60, %v7526_v11  ;;  %v7529_v34 = vadd.f32 %v18411_v10, %v7139_v37  ;;  %v26385_v28 = vld [vmem:[#allocation14_spill] sm:$0xff]  ;;  %v26387_v58 = vld [vmem:[#allocation95_spill] sm:$0xff]  ;;  %v26388_v35 = vld [vmem:[#allocation64_spill] sm:$0xff] }
 0x3cf   : > { %7677 = vst.msk [vmem:[#allocation2 + $0x30] sm:$0x1] %vm424_vm2, %v7659_v26  ;;  %v5194_v17 = vadd.f32 %v26385_v28, %v22468_v2  ;;  %v5972_v51 = vadd.f32 %v26386_v1, %v5582_v12  ;;  %v6363_v48 = vadd.f32 %v26388_v35, %v26387_v58  ;;  %v26389_v36 = vld [vmem:[#allocation80_spill] sm:$0xff]  ;;  %v7409_v31 = vpop.f32.mrf.mxu1  ;;  %18448 = vmatmul.mubr.msk.f32.gmra.mxu0 %vm368_vm1, %v22581_v54  ;;  %v26390_v20 = vld [vmem:[#allocation87_spill] sm:$0xff]  ;;  %v26393_v0 = vld [vmem:[#allocation85_spill] sm:$0xff] }
 0x3d0   : > { %v6750_v25 = vadd.f32 %v26389_v36, %v6360_v45  ;;  %v22594_v40 = vld [vmem:[#allocation2 + $0x31] sm:$0xff]  ;;  %v7141_v49 = vadd.f32 %v22404_v22, %v6751_v44  ;;  %7630 = vst.msk [vmem:[#allocation2 + $0x81] sm:$0xff] %vm368_vm1, %v7598_v24  ;;  %v7597_v2 = vmax.f32 %v7565_v53, 0.0  ;;  %v7568_v16 = vadd.f32 %v22448_v60, %v7529_v34  ;;  %v26391_v63 = vld [vmem:[#allocation43_spill] sm:$0xff]  ;;  %v26395_v45 = vld [vmem:[#allocation57_spill] sm:$0xff]  ;;  %v22623_v24 = vpop.f32.mrf.mxu0 }
 0x3d1   : > { %v7696_v55 = vld [vmem:[#allocation2 + $0x58] sm:$0x1]  ;;  %v7528_v13 = vadd.f32 %v7409_v31, %v7138_v42  ;;  %18450 = vmatprep.mubr.msk.f32.mxu0 %vm368_vm1, %v22594_v40  ;;  %v5196_v38 = vadd.f32 %v26390_v20, %v22482_v9  ;;  %v5584_v46 = vadd.f32 %v26391_v63, %v5194_v17  ;;  %v26392_v19 = vld [vmem:[#allocation23_spill] sm:$0xff]  ;;  %v6753_v22 = vadd.f32 %v26393_v0, %v6363_v48  ;;  %v18414_v4 = vpop.f32.mrf.mxu1  ;;  %v22611_v9 = vld [vmem:[#allocation2 + $0x39] sm:$0xff] }
 0x3d2   : > { %7714 = vst.msk [vmem:[#allocation2 + $0x59] sm:$0x1] %vm424_vm2, %v7696_v55  ;;  %v6362_v37 = vadd.f32 %v26392_v19, %v5972_v51  ;;  %v7729_v11 = vld [vmem:[#allocation2] sm:$0xff]  ;;  %v7660_v32 = vld [vmem:[#allocation2 + $0x49] sm:$0x1]  ;;  %v7600_v39 = vmax.f32 %v7568_v16, 0.0  ;;  %v7531_v5 = vadd.f32 %v18414_v4, %v7141_v49 }
 0x3d3   : > { %v26394_v7 = vld [vmem:[#allocation31_spill] sm:$0xff]  ;;  %7629 = vst.msk [vmem:[#allocation2 + $0x79] sm:$0xff] %vm368_vm1, %v7597_v2  ;;  %v7567_v23 = vadd.f32 %v22448_v60, %v7528_v13  ;;  %18494 = vmatprep.mubr.msk.f32.mxu1 %vm368_vm1, %v7729_v11  ;;  %v22617_v41 = vld [vmem:[%s25802_s5 + $0x14] sm:$0xf]  ;;  %v5974_v62 = vadd.f32 %v26395_v45, %v5584_v46  ;;  %v26397_v10 = vld [vmem:[#allocation66_spill] sm:$0xff]  ;;  %v7419_v53 = vpop.f32.mrf.mxu1  ;;  %18451 = vmatmul.mubr.msk.f32.gmra.mxu0 %vm368_vm1, %v22611_v9 }
 0x3d4   : > { %v7140_v6 = vadd.f32 %v26394_v7, %v6750_v25  ;;  %v7730_v12 = vld [vmem:[#allocation2 + $0x8] sm:$0xff]  ;;  %7678 = vst.msk [vmem:[#allocation2 + $0x48] sm:$0x1] %vm424_vm2, %v7660_v32  ;;  %v26396_v44 = vld [vmem:[#allocation96_spill] sm:$0xff]  ;;  %v7697_v17 = vld [vmem:[#allocation2 + $0x70] sm:$0x1]  ;;  %v7570_v35 = vadd.f32 %v22448_v60, %v7531_v5 }
 0x3d5   : > { %v6365_v26 = vadd.f32 %v26397_v10, %v26396_v44  ;;  %v26398_v61 = vld [vmem:[#allocation26_spill] sm:$0xff]  ;;  %18495 = vmatmul.mubr.msk.f32.vlgmr.msra.gmra.mxu1 %vm368_vm1, %v7730_v12  ;;  %v22628_v34 = vld [vmem:[#allocation2 + $0x49] sm:$0xff]  ;;  %v22630_v28 = vld [vmem:[#allocation2 + $0x18] sm:$0xff]  ;;  %7632 = vst.msk [vmem:[#allocation2 + $0x99] sm:$0xff] %vm368_vm1, %v7600_v39  ;;  %v7599_v58 = vmax.f32 %v7567_v23, 0.0  ;;  %v18417_v20 = vpop.f32.mrf.mxu1  ;;  %v22661_v23 = vpop.f32.mrf.mxu0 }
 0x3d6   : > { %v6752_v42 = vadd.f32 %v26398_v61, %v6362_v37  ;;  %v26399_v1 = vld [vmem:[#allocation44_spill] sm:$0xff]  ;;  %v7530_v48 = vadd.f32 %v7419_v53, %v7140_v6  ;;  %18453 = vmatprep.mubr.msk.f32.mxu0 %vm368_vm1, %v22628_v34  ;;  %18497 = vmatprep.mubr.msk.f32.mxu1 %vm368_vm1, %v22630_v28  ;;  %7715 = vst.msk [vmem:[#allocation2 + $0x71] sm:$0x1] %vm424_vm2, %v7697_v17  ;;  %v26400_v36 = vld [vmem:[#allocation45_spill] sm:$0xff]  ;;  %v26402_v49 = vld [vmem:[#allocation59_spill] sm:$0xff]  ;;  %v7602_v37 = vmax.f32 %v7570_v35, 0.0 }
 0x3d7   : > { %v7143_v51 = vadd.f32 %v26399_v1, %v6753_v22  ;;  %v5198_v25 = vadd.f32 %v26400_v36, %v22494_v33  ;;  %v26401_v31 = vld [vmem:[#allocation89_spill] sm:$0xff]  ;;  %v6364_v2 = vadd.f32 %v26402_v49, %v5974_v62  ;;  %v26403_v16 = vld [vmem:[#allocation34_spill] sm:$0xff]  ;;  %v26404_v46 = vld [vmem:[#allocation108_spill] sm:$0xff]  ;;  %7631 = vst.msk [vmem:[#allocation2 + $0x91] sm:$0xff] %vm368_vm1, %v7599_v58  ;;  %v7429_v5 = vpop.f32.mrf.mxu1 }
 0x3d8   : > { %v5586_v55 = vadd.f32 %v26401_v31, %v5196_v38  ;;  %v6755_v13 = vadd.f32 %v26403_v16, %v6365_v26  ;;  %v7661_v63 = vld [vmem:[#allocation2 + $0x61] sm:$0x1]  ;;  %18593 = vmatpush3.msk.msra.mxu1 %vm642_vm0, %v26404_v46  ;;  %v7142_v19 = vadd.f32 %v22424_v14, %v6752_v42  ;;  %v7569_v0 = vadd.f32 %v22448_v60, %v7530_v48  ;;  %v22650_v33 = vld [vmem:[#allocation2 + $0x51] sm:$0xff]  ;;  %v26405_v4 = vld [vmem:[#allocation19_spill] sm:$0xff] }
 0x3d9   : > { %v7533_v22 = vadd.f32 %v18417_v20, %v7143_v51  ;;  %v22652_v38 = vld [vmem:[#allocation2 + $0x20] sm:$0xff]  ;;  %7679 = vst.msk [vmem:[#allocation2 + $0x60] sm:$0x1] %vm424_vm2, %v7661_v63  ;;  %18692 = vmatprep.subr.msk.mxu1 %vm642_vm0, %v22617_v41  ;;  %v26407_v7 = vld [vmem:[#allocation68_spill] sm:$0xff]  ;;  %18454 = vmatmul.mubr.msk.f32.gmra.mxu0 %vm368_vm1, %v22650_v33  ;;  %v7698_v62 = vld [vmem:[#allocation2 + $0x88] sm:$0x1]  ;;  %v18420_v48 = vpop.f32.mrf.mxu1 }
 0x3da   : > { %v5976_v11 = vadd.f32 %v26405_v4, %v5586_v55  ;;  %v26406_v32 = vld [vmem:[#allocation98_spill] sm:$0xff]  ;;  %v26408_v6 = vld [vmem:[#allocation40_spill] sm:$0xff]  ;;  %18498 = vmatmul.mubr.msk.f32.gmra.mxu1 %vm368_vm1, %v22652_v38  ;;  %v7145_v44 = vadd.f32 %v22436_v15, %v6755_v13  ;;  %7634 = vst.msk [vmem:[#allocation2 + $0xb1] sm:$0xff] %vm368_vm1, %v7602_v37  ;;  %v7601_v10 = vmax.f32 %v7569_v0, 0.0  ;;  %v7532_v61 = vadd.f32 %v7429_v5, %v7142_v19  ;;  %v26411_v17 = vld [vmem:[#allocation13_spill] sm:$0xff] }
 0x3db   : > { %v6367_v14 = vadd.f32 %v26407_v7, %v26406_v32  ;;  %v6754_v39 = vadd.f32 %v26408_v6, %v6364_v2  ;;  %v22667_v12 = vld [vmem:[#allocation2 + $0x61] sm:$0xff]  ;;  %v22669_v45 = vld [vmem:[#allocation2 + $0x30] sm:$0xff]  ;;  %v7572_v26 = vadd.f32 %v22448_v60, %v7533_v22  ;;  %7716 = vst.msk [vmem:[#allocation2 + $0x89] sm:$0x1] %vm424_vm2, %v7698_v62  ;;  %v5588_v1 = vadd.f32 %v26411_v17, %v5198_v25  ;;  %v26412_v15 = vld [vmem:[#allocation29_spill] sm:$0xff]  ;;  %v7439_v0 = vpop.f32.mrf.mxu1 }
 0x3dc   : > { %26409 = vst [vmem:[#allocation86_spill] sm:$0xff] %v22669_v45  ;;  %18456 = vmatprep.mubr.msk.f32.mxu0 %vm368_vm1, %v22667_v12  ;;  %18500 = vmatprep.mubr.msk.f32.mxu1 %vm368_vm1, %v22669_v45  ;;  %v26410_v42 = vld [vmem:[#allocation52_spill] sm:$0xff]  ;;  %v6366_v51 = vadd.f32 %v26412_v15, %v5976_v11  ;;  %v26413_v58 = vld [vmem:[#allocation81_spill] sm:$0xff]  ;;  %7633 = vst.msk [vmem:[#allocation2 + $0xa9] sm:$0xff] %vm368_vm1, %v7601_v10  ;;  %v7571_v49 = vadd.f32 %v22448_v60, %v7532_v61 }
 0x3dd   : > { %v5200_v53 = vadd.f32 %v26410_v42, %v22507_v3  ;;  %v6757_v35 = vadd.f32 %v26413_v58, %v6367_v14  ;;  %v7662_v36 = vld [vmem:[#allocation2 + $0x79] sm:$0x1]  ;;  %v7144_v31 = vadd.f32 %v22455_v57, %v6754_v39  ;;  %v7604_v55 = vmax.f32 %v7572_v26, 0.0  ;;  %v22687_v16 = vld [vmem:[#allocation2 + $0x69] sm:$0xff]  ;;  %v26417_v63 = vld [vmem:[#allocation70_spill] sm:$0xff]  ;;  %v22696_v57 = vpop.f32.mrf.mxu0  ;;  %v18423_v42 = vpop.f32.mrf.mxu1 }
 0x3de   : > { %v7535_v2 = vadd.f32 %v18420_v48, %v7145_v44  ;;  %v22689_v13 = vld [vmem:[#allocation2 + $0x38] sm:$0xff]  ;;  %7680 = vst.msk [vmem:[#allocation2 + $0x78] sm:$0x1] %vm424_vm2, %v7662_v36  ;;  %v26416_v20 = vld [vmem:[#allocation99_spill] sm:$0xff]  ;;  %18457 = vmatmul.mubr.msk.f32.gmra.mxu0 %vm368_vm1, %v22687_v16  ;;  %v7699_v11 = vld [vmem:[#allocation2 + $0xa0] sm:$0x1] }
 0x3df   : > { %26414 = vst [vmem:[#allocation51_spill] sm:$0xff] %v22689_v13  ;;  %v26415_v3 = vld [vmem:[#allocation61_spill] sm:$0xff]  ;;  %v6369_v46 = vadd.f32 %v26417_v63, %v26416_v20  ;;  %v26418_v19 = vld [vmem:[#allocation24_spill] sm:$0xff]  ;;  %18501 = vmatmul.mubr.msk.f32.gmra.mxu1 %vm368_vm1, %v22689_v13  ;;  %v22704_v4 = vld [vmem:[#allocation2 + $0x48] sm:$0xff]  ;;  %v7147_v32 = vadd.f32 %v22474_v52, %v6757_v35  ;;  %v7603_v7 = vmax.f32 %v7571_v49, 0.0  ;;  %v7534_v6 = vadd.f32 %v7439_v0, %v7144_v31 }
 0x3e0   : > { %v5978_v25 = vadd.f32 %v26415_v3, %v5588_v1  ;;  %v6756_v37 = vadd.f32 %v26418_v19, %v6366_v51  ;;  %v22702_v22 = vld [vmem:[#allocation2 + $0x79] sm:$0xff]  ;;  %26419 = vst [vmem:[#allocation78_spill] sm:$0xff] %v22704_v4  ;;  %7636 = vst.msk [vmem:[#allocation2 + $0xc9] sm:$0xff] %vm368_vm1, %v7604_v55  ;;  %v7574_v14 = vadd.f32 %v22448_v60, %v7535_v2  ;;  %18503 = vmatprep.mubr.msk.f32.mxu1 %vm368_vm1, %v22704_v4  ;;  %v26421_v62 = vld [vmem:[#allocation54_spill] sm:$0xff]  ;;  %v7449_v3 = vpop.f32.mrf.mxu1 }
 0x3e1   : > { %18459 = vmatprep.mubr.msk.f32.mxu0 %vm368_vm1, %v22702_v22  ;;  %7717 = vst.msk [vmem:[#allocation2 + $0xa1] sm:$0x1] %vm424_vm2, %v7699_v11  ;;  %v26420_v39 = vld [vmem:[#allocation105_spill] sm:$0xff]  ;;  %v5590_v44 = vadd.f32 %v26421_v62, %v5200_v53  ;;  %v26422_v52 = vld [vmem:[#allocation63_spill] sm:$0xff]  ;;  %v26423_v26 = vld [vmem:[#allocation28_spill] sm:$0xff]  ;;  %v7573_v51 = vadd.f32 %v22448_v60, %v7534_v6  ;;  %v7537_v58 = vadd.f32 %v18423_v42, %v7147_v32 }
 0x3e2   : > { %v5202_v5 = vadd.f32 %v26420_v39, %v22518_v29  ;;  %v6368_v10 = vadd.f32 %v26422_v52, %v5978_v25  ;;  %v6759_v61 = vadd.f32 %v26423_v26, %v6369_v46  ;;  %v7663_v17 = vld [vmem:[#allocation2 + $0x91] sm:$0x1]  ;;  %v7146_v1 = vadd.f32 %v22500_v18, %v6756_v37  ;;  %7635 = vst.msk [vmem:[#allocation2 + $0xc1] sm:$0xff] %vm368_vm1, %v7603_v7  ;;  %v22722_v35 = vld [vmem:[#allocation2 + $0x81] sm:$0xff]  ;;  %v26425_v29 = vld [vmem:[#allocation21_spill] sm:$0xff]  ;;  %v22731_v18 = vpop.f32.mrf.mxu0 }
 0x3e3   : > { %v7606_v15 = vmax.f32 %v7574_v14, 0.0  ;;  %v22724_v48 = vld [vmem:[#allocation2 + $0x50] sm:$0xff]  ;;  %7681 = vst.msk [vmem:[#allocation2 + $0x90] sm:$0x1] %vm424_vm2, %v7663_v17  ;;  %v5980_v53 = vadd.f32 %v26425_v29, %v5590_v44  ;;  %v26428_v49 = vld [vmem:[#allocation10_spill] sm:$0xff]  ;;  %18460 = vmatmul.mubr.msk.f32.gmra.mxu0 %vm368_vm1, %v22722_v35  ;;  %v7605_v19 = vmax.f32 %v7573_v51, 0.0  ;;  %v7576_v37 = vadd.f32 %v22448_v60, %v7537_v58  ;;  %v18426_v44 = vpop.f32.mrf.mxu1 }
 0x3e4   : > { %26424 = vst [vmem:[#allocation38_spill] sm:$0xff] %v22724_v48  ;;  %v26426_v36 = vld [vmem:[#allocation100_spill] sm:$0xff]  ;;  %v6758_v2 = vadd.f32 %v26428_v49, %v6368_v10  ;;  %18504 = vmatmul.mubr.msk.f32.gmra.mxu1 %vm368_vm1, %v22724_v48  ;;  %v22739_v20 = vld [vmem:[#allocation2 + $0x60] sm:$0xff]  ;;  %v7149_v46 = vadd.f32 %v22524_v27, %v6759_v61  ;;  %v7536_v0 = vadd.f32 %v7449_v3, %v7146_v1  ;;  %v26431_v7 = vld [vmem:[#allocation79_spill] sm:$0xff] }
 0x3e5   : > { %v26427_v31 = vld [vmem:[#allocation72_spill] sm:$0xff]  ;;  %26429 = vst [vmem:[#allocation7_spill] sm:$0xff] %v22739_v20  ;;  %7638 = vst.msk [vmem:[#allocation2 + $0xe1] sm:$0xff] %vm368_vm1, %v7606_v15  ;;  %18506 = vmatprep.mubr.msk.f32.mxu1 %vm368_vm1, %v22739_v20  ;;  %v5592_v14 = vadd.f32 %v26431_v7, %v5202_v5  ;;  %v26432_v27 = vld [vmem:[#allocation30_spill] sm:$0xff]  ;;  %v7608_v26 = vmax.f32 %v7576_v37, 0.0 }
 0x3e6   : > { %v6371_v55 = vadd.f32 %v26427_v31, %v26426_v36  ;;  %v22737_v25 = vld [vmem:[#allocation2 + $0x91] sm:$0xff]  ;;  %v6370_v6 = vadd.f32 %v26432_v27, %v5980_v53  ;;  %v26433_v39 = vld [vmem:[#allocation42_spill] sm:$0xff]  ;;  %v7664_v52 = vld [vmem:[#allocation2 + $0xa9] sm:$0x1]  ;;  %v7148_v10 = vadd.f32 %v22557_v59, %v6758_v2  ;;  %7637 = vst.msk [vmem:[#allocation2 + $0xd9] sm:$0xff] %vm368_vm1, %v7605_v19  ;;  %v7575_v61 = vadd.f32 %v22448_v60, %v7536_v0  ;;  %v22766_v59 = vpop.f32.mrf.mxu0  ;;  %v7459_v36 = vpop.f32.mrf.mxu1 }
 0x3e7   : > { %v7700_v63 = vld [vmem:[#allocation2 + $0xb8] sm:$0x1]  ;;  %18462 = vmatprep.mubr.msk.f32.mxu0 %vm368_vm1, %v22737_v25  ;;  %v7539_v42 = vadd.f32 %v18426_v44, %v7149_v46  ;;  %v22757_v17 = vld [vmem:[#allocation2 + $0x99] sm:$0xff]  ;;  %v22759_v1 = vld [vmem:[#allocation2 + $0x68] sm:$0xff]  ;;  %7682 = vst.msk [vmem:[#allocation2 + $0xa8] sm:$0x1] %vm424_vm2, %v7664_v52 }
 0x3e8   : > { %7718 = vst.msk [vmem:[#allocation2 + $0xb9] sm:$0x1] %vm424_vm2, %v7700_v63  ;;  %v26430_v11 = vld [vmem:[#allocation16_spill] sm:$0xff]  ;;  %v6761_v62 = vadd.f32 %v26433_v39, %v6371_v55  ;;  %26434 = vst [vmem:[#allocation84_spill] sm:$0xff] %v22759_v1  ;;  %v26436_v15 = vld [vmem:[#allocation101_spill] sm:$0xff]  ;;  %18463 = vmatmul.mubr.msk.f32.gmra.mxu0 %vm368_vm1, %v22757_v17  ;;  %18507 = vmatmul.mubr.msk.f32.gmra.mxu1 %vm368_vm1, %v22759_v1  ;;  %v7607_v3 = vmax.f32 %v7575_v61, 0.0  ;;  %v7538_v46 = vadd.f32 %v7459_v36, %v7148_v10 }
 0x3e9   : > { %v5204_v32 = vadd.f32 %v26430_v11, %v22532_v50  ;;  %v26435_v50 = vld [vmem:[#allocation65_spill] sm:$0xff]  ;;  %v26437_v51 = vld [vmem:[#allocation74_spill] sm:$0xff]  ;;  %v22772_v31 = vld [vmem:[#allocation2 + $0xa9] sm:$0xff]  ;;  %7640 = vst.msk [vmem:[#allocation2 + $0xf9] sm:$0xff] %vm368_vm1, %v7608_v26  ;;  %v7578_v63 = vadd.f32 %v22448_v60, %v7539_v42 }
 0x3ea   : > { %v5982_v5 = vadd.f32 %v26435_v50, %v5592_v14  ;;  %v6373_v58 = vadd.f32 %v26437_v51, %v26436_v15  ;;  %v26438_v29 = vld [vmem:[#allocation82_spill] sm:$0xff]  ;;  %v22774_v55 = vld [vmem:[#allocation2 + $0x78] sm:$0xff]  ;;  %v7701_v49 = vld [vmem:[#allocation2 + $0xd0] sm:$0x1]  ;;  %v7151_v2 = vadd.f32 %v22590_v47, %v6761_v62  ;;  %18465 = vmatprep.mubr.msk.f32.mxu0 %vm368_vm1, %v22772_v31  ;;  %7639 = vst.msk [vmem:[#allocation2 + $0xf1] sm:$0xff] %vm368_vm1, %v7607_v3 }
 0x3eb   : > { %v6760_v53 = vadd.f32 %v26438_v29, %v6370_v6  ;;  %26439 = vst [vmem:[#allocation18_spill] sm:$0xff] %v22774_v55  ;;  %18509 = vmatprep.mubr.msk.f32.mxu1 %vm368_vm1, %v22774_v55  ;;  %7719 = vst.msk [vmem:[#allocation2 + $0xd1] sm:$0x1] %vm424_vm2, %v7701_v49  ;;  %v26440_v19 = vld [vmem:[#allocation90_spill] sm:$0xff]  ;;  %v26441_v0 = vld [vmem:[#allocation47_spill] sm:$0xff]  ;;  %v18429_v6 = vpop.f32.mrf.mxu1  ;;  %v7610_v44 = vmax.f32 %v7578_v63, 0.0  ;;  %v7577_v52 = vadd.f32 %v22448_v60, %v7538_v46 }
 0x3ec   : > { %v5206_v37 = vadd.f32 %v26440_v19, %v22551_v43  ;;  %v5594_v11 = vadd.f32 %v26441_v0, %v5204_v32  ;;  %v26442_v47 = vld [vmem:[#allocation67_spill] sm:$0xff]  ;;  %v7665_v39 = vld [vmem:[#allocation2 + $0xc1] sm:$0x1]  ;;  %v7541_v10 = vadd.f32 %v18429_v6, %v7151_v2  ;;  %v22792_v26 = vld [vmem:[#allocation2 + $0xb1] sm:$0xff] }
 0x3ed   : > { %v6372_v7 = vadd.f32 %v26442_v47, %v5982_v5  ;;  %v26443_v14 = vld [vmem:[#allocation91_spill] sm:$0xff]  ;;  %v7150_v62 = vadd.f32 %v22623_v24, %v6760_v53  ;;  %v22794_v61 = vld [vmem:[#allocation2 + $0x80] sm:$0xff]  ;;  %7683 = vst.msk [vmem:[#allocation2 + $0xc0] sm:$0x1] %vm424_vm2, %v7665_v39  ;;  %v26448_v15 = vld [vmem:[#allocation4_spill] sm:$0xff]  ;;  %v22801_v24 = vpop.f32.mrf.mxu0  ;;  %18466 = vmatmul.mubr.msk.f32.gmra.mxu0 %vm368_vm1, %v22792_v26  ;;  %v7609_v2 = vmax.f32 %v7577_v52, 0.0 }
 0x3ee   : > { %v6763_v27 = vadd.f32 %v26443_v14, %v6373_v58  ;;  %26444 = vst [vmem:[#allocation15_spill] sm:$0xff] %v22794_v61  ;;  %v26445_v43 = vld [vmem:[#allocation25_spill] sm:$0xff]  ;;  %v26446_v42 = vld [vmem:[#allocation103_spill] sm:$0xff]  ;;  %v7469_v58 = vpop.f32.mrf.mxu1  ;;  %18510 = vmatmul.mubr.msk.f32.gmra.mxu1 %vm368_vm1, %v22794_v61  ;;  %v22807_v29 = vld [vmem:[#allocation2 + $0xc1] sm:$0xff]  ;;  %v7580_v3 = vadd.f32 %v22448_v60, %v7541_v10 }
 0x3ef   : > { %v5984_v32 = vadd.f32 %v26445_v43, %v5594_v11  ;;  %v26447_v50 = vld [vmem:[#allocation75_spill] sm:$0xff]  ;;  %v6762_v51 = vadd.f32 %v26448_v15, %v6372_v7  ;;  %v7702_v36 = vld [vmem:[#allocation2 + $0xe8] sm:$0x1]  ;;  %7642 = vst.msk [vmem:[#allocation2 + $0x111] sm:$0xff] %vm368_vm1, %v7610_v44  ;;  %v7540_v63 = vadd.f32 %v7469_v58, %v7150_v62  ;;  %18468 = vmatprep.mubr.msk.f32.mxu0 %vm368_vm1, %v22807_v29  ;;  %v26450_v46 = vld [vmem:[#allocation49_spill] sm:$0xff] }
 0x3f0   : > { %v6375_v5 = vadd.f32 %v26447_v50, %v26446_v42  ;;  %v22809_v53 = vld [vmem:[#allocation2 + $0x90] sm:$0xff]  ;;  %v7153_v49 = vadd.f32 %v22661_v23, %v6763_v27  ;;  %7720 = vst.msk [vmem:[#allocation2 + $0xe9] sm:$0x1] %vm424_vm2, %v7702_v36  ;;  %v5208_v19 = vadd.f32 %v26450_v46, %v22569_v8  ;;  %v26453_v7 = vld [vmem:[#allocation37_spill] sm:$0xff]  ;;  %v18432_v27 = vpop.f32.mrf.mxu1  ;;  %v7612_v62 = vmax.f32 %v7580_v3, 0.0  ;;  %v22842_v36 = vld [vmem:[#allocation2 + $0xa8] sm:$0xff] }
 0x3f1   : > { %26449 = vst [vmem:[#allocation60_spill] sm:$0xff] %v22809_v53  ;;  %18512 = vmatprep.mubr.msk.f32.mxu1 %vm368_vm1, %v22809_v53  ;;  %v26451_v0 = vld [vmem:[#allocation56_spill] sm:$0xff]  ;;  %v7666_v6 = vld [vmem:[#allocation2 + $0xd9] sm:$0x1]  ;;  %v7152_v39 = vadd.f32 %v22696_v57, %v6762_v51  ;;  %7641 = vst.msk [vmem:[#allocation2 + $0x109] sm:$0xff] %vm368_vm1, %v7609_v2  ;;  %v7579_v44 = vadd.f32 %v22448_v60, %v7540_v63  ;;  %v7109_v57 = vpop.f32.mrf.mxu0 }
 0x3f2   : > { %v5596_v11 = vadd.f32 %v26451_v0, %v5206_v37  ;;  %v26452_v23 = vld [vmem:[#allocation76_spill] sm:$0xff]  ;;  %v6765_v14 = vadd.f32 %v26453_v7, %v6375_v5  ;;  %v7543_v52 = vadd.f32 %v18432_v27, %v7153_v49  ;;  %v22827_v10 = vld [vmem:[#allocation2 + $0xc9] sm:$0xff]  ;;  %7684 = vst.msk [vmem:[#allocation2 + $0xd8] sm:$0x1] %vm424_vm2, %v7666_v6  ;;  %v26455_v8 = vld [vmem:[#allocation69_spill] sm:$0xff]  ;;  %v7479_v51 = vpop.f32.mrf.mxu1 }
 0x3f3   : > { %v6374_v47 = vadd.f32 %v26452_v23, %v5984_v32  ;;  %v22829_v43 = vld [vmem:[#allocation2 + $0x98] sm:$0xff]  ;;  %v26457_v42 = vld [vmem:[#allocation107_spill] sm:$0xff]  ;;  %v26458_v5 = vld [vmem:[#allocation94_spill] sm:$0xff]  ;;  %18469 = vmatmul.mubr.msk.f32.gmra.mxu0 %vm368_vm1, %v22827_v10  ;;  %26459 = vst [vmem:[#allocation22_spill] sm:$0xff] %v22842_v36  ;;  %v7611_v3 = vmax.f32 %v7579_v44, 0.0  ;;  %v7542_v46 = vadd.f32 %v7479_v51, %v7152_v39 }
 0x3f4   : > { %26454 = vst [vmem:[#allocation36_spill] sm:$0xff] %v22829_v43  ;;  %v5986_v37 = vadd.f32 %v26455_v8, %v5596_v11  ;;  %v26456_v32 = vld [vmem:[#allocation104_spill] sm:$0xff]  ;;  %18513 = vmatmul.mubr.msk.f32.gmra.mxu1 %vm368_vm1, %v22829_v43  ;;  %v22840_v58 = vld [vmem:[#allocation2 + $0xd9] sm:$0xff]  ;;  %v7155_v2 = vadd.f32 %v22731_v18, %v6765_v14  ;;  %7644 = vst.msk [vmem:[#allocation2 + $0x129] sm:$0xff] %vm368_vm1, %v7612_v62  ;;  %v7582_v63 = vadd.f32 %v22448_v60, %v7543_v52  ;;  %v18435_v14 = vpop.f32.mrf.mxu1 }
 0x3f5   : > { %v6377_v50 = vadd.f32 %v26457_v42, %v26456_v32  ;;  %v6764_v15 = vadd.f32 %v26458_v5, %v6374_v47  ;;  %v7703_v49 = vld [vmem:[#allocation2 + $0x100] sm:$0x1]  ;;  %18471 = vmatprep.mubr.msk.f32.mxu0 %vm368_vm1, %v22840_v58  ;;  %18515 = vmatprep.mubr.msk.f32.mxu1 %vm368_vm1, %v22842_v36  ;;  %v26460_v0 = vld [vmem:[#allocation92_spill] sm:$0xff]  ;;  %v26462_v7 = vld [vmem:[#allocation27_spill] sm:$0xff]  ;;  %7643 = vst.msk [vmem:[#allocation2 + $0x121] sm:$0xff] %vm368_vm1, %v7611_v3 }
 0x3f6   : > { %7721 = vst.msk [vmem:[#allocation2 + $0x101] sm:$0x1] %vm424_vm2, %v7703_v49  ;;  %v5598_v11 = vadd.f32 %v26460_v0, %v5208_v19  ;;  %v26461_v23 = vld [vmem:[#allocation73_spill] sm:$0xff]  ;;  %v7667_v27 = vld [vmem:[#allocation2 + $0xf1] sm:$0x1]  ;;  %v7614_v39 = vmax.f32 %v7582_v63, 0.0  ;;  %v7581_v62 = vadd.f32 %v22448_v60, %v7542_v46  ;;  %v7545_v44 = vadd.f32 %v18435_v14, %v7155_v2 }
 0x3f7   : > { %v6376_v47 = vadd.f32 %v26461_v23, %v5986_v37  ;;  %v6767_v18 = vadd.f32 %v26462_v7, %v6377_v50  ;;  %v7154_v6 = vadd.f32 %v22766_v59, %v6764_v15  ;;  %v22858_v52 = vld [vmem:[#allocation2 + $0xe1] sm:$0xff]  ;;  %v22860_v8 = vld [vmem:[#allocation2 + $0xb0] sm:$0xff]  ;;  %7685 = vst.msk [vmem:[#allocation2 + $0xf0] sm:$0x1] %vm424_vm2, %v7667_v27  ;;  %v26467_v5 = vld [vmem:[#allocation5_spill] sm:$0xff]  ;;  %v18391_v59 = vpop.f32.mrf.mxu0  ;;  %v7489_v15 = vpop.f32.mrf.mxu1 }
 0x3f8   : > { %26463 = vst [vmem:[#allocation12_spill] sm:$0xff] %v22860_v8  ;;  %v26464_v19 = vld [vmem:[#allocation32_spill] sm:$0xff]  ;;  %v26465_v32 = vld [vmem:[#allocation106_spill] sm:$0xff]  ;;  %v26466_v42 = vld [vmem:[#allocation71_spill] sm:$0xff]  ;;  %18472 = vmatmul.mubr.msk.f32.gmra.mxu0 %vm368_vm1, %v22858_v52  ;;  %18516 = vmatmul.mubr.msk.f32.gmra.mxu1 %vm368_vm1, %v22860_v8  ;;  %v7613_v46 = vmax.f32 %v7581_v62, 0.0  ;;  %v7584_v0 = vadd.f32 %v22448_v60, %v7545_v44 }
 0x3f9   : > { %v5988_v37 = vadd.f32 %v26464_v19, %v5598_v11  ;;  %v6379_v50 = vadd.f32 %v26466_v42, %v26465_v32  ;;  %v6766_v51 = vadd.f32 %v26467_v5, %v6376_v47  ;;  %v22871_v49 = vld [vmem:[#allocation2 + $0xf1] sm:$0xff]  ;;  %v22873_v2 = vld [vmem:[#allocation2 + $0xc0] sm:$0xff]  ;;  %v7157_v63 = vadd.f32 %v22801_v24, %v6767_v18  ;;  %7646 = vst.msk [vmem:[#allocation2 + $0x141] sm:$0xff] %vm368_vm1, %v7614_v39  ;;  %v18438_v14 = vpop.f32.mrf.mxu1  ;;  %v7668_v24 = vld [vmem:[#allocation2 + $0x109] sm:$0x1] }
 0x3fa   : > { %26468 = vst [vmem:[#allocation9_spill] sm:$0xff] %v22873_v2  ;;  %v7704_v3 = vld [vmem:[#allocation2 + $0x118] sm:$0x1]  ;;  %v7544_v11 = vadd.f32 %v7489_v15, %v7154_v6  ;;  %18474 = vmatprep.mubr.msk.f32.mxu0 %vm368_vm1, %v22871_v49  ;;  %18518 = vmatprep.mubr.msk.f32.mxu1 %vm368_vm1, %v22873_v2  ;;  %v26469_v23 = vld [vmem:[#allocation77_spill] sm:$0xff]  ;;  %7645 = vst.msk [vmem:[#allocation2 + $0x139] sm:$0xff] %vm368_vm1, %v7613_v46  ;;  %v7616_v27 = vmax.f32 %v7584_v0, 0.0 }
 0x3fb   : > { %7722 = vst.msk [vmem:[#allocation2 + $0x119] sm:$0x1] %vm424_vm2, %v7704_v3  ;;  %v6378_v47 = vadd.f32 %v26469_v23, %v5988_v37  ;;  %v6769_v7 = vadd.f32 %v22431_v30, %v6379_v50  ;;  %v7156_v18 = vadd.f32 %v7109_v57, %v6766_v51  ;;  %v7547_v39 = vadd.f32 %v18438_v14, %v7157_v63  ;;  %v22887_v62 = vld [vmem:[#allocation2 + $0xf9] sm:$0xff]  ;;  %v22889_v44 = vld [vmem:[#allocation2 + $0xc8] sm:$0xff]  ;;  %v7119_v37 = vpop.f32.mrf.mxu0  ;;  %v7499_v32 = vpop.f32.mrf.mxu1  ;;  %v7705_v42 = vld [vmem:[#allocation2 + $0x130] sm:$0x1] }
 0x3fc   : > { %v7583_v6 = vadd.f32 %v22448_v60, %v7544_v11  ;;  %26470 = vst [vmem:[#allocation48_spill] sm:$0xff] %v22889_v44  ;;  %7686 = vst.msk [vmem:[#allocation2 + $0x108] sm:$0x1] %vm424_vm2, %v7668_v24  ;;  %18475 = vmatmul.mubr.msk.f32.gmra.mxu0 %vm368_vm1, %v22887_v62  ;;  %18519 = vmatmul.mubr.msk.f32.gmra.mxu1 %vm368_vm1, %v22889_v44  ;;  %v22897_v30 = vld [vmem:[#allocation2 + $0x109] sm:$0xff]  ;;  %v22899_v57 = vld [vmem:[#allocation2 + $0xd8] sm:$0xff] }
 0x3fd   : > { %v6768_v19 = vadd.f32 %v22438_v21, %v6378_v47  ;;  %26471 = vst [vmem:[#allocation50_spill] sm:$0xff] %v22899_v57  ;;  %v7159_v50 = vadd.f32 %v18391_v59, %v6769_v7  ;;  %7648 = vst.msk [vmem:[#allocation2 + $0x159] sm:$0xff] %vm368_vm1, %v7616_v27  ;;  %v7586_v51 = vadd.f32 %v22448_v60, %v7547_v39  ;;  %18477 = vmatprep.mubr.msk.f32.mxu0 %vm368_vm1, %v22897_v30  ;;  %v18441_v15 = vpop.f32.mrf.mxu1  ;;  %v7669_v3 = vld [vmem:[#allocation2 + $0x121] sm:$0x1]  ;;  %v22910_v11 = vld [vmem:[#allocation2 + $0x111] sm:$0xff] }
 0x3fe   : > { %v7615_v5 = vmax.f32 %v7583_v6, 0.0  ;;  %v7546_v21 = vadd.f32 %v7499_v32, %v7156_v18  ;;  %18521 = vmatprep.mubr.msk.f32.mxu1 %vm368_vm1, %v22899_v57  ;;  %7723 = vst.msk [vmem:[#allocation2 + $0x131] sm:$0x1] %vm424_vm2, %v7705_v42  ;;  %v22912_v23 = vld [vmem:[#allocation2 + $0xe0] sm:$0xff]  ;;  %7687 = vst.msk [vmem:[#allocation2 + $0x120] sm:$0x1] %vm424_vm2, %v7669_v3 }
 0x3ff   : > { %v7158_v63 = vadd.f32 %v7119_v37, %v6768_v19  ;;  %v7618_v59 = vmax.f32 %v7586_v51, 0.0  ;;  %v7549_v0 = vadd.f32 %v18441_v15, %v7159_v50  ;;  %26472 = vst [vmem:[#allocation20_spill] sm:$0xff] %v22912_v23  ;;  %v7509_v47 = vpop.f32.mrf.mxu1  ;;  %v22919_v7 = vld [vmem:[#allocation2 + $0x121] sm:$0xff]  ;;  %v22921_v14 = vld [vmem:[#allocation2 + $0xf0] sm:$0xff]  ;;  %v22934_v42 = vld [vmem:[#allocation2 + $0xf8] sm:$0xff] }
 0x400   : > { %7647 = vst.msk [vmem:[#allocation2 + $0x151] sm:$0xff] %vm368_vm1, %v7615_v5  ;;  %v7585_v46 = vadd.f32 %v22448_v60, %v7546_v21  ;;  %18478 = vmatmul.mubr.msk.f32.gmra.mxu0 %vm368_vm1, %v22910_v11  ;;  %18522 = vmatmul.mubr.msk.f32.gmra.mxu1 %vm368_vm1, %v22912_v23  ;;  %26473 = vst [vmem:[#allocation83_spill] sm:$0xff] %v22921_v14  ;;  %v7706_v24 = vld [vmem:[#allocation2 + $0x148] sm:$0x1]  ;;  %v22932_v32 = vld [vmem:[#allocation2 + $0x129] sm:$0xff] }
 0x401   : > { %7650 = vst.msk [vmem:[#allocation2 + $0x171] sm:$0xff] %vm368_vm1, %v7618_v59  ;;  %v7588_v27 = vadd.f32 %v22448_v60, %v7549_v0  ;;  %v7548_v6 = vadd.f32 %v7509_v47, %v7158_v63  ;;  %18480 = vmatprep.mubr.msk.f32.mxu0 %vm368_vm1, %v22919_v7  ;;  %18524 = vmatprep.mubr.msk.f32.mxu1 %vm368_vm1, %v22921_v14  ;;  %v7670_v39 = vld [vmem:[#allocation2 + $0x139] sm:$0x1]  ;;  %26474 = vst [vmem:[#allocation33_spill] sm:$0xff] %v22934_v42  ;;  %v22954_v15 = vld [vmem:[#allocation2 + $0x141] sm:$0xff] }
 0x402   : > { %v7617_v18 = vmax.f32 %v7585_v46, 0.0  ;;  %7724 = vst.msk [vmem:[#allocation2 + $0x149] sm:$0x1] %vm424_vm2, %v7706_v24  ;;  %7688 = vst.msk [vmem:[#allocation2 + $0x138] sm:$0x1] %vm424_vm2, %v7670_v39  ;;  %v22941_v50 = vld [vmem:[#allocation2 + $0x139] sm:$0xff] }
 0x403   : > { %v7620_v19 = vmax.f32 %v7588_v27, 0.0  ;;  %v7587_v37 = vadd.f32 %v22448_v60, %v7548_v6  ;;  %v22943_v5 = vld [vmem:[#allocation2 + $0x108] sm:$0xff]  ;;  %v22956_v3 = vld [vmem:[#allocation2 + $0x110] sm:$0xff] }
 0x404   : > { %7649 = vst.msk [vmem:[#allocation2 + $0x169] sm:$0xff] %vm368_vm1, %v7617_v18  ;;  %18481 = vmatmul.mubr.msk.f32.gmra.mxu0 %vm368_vm1, %v22932_v32  ;;  %18525 = vmatmul.mubr.msk.f32.gmra.mxu1 %vm368_vm1, %v22934_v42  ;;  %26475 = vst [vmem:[#allocation46_spill] sm:$0xff] %v22943_v5  ;;  %v7707_v51 = vld [vmem:[#allocation2 + $0x160] sm:$0x1]  ;;  %v22974_v24 = vld [vmem:[#allocation2 + $0x128] sm:$0xff] }
 0x405   : > { %7652 = vst.msk [vmem:[#allocation2 + $0x189] sm:$0xff] %vm368_vm1, %v7620_v19  ;;  %7656 = vst.msk [vmem:[#allocation2 + $0x1a1] sm:$0xff] %vm368_vm1, %v7620_v19  ;;  %v7619_v60 = vmax.f32 %v7587_v37, 0.0  ;;  %18483 = vmatprep.mubr.msk.f32.mxu0 %vm368_vm1, %v22941_v50  ;;  %18527 = vmatprep.mubr.msk.f32.mxu1 %vm368_vm1, %v22943_v5  ;;  %v22965_v59 = vld [vmem:[#allocation2 + $0x120] sm:$0xff] }
 0x406   : > { %7725 = vst.msk [vmem:[#allocation2 + $0x161] sm:$0x1] %vm424_vm2, %v7707_v51  ;;  %26476 = vst [vmem:[#allocation41_spill] sm:$0xff] %v22956_v3  ;;  %v22972_v47 = vld [vmem:[#allocation2 + $0x159] sm:$0xff] }
 0x407   : > { %v7671_v21 = vld [vmem:[#allocation2 + $0x151] sm:$0x1]  ;;  %7651 = vst.msk [vmem:[#allocation2 + $0x181] sm:$0xff] %vm368_vm1, %v7619_v60  ;;  %7655 = vst.msk [vmem:[#allocation2 + $0x199] sm:$0xff] %vm368_vm1, %v7619_v60  ;;  %v22992_v37 = vld [vmem:[#allocation2 + $0x140] sm:$0xff] }
 0x408   : > { %7689 = vst.msk [vmem:[#allocation2 + $0x150] sm:$0x1] %vm424_vm2, %v7671_v21  ;;  %18484 = vmatmul.mubr.msk.f32.gmra.mxu0 %vm368_vm1, %v22954_v15  ;;  %18528 = vmatmul.mubr.msk.f32.gmra.mxu1 %vm368_vm1, %v22956_v3  ;;  %v22963_v63 = vld [vmem:[#allocation2 + $0x151] sm:$0xff]  ;;  %26477 = vst [vmem:[#allocation53_spill] sm:$0xff] %v22965_v59  ;;  %v8444_v21 = vld [vmem:[#allocation2 + $0x2] sm:$0xff] }
 0x409   : > { %v7708_v46 = vld [vmem:[#allocation2 + $0x178] sm:$0x1]  ;;  %18486 = vmatprep.mubr.msk.f32.mxu0 %vm368_vm1, %v22963_v63  ;;  %18530 = vmatprep.mubr.msk.f32.mxu1 %vm368_vm1, %v22965_v59  ;;  %26478 = vst [vmem:[#allocation93_spill] sm:$0xff] %v22972_v47  ;;  %26479 = vst [vmem:[#allocation62_spill] sm:$0xff] %v22974_v24 }
 0x40a   : > { %7726 = vst.msk [vmem:[#allocation2 + $0x179] sm:$0x1] %vm424_vm2, %v7708_v46  ;;  %v22983_v27 = vld [vmem:[#allocation2 + $0x138] sm:$0xff]  ;;  %26483 = vst [vmem:[#allocation97_spill] sm:$0xff] %v22992_v37 }
 0x40b   : > { %v7672_v0 = vld [vmem:[#allocation2 + $0x169] sm:$0x1]  ;;  %26481 = vst [vmem:[#allocation88_spill] sm:$0xff] %v22983_v27  ;;  %v22990_v19 = vld [vmem:[#allocation2 + $0x171] sm:$0xff] }
 0x40c   : > { %7690 = vst.msk [vmem:[#allocation2 + $0x168] sm:$0x1] %vm424_vm2, %v7672_v0  ;;  %18487 = vmatmul.mubr.msk.f32.gmra.mxu0 %vm368_vm1, %v22972_v47  ;;  %18531 = vmatmul.mubr.msk.f32.gmra.mxu1 %vm368_vm1, %v22974_v24  ;;  %v22981_v18 = vld [vmem:[#allocation2 + $0x169] sm:$0xff]  ;;  %26482 = vst [vmem:[#allocation58_spill] sm:$0xff] %v22990_v19  ;;  %v7710_v46 = vld [vmem:[#allocation2 + $0x1a8] sm:$0x1] }
 0x40d   : > { %26480 = vst [vmem:[#allocation35_spill] sm:$0xff] %v22981_v18  ;;  %v7709_v6 = vld [vmem:[#allocation2 + $0x190] sm:$0x1]  ;;  %18489 = vmatprep.mubr.msk.f32.mxu0 %vm368_vm1, %v22981_v18  ;;  %18533 = vmatprep.mubr.msk.f32.mxu1 %vm368_vm1, %v22983_v27  ;;  %v23005_v0 = vld [vmem:[#allocation2 + $0x158] sm:$0xff]  ;;  %7728 = vst.msk [vmem:[#allocation2 + $0x1a9] sm:$0x1] %vm424_vm2, %v7710_v46 }
 0x40e   : > { %7727 = vst.msk [vmem:[#allocation2 + $0x191] sm:$0x1] %vm424_vm2, %v7709_v6  ;;  %v7673_v39 = vld [vmem:[#allocation2 + $0x181] sm:$0x1]  ;;  %v7674_v51 = vld [vmem:[#allocation2 + $0x199] sm:$0x1] }
 0x40f   : > { %7691 = vst.msk [vmem:[#allocation2 + $0x180] sm:$0x1] %vm424_vm2, %v7673_v39  ;;  %v22999_v60 = vld [vmem:[#allocation2 + $0x150] sm:$0xff]  ;;  %7692 = vst.msk [vmem:[#allocation2 + $0x198] sm:$0x1] %vm424_vm2, %v7674_v51 }
 0x410   : > { %18490 = vmatmul.mubr.msk.f32.gmra.mxu0 %vm368_vm1, %v22990_v19  ;;  %18534 = vmatmul.mubr.msk.f32.gmra.mxu1 %vm368_vm1, %v22992_v37  ;;  %26484 = vst [vmem:[#allocation39_spill] sm:$0xff] %v22999_v60  ;;  %v8445_v6 = vld [vmem:[#allocation2 + $0xa] sm:$0xff]  ;;  %v23010_v39 = vld [vmem:[%s25802_s5 + $0x18] sm:$0xf]  ;;  %v23030_v19 = vld [vmem:[#allocation2 + $0x22] sm:$0xff] }
 0x411   : > { %18536 = vmatprep.mubr.msk.f32.mxu1 %vm368_vm1, %v22999_v60  ;;  %18544 = vmatprep.mubr.msk.f32.mxu0 %vm368_vm1, %v8444_v21  ;;  %v23022_v21 = vld [vmem:[#allocation2 + $0x1a] sm:$0xff]  ;;  %v23028_v46 = vld [vmem:[#allocation2 + $0x170] sm:$0xff] }
 0x412   : > { %v23048_v18 = vld [vmem:[#allocation2 + $0x4a] sm:$0xff]  ;;  %v23053_v47 = vld [vmem:[%s25802_s5 + $0x1c] sm:$0xf] }
 0x413   : > { %v23016_v51 = vld [vmem:[#allocation2 + $0x168] sm:$0xff] }
 0x414   : > { %18537 = vmatmul.mubr.msk.f32.gmra.mxu1 %vm368_vm1, %v23005_v0  ;;  %18545 = vmatmul.mubr.msk.f32.vlgmr.msra.gmra.mxu0 %vm368_vm1, %v8445_v6  ;;  %v23042_v6 = vld [vmem:[#allocation2 + $0x3a] sm:$0xff] }
 0x415   : > { %18643 = vmatpush3.msk.msra.mxu0 %vm642_vm0, %v22547_v56  ;;  %18539 = vmatprep.mubr.msk.f32.mxu1 %vm368_vm1, %v23016_v51  ;;  %v23036_v56 = vld [vmem:[#allocation2 + $0x32] sm:$0xff] }
 0x416   : > { %18547 = vmatprep.mubr.msk.f32.mxu0 %vm368_vm1, %v23022_v21  ;;  %18742 = vmatprep.subr.msk.mxu0 %vm642_vm0, %v23010_v39 }
 0x418   : > { %18540 = vmatmul.mubr.msk.f32.gmra.mxu1 %vm368_vm1, %v23028_v46  ;;  %18548 = vmatmul.mubr.msk.f32.gmra.mxu0 %vm368_vm1, %v23030_v19 }
 0x419   : > { %18550 = vmatprep.mubr.msk.f32.mxu0 %vm368_vm1, %v23036_v56  ;;  %18594 = vmatprep.mubr.msk.f32.mxu1 %vm368_vm1, %v22630_v28  ;;  %v23061_v28 = vld [vmem:[#allocation2 + $0x52] sm:$0xff] }
 0x41c   : > { %18551 = vmatmul.mubr.msk.f32.gmra.mxu0 %vm368_vm1, %v23042_v6  ;;  %18595 = vmatmul.mubr.msk.f32.vlgmr.msra.gmra.mxu1 %vm368_vm1, %v22652_v38  ;;  %v23069_v38 = vld [vmem:[#allocation2 + $0x62] sm:$0xff] }
 0x41d   : > { %18553 = vmatprep.mubr.msk.f32.mxu0 %vm368_vm1, %v23048_v18  ;;  %18597 = vmatprep.mubr.msk.f32.mxu1 %vm368_vm1, %v22669_v45  ;;  %v23081_v45 = vld [vmem:[#allocation2 + $0x7a] sm:$0xff] }
 0x41e   : > { %18693 = vmatpush3.msk.msra.mxu1 %vm642_vm0, %v22617_v41  ;;  %v23075_v41 = vld [vmem:[#allocation2 + $0x6a] sm:$0xff] }
 0x41f   : > { %18792 = vmatprep.subr.msk.mxu1 %vm642_vm0, %v23053_v47 }
 0x420   : > { %18554 = vmatmul.mubr.msk.f32.gmra.mxu0 %vm368_vm1, %v23061_v28  ;;  %18598 = vmatmul.mubr.msk.f32.gmra.mxu1 %vm368_vm1, %v22689_v13  ;;  %v23087_v13 = vld [vmem:[#allocation2 + $0x82] sm:$0xff] }
 0x421   : > { %18556 = vmatprep.mubr.msk.f32.mxu0 %vm368_vm1, %v23069_v38  ;;  %18600 = vmatprep.mubr.msk.f32.mxu1 %vm368_vm1, %v22704_v4  ;;  %v23093_v4 = vld [vmem:[#allocation2 + $0x92] sm:$0xff] }
 0x424   : > { %18557 = vmatmul.mubr.msk.f32.gmra.mxu0 %vm368_vm1, %v23075_v41  ;;  %18601 = vmatmul.mubr.msk.f32.gmra.mxu1 %vm368_vm1, %v22724_v48  ;;  %v23099_v48 = vld [vmem:[#allocation2 + $0x9a] sm:$0xff] }
 0x425   : > { %18559 = vmatprep.mubr.msk.f32.mxu0 %vm368_vm1, %v23081_v45  ;;  %18603 = vmatprep.mubr.msk.f32.mxu1 %vm368_vm1, %v22739_v20  ;;  %v23105_v20 = vld [vmem:[#allocation2 + $0xaa] sm:$0xff] }
 0x428   : > { %18560 = vmatmul.mubr.msk.f32.gmra.mxu0 %vm368_vm1, %v23087_v13  ;;  %18604 = vmatmul.mubr.msk.f32.gmra.mxu1 %vm368_vm1, %v22759_v1  ;;  %v23111_v1 = vld [vmem:[#allocation2 + $0xb2] sm:$0xff] }
 0x429   : > { %18562 = vmatprep.mubr.msk.f32.mxu0 %vm368_vm1, %v23093_v4  ;;  %18606 = vmatprep.mubr.msk.f32.mxu1 %vm368_vm1, %v22774_v55  ;;  %v23117_v55 = vld [vmem:[#allocation2 + $0xc2] sm:$0xff] }
 0x42c   : > { %18563 = vmatmul.mubr.msk.f32.gmra.mxu0 %vm368_vm1, %v23099_v48  ;;  %18607 = vmatmul.mubr.msk.f32.gmra.mxu1 %vm368_vm1, %v22794_v61  ;;  %v23123_v61 = vld [vmem:[#allocation2 + $0xca] sm:$0xff] }
 0x42d   : > { %18565 = vmatprep.mubr.msk.f32.mxu0 %vm368_vm1, %v23105_v20  ;;  %18609 = vmatprep.mubr.msk.f32.mxu1 %vm368_vm1, %v22809_v53  ;;  %v23129_v53 = vld [vmem:[#allocation2 + $0xda] sm:$0xff] }
 0x430   : > { %18566 = vmatmul.mubr.msk.f32.gmra.mxu0 %vm368_vm1, %v23111_v1  ;;  %18610 = vmatmul.mubr.msk.f32.gmra.mxu1 %vm368_vm1, %v22829_v43  ;;  %v23135_v43 = vld [vmem:[#allocation2 + $0xe2] sm:$0xff] }
 0x431   : > { %18568 = vmatprep.mubr.msk.f32.mxu0 %vm368_vm1, %v23117_v55  ;;  %18612 = vmatprep.mubr.msk.f32.mxu1 %vm368_vm1, %v22842_v36  ;;  %v23141_v36 = vld [vmem:[#allocation2 + $0xf2] sm:$0xff] }
 0x434   : > { %18569 = vmatmul.mubr.msk.f32.gmra.mxu0 %vm368_vm1, %v23123_v61  ;;  %18613 = vmatmul.mubr.msk.f32.gmra.mxu1 %vm368_vm1, %v22860_v8  ;;  %v23147_v8 = vld [vmem:[#allocation2 + $0xfa] sm:$0xff] }
 0x435   : > { %18571 = vmatprep.mubr.msk.f32.mxu0 %vm368_vm1, %v23129_v53  ;;  %18615 = vmatprep.mubr.msk.f32.mxu1 %vm368_vm1, %v22873_v2  ;;  %v23153_v2 = vld [vmem:[#allocation2 + $0x10a] sm:$0xff] }
 0x438   : > { %18572 = vmatmul.mubr.msk.f32.gmra.mxu0 %vm368_vm1, %v23135_v43  ;;  %18616 = vmatmul.mubr.msk.f32.gmra.mxu1 %vm368_vm1, %v22889_v44  ;;  %v23159_v44 = vld [vmem:[#allocation2 + $0x112] sm:$0xff] }
 0x439   : > { %18574 = vmatprep.mubr.msk.f32.mxu0 %vm368_vm1, %v23141_v36  ;;  %18618 = vmatprep.mubr.msk.f32.mxu1 %vm368_vm1, %v22899_v57  ;;  %v23165_v57 = vld [vmem:[#allocation2 + $0x122] sm:$0xff] }
 0x43c   : > { %18575 = vmatmul.mubr.msk.f32.gmra.mxu0 %vm368_vm1, %v23147_v8  ;;  %18619 = vmatmul.mubr.msk.f32.gmra.mxu1 %vm368_vm1, %v22912_v23  ;;  %v23171_v23 = vld [vmem:[#allocation2 + $0x12a] sm:$0xff] }
 0x43d   : > { %18577 = vmatprep.mubr.msk.f32.mxu0 %vm368_vm1, %v23153_v2  ;;  %18621 = vmatprep.mubr.msk.f32.mxu1 %vm368_vm1, %v22921_v14  ;;  %v23177_v14 = vld [vmem:[#allocation2 + $0x13a] sm:$0xff] }
 0x440   : > { %18578 = vmatmul.mubr.msk.f32.gmra.mxu0 %vm368_vm1, %v23159_v44  ;;  %18622 = vmatmul.mubr.msk.f32.gmra.mxu1 %vm368_vm1, %v22934_v42  ;;  %v23183_v42 = vld [vmem:[#allocation2 + $0x142] sm:$0xff] }
 0x441   : > { %18580 = vmatprep.mubr.msk.f32.mxu0 %vm368_vm1, %v23165_v57  ;;  %18624 = vmatprep.mubr.msk.f32.mxu1 %vm368_vm1, %v22943_v5  ;;  %v23189_v5 = vld [vmem:[#allocation2 + $0x152] sm:$0xff] }
 0x444   : > { %18581 = vmatmul.mubr.msk.f32.gmra.mxu0 %vm368_vm1, %v23171_v23  ;;  %18625 = vmatmul.mubr.msk.f32.gmra.mxu1 %vm368_vm1, %v22956_v3  ;;  %v23195_v3 = vld [vmem:[#allocation2 + $0x15a] sm:$0xff] }
 0x445   : > { %18583 = vmatprep.mubr.msk.f32.mxu0 %vm368_vm1, %v23177_v14  ;;  %18627 = vmatprep.mubr.msk.f32.mxu1 %vm368_vm1, %v22965_v59  ;;  %v23201_v59 = vld [vmem:[#allocation2 + $0x16a] sm:$0xff] }
 0x448   : > { %18584 = vmatmul.mubr.msk.f32.gmra.mxu0 %vm368_vm1, %v23183_v42  ;;  %18628 = vmatmul.mubr.msk.f32.gmra.mxu1 %vm368_vm1, %v22974_v24  ;;  %v23207_v24 = vld [vmem:[#allocation2 + $0x172] sm:$0xff] }
 0x449   : > { %18586 = vmatprep.mubr.msk.f32.mxu0 %vm368_vm1, %v23189_v5  ;;  %18630 = vmatprep.mubr.msk.f32.mxu1 %vm368_vm1, %v22983_v27  ;;  %v23219_v27 = vld [vmem:[%s25802_s5 + $0x20] sm:$0xf] }
 0x44c   : > { %18587 = vmatmul.mubr.msk.f32.gmra.mxu0 %vm368_vm1, %v23195_v3  ;;  %18631 = vmatmul.mubr.msk.f32.gmra.mxu1 %vm368_vm1, %v22992_v37  ;;  %v19479_v37 = vld [vmem:[#allocation2 + $0x19] sm:$0xff] }
 0x44d   : > { %18589 = vmatprep.mubr.msk.f32.mxu0 %vm368_vm1, %v23201_v59  ;;  %18633 = vmatprep.mubr.msk.f32.mxu1 %vm368_vm1, %v22999_v60  ;;  %v23225_v60 = vld [vmem:[#allocation2 + $0x180] sm:$0xff] }
 0x450   : > { %18590 = vmatmul.mubr.msk.f32.gmra.mxu0 %vm368_vm1, %v23207_v24  ;;  %18634 = vmatmul.mubr.msk.f32.gmra.mxu1 %vm368_vm1, %v23005_v0 }
 0x451   : > { %18636 = vmatprep.mubr.msk.f32.mxu1 %vm368_vm1, %v23016_v51  ;;  %18644 = vmatprep.mubr.msk.f32.mxu0 %vm368_vm1, %v19479_v37  ;;  %v23235_v37 = vld [vmem:[#allocation2 + $0x188] sm:$0xff] }
 0x454   : > { %18637 = vmatmul.mubr.msk.f32.gmra.mxu1 %vm368_vm1, %v23028_v46  ;;  %18645 = vmatmul.mubr.msk.f32.vlgmr.msra.gmra.mxu0 %vm368_vm1, %v22581_v54  ;;  %v26485_v54 = vld [vmem:[#allocation93_spill] sm:$0xff] }
 0x455   : > { %18743 = vmatpush3.msk.msra.mxu0 %vm642_vm0, %v23010_v39  ;;  %18639 = vmatprep.mubr.msk.f32.mxu1 %vm368_vm1, %v23225_v60  ;;  %v26499_v39 = vld [vmem:[#allocation12_spill] sm:$0xff] }
 0x456   : > { %18647 = vmatprep.mubr.msk.f32.mxu0 %vm368_vm1, %v22594_v40  ;;  %18842 = vmatprep.subr.msk.mxu0 %vm642_vm0, %v23219_v27  ;;  %v26486_v40 = vld [vmem:[#allocation35_spill] sm:$0xff] }
 0x458   : > { %18640 = vmatmul.mubr.msk.f32.gmra.mxu1 %vm368_vm1, %v23235_v37  ;;  %18648 = vmatmul.mubr.msk.f32.gmra.mxu0 %vm368_vm1, %v22611_v9  ;;  %v26487_v9 = vld [vmem:[#allocation58_spill] sm:$0xff] }
 0x459   : > { %18650 = vmatprep.mubr.msk.f32.mxu0 %vm368_vm1, %v22628_v34  ;;  %18694 = vmatprep.mubr.msk.f32.mxu1 %vm368_vm1, %v23022_v21  ;;  %v23347_v34 = vld [vmem:[#allocation2 + $0x181] sm:$0xff]  ;;  %v10402_v21 = vld [vmem:[#allocation2 + $0x91] sm:$0xff] }
 0x45c   : > { %18651 = vmatmul.mubr.msk.f32.gmra.mxu0 %vm368_vm1, %v22650_v33  ;;  %18695 = vmatmul.mubr.msk.f32.vlgmr.msra.gmra.mxu1 %vm368_vm1, %v23030_v19  ;;  %v23353_v33 = vld [vmem:[#allocation2 + $0x189] sm:$0xff] }
 0x45d   : > { %18653 = vmatprep.mubr.msk.f32.mxu0 %vm368_vm1, %v22667_v12  ;;  %18697 = vmatprep.mubr.msk.f32.mxu1 %vm368_vm1, %v23036_v56  ;;  %v26488_v12 = vld [vmem:[#allocation86_spill] sm:$0xff] }
 0x45e   : > { %18793 = vmatpush3.msk.msra.mxu1 %vm642_vm0, %v23053_v47 }
 0x460   : > { %18654 = vmatmul.mubr.msk.f32.gmra.mxu0 %vm368_vm1, %v22687_v16  ;;  %18698 = vmatmul.mubr.msk.f32.gmra.mxu1 %vm368_vm1, %v23042_v6 }
 0x461   : > { %18656 = vmatprep.mubr.msk.f32.mxu0 %vm368_vm1, %v22702_v22  ;;  %18700 = vmatprep.mubr.msk.f32.mxu1 %vm368_vm1, %v23048_v18  ;;  %v23367_v22 = vld [vmem:[#allocation2 + $0x182] sm:$0xff] }
 0x464   : > { %18657 = vmatmul.mubr.msk.f32.gmra.mxu0 %vm368_vm1, %v22722_v35  ;;  %18701 = vmatmul.mubr.msk.f32.gmra.mxu1 %vm368_vm1, %v23061_v28 }
 0x465   : > { %18659 = vmatprep.mubr.msk.f32.mxu0 %vm368_vm1, %v22737_v25  ;;  %18703 = vmatprep.mubr.msk.f32.mxu1 %vm368_vm1, %v23069_v38 }
 0x468   : > { %18660 = vmatmul.mubr.msk.f32.gmra.mxu0 %vm368_vm1, %v22757_v17  ;;  %18704 = vmatmul.mubr.msk.f32.gmra.mxu1 %vm368_vm1, %v23075_v41  ;;  %v10394_v17 = vld [vmem:[#allocation2 + $0x31] sm:$0xff] }
 0x469   : > { %18662 = vmatprep.mubr.msk.f32.mxu0 %vm368_vm1, %v22772_v31  ;;  %18706 = vmatprep.mubr.msk.f32.mxu1 %vm368_vm1, %v23081_v45 }
 0x46c   : > { %18663 = vmatmul.mubr.msk.f32.gmra.mxu0 %vm368_vm1, %v22792_v26  ;;  %18707 = vmatmul.mubr.msk.f32.gmra.mxu1 %vm368_vm1, %v23087_v13  ;;  %v26489_v13 = vld [vmem:[#allocation51_spill] sm:$0xff] }
 0x46d   : > { %18665 = vmatprep.mubr.msk.f32.mxu0 %vm368_vm1, %v22807_v29  ;;  %18709 = vmatprep.mubr.msk.f32.mxu1 %vm368_vm1, %v23093_v4  ;;  %v26490_v4 = vld [vmem:[#allocation78_spill] sm:$0xff]  ;;  %v26493_v29 = vld [vmem:[#allocation84_spill] sm:$0xff] }
 0x470   : > { %18666 = vmatmul.mubr.msk.f32.gmra.mxu0 %vm368_vm1, %v22827_v10  ;;  %18710 = vmatmul.mubr.msk.f32.gmra.mxu1 %vm368_vm1, %v23099_v48  ;;  %v23375_v48 = vld [vmem:[#allocation2 + $0x18a] sm:$0xff] }
 0x471   : > { %18668 = vmatprep.mubr.msk.f32.mxu0 %vm368_vm1, %v22840_v58  ;;  %18712 = vmatprep.mubr.msk.f32.mxu1 %vm368_vm1, %v23105_v20  ;;  %v26491_v20 = vld [vmem:[#allocation38_spill] sm:$0xff] }
 0x474   : > { %18669 = vmatmul.mubr.msk.f32.gmra.mxu0 %vm368_vm1, %v22858_v52  ;;  %18713 = vmatmul.mubr.msk.f32.gmra.mxu1 %vm368_vm1, %v23111_v1  ;;  %v26492_v1 = vld [vmem:[#allocation7_spill] sm:$0xff] }
 0x475   : > { %18671 = vmatprep.mubr.msk.f32.mxu0 %vm368_vm1, %v22871_v49  ;;  %18715 = vmatprep.mubr.msk.f32.mxu1 %vm368_vm1, %v23117_v55  ;;  %v10395_v55 = vld [vmem:[#allocation2 + $0x39] sm:$0xff] }
 0x478   : > { %18672 = vmatmul.mubr.msk.f32.gmra.mxu0 %vm368_vm1, %v22887_v62  ;;  %18716 = vmatmul.mubr.msk.f32.gmra.mxu1 %vm368_vm1, %v23123_v61  ;;  %v26495_v62 = vld [vmem:[#allocation15_spill] sm:$0xff] }
 0x479   : > { %18674 = vmatprep.mubr.msk.f32.mxu0 %vm368_vm1, %v22897_v30  ;;  %18718 = vmatprep.mubr.msk.f32.mxu1 %vm368_vm1, %v23129_v53  ;;  %v10396_v53 = vld [vmem:[#allocation2 + $0x49] sm:$0xff] }
 0x47c   : > { %18675 = vmatmul.mubr.msk.f32.gmra.mxu0 %vm368_vm1, %v22910_v11  ;;  %18719 = vmatmul.mubr.msk.f32.gmra.mxu1 %vm368_vm1, %v23135_v43  ;;  %v26494_v43 = vld [vmem:[#allocation18_spill] sm:$0xff] }
 0x47d   : > { %18677 = vmatprep.mubr.msk.f32.mxu0 %vm368_vm1, %v22919_v7  ;;  %18721 = vmatprep.mubr.msk.f32.mxu1 %vm368_vm1, %v23141_v36 }
 0x480   : > { %18678 = vmatmul.mubr.msk.f32.gmra.mxu0 %vm368_vm1, %v22932_v32  ;;  %18722 = vmatmul.mubr.msk.f32.gmra.mxu1 %vm368_vm1, %v23147_v8  ;;  %v10397_v8 = vld [vmem:[#allocation2 + $0x51] sm:$0xff] }
 0x481   : > { %18680 = vmatprep.mubr.msk.f32.mxu0 %vm368_vm1, %v22941_v50  ;;  %18724 = vmatprep.mubr.msk.f32.mxu1 %vm368_vm1, %v23153_v2  ;;  %v26497_v50 = vld [vmem:[#allocation36_spill] sm:$0xff] }
 0x484   : > { %18681 = vmatmul.mubr.msk.f32.gmra.mxu0 %vm368_vm1, %v22954_v15  ;;  %18725 = vmatmul.mubr.msk.f32.gmra.mxu1 %vm368_vm1, %v23159_v44  ;;  %v10398_v44 = vld [vmem:[#allocation2 + $0x61] sm:$0xff] }
 0x485   : > { %18683 = vmatprep.mubr.msk.f32.mxu0 %vm368_vm1, %v22963_v63  ;;  %18727 = vmatprep.mubr.msk.f32.mxu1 %vm368_vm1, %v23165_v57  ;;  %v26496_v57 = vld [vmem:[#allocation60_spill] sm:$0xff] }
 0x488   : > { %18684 = vmatmul.mubr.msk.f32.gmra.mxu0 %vm368_vm1, %v26485_v54  ;;  %18728 = vmatmul.mubr.msk.f32.gmra.mxu1 %vm368_vm1, %v23171_v23  ;;  %v26500_v54 = vld [vmem:[#allocation9_spill] sm:$0xff] }
 0x489   : > { %18686 = vmatprep.mubr.msk.f32.mxu0 %vm368_vm1, %v26486_v40  ;;  %18730 = vmatprep.mubr.msk.f32.mxu1 %vm368_vm1, %v23177_v14  ;;  %v10399_v14 = vld [vmem:[#allocation2 + $0x69] sm:$0xff] }
 0x48b   : > { %v18446_v16 = vpop.f32.mrf.mxu0 }
 0x48c   : > { %18687 = vmatmul.mubr.msk.f32.gmra.mxu0 %vm368_vm1, %v26487_v9  ;;  %18731 = vmatmul.mubr.msk.f32.gmra.mxu1 %vm368_vm1, %v23183_v42 }
 0x48d   : > { %18689 = vmatprep.mubr.msk.f32.mxu0 %vm368_vm1, %v23347_v34  ;;  %18733 = vmatprep.mubr.msk.f32.mxu1 %vm368_vm1, %v23189_v5  ;;  %v7961_v35 = vpop.f32.mrf.mxu0  ;;  %v10400_v5 = vld [vmem:[#allocation2 + $0x79] sm:$0xff] }
 0x48f   : > { %v18449_v25 = vpop.f32.mrf.mxu0 }
 0x490   : > { %18690 = vmatmul.mubr.msk.f32.gmra.mxu0 %vm368_vm1, %v23353_v33  ;;  %18734 = vmatmul.mubr.msk.f32.gmra.mxu1 %vm368_vm1, %v23195_v3  ;;  %v26498_v3 = vld [vmem:[#allocation22_spill] sm:$0xff] }
 0x491   : > { %18736 = vmatprep.mubr.msk.f32.mxu1 %vm368_vm1, %v23201_v59  ;;  %18744 = vmatprep.mubr.msk.f32.mxu0 %vm368_vm1, %v26488_v12  ;;  %v7971_v31 = vpop.f32.mrf.mxu0 }
 0x493   : > { %v18452_v26 = vpop.f32.mrf.mxu0 }
 0x494   : > { %18737 = vmatmul.mubr.msk.f32.gmra.mxu1 %vm368_vm1, %v23207_v24  ;;  %18745 = vmatmul.mubr.msk.f32.vlgmr.msra.gmra.mxu0 %vm368_vm1, %v26489_v13  ;;  %v10401_v24 = vld [vmem:[#allocation2 + $0x81] sm:$0xff] }
 0x495   : > { %18843 = vmatpush3.msk.msra.mxu0 %vm642_vm0, %v23219_v27  ;;  %18739 = vmatprep.mubr.msk.f32.mxu1 %vm368_vm1, %v23367_v22  ;;  %v18496_v61 = vpop.f32.mrf.mxu1  ;;  %v7981_v58 = vpop.f32.mrf.mxu0 }
 0x496   : > { %18747 = vmatprep.mubr.msk.f32.mxu0 %vm368_vm1, %v26490_v4  ;;  %v23387_v10 = vadd.f32 %v18496_v61, %v18446_v16  ;;  %v10403_v16 = vld [vmem:[#allocation2 + $0x99] sm:$0xff] }
 0x497   : > { %v8285_v36 = vpop.f32.mrf.mxu1 }
 0x498   : > { %18740 = vmatmul.mubr.msk.f32.gmra.mxu1 %vm368_vm1, %v23375_v48  ;;  %18748 = vmatmul.mubr.msk.f32.gmra.mxu0 %vm368_vm1, %v26491_v20  ;;  %v23392_v52 = vadd.f32 %v8285_v36, %v7961_v35  ;;  %v26501_v35 = vld [vmem:[#allocation48_spill] sm:$0xff]  ;;  %v26504_v36 = vld [vmem:[#allocation83_spill] sm:$0xff] }
 0x499   : > { %18750 = vmatprep.mubr.msk.f32.mxu0 %vm368_vm1, %v26492_v1  ;;  %18794 = vmatprep.mubr.msk.f32.mxu1 %vm368_vm1, %v10394_v17  ;;  %v18455_v49 = vpop.f32.mrf.mxu0  ;;  %v26502_v17 = vld [vmem:[#allocation50_spill] sm:$0xff] }
 0x49a   : > { %v18499_v2 = vpop.f32.mrf.mxu1 }
 0x49b   : > { %v23397_v30 = vadd.f32 %v18499_v2, %v18449_v25  ;;  %v7991_v11 = vpop.f32.mrf.mxu0  ;;  %v10404_v25 = vld [vmem:[#allocation2 + $0xa9] sm:$0xff] }
 0x49c   : > { %18751 = vmatmul.mubr.msk.f32.gmra.mxu0 %vm368_vm1, %v26493_v29  ;;  %18795 = vmatmul.mubr.msk.f32.vlgmr.msra.gmra.mxu1 %vm368_vm1, %v10395_v55  ;;  %v8295_v23 = vpop.f32.mrf.mxu1 }
 0x49d   : > { %18753 = vmatprep.mubr.msk.f32.mxu0 %vm368_vm1, %v26494_v43  ;;  %18797 = vmatprep.mubr.msk.f32.mxu1 %vm368_vm1, %v10396_v53  ;;  %v23402_v7 = vadd.f32 %v8295_v23, %v7971_v31  ;;  %v26503_v53 = vld [vmem:[#allocation20_spill] sm:$0xff]  ;;  %v10406_v43 = vld [vmem:[#allocation2 + $0xc1] sm:$0xff]  ;;  %v10408_v23 = vld [vmem:[#allocation2 + $0xd9] sm:$0xff] }
 0x49e   : > { %v18458_v32 = vpop.f32.mrf.mxu0 }
 0x49f   : > { %v18502_v42 = vpop.f32.mrf.mxu1 }
 0x4a0   : > { %18754 = vmatmul.mubr.msk.f32.gmra.mxu0 %vm368_vm1, %v26495_v62  ;;  %18798 = vmatmul.mubr.msk.f32.gmra.mxu1 %vm368_vm1, %v10397_v8  ;;  %v23407_v15 = vadd.f32 %v18502_v42, %v18452_v26  ;;  %v8001_v63 = vpop.f32.mrf.mxu0  ;;  %v10405_v26 = vld [vmem:[#allocation2 + $0xb1] sm:$0xff]  ;;  %v10407_v62 = vld [vmem:[#allocation2 + $0xc9] sm:$0xff] }
 0x4a1   : > { %18756 = vmatprep.mubr.msk.f32.mxu0 %vm368_vm1, %v26496_v57  ;;  %18800 = vmatprep.mubr.msk.f32.mxu1 %vm368_vm1, %v10398_v44  ;;  %v8305_v59 = vpop.f32.mrf.mxu1 }
 0x4a2   : > { %v23412_v47 = vadd.f32 %v8305_v59, %v7981_v58 }
 0x4a3   : > { %v18461_v27 = vpop.f32.mrf.mxu0 }
 0x4a4   : > { %18757 = vmatmul.mubr.msk.f32.gmra.mxu0 %vm368_vm1, %v26497_v50  ;;  %18801 = vmatmul.mubr.msk.f32.gmra.mxu1 %vm368_vm1, %v10399_v14  ;;  %v18505_v19 = vpop.f32.mrf.mxu1 }
 0x4a5   : > { %18759 = vmatprep.mubr.msk.f32.mxu0 %vm368_vm1, %v26498_v3  ;;  %18803 = vmatprep.mubr.msk.f32.mxu1 %vm368_vm1, %v10400_v5  ;;  %v23417_v41 = vadd.f32 %v18505_v19, %v18455_v49  ;;  %v8011_v40 = vpop.f32.mrf.mxu0  ;;  %v10409_v3 = vld [vmem:[#allocation2 + $0xe1] sm:$0xff] }
 0x4a6   : > { %v8315_v9 = vpop.f32.mrf.mxu1 }
 0x4a7   : > { %v23422_v12 = vadd.f32 %v8315_v9, %v7991_v11  ;;  %v26505_v11 = vld [vmem:[#allocation33_spill] sm:$0xff] }
 0x4a8   : > { %18760 = vmatmul.mubr.msk.f32.gmra.mxu0 %vm368_vm1, %v26499_v39  ;;  %18804 = vmatmul.mubr.msk.f32.gmra.mxu1 %vm368_vm1, %v10401_v24  ;;  %v18464_v13 = vpop.f32.mrf.mxu0  ;;  %v18508_v4 = vpop.f32.mrf.mxu1  ;;  %v26507_v24 = vld [vmem:[#allocation41_spill] sm:$0xff] }
 0x4a9   : > { %18762 = vmatprep.mubr.msk.f32.mxu0 %vm368_vm1, %v26500_v54  ;;  %18806 = vmatprep.mubr.msk.f32.mxu1 %vm368_vm1, %v10402_v21  ;;  %v23427_v20 = vadd.f32 %v18508_v4, %v18458_v32  ;;  %v26506_v32 = vld [vmem:[#allocation46_spill] sm:$0xff]  ;;  %v26508_v39 = vld [vmem:[#allocation53_spill] sm:$0xff] }
 0x4aa   : > { %v8021_v1 = vpop.f32.mrf.mxu0  ;;  %v8325_v31 = vpop.f32.mrf.mxu1  ;;  %v10411_v9 = vld [vmem:[#allocation2 + $0xf9] sm:$0xff]  ;;  %v26509_v4 = vld [vmem:[#allocation62_spill] sm:$0xff] }
 0x4ab   : > { %v23432_v55 = vadd.f32 %v8325_v31, %v8001_v63 }
 0x4ac   : > { %18763 = vmatmul.mubr.msk.f32.gmra.mxu0 %vm368_vm1, %v26501_v35  ;;  %18807 = vmatmul.mubr.msk.f32.gmra.mxu1 %vm368_vm1, %v10403_v16  ;;  %v10412_v35 = vld [vmem:[#allocation2 + $0x109] sm:$0xff] }
 0x4ad   : > { %18765 = vmatprep.mubr.msk.f32.mxu0 %vm368_vm1, %v26502_v17  ;;  %18809 = vmatprep.mubr.msk.f32.mxu1 %vm368_vm1, %v10404_v25  ;;  %v18467_v61 = vpop.f32.mrf.mxu0  ;;  %v26510_v17 = vld [vmem:[#allocation88_spill] sm:$0xff] }
 0x4ae   : > { %v18511_v29 = vpop.f32.mrf.mxu1 }
 0x4af   : > { %v23437_v58 = vadd.f32 %v18511_v29, %v18461_v27  ;;  %v8031_v8 = vpop.f32.mrf.mxu0  ;;  %v10410_v27 = vld [vmem:[#allocation2 + $0xf1] sm:$0xff] }
 0x4b0   : > { %18766 = vmatmul.mubr.msk.f32.gmra.mxu0 %vm368_vm1, %v26503_v53  ;;  %18810 = vmatmul.mubr.msk.f32.gmra.mxu1 %vm368_vm1, %v10405_v26  ;;  %v8335_v49 = vpop.f32.mrf.mxu1  ;;  %v10413_v26 = vld [vmem:[#allocation2 + $0x111] sm:$0xff]  ;;  %v26511_v53 = vld [vmem:[#allocation97_spill] sm:$0xff] }
 0x4b1   : > { %18768 = vmatprep.mubr.msk.f32.mxu0 %vm368_vm1, %v26504_v36  ;;  %18812 = vmatprep.mubr.msk.f32.mxu1 %vm368_vm1, %v10406_v43  ;;  %v23442_v2 = vadd.f32 %v8335_v49, %v8011_v40  ;;  %v10414_v43 = vld [vmem:[#allocation2 + $0x121] sm:$0xff] }
 0x4b3   : > { %v18470_v44 = vpop.f32.mrf.mxu0 }
 0x4b4   : > { %v18514_v57 = vpop.f32.mrf.mxu1  ;;  %18769 = vmatmul.mubr.msk.f32.gmra.mxu0 %vm368_vm1, %v26505_v11  ;;  %18813 = vmatmul.mubr.msk.f32.gmra.mxu1 %vm368_vm1, %v10407_v62 }
 0x4b5   : > { %v23447_v14 = vadd.f32 %v18514_v57, %v18464_v13  ;;  %18771 = vmatprep.mubr.msk.f32.mxu0 %vm368_vm1, %v26506_v32  ;;  %18815 = vmatprep.mubr.msk.f32.mxu1 %vm368_vm1, %v10408_v23  ;;  %v23452_v42 = vpop.f32.mrf.mxu0  ;;  %v10416_v23 = vld [vmem:[#allocation2 + $0x139] sm:$0xff] }
 0x4b6   : > { %v8345_v50 = vpop.f32.mrf.mxu1 }
 0x4b7   : > { %v23454_v5 = vadd.f32 %v8345_v50, %v8021_v1 }
 0x4b8   : > { %v18473_v63 = vpop.f32.mrf.mxu0  ;;  %v18517_v59 = vpop.f32.mrf.mxu1  ;;  %18772 = vmatmul.mubr.msk.f32.gmra.mxu0 %vm368_vm1, %v26507_v24  ;;  %18816 = vmatmul.mubr.msk.f32.gmra.mxu1 %vm368_vm1, %v10409_v3 }
 0x4b9   : > { %v23459_v19 = vadd.f32 %v18517_v59, %v18467_v61  ;;  %18774 = vmatprep.mubr.msk.f32.mxu0 %vm368_vm1, %v26508_v39  ;;  %18818 = vmatprep.mubr.msk.f32.mxu1 %vm368_vm1, %v10410_v27 }
 0x4ba   : > { %v23464_v21 = vpop.f32.mrf.mxu0  ;;  %v8355_v54 = vpop.f32.mrf.mxu1 }
 0x4bb   : > { %v23466_v40 = vadd.f32 %v8355_v54, %v8031_v8  ;;  %v26512_v8 = vld [vmem:[#allocation39_spill] sm:$0xff]  ;;  %v10419_v54 = vld [vmem:[#allocation2 + $0x159] sm:$0xff] }
 0x4bc   : > { %v18476_v16 = vpop.f32.mrf.mxu0  ;;  %v18520_v13 = vpop.f32.mrf.mxu1  ;;  %18775 = vmatmul.mubr.msk.f32.gmra.mxu0 %vm368_vm1, %v26509_v4  ;;  %18819 = vmatmul.mubr.msk.f32.gmra.mxu1 %vm368_vm1, %v10411_v9 }
 0x4bd   : > { %v23471_v25 = vadd.f32 %v18520_v13, %v18470_v44  ;;  %18777 = vmatprep.mubr.msk.f32.mxu0 %vm368_vm1, %v26510_v17  ;;  %18821 = vmatprep.mubr.msk.f32.mxu1 %vm368_vm1, %v10412_v35  ;;  %v10415_v44 = vld [vmem:[#allocation2 + $0x129] sm:$0xff]  ;;  %v10035_v17 = vld [vmem:[#allocation2 + $0x1a0] sm:$0xff] }
 0x4be   : > { %v23476_v1 = vpop.f32.mrf.mxu0  ;;  %v23478_v31 = vpop.f32.mrf.mxu1  ;;  %v10420_v13 = vld [vmem:[#allocation2 + $0x169] sm:$0xff] }
 0x4c0   : > { %v18479_v61 = vpop.f32.mrf.mxu0  ;;  %v18523_v29 = vpop.f32.mrf.mxu1  ;;  %18778 = vmatmul.mubr.msk.f32.gmra.mxu0 %vm368_vm1, %v26511_v53  ;;  %18822 = vmatmul.mubr.msk.f32.gmra.mxu1 %vm368_vm1, %v10413_v26  ;;  %v10421_v26 = vld [vmem:[#allocation2 + $0x171] sm:$0xff] }
 0x4c1   : > { %v23483_v36 = vadd.f32 %v18523_v29, %v18473_v63  ;;  %18780 = vmatprep.mubr.msk.f32.mxu0 %vm368_vm1, %v26512_v8  ;;  %18824 = vmatprep.mubr.msk.f32.mxu1 %vm368_vm1, %v10414_v43  ;;  %v10417_v63 = vld [vmem:[#allocation2 + $0x141] sm:$0xff] }
 0x4c2   : > { %v23488_v49 = vpop.f32.mrf.mxu0  ;;  %v23490_v62 = vpop.f32.mrf.mxu1 }
 0x4c4   : > { %v18482_v57 = vpop.f32.mrf.mxu0  ;;  %v18526_v11 = vpop.f32.mrf.mxu1  ;;  %18781 = vmatmul.mubr.msk.f32.gmra.mxu0 %vm368_vm1, %v23005_v0  ;;  %18825 = vmatmul.mubr.msk.f32.gmra.mxu1 %vm368_vm1, %v10415_v44  ;;  %v10418_v0 = vld [vmem:[#allocation2 + $0x151] sm:$0xff] }
 0x4c5   : > { %v23495_v32 = vadd.f32 %v18526_v11, %v18476_v16  ;;  %18783 = vmatprep.mubr.msk.f32.mxu0 %vm368_vm1, %v23016_v51  ;;  %18827 = vmatprep.mubr.msk.f32.mxu1 %vm368_vm1, %v10416_v23 }
 0x4c6   : > { %v23500_v50 = vpop.f32.mrf.mxu0  ;;  %v23502_v3 = vpop.f32.mrf.mxu1 }
 0x4c7   : > { %26513 = vst [vmem:[#allocation11_spill] sm:$0xff] %v23500_v50 }
 0x4c8   : > { %v18485_v59 = vpop.f32.mrf.mxu0  ;;  %v18529_v24 = vpop.f32.mrf.mxu1  ;;  %18784 = vmatmul.mubr.msk.f32.gmra.mxu0 %vm368_vm1, %v23028_v46  ;;  %18828 = vmatmul.mubr.msk.f32.gmra.mxu1 %vm368_vm1, %v10417_v63  ;;  %v10034_v46 = vld [vmem:[#allocation2 + $0x198] sm:$0xff] }
 0x4c9   : > { %v23507_v27 = vadd.f32 %v18529_v24, %v18479_v61  ;;  %18786 = vmatprep.mubr.msk.f32.mxu0 %vm368_vm1, %v23225_v60  ;;  %18830 = vmatprep.mubr.msk.f32.mxu1 %vm368_vm1, %v10418_v0 }
 0x4ca   : > { %v23512_v51 = vpop.f32.mrf.mxu0  ;;  %v23514_v39 = vpop.f32.mrf.mxu1 }
 0x4cb   : > { %26514 = vst [vmem:[#allocation102_spill] sm:$0xff] %v23512_v51 }
 0x4cc   : > { %v18488_v9 = vpop.f32.mrf.mxu0  ;;  %v18532_v16 = vpop.f32.mrf.mxu1  ;;  %18787 = vmatmul.mubr.msk.f32.gmra.mxu0 %vm368_vm1, %v23235_v37  ;;  %18831 = vmatmul.mubr.msk.f32.gmra.mxu1 %vm368_vm1, %v10419_v54  ;;  %v10789_v54 = vld [vmem:[#allocation2 + $0x6a] sm:$0xff] }
 0x4cd   : > { %v23519_v4 = vadd.f32 %v18532_v16, %v18482_v57  ;;  %18789 = vmatprep.mubr.msk.f32.mxu0 %vm368_vm1, %v10034_v46  ;;  %18833 = vmatprep.mubr.msk.f32.mxu1 %vm368_vm1, %v10420_v13  ;;  %v10424_v57 = vld [vmem:[#allocation2 + $0x199] sm:$0xff] }
 0x4ce   : > { %v23523_v60 = vpop.f32.mrf.mxu0  ;;  %v23525_v35 = vpop.f32.mrf.mxu1 }
 0x4cf   : > { %26515 = vst [vmem:[#allocation55_spill] sm:$0xff] %v23523_v60  ;;  %26516 = vst [vmem:[#allocation8_spill] sm:$0xff] %v23525_v35 }
 0x4d0   : > { %v18491_v61 = vpop.f32.mrf.mxu0  ;;  %v18535_v29 = vpop.f32.mrf.mxu1  ;;  %18790 = vmatmul.mubr.msk.f32.gmra.mxu0 %vm368_vm1, %v10035_v17  ;;  %18834 = vmatmul.mubr.msk.f32.gmra.mxu1 %vm368_vm1, %v10421_v26 }
 0x4d1   : > { %v23529_v37 = vadd.f32 %v18535_v29, %v18485_v59  ;;  %18836 = vmatprep.mubr.msk.f32.mxu1 %vm368_vm1, %v23347_v34  ;;  %18844 = vmatprep.mubr.msk.f32.mxu0 %vm368_vm1, %v23036_v56 }
 0x4d2   : > { %v23535_v53 = vpop.f32.mrf.mxu0  ;;  %v23537_v43 = vpop.f32.mrf.mxu1 }
 0x4d3   : > { %26517 = vst [vmem:[#allocation6_spill] sm:$0xff] %v23535_v53  ;;  %26518 = vst [vmem:[#allocation14_spill] sm:$0xff] %v23537_v43 }
 0x4d4   : > { %v18538_v8 = vpop.f32.mrf.mxu1  ;;  %v18546_v44 = vpop.f32.mrf.mxu0  ;;  %18837 = vmatmul.mubr.msk.f32.gmra.mxu1 %vm368_vm1, %v23353_v33  ;;  %18845 = vmatmul.mubr.msk.f32.vlgmr.msra.gmra.mxu0 %vm368_vm1, %v23042_v6  ;;  %v10425_v33 = vld [vmem:[#allocation2 + $0x1a1] sm:$0xff] }
 0x4d5   : > { %v23543_v11 = vadd.f32 %v18538_v8, %v18488_v9  ;;  %v8803_v34 = vadd.f32 %v18546_v44, %v23387_v10  ;;  %18839 = vmatprep.mubr.msk.f32.mxu1 %vm368_vm1, %v10424_v57  ;;  %18847 = vmatprep.mubr.msk.f32.mxu0 %vm368_vm1, %v23048_v18 }
 0x4d6   : > { %v23549_v56 = vpop.f32.mrf.mxu1  ;;  %v8643_v23 = vpop.f32.mrf.mxu0 }
 0x4d7   : > { %26519 = vst [vmem:[#allocation17_spill] sm:$0xff] %v23549_v56  ;;  %v23552_v63 = vadd.f32 %v8643_v23, %v23392_v52  ;;  %v10794_v23 = vld [vmem:[#allocation2 + $0xaa] sm:$0xff] }
 0x4d8   : > { %v18541_v59 = vpop.f32.mrf.mxu1  ;;  %v18549_v24 = vpop.f32.mrf.mxu0  ;;  %18840 = vmatmul.mubr.msk.f32.gmra.mxu1 %vm368_vm1, %v10425_v33  ;;  %18848 = vmatmul.mubr.msk.f32.gmra.mxu0 %vm368_vm1, %v23061_v28 }
 0x4d9   : > { %v23557_v6 = vadd.f32 %v18541_v59, %v18491_v61  ;;  %v8805_v10 = vadd.f32 %v18549_v24, %v23397_v30  ;;  %18850 = vmatprep.mubr.msk.f32.mxu0 %vm368_vm1, %v23069_v38  ;;  %v10792_v61 = vld [vmem:[#allocation2 + $0x92] sm:$0xff] }
 0x4da   : > { %v23562_v18 = vpop.f32.mrf.mxu1  ;;  %v8653_v0 = vpop.f32.mrf.mxu0 }
 0x4db   : > { %26520 = vst [vmem:[#allocation95_spill] sm:$0xff] %v23562_v18  ;;  %v23565_v52 = vadd.f32 %v8653_v0, %v23402_v7  ;;  %v10791_v7 = vld [vmem:[#allocation2 + $0x82] sm:$0xff]  ;;  %v10795_v0 = vld [vmem:[#allocation2 + $0xb2] sm:$0xff] }
 0x4dc   : > { %v18552_v9 = vpop.f32.mrf.mxu0  ;;  %v18596_v16 = vpop.f32.mrf.mxu1  ;;  %18851 = vmatmul.mubr.msk.f32.gmra.mxu0 %vm368_vm1, %v10789_v54 }
 0x4dd   : > { %v8807_v28 = vadd.f32 %v18552_v9, %v23407_v15  ;;  %v23569_v46 = vadd.f32 %v18596_v16, %v8803_v34  ;;  %18853 = vmatprep.mubr.msk.f32.mxu0 %vm368_vm1, %v23081_v45  ;;  %v10796_v9 = vld [vmem:[#allocation2 + $0xc2] sm:$0xff] }
 0x4de   : > { %v8663_v30 = vpop.f32.mrf.mxu0  ;;  %v23573_v38 = vpop.f32.mrf.mxu1 }
 0x4df   : > { %v23576_v13 = vadd.f32 %v8663_v30, %v23412_v47  ;;  %v10793_v47 = vld [vmem:[#allocation2 + $0x9a] sm:$0xff] }
 0x4e0   : > { %v18555_v17 = vpop.f32.mrf.mxu0  ;;  %v18599_v26 = vpop.f32.mrf.mxu1  ;;  %18854 = vmatmul.mubr.msk.f32.gmra.mxu0 %vm368_vm1, %v10791_v7 }
 0x4e1   : > { %v8809_v29 = vadd.f32 %v18555_v17, %v23417_v41  ;;  %v23580_v15 = vadd.f32 %v18599_v26, %v8805_v10  ;;  %18856 = vmatprep.mubr.msk.f32.mxu0 %vm368_vm1, %v10792_v61  ;;  %v16044_v41 = vld [vmem:[%s25804_s7 + $0x4] sm:$0xf]  ;;  %v10797_v17 = vld [vmem:[#allocation2 + $0xca] sm:$0xff] }
 0x4e2   : > { %v8673_v8 = vpop.f32.mrf.mxu0  ;;  %v23583_v45 = vpop.f32.mrf.mxu1  ;;  %18892 = vmatprep.subr.msk.mxu1 %vm642_vm0, %v16044_v41 }
 0x4e3   : > { %v23586_v44 = vadd.f32 %v8673_v8, %v23422_v12  ;;  %18893 = vmatpush3.msk.msra.mxu1 %vm642_vm0, %v16044_v41  ;;  %v10798_v8 = vld [vmem:[#allocation2 + $0xda] sm:$0xff] }
 0x4e4   : > { %v18558_v57 = vpop.f32.mrf.mxu0  ;;  %v18602_v34 = vpop.f32.mrf.mxu1  ;;  %18857 = vmatmul.mubr.msk.f32.gmra.mxu0 %vm368_vm1, %v10793_v47 }
 0x4e5   : > { %v8811_v33 = vadd.f32 %v18558_v57, %v23427_v20  ;;  %v23590_v59 = vadd.f32 %v18602_v34, %v8807_v28  ;;  %18859 = vmatprep.mubr.msk.f32.mxu0 %vm368_vm1, %v10794_v23 }
 0x4e6   : > { %v8683_v24 = vpop.f32.mrf.mxu0  ;;  %v23596_v10 = vpop.f32.mrf.mxu1 }
 0x4e7   : > { %v23600_v12 = vadd.f32 %v8683_v24, %v23432_v55  ;;  %v10800_v24 = vld [vmem:[#allocation2 + $0xf2] sm:$0xff] }
 0x4e8   : > { %v18561_v20 = vpop.f32.mrf.mxu0  ;;  %v18605_v54 = vpop.f32.mrf.mxu1  ;;  %18860 = vmatmul.mubr.msk.f32.gmra.mxu0 %vm368_vm1, %v10795_v0 }
 0x4e9   : > { %v8813_v16 = vadd.f32 %v18561_v20, %v23437_v58  ;;  %v23605_v28 = vadd.f32 %v18605_v54, %v8809_v29  ;;  %18862 = vmatprep.mubr.msk.f32.mxu0 %vm368_vm1, %v10796_v9 }
 0x4ea   : > { %v8693_v30 = vpop.f32.mrf.mxu0  ;;  %v23608_v7 = vpop.f32.mrf.mxu1 }
 0x4eb   : > { %v23611_v55 = vadd.f32 %v8693_v30, %v23442_v2  ;;  %v10799_v2 = vld [vmem:[#allocation2 + $0xe2] sm:$0xff] }
 0x4ec   : > { %v18564_v26 = vpop.f32.mrf.mxu0  ;;  %v18608_v61 = vpop.f32.mrf.mxu1  ;;  %18863 = vmatmul.mubr.msk.f32.gmra.mxu0 %vm368_vm1, %v10797_v17  ;;  %v10802_v17 = vld [vmem:[#allocation2 + $0x10a] sm:$0xff] }
 0x4ed   : > { %v8815_v47 = vadd.f32 %v18564_v26, %v23447_v14  ;;  %v23615_v57 = vadd.f32 %v18608_v61, %v8811_v33  ;;  %18865 = vmatprep.mubr.msk.f32.mxu0 %vm368_vm1, %v10798_v8  ;;  %v10803_v8 = vld [vmem:[#allocation2 + $0x112] sm:$0xff] }
 0x4ee   : > { %v8703_v58 = vpop.f32.mrf.mxu0  ;;  %v23618_v29 = vpop.f32.mrf.mxu1 }
 0x4ef   : > { %v23621_v34 = vadd.f32 %v8703_v58, %v23454_v5  ;;  %v10801_v5 = vld [vmem:[#allocation2 + $0xfa] sm:$0xff] }
 0x4f0   : > { %v18567_v23 = vpop.f32.mrf.mxu0  ;;  %v18611_v41 = vpop.f32.mrf.mxu1  ;;  %18866 = vmatmul.mubr.msk.f32.gmra.mxu0 %vm368_vm1, %v10799_v2  ;;  %v10804_v2 = vld [vmem:[#allocation2 + $0x122] sm:$0xff] }
 0x4f1   : > { %26521 = vst [vmem:[#allocation64_spill] sm:$0xff] %v23621_v34  ;;  %v8817_v0 = vadd.f32 %v18567_v23, %v23459_v19  ;;  %v23625_v20 = vadd.f32 %v18611_v41, %v8813_v16  ;;  %18868 = vmatprep.mubr.msk.f32.mxu0 %vm368_vm1, %v10800_v24  ;;  %v10805_v24 = vld [vmem:[#allocation2 + $0x12a] sm:$0xff] }
 0x4f2   : > { %v8713_v14 = vpop.f32.mrf.mxu0  ;;  %v23628_v33 = vpop.f32.mrf.mxu1 }
 0x4f3   : > { %26522 = vst [vmem:[#allocation80_spill] sm:$0xff] %v23628_v33  ;;  %v23631_v54 = vadd.f32 %v8713_v14, %v23466_v40 }
 0x4f4   : > { %v18570_v9 = vpop.f32.mrf.mxu0  ;;  %v18614_v30 = vpop.f32.mrf.mxu1  ;;  %18869 = vmatmul.mubr.msk.f32.gmra.mxu0 %vm368_vm1, %v10801_v5 }
 0x4f5   : > { %26523 = vst [vmem:[#allocation87_spill] sm:$0xff] %v23631_v54  ;;  %v8819_v26 = vadd.f32 %v18570_v9, %v23471_v25  ;;  %v23635_v61 = vadd.f32 %v18614_v30, %v8815_v47  ;;  %18871 = vmatprep.mubr.msk.f32.mxu0 %vm368_vm1, %v10802_v17  ;;  %v10806_v9 = vld [vmem:[#allocation2 + $0x13a] sm:$0xff] }
 0x4f6   : > { %v23638_v19 = vpop.f32.mrf.mxu0  ;;  %v23640_v16 = vpop.f32.mrf.mxu1 }
 0x4f7   : > { %26524 = vst [vmem:[#allocation43_spill] sm:$0xff] %v23638_v19  ;;  %26525 = vst [vmem:[#allocation23_spill] sm:$0xff] %v23640_v16 }
 0x4f8   : > { %v18573_v58 = vpop.f32.mrf.mxu0  ;;  %v18617_v40 = vpop.f32.mrf.mxu1  ;;  %18872 = vmatmul.mubr.msk.f32.gmra.mxu0 %vm368_vm1, %v10803_v8  ;;  %v10807_v8 = vld [vmem:[#allocation2 + $0x142] sm:$0xff] }
 0x4f9   : > { %v8821_v23 = vadd.f32 %v18573_v58, %v23483_v36  ;;  %v23644_v41 = vadd.f32 %v18617_v40, %v8817_v0  ;;  %18874 = vmatprep.mubr.msk.f32.mxu0 %vm368_vm1, %v10804_v2  ;;  %v10808_v2 = vld [vmem:[#allocation2 + $0x152] sm:$0xff] }
 0x4fa   : > { %v23647_v25 = vpop.f32.mrf.mxu0  ;;  %v23649_v47 = vpop.f32.mrf.mxu1 }
 0x4fb   : > { %26526 = vst [vmem:[#allocation85_spill] sm:$0xff] %v23647_v25  ;;  %26527 = vst [vmem:[#allocation31_spill] sm:$0xff] %v23649_v47 }
 0x4fc   : > { %v18576_v14 = vpop.f32.mrf.mxu0  ;;  %v18620_v5 = vpop.f32.mrf.mxu1  ;;  %18875 = vmatmul.mubr.msk.f32.gmra.mxu0 %vm368_vm1, %v10805_v24 }
 0x4fd   : > { %v8823_v30 = vadd.f32 %v18576_v14, %v23495_v32  ;;  %v23653_v17 = vadd.f32 %v18620_v5, %v8819_v26  ;;  %18877 = vmatprep.mubr.msk.f32.mxu0 %vm368_vm1, %v10806_v9  ;;  %v10809_v14 = vld [vmem:[#allocation2 + $0x15a] sm:$0xff] }
 0x4fe   : > { %v23656_v36 = vpop.f32.mrf.mxu0  ;;  %v23658_v0 = vpop.f32.mrf.mxu1 }
 0x4ff   : > { %26528 = vst [vmem:[#allocation57_spill] sm:$0xff] %v23656_v36  ;;  %26529 = vst [vmem:[#allocation96_spill] sm:$0xff] %v23658_v0  ;;  %v10810_v36 = vld [vmem:[#allocation2 + $0x16a] sm:$0xff] }
 0x500   : > { %v18579_v58 = vpop.f32.mrf.mxu0  ;;  %v18623_v40 = vpop.f32.mrf.mxu1  ;;  %18878 = vmatmul.mubr.msk.f32.gmra.mxu0 %vm368_vm1, %v10807_v8 }
 0x501   : > { %v8825_v25 = vadd.f32 %v18579_v58, %v23507_v27  ;;  %v23662_v24 = vadd.f32 %v18623_v40, %v8821_v23  ;;  %18880 = vmatprep.mubr.msk.f32.mxu0 %vm368_vm1, %v10808_v2  ;;  %v10811_v58 = vld [vmem:[#allocation2 + $0x172] sm:$0xff] }
 0x502   : > { %v23665_v32 = vpop.f32.mrf.mxu0  ;;  %v23667_v26 = vpop.f32.mrf.mxu1 }
 0x503   : > { %26530 = vst [vmem:[#allocation66_spill] sm:$0xff] %v23665_v32  ;;  %26531 = vst [vmem:[#allocation26_spill] sm:$0xff] %v23667_v26 }
 0x504   : > { %v18582_v5 = vpop.f32.mrf.mxu0  ;;  %v18626_v9 = vpop.f32.mrf.mxu1  ;;  %18881 = vmatmul.mubr.msk.f32.gmra.mxu0 %vm368_vm1, %v10809_v14 }
 0x505   : > { %v8827_v0 = vadd.f32 %v18582_v5, %v23519_v4  ;;  %v23671_v8 = vadd.f32 %v18626_v9, %v8823_v30  ;;  %18883 = vmatprep.mubr.msk.f32.mxu0 %vm368_vm1, %v10810_v36  ;;  %v10814_v5 = vld [vmem:[#allocation2 + $0x19a] sm:$0xff] }
 0x506   : > { %v23674_v27 = vpop.f32.mrf.mxu0  ;;  %v23676_v23 = vpop.f32.mrf.mxu1 }
 0x507   : > { %26532 = vst [vmem:[#allocation44_spill] sm:$0xff] %v23674_v27  ;;  %26533 = vst [vmem:[#allocation45_spill] sm:$0xff] %v23676_v23 }
 0x508   : > { %v18585_v40 = vpop.f32.mrf.mxu0  ;;  %v18629_v2 = vpop.f32.mrf.mxu1  ;;  %18884 = vmatmul.mubr.msk.f32.gmra.mxu0 %vm368_vm1, %v10811_v58 }
 0x509   : > { %v8829_v32 = vadd.f32 %v18585_v40, %v23529_v37  ;;  %v23680_v26 = vadd.f32 %v18629_v2, %v8825_v25  ;;  %18886 = vmatprep.mubr.msk.f32.mxu0 %vm368_vm1, %v23367_v22  ;;  %v10815_v22 = vld [vmem:[#allocation2 + $0x1a2] sm:$0xff] }
 0x50a   : > { %v23684_v4 = vpop.f32.mrf.mxu0  ;;  %v23686_v30 = vpop.f32.mrf.mxu1 }
 0x50b   : > { %26534 = vst [vmem:[#allocation89_spill] sm:$0xff] %v23684_v4  ;;  %26535 = vst [vmem:[#allocation59_spill] sm:$0xff] %v23686_v30 }
 0x50c   : > { %v18588_v36 = vpop.f32.mrf.mxu0  ;;  %v18632_v14 = vpop.f32.mrf.mxu1  ;;  %18887 = vmatmul.mubr.msk.f32.gmra.mxu0 %vm368_vm1, %v23375_v48 }
 0x50d   : > { %v8831_v9 = vadd.f32 %v18588_v36, %v23543_v11  ;;  %v23691_v58 = vadd.f32 %v18632_v14, %v8827_v0  ;;  %18889 = vmatprep.mubr.msk.f32.mxu0 %vm368_vm1, %v10814_v5 }
 0x50e   : > { %v23694_v37 = vpop.f32.mrf.mxu0  ;;  %v23696_v25 = vpop.f32.mrf.mxu1 }
 0x50f   : > { %26536 = vst [vmem:[#allocation34_spill] sm:$0xff] %v23694_v37  ;;  %26537 = vst [vmem:[#allocation108_spill] sm:$0xff] %v23696_v25 }
 0x510   : > { %v18591_v40 = vpop.f32.mrf.mxu0  ;;  %v18635_v2 = vpop.f32.mrf.mxu1  ;;  %18890 = vmatmul.mubr.msk.f32.gmra.mxu0 %vm368_vm1, %v10815_v22 }
 0x511   : > { %v8833_v4 = vadd.f32 %v18591_v40, %v23557_v6  ;;  %v23700_v30 = vadd.f32 %v18635_v2, %v8829_v32 }
 0x512   : > { %v23702_v48 = vpop.f32.mrf.mxu0  ;;  %v23704_v11 = vpop.f32.mrf.mxu1 }
 0x513   : > { %26538 = vst [vmem:[#allocation19_spill] sm:$0xff] %v23702_v48  ;;  %26539 = vst [vmem:[#allocation98_spill] sm:$0xff] %v23704_v11 }
 0x514   : > { %v18638_v0 = vpop.f32.mrf.mxu1  ;;  %v18646_v36 = vpop.f32.mrf.mxu0 }
 0x515   : > { %v23706_v14 = vadd.f32 %v18638_v0, %v8831_v9  ;;  %v23709_v5 = vadd.f32 %v18646_v36, %v23569_v46 }
 0x516   : > { %v23711_v37 = vpop.f32.mrf.mxu1  ;;  %v23713_v25 = vpop.f32.mrf.mxu0 }
 0x517   : > { %26540 = vst [vmem:[#allocation68_spill] sm:$0xff] %v23711_v37 }
 0x518   : > { %v18641_v22 = vpop.f32.mrf.mxu1  ;;  %v18649_v27 = vpop.f32.mrf.mxu0 }
 0x519   : > { %v23715_v6 = vadd.f32 %v18641_v22, %v8833_v4  ;;  %v23718_v32 = vadd.f32 %v18649_v27, %v23580_v15 }
 0x51a   : > { %v23720_v40 = vpop.f32.mrf.mxu1  ;;  %v23722_v2 = vpop.f32.mrf.mxu0 }
 0x51b   : > { %26541 = vst [vmem:[#allocation40_spill] sm:$0xff] %v23720_v40 }
 0x51c   : > { %v18652_v9 = vpop.f32.mrf.mxu0  ;;  %v23724_v0 = vpop.f32.mrf.mxu1 }
 0x51d   : > { %v23727_v46 = vadd.f32 %v18652_v9, %v23590_v59 }
 0x51e   : > { %v23729_v36 = vpop.f32.mrf.mxu0  ;;  %v23731_v37 = vpop.f32.mrf.mxu1 }
 0x520   : > { %v18655_v48 = vpop.f32.mrf.mxu0  ;;  %v23733_v4 = vpop.f32.mrf.mxu1 }
 0x521   : > { %v23736_v15 = vadd.f32 %v18655_v48, %v23605_v28  ;;  %v11385_v48 = vld [vmem:[%s25804_s7] sm:$0xf] }
 0x522   : > { %v23738_v27 = vpop.f32.mrf.mxu0  ;;  %v23740_v22 = vpop.f32.mrf.mxu1  ;;  %18942 = vmatprep.subr.msk.mxu0 %vm642_vm0, %v11385_v48 }
 0x523   : > { %18943 = vmatpush3.msk.msra.mxu0 %vm642_vm0, %v11385_v48 }
 0x524   : > { %v18658_v40 = vpop.f32.mrf.mxu0  ;;  %v23742_v11 = vpop.f32.mrf.mxu1 }
 0x525   : > { %v23745_v59 = vadd.f32 %v18658_v40, %v23615_v57  ;;  %v23768_v57 = vld [vmem:[%s25804_s7 + $0x8] sm:$0xf] }
 0x526   : > { %v23747_v9 = vpop.f32.mrf.mxu0  ;;  %v23749_v23 = vpop.f32.mrf.mxu1  ;;  %26544 = vst [vmem:[#allocation29_spill] sm:$0xff] %v23768_v57  ;;  %18992 = vmatprep.subr.msk.mxu1 %vm642_vm0, %v23768_v57 }
 0x528   : > { %v18661_v19 = vpop.f32.mrf.mxu0  ;;  %v23751_v47 = vpop.f32.mrf.mxu1 }
 0x529   : > { %v23754_v28 = vadd.f32 %v18661_v19, %v23625_v20 }
 0x52a   : > { %v23759_v54 = vpop.f32.mrf.mxu0  ;;  %v23761_v18 = vpop.f32.mrf.mxu1 }
 0x52b   : > { %26542 = vst [vmem:[#allocation52_spill] sm:$0xff] %v23754_v28  ;;  %26543 = vst [vmem:[#allocation13_spill] sm:$0xff] %v23759_v54 }
 0x52c   : > { %v18664_v40 = vpop.f32.mrf.mxu0  ;;  %v23770_v20 = vpop.f32.mrf.mxu1 }
 0x52d   : > { %v23775_v19 = vadd.f32 %v18664_v40, %v23635_v61 }
 0x52e   : > { %v23777_v53 = vpop.f32.mrf.mxu0  ;;  %v23779_v56 = vpop.f32.mrf.mxu1 }
 0x52f   : > { %26545 = vst [vmem:[#allocation81_spill] sm:$0xff] %v23775_v19  ;;  %26546 = vst [vmem:[#allocation61_spill] sm:$0xff] %v23777_v53 }
 0x530   : > { %26547 = vst [vmem:[#allocation99_spill] sm:$0xff] %v23779_v56  ;;  %v18667_v60 = vpop.f32.mrf.mxu0  ;;  %v23781_v48 = vpop.f32.mrf.mxu1 }
 0x531   : > { %26548 = vst [vmem:[#allocation70_spill] sm:$0xff] %v23781_v48  ;;  %v23784_v16 = vadd.f32 %v18667_v60, %v23644_v41 }
 0x532   : > { %v23786_v34 = vpop.f32.mrf.mxu0  ;;  %v23788_v43 = vpop.f32.mrf.mxu1 }
 0x533   : > { %26549 = vst [vmem:[#allocation24_spill] sm:$0xff] %v23784_v16  ;;  %26550 = vst [vmem:[#allocation105_spill] sm:$0xff] %v23786_v34 }
 0x534   : > { %26551 = vst [vmem:[#allocation54_spill] sm:$0xff] %v23788_v43  ;;  %v18670_v51 = vpop.f32.mrf.mxu0  ;;  %v23790_v28 = vpop.f32.mrf.mxu1 }
 0x535   : > { %26552 = vst [vmem:[#allocation63_spill] sm:$0xff] %v23790_v28  ;;  %v23793_v61 = vadd.f32 %v18670_v51, %v23653_v17 }
 0x536   : > { %v23795_v40 = vpop.f32.mrf.mxu0  ;;  %v23797_v57 = vpop.f32.mrf.mxu1 }
 0x537   : > { %26553 = vst [vmem:[#allocation28_spill] sm:$0xff] %v23793_v61  ;;  %26554 = vst [vmem:[#allocation21_spill] sm:$0xff] %v23795_v40 }
 0x538   : > { %26555 = vst [vmem:[#allocation100_spill] sm:$0xff] %v23797_v57  ;;  %v18673_v19 = vpop.f32.mrf.mxu0  ;;  %v23799_v53 = vpop.f32.mrf.mxu1 }
 0x539   : > { %26556 = vst [vmem:[#allocation72_spill] sm:$0xff] %v23799_v53  ;;  %v23802_v60 = vadd.f32 %v18673_v19, %v23662_v24 }
 0x53a   : > { %v23804_v41 = vpop.f32.mrf.mxu0  ;;  %v23806_v16 = vpop.f32.mrf.mxu1 }
 0x53b   : > { %26557 = vst [vmem:[#allocation10_spill] sm:$0xff] %v23802_v60  ;;  %26558 = vst [vmem:[#allocation16_spill] sm:$0xff] %v23804_v41 }
 0x53c   : > { %26559 = vst [vmem:[#allocation79_spill] sm:$0xff] %v23806_v16  ;;  %v18676_v34 = vpop.f32.mrf.mxu0  ;;  %v23808_v43 = vpop.f32.mrf.mxu1 }
 0x53d   : > { %26560 = vst [vmem:[#allocation30_spill] sm:$0xff] %v23808_v43  ;;  %v23811_v51 = vadd.f32 %v18676_v34, %v23671_v8 }
 0x53e   : > { %v23813_v17 = vpop.f32.mrf.mxu0  ;;  %v23815_v61 = vpop.f32.mrf.mxu1 }
 0x53f   : > { %26561 = vst [vmem:[#allocation42_spill] sm:$0xff] %v23811_v51  ;;  %26562 = vst [vmem:[#allocation65_spill] sm:$0xff] %v23813_v17 }
 0x540   : > { %26563 = vst [vmem:[#allocation101_spill] sm:$0xff] %v23815_v61  ;;  %v18679_v40 = vpop.f32.mrf.mxu0  ;;  %v23817_v57 = vpop.f32.mrf.mxu1 }
 0x541   : > { %26564 = vst [vmem:[#allocation74_spill] sm:$0xff] %v23817_v57  ;;  %v23820_v24 = vadd.f32 %v18679_v40, %v23680_v26 }
 0x542   : > { %v23822_v19 = vpop.f32.mrf.mxu0  ;;  %v23824_v60 = vpop.f32.mrf.mxu1 }
 0x543   : > { %26565 = vst [vmem:[#allocation82_spill] sm:$0xff] %v23820_v24  ;;  %26566 = vst [vmem:[#allocation90_spill] sm:$0xff] %v23822_v19 }
 0x544   : > { %26567 = vst [vmem:[#allocation47_spill] sm:$0xff] %v23824_v60  ;;  %v18682_v41 = vpop.f32.mrf.mxu0  ;;  %v23826_v16 = vpop.f32.mrf.mxu1 }
 0x545   : > { %26568 = vst [vmem:[#allocation67_spill] sm:$0xff] %v23826_v16  ;;  %v23829_v34 = vadd.f32 %v18682_v41, %v23691_v58 }
 0x546   : > { %v23831_v8 = vpop.f32.mrf.mxu0  ;;  %v23833_v51 = vpop.f32.mrf.mxu1 }
 0x547   : > { %26569 = vst [vmem:[#allocation91_spill] sm:$0xff] %v23829_v34  ;;  %26570 = vst [vmem:[#allocation25_spill] sm:$0xff] %v23831_v8 }
 0x548   : > { %26571 = vst [vmem:[#allocation103_spill] sm:$0xff] %v23833_v51  ;;  %v18685_v17 = vpop.f32.mrf.mxu0  ;;  %v23835_v61 = vpop.f32.mrf.mxu1 }
 0x549   : > { %26572 = vst [vmem:[#allocation75_spill] sm:$0xff] %v23835_v61  ;;  %v23838_v26 = vadd.f32 %v18685_v17, %v23700_v30 }
 0x54a   : > { %v23840_v40 = vpop.f32.mrf.mxu0  ;;  %v23842_v24 = vpop.f32.mrf.mxu1 }
 0x54b   : > { %26573 = vst [vmem:[#allocation4_spill] sm:$0xff] %v23838_v26  ;;  %26574 = vst [vmem:[#allocation49_spill] sm:$0xff] %v23840_v40 }
 0x54c   : > { %26575 = vst [vmem:[#allocation56_spill] sm:$0xff] %v23842_v24  ;;  %v18688_v19 = vpop.f32.mrf.mxu0  ;;  %v23844_v60 = vpop.f32.mrf.mxu1 }
 0x54d   : > { %26576 = vst [vmem:[#allocation76_spill] sm:$0xff] %v23844_v60  ;;  %v23847_v58 = vadd.f32 %v18688_v19, %v23706_v14 }
 0x54e   : > { %v23849_v41 = vpop.f32.mrf.mxu0  ;;  %v23851_v34 = vpop.f32.mrf.mxu1 }
 0x54f   : > { %26577 = vst [vmem:[#allocation37_spill] sm:$0xff] %v23847_v58  ;;  %26578 = vst [vmem:[#allocation69_spill] sm:$0xff] %v23849_v41 }
 0x550   : > { %26579 = vst [vmem:[#allocation104_spill] sm:$0xff] %v23851_v34  ;;  %v18691_v8 = vpop.f32.mrf.mxu0  ;;  %v23853_v51 = vpop.f32.mrf.mxu1 }
 0x551   : > { %26580 = vst [vmem:[#allocation107_spill] sm:$0xff] %v23853_v51  ;;  %v23856_v30 = vadd.f32 %v18691_v8, %v23715_v6 }
 0x552   : > { %v23858_v17 = vpop.f32.mrf.mxu0  ;;  %v23860_v26 = vpop.f32.mrf.mxu1 }
 0x553   : > { %26581 = vst [vmem:[#allocation94_spill] sm:$0xff] %v23856_v30  ;;  %26582 = vst [vmem:[#allocation92_spill] sm:$0xff] %v23858_v17 }
 0x554   : > { %26583 = vst [vmem:[#allocation73_spill] sm:$0xff] %v23860_v26  ;;  %v23862_v40 = vpop.f32.mrf.mxu1  ;;  %v18746_v60 = vpop.f32.mrf.mxu0 }
 0x555   : > { %26584 = vst [vmem:[#allocation27_spill] sm:$0xff] %v23862_v40 }
 0x556   : > { %v23864_v24 = vpop.f32.mrf.mxu1  ;;  %v10203_v14 = vpop.f32.mrf.mxu0 }
 0x557   : > { %26585 = vst [vmem:[#allocation32_spill] sm:$0xff] %v23864_v24 }
 0x558   : > { %v23866_v19 = vpop.f32.mrf.mxu1  ;;  %v23868_v58 = vpop.f32.mrf.mxu0 }
 0x559   : > { %26586 = vst [vmem:[#allocation106_spill] sm:$0xff] %v23866_v19 }
 0x55a   : > { %v23870_v41 = vpop.f32.mrf.mxu1  ;;  %v23872_v51 = vpop.f32.mrf.mxu0 }
 0x55b   : > { %26587 = vst [vmem:[#allocation71_spill] sm:$0xff] %v23870_v41  ;;  %v23889_v41 = vld [vmem:[%s25804_s7 + $0xc] sm:$0xf] }
 0x55c   : > { %v23874_v6 = vpop.f32.mrf.mxu0  ;;  %v18796_v8 = vpop.f32.mrf.mxu1  ;;  %26588 = vst [vmem:[#allocation5_spill] sm:$0xff] %v23889_v41  ;;  %19042 = vmatprep.subr.msk.mxu0 %vm642_vm0, %v23889_v41 }
 0x55e   : > { %v23876_v30 = vpop.f32.mrf.mxu0  ;;  %v10593_v17 = vpop.f32.mrf.mxu1 }
 0x560   : > { %v23878_v26 = vpop.f32.mrf.mxu0  ;;  %v23880_v40 = vpop.f32.mrf.mxu1 }
 0x562   : > { %v23882_v24 = vpop.f32.mrf.mxu0  ;;  %v23884_v34 = vpop.f32.mrf.mxu1 }
 0x564   : > { %v23891_v19 = vpop.f32.mrf.mxu0  ;;  %v23893_v61 = vpop.f32.mrf.mxu1 }
 0x565   : > { %26589 = vst [vmem:[#allocation77_spill] sm:$0xff] %v23891_v19 }
 0x566   : > { %v23897_v16 = vpop.f32.mrf.mxu0  ;;  %v23899_v57 = vpop.f32.mrf.mxu1 }
 0x567   : > { %26590 = vst [vmem:[#allocation93_spill] sm:$0xff] %v23897_v16 }
 0x568   : > { %v23901_v43 = vpop.f32.mrf.mxu0  ;;  %v23903_v53 = vpop.f32.mrf.mxu1 }
 0x569   : > { %26591 = vst [vmem:[#allocation35_spill] sm:$0xff] %v23901_v43 }
 0x56a   : > { %v23905_v28 = vpop.f32.mrf.mxu0  ;;  %v23909_v54 = vpop.f32.mrf.mxu1 }
 0x56b   : > { %26592 = vst [vmem:[#allocation58_spill] sm:$0xff] %v23905_v28  ;;  %26594 = vst [vmem:[#allocation51_spill] sm:$0xff] %v23909_v54 }
 0x56c   : > { %v23907_v48 = vpop.f32.mrf.mxu0  ;;  %v23915_v19 = vpop.f32.mrf.mxu1 }
 0x56d   : > { %26593 = vst [vmem:[#allocation86_spill] sm:$0xff] %v23907_v48  ;;  %26597 = vst [vmem:[#allocation7_spill] sm:$0xff] %v23915_v19 }
 0x56e   : > { %v23911_v35 = vpop.f32.mrf.mxu0  ;;  %v23921_v56 = vpop.f32.mrf.mxu1 }
 0x56f   : > { %26595 = vst [vmem:[#allocation78_spill] sm:$0xff] %v23911_v35  ;;  %26600 = vst [vmem:[#allocation15_spill] sm:$0xff] %v23921_v56 }
 0x570   : > { %v23913_v50 = vpop.f32.mrf.mxu0  ;;  %v23927_v28 = vpop.f32.mrf.mxu1 }
 0x571   : > { %26596 = vst [vmem:[#allocation38_spill] sm:$0xff] %v23913_v50  ;;  %26603 = vst [vmem:[#allocation22_spill] sm:$0xff] %v23927_v28 }
 0x572   : > { %v23917_v41 = vpop.f32.mrf.mxu0  ;;  %v23933_v35 = vpop.f32.mrf.mxu1 }
 0x573   : > { %26598 = vst [vmem:[#allocation84_spill] sm:$0xff] %v23917_v41  ;;  %26606 = vst [vmem:[#allocation48_spill] sm:$0xff] %v23933_v35 }
 0x574   : > { %v23919_v16 = vpop.f32.mrf.mxu0  ;;  %v23939_v41 = vpop.f32.mrf.mxu1 }
 0x575   : > { %26599 = vst [vmem:[#allocation18_spill] sm:$0xff] %v23919_v16 }
 0x576   : > { %v23923_v43 = vpop.f32.mrf.mxu0 }
 0x577   : > { %26601 = vst [vmem:[#allocation60_spill] sm:$0xff] %v23923_v43  ;;  %v23945_v43 = vpop.f32.mrf.mxu1 }
 0x578   : > { %v23925_v33 = vpop.f32.mrf.mxu0  ;;  %26611 = vst [vmem:[#allocation46_spill] sm:$0xff] %v23945_v43 }
 0x579   : > { %26602 = vst [vmem:[#allocation36_spill] sm:$0xff] %v23925_v33 }
 0x57a   : > { %v23929_v48 = vpop.f32.mrf.mxu0 }
 0x57b   : > { %26604 = vst [vmem:[#allocation12_spill] sm:$0xff] %v23929_v48  ;;  %v23951_v48 = vpop.f32.mrf.mxu1 }
 0x57c   : > { %v23931_v54 = vpop.f32.mrf.mxu0  ;;  %26614 = vst [vmem:[#allocation62_spill] sm:$0xff] %v23951_v48 }
 0x57d   : > { %26605 = vst [vmem:[#allocation9_spill] sm:$0xff] %v23931_v54 }
 0x57e   : > { %v23935_v50 = vpop.f32.mrf.mxu0 }
 0x57f   : > { %26607 = vst [vmem:[#allocation50_spill] sm:$0xff] %v23935_v50  ;;  %v23959_v50 = vpop.f32.mrf.mxu1 }
 0x580   : > { %v23937_v19 = vpop.f32.mrf.mxu0 }
 0x581   : > { %26608 = vst [vmem:[#allocation20_spill] sm:$0xff] %v23937_v19  ;;  %v9192_v19 = vadd.f32 %v23573_v38, %v23552_v63  ;;  %v23971_v48 = vpop.f32.mrf.mxu1 }
 0x582   : > { %v23941_v16 = vpop.f32.mrf.mxu0 }
 0x583   : > { %26609 = vst [vmem:[#allocation83_spill] sm:$0xff] %v23941_v16 }
 0x584   : > { %v23943_v56 = vpop.f32.mrf.mxu0 }
 0x585   : > { %26610 = vst [vmem:[#allocation33_spill] sm:$0xff] %v23943_v56  ;;  %v9582_v56 = vadd.f32 %v23713_v25, %v9192_v19  ;;  %v9975_v25 = vadd.f32 %v23733_v4, %v23718_v32 }
 0x586   : > { %v23947_v33 = vpop.f32.mrf.mxu0 }
 0x587   : > { %26612 = vst [vmem:[#allocation41_spill] sm:$0xff] %v23947_v33  ;;  %v9973_v33 = vadd.f32 %v23724_v0, %v23709_v5  ;;  %v9196_v5 = vadd.f32 %v23596_v10, %v23576_v13 }
 0x588   : > { %v23949_v28 = vpop.f32.mrf.mxu0 }
 0x589   : > { %26613 = vst [vmem:[#allocation53_spill] sm:$0xff] %v23949_v28  ;;  %v9194_v28 = vadd.f32 %v23583_v45, %v23565_v52  ;;  %v10365_v45 = vadd.f32 %v23868_v58, %v9975_v25 }
 0x58a   : > { %v23953_v54 = vpop.f32.mrf.mxu0 }
 0x58b   : > { %26615 = vst [vmem:[#allocation88_spill] sm:$0xff] %v23953_v54  ;;  %v9972_v54 = vadd.f32 %v23731_v37, %v9582_v56  ;;  %v9584_v38 = vadd.f32 %v23722_v2, %v9194_v28  ;;  %v23983_v56 = vld [vmem:[%s25803_s6] ss:$0 sm:$0xff]  ;;  %v9586_v2 = vadd.f32 %v23729_v36, %v9196_v5  ;;  %v10755_v32 = vadd.f32 %v23880_v40, %v10365_v45 }
 0x58c   : > { %v23955_v35 = vpop.f32.mrf.mxu0 }
 0x58d   : > { %26616 = vst [vmem:[#allocation97_spill] sm:$0xff] %v23955_v35  ;;  %v10363_v35 = vadd.f32 %v18746_v60, %v9973_v33  ;;  %v10362_v19 = vadd.f32 %v10203_v14, %v9972_v54  ;;  %v9974_v52 = vadd.f32 %v23740_v22, %v9584_v38  ;;  %v23990_v54 = vpop.f32.mrf.mxu1  ;;  %v9198_v22 = vadd.f32 %v23608_v7, %v23586_v44 }
 0x58e   : > { %v23961_v16 = vpop.f32.mrf.mxu0  ;;  %v9979_v44 = vadd.f32 %v23751_v47, %v23736_v15  ;;  %v9200_v47 = vadd.f32 %v23618_v29, %v23600_v12 }
 0x58f   : > { %26617 = vst [vmem:[#allocation39_spill] sm:$0xff] %v23961_v16  ;;  %v10753_v16 = vadd.f32 %v18796_v8, %v10363_v35  ;;  %v10752_v33 = vadd.f32 %v10593_v17, %v10362_v19  ;;  %v9977_v35 = vadd.f32 %v23742_v11, %v23727_v46  ;;  %v10364_v10 = vadd.f32 %v23872_v51, %v9974_v52 }
 0x590   : > { %v23966_v43 = vpop.f32.mrf.mxu0  ;;  %v24003_v51 = vadd.f32 %v23478_v31, %v23452_v42  ;;  %v9588_v40 = vadd.f32 %v23738_v27, %v9198_v22  ;;  %v24017_v27 = vadd.f32 %v23490_v62, %v23464_v21  ;;  %v24029_v21 = vadd.f32 %v23502_v3, %v23476_v1  ;;  %v26618_v3 = vld [vmem:[#allocation80_spill] sm:$0xff] }
 0x591   : > { %v10367_v36 = vadd.f32 %v23874_v6, %v9977_v35  ;;  %v10754_v11 = vadd.f32 %v23884_v34, %v10364_v10  ;;  %v9590_v62 = vadd.f32 %v23747_v9, %v9200_v47  ;;  %v24042_v1 = vadd.f32 %v23514_v39, %v23488_v49  ;;  %v26619_v9 = vld [vmem:[#allocation99_spill] sm:$0xff]  ;;  %v26624_v39 = vld [vmem:[#allocation13_spill] sm:$0xff] }
 0x592   : > { %v23973_v63 = vpop.f32.mrf.mxu0  ;;  %v9978_v15 = vadd.f32 %v23761_v18, %v9588_v40  ;;  %v9981_v18 = vadd.f32 %v23770_v20, %v23745_v59  ;;  %v9202_v59 = vadd.f32 %v26618_v3, %v23611_v55  ;;  %v26622_v10 = vld [vmem:[#allocation11_spill] sm:$0xff]  ;;  %v26625_v55 = vld [vmem:[#allocation52_spill] sm:$0xff] }
 0x593   : > { %v10757_v34 = vadd.f32 %v23893_v61, %v10367_v36  ;;  %v9980_v20 = vadd.f32 %v26619_v9, %v9590_v62  ;;  %v26632_v47 = vld [vmem:[#allocation23_spill] sm:$0xff]  ;;  %v26637_v9 = vld [vmem:[#allocation17_spill] sm:$0xff] }
 0x594   : > { %v18846_v0 = vpop.f32.mrf.mxu0  ;;  %v10368_v12 = vadd.f32 %v23882_v24, %v9978_v15  ;;  %v26620_v24 = vld [vmem:[#allocation77_spill] sm:$0xff]  ;;  %v24082_v3 = vld [vmem:[%s25804_s7 + $0x10] sm:$0xf] }
 0x595   : > { %v11143_v37 = vadd.f32 %v18846_v0, %v10753_v16  ;;  %v9976_v16 = vadd.f32 %v23749_v23, %v9586_v2  ;;  %v24009_v23 = vpop.f32.mrf.mxu1  ;;  %v10371_v45 = vadd.f32 %v26620_v24, %v9981_v18  ;;  %v26635_v18 = vld [vmem:[#allocation15_spill] sm:$0xff]  ;;  %v26638_v24 = vld [vmem:[#allocation61_spill] sm:$0xff] }
 0x596   : > { %v10983_v13 = vpop.f32.mrf.mxu0 }
 0x597   : > { %v11182_v4 = vadd.f32 %v23983_v56, %v11143_v37  ;;  %v11142_v28 = vadd.f32 %v10983_v13, %v10752_v33  ;;  %v10366_v7 = vadd.f32 %v23876_v30, %v9976_v16  ;;  %v10369_v30 = vadd.f32 %v23878_v26, %v9979_v44  ;;  %v24035_v29 = vpop.f32.mrf.mxu1  ;;  %v26621_v37 = vld [vmem:[#allocation51_spill] sm:$0xff]  ;;  %v26627_v16 = vld [vmem:[#allocation93_spill] sm:$0xff] }
 0x598   : > { %v18849_v60 = vpop.f32.mrf.mxu0  ;;  %v10370_v36 = vadd.f32 %v26627_v16, %v9980_v20  ;;  %v26643_v16 = vld [vmem:[#allocation29_spill] sm:$0xff] }
 0x599   : > { %v11214_v46 = vmax.f32 %v11182_v4, 0.0  ;;  %v11181_v58 = vadd.f32 %v23983_v56, %v11142_v28  ;;  %v11145_v17 = vadd.f32 %v18849_v60, %v10755_v32  ;;  %v10756_v8 = vadd.f32 %v23899_v57, %v10366_v7  ;;  %v26623_v32 = vld [vmem:[#allocation8_spill] sm:$0xff]  ;;  %v26626_v28 = vld [vmem:[#allocation70_spill] sm:$0xff]  ;;  %v24059_v60 = vpop.f32.mrf.mxu1 }
 0x59a   : > { %v10993_v14 = vpop.f32.mrf.mxu0  ;;  %v10759_v26 = vadd.f32 %v23903_v53, %v10369_v30  ;;  %v10758_v53 = vadd.f32 %v26621_v37, %v10368_v12  ;;  %v24053_v49 = vadd.f32 %v26623_v32, %v26622_v10  ;;  %v9592_v4 = vadd.f32 %v26624_v39, %v9202_v59  ;;  %v26633_v30 = vld [vmem:[#allocation54_spill] sm:$0xff]  ;;  %v26636_v59 = vld [vmem:[#allocation55_spill] sm:$0xff] }
 0x59b   : > { %11246 = vst.msk [vmem:[#allocation2 + $0x21] sm:$0xff] %vm368_vm1, %v11214_v46  ;;  %11278 = vst.msk [vmem:[#allocation2 + $0x9] sm:$0xff] %vm368_vm1, %v11214_v46  ;;  %v11213_v6 = vmax.f32 %v11181_v58, 0.0  ;;  %v11184_v42 = vadd.f32 %v23983_v56, %v11145_v17  ;;  %v11144_v31 = vadd.f32 %v10993_v14, %v10754_v11  ;;  %v9983_v22 = vadd.f32 %v26626_v28, %v26625_v55  ;;  %v26628_v58 = vld [vmem:[#allocation7_spill] sm:$0xff]  ;;  %v26642_v39 = vld [vmem:[#allocation22_spill] sm:$0xff] }
 0x59c   : > { %v18852_v61 = vpop.f32.mrf.mxu0  ;;  %v10761_v17 = vadd.f32 %v26628_v58, %v10371_v45  ;;  %v10760_v12 = vadd.f32 %v26635_v18, %v10370_v36  ;;  %v24086_v20 = vadd.f32 %v26637_v9, %v26636_v59  ;;  %v26640_v37 = vld [vmem:[#allocation63_spill] sm:$0xff]  ;;  %v26652_v18 = vld [vmem:[#allocation105_spill] sm:$0xff] }
 0x59d   : > { %11245 = vst.msk [vmem:[#allocation2 + $0x19] sm:$0xff] %vm368_vm1, %v11213_v6  ;;  %11277 = vst.msk [vmem:[#allocation2 + $0x1] sm:$0xff] %vm368_vm1, %v11213_v6  ;;  %v11216_v38 = vmax.f32 %v11184_v42, 0.0  ;;  %v11183_v25 = vadd.f32 %v23983_v56, %v11144_v31  ;;  %v11147_v19 = vadd.f32 %v18852_v61, %v10757_v34  ;;  %v26629_v34 = vld [vmem:[#allocation102_spill] sm:$0xff]  ;;  %v26631_v31 = vld [vmem:[#allocation64_spill] sm:$0xff]  ;;  %v9982_v61 = vadd.f32 %v26633_v30, %v9592_v4 }
 0x59e   : > { %v11003_v57 = vpop.f32.mrf.mxu0  ;;  %v26630_v6 = vld [vmem:[#allocation14_spill] sm:$0xff]  ;;  %v9204_v15 = vadd.f32 %v26632_v47, %v26631_v31 }
 0x59f   : > { %11248 = vst.msk [vmem:[#allocation2 + $0x39] sm:$0xff] %vm368_vm1, %v11216_v38  ;;  %v11215_v5 = vmax.f32 %v11183_v25, 0.0  ;;  %v11186_v0 = vadd.f32 %v23983_v56, %v11147_v19  ;;  %v11146_v52 = vadd.f32 %v11003_v57, %v10756_v8  ;;  %v24067_v42 = vadd.f32 %v26630_v6, %v26629_v34  ;;  %v26634_v8 = vld [vmem:[#allocation35_spill] sm:$0xff]  ;;  %v26649_v34 = vld [vmem:[#allocation86_spill] sm:$0xff] }
 0x5a0   : > { %v18855_v33 = vpop.f32.mrf.mxu0  ;;  %v10373_v38 = vadd.f32 %v26634_v8, %v9983_v22  ;;  %v9594_v45 = vadd.f32 %v26638_v24, %v9204_v15  ;;  %v26650_v15 = vld [vmem:[#allocation48_spill] sm:$0xff] }
 0x5a1   : > { %11247 = vst.msk [vmem:[#allocation2 + $0x31] sm:$0xff] %vm368_vm1, %v11215_v5  ;;  %v11218_v2 = vmax.f32 %v11186_v0, 0.0  ;;  %v11185_v35 = vadd.f32 %v23983_v56, %v11146_v52  ;;  %v11149_v13 = vadd.f32 %v18855_v33, %v10759_v26  ;;  %v26639_v33 = vld [vmem:[#allocation81_spill] sm:$0xff] }
 0x5a2   : > { %v11013_v11 = vpop.f32.mrf.mxu0  ;;  %v11317_v46 = vld [vmem:[#allocation2 + $0x10] sm:$0x1]  ;;  %v11318_v14 = vld [vmem:[#allocation2 + $0x28] sm:$0x1]  ;;  %v10763_v4 = vadd.f32 %v26642_v39, %v10373_v38 }
 0x5a3   : > { %11250 = vst.msk [vmem:[#allocation2 + $0x51] sm:$0xff] %vm368_vm1, %v11218_v2  ;;  %v11217_v40 = vmax.f32 %v11185_v35, 0.0  ;;  %v11188_v44 = vadd.f32 %v23983_v56, %v11149_v13  ;;  %v11148_v7 = vadd.f32 %v11013_v11, %v10758_v53  ;;  %v11387_v0 = vld [vmem:[#allocation2 + $0x9] sm:$0xff]  ;;  %v9985_v53 = vadd.f32 %v26640_v37, %v26639_v33  ;;  %v26641_v2 = vld [vmem:[#allocation58_spill] sm:$0xff]  ;;  %v24092_v13 = vpop.f32.mrf.mxu1 }
 0x5a4   : > { %11335 = vst.msk [vmem:[#allocation2 + $0x11] sm:$0x1] %vm424_vm2, %v11317_v46  ;;  %v18858_v25 = vpop.f32.mrf.mxu0  ;;  %v11386_v19 = vld [vmem:[#allocation2 + $0x1] sm:$0xff]  ;;  %11336 = vst.msk [vmem:[#allocation2 + $0x29] sm:$0x1] %vm424_vm2, %v11318_v14  ;;  %v10372_v35 = vadd.f32 %v26641_v2, %v9982_v61  ;;  %v11388_v32 = vld [vmem:[#allocation2 + $0x19] sm:$0xff] }
 0x5a5   : > { %v11281_v62 = vld [vmem:[#allocation2 + $0x1] sm:$0x1]  ;;  %11249 = vst.msk [vmem:[#allocation2 + $0x49] sm:$0xff] %vm368_vm1, %v11217_v40  ;;  %v11220_v57 = vmax.f32 %v11188_v44, 0.0  ;;  %v11187_v26 = vadd.f32 %v23983_v56, %v11148_v7  ;;  %v11151_v5 = vadd.f32 %v18858_v25, %v10761_v17  ;;  %18894 = vmatprep.mubr.msk.f32.mxu1 %vm368_vm1, %v11386_v19  ;;  %v11282_v52 = vld [vmem:[#allocation2 + $0x19] sm:$0x1]  ;;  %v10375_v6 = vadd.f32 %v26649_v34, %v9985_v53  ;;  %v24125_v59 = vpop.f32.mrf.mxu1 }
 0x5a6   : > { %11299 = vst.msk [vmem:[#allocation2] sm:$0x1] %vm424_vm2, %v11281_v62  ;;  %v11023_v10 = vpop.f32.mrf.mxu0  ;;  %18895 = vmatmul.mubr.msk.f32.vlgmr.msra.gmra.mxu1 %vm368_vm1, %v11387_v0  ;;  %11300 = vst.msk [vmem:[#allocation2 + $0x18] sm:$0x1] %vm424_vm2, %v11282_v52  ;;  %v11319_v36 = vld [vmem:[#allocation2 + $0x40] sm:$0x1]  ;;  %v10762_v30 = vadd.f32 %v26650_v15, %v10372_v35 }
 0x5a7   : > { %11252 = vst.msk [vmem:[#allocation2 + $0x69] sm:$0xff] %vm368_vm1, %v11220_v57  ;;  %v11219_v55 = vmax.f32 %v11187_v26, 0.0  ;;  %v11190_v28 = vadd.f32 %v23983_v56, %v11151_v5  ;;  %v11150_v22 = vadd.f32 %v11023_v10, %v10760_v12  ;;  %18993 = vmatpush3.msk.msra.mxu1 %vm642_vm0, %v26643_v16  ;;  %18897 = vmatprep.mubr.msk.f32.mxu1 %vm368_vm1, %v11388_v32  ;;  %v26644_v11 = vld [vmem:[#allocation6_spill] sm:$0xff]  ;;  %v26645_v46 = vld [vmem:[#allocation95_spill] sm:$0xff]  ;;  %v26648_v7 = vld [vmem:[#allocation100_spill] sm:$0xff] }
 0x5a8   : > { %v24104_v58 = vadd.f32 %v26645_v46, %v26644_v11  ;;  %v26646_v17 = vld [vmem:[#allocation87_spill] sm:$0xff]  ;;  %v9984_v14 = vadd.f32 %v26648_v7, %v9594_v45  ;;  %v18861_v31 = vpop.f32.mrf.mxu0  ;;  %v11283_v47 = vld [vmem:[#allocation2 + $0x31] sm:$0x1]  ;;  %19092 = vmatprep.subr.msk.mxu1 %vm642_vm0, %v24082_v3  ;;  %11337 = vst.msk [vmem:[#allocation2 + $0x41] sm:$0x1] %vm424_vm2, %v11319_v36  ;;  %v24116_v25 = vld [vmem:[#allocation2 + $0x21] sm:$0xff]  ;;  %v10765_v33 = vadd.f32 %v23939_v41, %v10375_v6 }
 0x5a9   : > { %v26647_v40 = vld [vmem:[#allocation31_spill] sm:$0xff]  ;;  %11251 = vst.msk [vmem:[#allocation2 + $0x61] sm:$0xff] %vm368_vm1, %v11219_v55  ;;  %v11222_v61 = vmax.f32 %v11190_v28, 0.0  ;;  %v11189_v8 = vadd.f32 %v23983_v56, %v11150_v22  ;;  %v11153_v38 = vadd.f32 %v18861_v31, %v10763_v4  ;;  %v26653_v57 = vld [vmem:[#allocation24_spill] sm:$0xff]  ;;  %v26655_v0 = vld [vmem:[#allocation78_spill] sm:$0xff] }
 0x5aa   : > { %v9206_v44 = vadd.f32 %v26647_v40, %v26646_v17  ;;  %11301 = vst.msk [vmem:[#allocation2 + $0x30] sm:$0x1] %vm424_vm2, %v11283_v47  ;;  %v26651_v19 = vld [vmem:[#allocation43_spill] sm:$0xff]  ;;  %v26654_v26 = vld [vmem:[#allocation72_spill] sm:$0xff]  ;;  %v10374_v52 = vadd.f32 %v26655_v0, %v9984_v14  ;;  %v11033_v9 = vpop.f32.mrf.mxu0  ;;  %18898 = vmatmul.mubr.msk.f32.gmra.mxu1 %vm368_vm1, %v24116_v25  ;;  %v26656_v2 = vld [vmem:[#allocation85_spill] sm:$0xff] }
 0x5ab   : > { %v8818_v62 = vadd.f32 %v26651_v19, %v24003_v51  ;;  %v9987_v5 = vadd.f32 %v26654_v26, %v26653_v57  ;;  %v24129_v24 = vld [vmem:[#allocation2 + $0x31] sm:$0xff]  ;;  %11254 = vst.msk [vmem:[#allocation2 + $0x81] sm:$0xff] %vm368_vm1, %v11222_v61  ;;  %v11221_v51 = vmax.f32 %v11189_v8, 0.0  ;;  %v11192_v37 = vadd.f32 %v23983_v56, %v11153_v38  ;;  %v26658_v39 = vld [vmem:[#allocation79_spill] sm:$0xff]  ;;  %v26659_v55 = vld [vmem:[#allocation38_spill] sm:$0xff]  ;;  %v24158_v61 = vpop.f32.mrf.mxu1 }
 0x5ac   : > { %v9596_v12 = vadd.f32 %v26652_v18, %v9206_v44  ;;  %v11320_v45 = vld [vmem:[#allocation2 + $0x58] sm:$0x1]  ;;  %v11152_v53 = vadd.f32 %v11033_v9, %v10762_v30  ;;  %18900 = vmatprep.mubr.msk.f32.mxu1 %vm368_vm1, %v24129_v24  ;;  %v8820_v35 = vadd.f32 %v26656_v2, %v24017_v27  ;;  %v18864_v28 = vpop.f32.mrf.mxu0  ;;  %v11284_v16 = vld [vmem:[#allocation2 + $0x49] sm:$0x1]  ;;  %v26660_v36 = vld [vmem:[#allocation46_spill] sm:$0xff] }
 0x5ad   : > { %11338 = vst.msk [vmem:[#allocation2 + $0x59] sm:$0x1] %vm424_vm2, %v11320_v45  ;;  %v26657_v10 = vld [vmem:[#allocation96_spill] sm:$0xff]  ;;  %v10377_v41 = vadd.f32 %v26659_v55, %v9987_v5  ;;  %v11353_v22 = vld [vmem:[#allocation2] sm:$0xff]  ;;  %v10764_v11 = vadd.f32 %v26660_v36, %v10374_v52  ;;  %v11224_v46 = vmax.f32 %v11192_v37, 0.0  ;;  %v11155_v40 = vadd.f32 %v18864_v28, %v10765_v33  ;;  %v11354_v44 = vld [vmem:[#allocation2 + $0x8] sm:$0xff] }
 0x5ae   : > { %v9208_v32 = vadd.f32 %v26657_v10, %v8818_v62  ;;  %v9986_v4 = vadd.f32 %v26658_v39, %v9596_v12  ;;  %11253 = vst.msk [vmem:[#allocation2 + $0x79] sm:$0xff] %vm368_vm1, %v11221_v51  ;;  %v11191_v17 = vadd.f32 %v23983_v56, %v11152_v53  ;;  %18944 = vmatprep.mubr.msk.f32.mxu0 %vm368_vm1, %v11353_v22  ;;  %v24146_v27 = vld [vmem:[#allocation2 + $0x39] sm:$0xff]  ;;  %v24152_v7 = vld [vmem:[%s25804_s7 + $0x14] sm:$0xf]  ;;  %v26663_v31 = vld [vmem:[#allocation30_spill] sm:$0xff]  ;;  %v11043_v8 = vpop.f32.mrf.mxu0 }
 0x5af   : > { %11302 = vst.msk [vmem:[#allocation2 + $0x48] sm:$0x1] %vm424_vm2, %v11284_v16  ;;  %v26661_v14 = vld [vmem:[#allocation21_spill] sm:$0xff]  ;;  %v26662_v6 = vld [vmem:[#allocation28_spill] sm:$0xff]  ;;  %18901 = vmatmul.mubr.msk.f32.gmra.mxu1 %vm368_vm1, %v24146_v27  ;;  %18945 = vmatmul.mubr.msk.f32.vlgmr.msra.gmra.mxu0 %vm368_vm1, %v11354_v44  ;;  %v24163_v38 = vld [vmem:[#allocation2 + $0x49] sm:$0xff]  ;;  %v11194_v26 = vadd.f32 %v23983_v56, %v11155_v40  ;;  %v11154_v5 = vadd.f32 %v11043_v8, %v10764_v11 }
 0x5b0   : > { %v9598_v34 = vadd.f32 %v26661_v14, %v9208_v32  ;;  %v9989_v47 = vadd.f32 %v26663_v31, %v26662_v6  ;;  %v26664_v15 = vld [vmem:[#allocation84_spill] sm:$0xff]  ;;  %v11321_v62 = vld [vmem:[#allocation2 + $0x70] sm:$0x1]  ;;  %v26665_v18 = vld [vmem:[#allocation62_spill] sm:$0xff]  ;;  %11256 = vst.msk [vmem:[#allocation2 + $0x99] sm:$0xff] %vm368_vm1, %v11224_v46  ;;  %v11223_v57 = vmax.f32 %v11191_v17, 0.0  ;;  %18903 = vmatprep.mubr.msk.f32.mxu1 %vm368_vm1, %v24163_v38  ;;  %v18867_v2 = vpop.f32.mrf.mxu0  ;;  %v24196_v17 = vpop.f32.mrf.mxu1 }
 0x5b1   : > { %v10376_v30 = vadd.f32 %v26664_v15, %v9986_v4  ;;  %v24165_v19 = vld [vmem:[#allocation2 + $0x18] sm:$0xff]  ;;  %v10767_v12 = vadd.f32 %v26665_v18, %v10377_v41  ;;  %11339 = vst.msk [vmem:[#allocation2 + $0x71] sm:$0x1] %vm424_vm2, %v11321_v62  ;;  %v26667_v9 = vld [vmem:[#allocation26_spill] sm:$0xff]  ;;  %v11226_v4 = vmax.f32 %v11194_v26, 0.0  ;;  %v11193_v55 = vadd.f32 %v23983_v56, %v11154_v5  ;;  %v24204_v14 = vld [vmem:[#allocation2 + $0x30] sm:$0xff] }
 0x5b2   : > { %18947 = vmatprep.mubr.msk.f32.mxu0 %vm368_vm1, %v24165_v19  ;;  %v26666_v0 = vld [vmem:[#allocation57_spill] sm:$0xff]  ;;  %v9210_v45 = vadd.f32 %v26667_v9, %v8820_v35  ;;  %v26669_v37 = vld [vmem:[#allocation18_spill] sm:$0xff]  ;;  %11255 = vst.msk [vmem:[#allocation2 + $0x91] sm:$0xff] %vm368_vm1, %v11223_v57  ;;  %v26671_v28 = vld [vmem:[#allocation16_spill] sm:$0xff]  ;;  %v11053_v40 = vpop.f32.mrf.mxu0 }
 0x5b3   : > { %v8822_v52 = vadd.f32 %v26666_v0, %v24029_v21  ;;  %v26668_v33 = vld [vmem:[#allocation101_spill] sm:$0xff]  ;;  %v10379_v53 = vadd.f32 %v26669_v37, %v9989_v47  ;;  %v11285_v10 = vld [vmem:[#allocation2 + $0x61] sm:$0x1]  ;;  %v10766_v39 = vadd.f32 %v23959_v50, %v10376_v30  ;;  %v11157_v41 = vadd.f32 %v18867_v2, %v10767_v12  ;;  %v24185_v21 = vld [vmem:[#allocation2 + $0x51] sm:$0xff]  ;;  %26675 = vst [vmem:[#allocation80_spill] sm:$0xff] %v24204_v14 }
 0x5b4   : > { %v9988_v51 = vadd.f32 %v26668_v33, %v9598_v34  ;;  %v26670_v32 = vld [vmem:[#allocation5_spill] sm:$0xff]  ;;  %11303 = vst.msk [vmem:[#allocation2 + $0x60] sm:$0x1] %vm424_vm2, %v11285_v10  ;;  %v9600_v22 = vadd.f32 %v26671_v28, %v9210_v45  ;;  %v26672_v16 = vld [vmem:[#allocation10_spill] sm:$0xff]  ;;  %v26674_v11 = vld [vmem:[#allocation60_spill] sm:$0xff]  ;;  %18904 = vmatmul.mubr.msk.f32.gmra.mxu1 %vm368_vm1, %v24185_v21  ;;  %v11225_v31 = vmax.f32 %v11193_v55, 0.0  ;;  %v18870_v5 = vpop.f32.mrf.mxu0 }
 0x5b5   : > { %19043 = vmatpush3.msk.msra.mxu0 %vm642_vm0, %v26670_v32  ;;  %v24187_v35 = vld [vmem:[#allocation2 + $0x20] sm:$0xff]  ;;  %v11322_v34 = vld [vmem:[#allocation2 + $0x88] sm:$0x1]  ;;  %v10769_v6 = vadd.f32 %v23971_v48, %v10379_v53  ;;  %11258 = vst.msk [vmem:[#allocation2 + $0xb1] sm:$0xff] %vm368_vm1, %v11226_v4  ;;  %v11196_v47 = vadd.f32 %v23983_v56, %v11157_v41  ;;  %v11156_v15 = vadd.f32 %v11053_v40, %v10766_v39  ;;  %v26678_v48 = vld [vmem:[#allocation47_spill] sm:$0xff] }
 0x5b6   : > { %19142 = vmatprep.subr.msk.mxu0 %vm642_vm0, %v24152_v7  ;;  %v26673_v36 = vld [vmem:[#allocation74_spill] sm:$0xff]  ;;  %v10378_v46 = vadd.f32 %v26674_v11, %v9988_v51  ;;  %18948 = vmatmul.mubr.msk.f32.gmra.mxu0 %vm368_vm1, %v24187_v35  ;;  %11340 = vst.msk [vmem:[#allocation2 + $0x89] sm:$0x1] %vm424_vm2, %v11322_v34  ;;  %v26677_v62 = vld [vmem:[#allocation45_spill] sm:$0xff]  ;;  %v9990_v12 = vadd.f32 %v26678_v48, %v9600_v22  ;;  %v26679_v57 = vld [vmem:[#allocation36_spill] sm:$0xff]  ;;  %v11063_v55 = vpop.f32.mrf.mxu0 }
 0x5b7   : > { %v9991_v50 = vadd.f32 %v26673_v36, %v26672_v16  ;;  %v24202_v44 = vld [vmem:[#allocation2 + $0x61] sm:$0xff]  ;;  %18950 = vmatprep.mubr.msk.f32.mxu0 %vm368_vm1, %v24204_v14  ;;  %v9212_v18 = vadd.f32 %v26677_v62, %v8822_v52  ;;  %v11286_v0 = vld [vmem:[#allocation2 + $0x79] sm:$0x1]  ;;  %11257 = vst.msk [vmem:[#allocation2 + $0xa9] sm:$0xff] %vm368_vm1, %v11225_v31  ;;  %v11228_v45 = vmax.f32 %v11196_v47, 0.0  ;;  %v11195_v33 = vadd.f32 %v23983_v56, %v11156_v15  ;;  %v24222_v37 = vld [vmem:[#allocation2 + $0x69] sm:$0xff] }
 0x5b8   : > { %18906 = vmatprep.mubr.msk.f32.mxu1 %vm368_vm1, %v24202_v44  ;;  %v26676_v30 = vld [vmem:[#allocation66_spill] sm:$0xff]  ;;  %v10768_v9 = vadd.f32 %v23990_v54, %v10378_v46  ;;  %v11159_v51 = vadd.f32 %v18870_v5, %v10769_v6  ;;  %v24224_v53 = vld [vmem:[#allocation2 + $0x38] sm:$0xff]  ;;  %11304 = vst.msk [vmem:[#allocation2 + $0x78] sm:$0x1] %vm424_vm2, %v11286_v0  ;;  %v26683_v10 = vld [vmem:[#allocation67_spill] sm:$0xff]  ;;  %v24231_v54 = vpop.f32.mrf.mxu1 }
 0x5b9   : > { %v8824_v8 = vadd.f32 %v26676_v30, %v24042_v1  ;;  %v10381_v26 = vadd.f32 %v26679_v57, %v9991_v50  ;;  %26680 = vst [vmem:[#allocation99_spill] sm:$0xff] %v24224_v53  ;;  %v26681_v1 = vld [vmem:[#allocation65_spill] sm:$0xff]  ;;  %v26682_v2 = vld [vmem:[#allocation42_spill] sm:$0xff]  ;;  %v26684_v39 = vld [vmem:[#allocation12_spill] sm:$0xff]  ;;  %18907 = vmatmul.mubr.msk.f32.gmra.mxu1 %vm368_vm1, %v24222_v37  ;;  %v11227_v36 = vmax.f32 %v11195_v33, 0.0  ;;  %v18873_v30 = vpop.f32.mrf.mxu0 }
 0x5ba   : > { %v9602_v52 = vadd.f32 %v26681_v1, %v9212_v18  ;;  %v9993_v32 = vadd.f32 %v26683_v10, %v26682_v2  ;;  %v10380_v4 = vadd.f32 %v26684_v39, %v9990_v12  ;;  %18951 = vmatmul.mubr.msk.f32.gmra.mxu0 %vm368_vm1, %v24224_v53  ;;  %v24237_v41 = vld [vmem:[#allocation2 + $0x79] sm:$0xff]  ;;  %v24239_v28 = vld [vmem:[#allocation2 + $0x48] sm:$0xff]  ;;  %11260 = vst.msk [vmem:[#allocation2 + $0xc9] sm:$0xff] %vm368_vm1, %v11228_v45  ;;  %v26686_v46 = vld [vmem:[#allocation44_spill] sm:$0xff] }
 0x5bb   : > { %26685 = vst [vmem:[#allocation77_spill] sm:$0xff] %v24239_v28  ;;  %v11323_v22 = vld [vmem:[#allocation2 + $0xa0] sm:$0x1]  ;;  %v10771_v16 = vadd.f32 %v24009_v23, %v10381_v26  ;;  %v11198_v50 = vadd.f32 %v23983_v56, %v11159_v51  ;;  %v11158_v11 = vadd.f32 %v11063_v55, %v10768_v9  ;;  %18909 = vmatprep.mubr.msk.f32.mxu1 %vm368_vm1, %v24237_v41  ;;  %v26687_v34 = vld [vmem:[#allocation59_spill] sm:$0xff]  ;;  %v11287_v62 = vld [vmem:[#allocation2 + $0x91] sm:$0x1]  ;;  %v11073_v1 = vpop.f32.mrf.mxu0 }
 0x5bc   : > { %18953 = vmatprep.mubr.msk.f32.mxu0 %vm368_vm1, %v24239_v28  ;;  %11341 = vst.msk [vmem:[#allocation2 + $0xa1] sm:$0x1] %vm424_vm2, %v11323_v22  ;;  %v8826_v40 = vadd.f32 %v26686_v46, %v24053_v49  ;;  %v9214_v6 = vadd.f32 %v26687_v34, %v8824_v8  ;;  %v26688_v23 = vld [vmem:[#allocation103_spill] sm:$0xff]  ;;  %v26689_v47 = vld [vmem:[#allocation9_spill] sm:$0xff]  ;;  %v10770_v18 = vadd.f32 %v24035_v29, %v10380_v4  ;;  %v24257_v26 = vld [vmem:[#allocation2 + $0x81] sm:$0xff]  ;;  %v24266_v29 = vpop.f32.mrf.mxu1 }
 0x5bd   : > { %v9992_v31 = vadd.f32 %v26688_v23, %v9602_v52  ;;  %v10383_v15 = vadd.f32 %v26689_v47, %v9993_v32  ;;  %11259 = vst.msk [vmem:[#allocation2 + $0xc1] sm:$0xff] %vm368_vm1, %v11227_v36  ;;  %v11230_v48 = vmax.f32 %v11198_v50, 0.0  ;;  %v11197_v12 = vadd.f32 %v23983_v56, %v11158_v11  ;;  %v24259_v5 = vld [vmem:[#allocation2 + $0x50] sm:$0xff]  ;;  %v26691_v49 = vld [vmem:[#allocation90_spill] sm:$0xff]  ;;  %18910 = vmatmul.mubr.msk.f32.gmra.mxu1 %vm368_vm1, %v24257_v26  ;;  %v11324_v10 = vld [vmem:[#allocation2 + $0xb8] sm:$0x1] }
 0x5be   : > { %v11161_v57 = vadd.f32 %v18873_v30, %v10771_v16  ;;  %26690 = vst [vmem:[#allocation51_spill] sm:$0xff] %v24259_v5  ;;  %11305 = vst.msk [vmem:[#allocation2 + $0x90] sm:$0x1] %vm424_vm2, %v11287_v62  ;;  %v9604_v8 = vadd.f32 %v26691_v49, %v9214_v6  ;;  %v26692_v0 = vld [vmem:[#allocation82_spill] sm:$0xff]  ;;  %v26693_v9 = vld [vmem:[#allocation75_spill] sm:$0xff]  ;;  %18954 = vmatmul.mubr.msk.f32.gmra.mxu0 %vm368_vm1, %v24259_v5  ;;  %v11160_v55 = vadd.f32 %v11073_v1, %v10770_v18  ;;  %v18876_v6 = vpop.f32.mrf.mxu0 }
 0x5bf   : > { %v9995_v45 = vadd.f32 %v26693_v9, %v26692_v0  ;;  %v26694_v33 = vld [vmem:[#allocation50_spill] sm:$0xff]  ;;  %v24272_v52 = vld [vmem:[#allocation2 + $0x91] sm:$0xff]  ;;  %v10773_v32 = vadd.f32 %v24059_v60, %v10383_v15  ;;  %11262 = vst.msk [vmem:[#allocation2 + $0xe1] sm:$0xff] %vm368_vm1, %v11230_v48  ;;  %v11229_v39 = vmax.f32 %v11197_v12, 0.0  ;;  %v26696_v22 = vld [vmem:[#allocation89_spill] sm:$0xff] }
 0x5c0   : > { %v10382_v51 = vadd.f32 %v26694_v33, %v9992_v31  ;;  %v24274_v2 = vld [vmem:[#allocation2 + $0x60] sm:$0xff]  ;;  %v11200_v4 = vadd.f32 %v23983_v56, %v11161_v57  ;;  %18912 = vmatprep.mubr.msk.f32.mxu1 %vm368_vm1, %v24272_v52  ;;  %11342 = vst.msk [vmem:[#allocation2 + $0xb9] sm:$0x1] %vm424_vm2, %v11324_v10  ;;  %v8828_v16 = vadd.f32 %v26696_v22, %v24067_v42  ;;  %v26697_v36 = vld [vmem:[#allocation108_spill] sm:$0xff]  ;;  %v11288_v23 = vld [vmem:[#allocation2 + $0xa9] sm:$0x1]  ;;  %v11083_v0 = vpop.f32.mrf.mxu0 }
 0x5c1   : > { %26695 = vst [vmem:[#allocation11_spill] sm:$0xff] %v24274_v2  ;;  %18956 = vmatprep.mubr.msk.f32.mxu0 %vm368_vm1, %v24274_v2  ;;  %v9216_v50 = vadd.f32 %v26697_v36, %v8826_v40  ;;  %v26698_v60 = vld [vmem:[#allocation56_spill] sm:$0xff]  ;;  %11261 = vst.msk [vmem:[#allocation2 + $0xd9] sm:$0xff] %vm368_vm1, %v11229_v39  ;;  %v11199_v15 = vadd.f32 %v23983_v56, %v11160_v55  ;;  %v11163_v30 = vadd.f32 %v18876_v6, %v10773_v32  ;;  %v24292_v62 = vld [vmem:[#allocation2 + $0x99] sm:$0xff] }
 0x5c2   : > { %v9994_v11 = vadd.f32 %v26698_v60, %v9604_v8  ;;  %v26699_v46 = vld [vmem:[#allocation20_spill] sm:$0xff]  ;;  %v10772_v31 = vadd.f32 %v24092_v13, %v10382_v51  ;;  %v11232_v47 = vmax.f32 %v11200_v4, 0.0  ;;  %v24294_v18 = vld [vmem:[#allocation2 + $0x68] sm:$0xff]  ;;  %11306 = vst.msk [vmem:[#allocation2 + $0xa8] sm:$0x1] %vm424_vm2, %v11288_v23  ;;  %v26701_v42 = vld [vmem:[#allocation25_spill] sm:$0xff]  ;;  %v24301_v13 = vpop.f32.mrf.mxu1  ;;  %18913 = vmatmul.mubr.msk.f32.gmra.mxu1 %vm368_vm1, %v24292_v62 }
 0x5c3   : > { %v10385_v34 = vadd.f32 %v26699_v46, %v9995_v45  ;;  %26700 = vst [vmem:[#allocation8_spill] sm:$0xff] %v24294_v18  ;;  %v9606_v40 = vadd.f32 %v26701_v42, %v9216_v50  ;;  %v26702_v48 = vld [vmem:[#allocation91_spill] sm:$0xff]  ;;  %v26703_v12 = vld [vmem:[#allocation76_spill] sm:$0xff]  ;;  %18957 = vmatmul.mubr.msk.f32.gmra.mxu0 %vm368_vm1, %v24294_v18  ;;  %v11231_v1 = vmax.f32 %v11199_v15, 0.0  ;;  %v11202_v10 = vadd.f32 %v23983_v56, %v11163_v30  ;;  %v26706_v39 = vld [vmem:[#allocation34_spill] sm:$0xff] }
 0x5c4   : > { %v9997_v57 = vadd.f32 %v26703_v12, %v26702_v48  ;;  %v26704_v49 = vld [vmem:[#allocation83_spill] sm:$0xff]  ;;  %v24309_v45 = vld [vmem:[#allocation2 + $0x78] sm:$0xff]  ;;  %11264 = vst.msk [vmem:[#allocation2 + $0xf9] sm:$0xff] %vm368_vm1, %v11232_v47  ;;  %v11162_v32 = vadd.f32 %v11083_v0, %v10772_v31  ;;  %v8830_v4 = vadd.f32 %v26706_v39, %v24086_v20  ;;  %v26707_v55 = vld [vmem:[#allocation98_spill] sm:$0xff] }
 0x5c5   : > { %v10384_v8 = vadd.f32 %v26704_v49, %v9994_v11  ;;  %v24307_v9 = vld [vmem:[#allocation2 + $0xa9] sm:$0xff]  ;;  %26705 = vst [vmem:[#allocation13_spill] sm:$0xff] %v24309_v45  ;;  %v10775_v51 = vadd.f32 %v24125_v59, %v10385_v34  ;;  %18959 = vmatprep.mubr.msk.f32.mxu0 %vm368_vm1, %v24309_v45  ;;  %v9218_v22 = vadd.f32 %v26707_v55, %v8828_v16  ;;  %v26708_v59 = vld [vmem:[#allocation104_spill] sm:$0xff]  ;;  %v26709_v50 = vld [vmem:[#allocation33_spill] sm:$0xff]  ;;  %v18879_v11 = vpop.f32.mrf.mxu0  ;;  %v11234_v6 = vmax.f32 %v11202_v10, 0.0 }
 0x5c6   : > { %v11325_v33 = vld [vmem:[#allocation2 + $0xd0] sm:$0x1]  ;;  %18915 = vmatprep.mubr.msk.f32.mxu1 %vm368_vm1, %v24307_v9  ;;  %v9996_v36 = vadd.f32 %v26708_v59, %v9606_v40  ;;  %v10387_v60 = vadd.f32 %v26709_v50, %v9997_v57  ;;  %v11289_v46 = vld [vmem:[#allocation2 + $0xc1] sm:$0x1]  ;;  %11263 = vst.msk [vmem:[#allocation2 + $0xf1] sm:$0xff] %vm368_vm1, %v11231_v1  ;;  %v11201_v23 = vadd.f32 %v23983_v56, %v11162_v32  ;;  %v24327_v47 = vld [vmem:[#allocation2 + $0xb1] sm:$0xff] }
 0x5c7   : > { %11343 = vst.msk [vmem:[#allocation2 + $0xd1] sm:$0x1] %vm424_vm2, %v11325_v33  ;;  %v10774_v34 = vadd.f32 %v24158_v61, %v10384_v8  ;;  %v11165_v31 = vadd.f32 %v18879_v11, %v10775_v51  ;;  %v24329_v15 = vld [vmem:[#allocation2 + $0x80] sm:$0xff]  ;;  %11307 = vst.msk [vmem:[#allocation2 + $0xc0] sm:$0x1] %vm424_vm2, %v11289_v46  ;;  %v26712_v30 = vld [vmem:[#allocation4_spill] sm:$0xff]  ;;  %v24336_v61 = vpop.f32.mrf.mxu1  ;;  %v11093_v57 = vpop.f32.mrf.mxu0  ;;  %18916 = vmatmul.mubr.msk.f32.gmra.mxu1 %vm368_vm1, %v24327_v47 }
 0x5c8   : > { %26710 = vst [vmem:[#allocation52_spill] sm:$0xff] %v24329_v15  ;;  %v26711_v20 = vld [vmem:[#allocation49_spill] sm:$0xff]  ;;  %v26713_v42 = vld [vmem:[#allocation107_spill] sm:$0xff]  ;;  %18960 = vmatmul.mubr.msk.f32.gmra.mxu0 %vm368_vm1, %v24329_v15  ;;  %v24342_v49 = vld [vmem:[#allocation2 + $0xc1] sm:$0xff]  ;;  %v10777_v33 = vadd.f32 %v24196_v17, %v10387_v60  ;;  %v11233_v51 = vmax.f32 %v11201_v23, 0.0 }
 0x5c9   : > { %v9608_v16 = vadd.f32 %v26711_v20, %v9218_v22  ;;  %v9999_v40 = vadd.f32 %v26713_v42, %v26712_v30  ;;  %v26714_v48 = vld [vmem:[#allocation41_spill] sm:$0xff]  ;;  %v24344_v8 = vld [vmem:[#allocation2 + $0x90] sm:$0xff]  ;;  %v11326_v0 = vld [vmem:[#allocation2 + $0xe8] sm:$0x1]  ;;  %11266 = vst.msk [vmem:[#allocation2 + $0x111] sm:$0xff] %vm368_vm1, %v11234_v6  ;;  %v11204_v1 = vadd.f32 %v23983_v56, %v11165_v31  ;;  %v11164_v10 = vadd.f32 %v11093_v57, %v10774_v34  ;;  %v18882_v60 = vpop.f32.mrf.mxu0 }
 0x5ca   : > { %v10386_v12 = vadd.f32 %v26714_v48, %v9996_v36  ;;  %26715 = vst [vmem:[#allocation70_spill] sm:$0xff] %v24344_v8  ;;  %18918 = vmatprep.mubr.msk.f32.mxu1 %vm368_vm1, %v24342_v49  ;;  %18962 = vmatprep.mubr.msk.f32.mxu0 %vm368_vm1, %v24344_v8  ;;  %11344 = vst.msk [vmem:[#allocation2 + $0xe9] sm:$0x1] %vm424_vm2, %v11326_v0  ;;  %v26716_v32 = vld [vmem:[#allocation19_spill] sm:$0xff]  ;;  %v26717_v55 = vld [vmem:[#allocation68_spill] sm:$0xff]  ;;  %v11167_v23 = vadd.f32 %v18882_v60, %v10777_v33 }
 0x5cb   : > { %v8832_v39 = vadd.f32 %v26716_v32, %v24104_v58  ;;  %v9220_v22 = vadd.f32 %v26717_v55, %v8830_v4  ;;  %v26718_v17 = vld [vmem:[#allocation73_spill] sm:$0xff]  ;;  %11265 = vst.msk [vmem:[#allocation2 + $0x109] sm:$0xff] %vm368_vm1, %v11233_v51  ;;  %v11236_v34 = vmax.f32 %v11204_v1, 0.0  ;;  %v11203_v6 = vadd.f32 %v23983_v56, %v11164_v10  ;;  %v24362_v31 = vld [vmem:[#allocation2 + $0xc9] sm:$0xff]  ;;  %v26726_v55 = vld [vmem:[#allocation40_spill] sm:$0xff] }
 0x5cc   : > { %v9998_v59 = vadd.f32 %v26718_v17, %v9608_v16  ;;  %v26719_v36 = vld [vmem:[#allocation53_spill] sm:$0xff]  ;;  %v10776_v46 = vadd.f32 %v24231_v54, %v10386_v12  ;;  %v26723_v30 = vld [vmem:[#allocation27_spill] sm:$0xff]  ;;  %v10733_v54 = vpop.f32.mrf.mxu1  ;;  %v11103_v12 = vpop.f32.mrf.mxu0  ;;  %18919 = vmatmul.mubr.msk.f32.gmra.mxu1 %vm368_vm1, %v24362_v31  ;;  %v11206_v10 = vadd.f32 %v23983_v56, %v11167_v23  ;;  %v26727_v17 = vld [vmem:[#allocation32_spill] sm:$0xff] }
 0x5cd   : > { %v10389_v50 = vadd.f32 %v26719_v36, %v9999_v40  ;;  %v11290_v11 = vld [vmem:[#allocation2 + $0xd9] sm:$0x1]  ;;  %v26724_v40 = vld [vmem:[#allocation88_spill] sm:$0xff]  ;;  %v24377_v0 = vld [vmem:[#allocation2 + $0xa8] sm:$0xff]  ;;  %11268 = vst.msk [vmem:[#allocation2 + $0x129] sm:$0xff] %vm368_vm1, %v11236_v34  ;;  %v11235_v1 = vmax.f32 %v11203_v6, 0.0 }
 0x5ce   : > { %v24364_v20 = vld [vmem:[#allocation2 + $0x98] sm:$0xff]  ;;  %11308 = vst.msk [vmem:[#allocation2 + $0xd8] sm:$0x1] %vm424_vm2, %v11290_v11  ;;  %v10388_v48 = vadd.f32 %v26724_v40, %v9998_v59  ;;  %26725 = vst [vmem:[#allocation7_spill] sm:$0xff] %v24377_v0  ;;  %v11327_v33 = vld [vmem:[#allocation2 + $0x100] sm:$0x1]  ;;  %v11166_v32 = vadd.f32 %v11103_v12, %v10776_v46 }
 0x5cf   : > { %26720 = vst [vmem:[#allocation93_spill] sm:$0xff] %v24364_v20  ;;  %v26721_v58 = vld [vmem:[#allocation69_spill] sm:$0xff]  ;;  %18963 = vmatmul.mubr.msk.f32.gmra.mxu0 %vm368_vm1, %v24364_v20  ;;  %v10779_v51 = vadd.f32 %v24266_v29, %v10389_v50  ;;  %11345 = vst.msk [vmem:[#allocation2 + $0x101] sm:$0x1] %vm424_vm2, %v11327_v33  ;;  %v18885_v50 = vpop.f32.mrf.mxu0  ;;  %v11291_v60 = vld [vmem:[#allocation2 + $0xf1] sm:$0x1] }
 0x5d0   : > { %v9610_v4 = vadd.f32 %v26721_v58, %v9220_v22  ;;  %v26722_v16 = vld [vmem:[#allocation37_spill] sm:$0xff]  ;;  %18965 = vmatprep.mubr.msk.f32.mxu0 %vm368_vm1, %v24377_v0  ;;  %v9222_v22 = vadd.f32 %v26726_v55, %v8832_v39  ;;  %v10778_v11 = vadd.f32 %v24301_v13, %v10388_v48  ;;  %11267 = vst.msk [vmem:[#allocation2 + $0x121] sm:$0xff] %vm368_vm1, %v11235_v1  ;;  %v11238_v46 = vmax.f32 %v11206_v10, 0.0  ;;  %v24393_v23 = vld [vmem:[#allocation2 + $0xe1] sm:$0xff]  ;;  %v24395_v58 = vld [vmem:[#allocation2 + $0xb0] sm:$0xff]  ;;  %v18841_v13 = vpop.f32.mrf.mxu1 }
 0x5d1   : > { %v10001_v42 = vadd.f32 %v26723_v30, %v26722_v16  ;;  %v24375_v57 = vld [vmem:[#allocation2 + $0xd9] sm:$0xff]  ;;  %v11205_v34 = vadd.f32 %v23983_v56, %v11166_v32  ;;  %v11169_v6 = vadd.f32 %v18885_v50, %v10779_v51  ;;  %26729 = vst [vmem:[#allocation102_spill] sm:$0xff] %v24395_v58  ;;  %11309 = vst.msk [vmem:[#allocation2 + $0xf0] sm:$0x1] %vm424_vm2, %v11291_v60  ;;  %v26730_v39 = vld [vmem:[#allocation92_spill] sm:$0xff]  ;;  %v11113_v48 = vpop.f32.mrf.mxu0 }
 0x5d2   : > { %18921 = vmatprep.mubr.msk.f32.mxu1 %vm368_vm1, %v24375_v57  ;;  %v10000_v59 = vadd.f32 %v26727_v17, %v9610_v4  ;;  %v26728_v36 = vld [vmem:[#allocation97_spill] sm:$0xff]  ;;  %v9612_v4 = vadd.f32 %v26730_v39, %v9222_v22  ;;  %v26731_v16 = vld [vmem:[#allocation94_spill] sm:$0xff]  ;;  %v26733_v40 = vld [vmem:[#allocation39_spill] sm:$0xff]  ;;  %11270 = vst.msk [vmem:[#allocation2 + $0x141] sm:$0xff] %vm368_vm1, %v11238_v46  ;;  %v11168_v22 = vadd.f32 %v11113_v48, %v10778_v11 }
 0x5d3   : > { %v10391_v29 = vadd.f32 %v26728_v36, %v10001_v42  ;;  %v26732_v30 = vld [vmem:[#allocation106_spill] sm:$0xff]  ;;  %18922 = vmatmul.mubr.msk.f32.gmra.mxu1 %vm368_vm1, %v24393_v23  ;;  %18966 = vmatmul.mubr.msk.f32.gmra.mxu0 %vm368_vm1, %v24395_v58  ;;  %v24406_v33 = vld [vmem:[#allocation2 + $0xf1] sm:$0xff]  ;;  %v11237_v32 = vmax.f32 %v11205_v34, 0.0  ;;  %v11208_v55 = vadd.f32 %v23983_v56, %v11169_v6  ;;  %v26735_v17 = vld [vmem:[#allocation71_spill] sm:$0xff]  ;;  %v18888_v50 = vpop.f32.mrf.mxu0 }
 0x5d4   : > { %v10003_v42 = vadd.f32 %v26732_v30, %v26731_v16  ;;  %v10390_v12 = vadd.f32 %v26733_v40, %v10000_v59  ;;  %v24408_v51 = vld [vmem:[#allocation2 + $0xc0] sm:$0xff]  ;;  %v11328_v1 = vld [vmem:[#allocation2 + $0x118] sm:$0x1]  ;;  %18924 = vmatprep.mubr.msk.f32.mxu1 %vm368_vm1, %v24406_v33  ;;  %v10002_v59 = vadd.f32 %v26735_v17, %v9612_v4  ;;  %v11207_v11 = vadd.f32 %v23983_v56, %v11168_v22  ;;  %v24424_v6 = vld [vmem:[#allocation2 + $0xc8] sm:$0xff]  ;;  %v10743_v4 = vpop.f32.mrf.mxu1 }
 0x5d5   : > { %26734 = vst [vmem:[#allocation14_spill] sm:$0xff] %v24408_v51  ;;  %v10781_v10 = vadd.f32 %v24336_v61, %v10391_v29  ;;  %18968 = vmatprep.mubr.msk.f32.mxu0 %vm368_vm1, %v24408_v51  ;;  %11346 = vst.msk [vmem:[#allocation2 + $0x119] sm:$0x1] %vm424_vm2, %v11328_v1  ;;  %v11292_v61 = vld [vmem:[#allocation2 + $0x109] sm:$0x1]  ;;  %v11240_v60 = vmax.f32 %v11208_v55, 0.0  ;;  %v11123_v16 = vpop.f32.mrf.mxu0 }
 0x5d6   : > { %v10393_v36 = vadd.f32 %v23966_v43, %v10003_v42  ;;  %v10780_v29 = vadd.f32 %v10733_v54, %v10390_v12  ;;  %11269 = vst.msk [vmem:[#allocation2 + $0x139] sm:$0xff] %vm368_vm1, %v11237_v32  ;;  %v24422_v34 = vld [vmem:[#allocation2 + $0xf9] sm:$0xff]  ;;  %26736 = vst [vmem:[#allocation64_spill] sm:$0xff] %v24424_v6  ;;  %v10392_v39 = vadd.f32 %v23973_v63, %v10002_v59  ;;  %v24432_v43 = vld [vmem:[#allocation2 + $0x109] sm:$0xff]  ;;  %v11239_v40 = vmax.f32 %v11207_v11, 0.0 }
 0x5d7   : > { %v11171_v46 = vadd.f32 %v18888_v50, %v10781_v10  ;;  %11310 = vst.msk [vmem:[#allocation2 + $0x108] sm:$0x1] %vm424_vm2, %v11292_v61  ;;  %18925 = vmatmul.mubr.msk.f32.gmra.mxu1 %vm368_vm1, %v24422_v34  ;;  %18969 = vmatmul.mubr.msk.f32.gmra.mxu0 %vm368_vm1, %v24424_v6  ;;  %v24434_v54 = vld [vmem:[#allocation2 + $0xd8] sm:$0xff]  ;;  %v11329_v30 = vld [vmem:[#allocation2 + $0x130] sm:$0x1]  ;;  %v18891_v48 = vpop.f32.mrf.mxu0  ;;  %v24447_v17 = vld [vmem:[#allocation2 + $0xe0] sm:$0xff] }
 0x5d8   : > { %26737 = vst [vmem:[#allocation23_spill] sm:$0xff] %v24434_v54  ;;  %v10783_v42 = vadd.f32 %v18841_v13, %v10393_v36  ;;  %11272 = vst.msk [vmem:[#allocation2 + $0x159] sm:$0xff] %vm368_vm1, %v11240_v60  ;;  %v11170_v63 = vadd.f32 %v11123_v16, %v10780_v29  ;;  %18927 = vmatprep.mubr.msk.f32.mxu1 %vm368_vm1, %v24432_v43  ;;  %18971 = vmatprep.mubr.msk.f32.mxu0 %vm368_vm1, %v24434_v54  ;;  %v11293_v1 = vld [vmem:[#allocation2 + $0x121] sm:$0x1]  ;;  %v24445_v22 = vld [vmem:[#allocation2 + $0x111] sm:$0xff] }
 0x5d9   : > { %v11210_v12 = vadd.f32 %v23983_v56, %v11171_v46  ;;  %11347 = vst.msk [vmem:[#allocation2 + $0x131] sm:$0x1] %vm424_vm2, %v11329_v30  ;;  %v10782_v10 = vadd.f32 %v10743_v4, %v10392_v39  ;;  %26738 = vst [vmem:[#allocation54_spill] sm:$0xff] %v24447_v17  ;;  %v11133_v59 = vpop.f32.mrf.mxu0  ;;  %v24454_v36 = vld [vmem:[#allocation2 + $0x121] sm:$0xff]  ;;  %v24456_v50 = vld [vmem:[#allocation2 + $0xf0] sm:$0xff] }
 0x5da   : > { %11271 = vst.msk [vmem:[#allocation2 + $0x151] sm:$0xff] %vm368_vm1, %v11239_v40  ;;  %v11209_v32 = vadd.f32 %v23983_v56, %v11170_v63  ;;  %v11173_v55 = vadd.f32 %v18891_v48, %v10783_v42  ;;  %26739 = vst [vmem:[#allocation35_spill] sm:$0xff] %v24456_v50  ;;  %v11330_v61 = vld [vmem:[#allocation2 + $0x148] sm:$0x1]  ;;  %v24467_v16 = vld [vmem:[#allocation2 + $0x129] sm:$0xff] }
 0x5db   : > { %v11242_v13 = vmax.f32 %v11210_v12, 0.0  ;;  %11311 = vst.msk [vmem:[#allocation2 + $0x120] sm:$0x1] %vm424_vm2, %v11293_v1  ;;  %18928 = vmatmul.mubr.msk.f32.gmra.mxu1 %vm368_vm1, %v24445_v22  ;;  %18972 = vmatmul.mubr.msk.f32.gmra.mxu0 %vm368_vm1, %v24447_v17  ;;  %v11172_v11 = vadd.f32 %v11133_v59, %v10782_v10  ;;  %11348 = vst.msk [vmem:[#allocation2 + $0x149] sm:$0x1] %vm424_vm2, %v11330_v61  ;;  %v24469_v30 = vld [vmem:[#allocation2 + $0xf8] sm:$0xff] }
 0x5dc   : > { %v11241_v29 = vmax.f32 %v11209_v32, 0.0  ;;  %v11212_v60 = vadd.f32 %v23983_v56, %v11173_v55  ;;  %18930 = vmatprep.mubr.msk.f32.mxu1 %vm368_vm1, %v24454_v36  ;;  %18974 = vmatprep.mubr.msk.f32.mxu0 %vm368_vm1, %v24456_v50  ;;  %26740 = vst [vmem:[#allocation15_spill] sm:$0xff] %v24469_v30  ;;  %v24489_v48 = vld [vmem:[#allocation2 + $0x141] sm:$0xff]  ;;  %v24491_v1 = vld [vmem:[#allocation2 + $0x110] sm:$0xff] }
 0x5dd   : > { %11274 = vst.msk [vmem:[#allocation2 + $0x171] sm:$0xff] %vm368_vm1, %v11242_v13  ;;  %v11294_v46 = vld [vmem:[#allocation2 + $0x139] sm:$0x1]  ;;  %v11211_v4 = vadd.f32 %v23983_v56, %v11172_v11  ;;  %26742 = vst [vmem:[#allocation17_spill] sm:$0xff] %v24491_v1  ;;  %v24509_v61 = vld [vmem:[#allocation2 + $0x128] sm:$0xff] }
 0x5de   : > { %11273 = vst.msk [vmem:[#allocation2 + $0x169] sm:$0xff] %vm368_vm1, %v11241_v29  ;;  %v11244_v39 = vmax.f32 %v11212_v60, 0.0  ;;  %v24476_v42 = vld [vmem:[#allocation2 + $0x139] sm:$0xff]  ;;  %v24478_v40 = vld [vmem:[#allocation2 + $0x108] sm:$0xff]  ;;  %26745 = vst [vmem:[#allocation63_spill] sm:$0xff] %v24509_v61 }
 0x5df   : > { %11312 = vst.msk [vmem:[#allocation2 + $0x138] sm:$0x1] %vm424_vm2, %v11294_v46  ;;  %18931 = vmatmul.mubr.msk.f32.gmra.mxu1 %vm368_vm1, %v24467_v16  ;;  %18975 = vmatmul.mubr.msk.f32.gmra.mxu0 %vm368_vm1, %v24469_v30  ;;  %26741 = vst [vmem:[#allocation55_spill] sm:$0xff] %v24478_v40  ;;  %v11331_v12 = vld [vmem:[#allocation2 + $0x160] sm:$0x1]  ;;  %v11243_v56 = vmax.f32 %v11211_v4, 0.0 }
 0x5e0   : > { %11276 = vst.msk [vmem:[#allocation2 + $0x189] sm:$0xff] %vm368_vm1, %v11244_v39  ;;  %11280 = vst.msk [vmem:[#allocation2 + $0x1a1] sm:$0xff] %vm368_vm1, %v11244_v39  ;;  %18933 = vmatprep.mubr.msk.f32.mxu1 %vm368_vm1, %v24476_v42  ;;  %18977 = vmatprep.mubr.msk.f32.mxu0 %vm368_vm1, %v24478_v40  ;;  %v24507_v59 = vld [vmem:[#allocation2 + $0x159] sm:$0xff] }
 0x5e1   : > { %11349 = vst.msk [vmem:[#allocation2 + $0x161] sm:$0x1] %vm424_vm2, %v11331_v12  ;;  %v11295_v63 = vld [vmem:[#allocation2 + $0x151] sm:$0x1]  ;;  %26744 = vst [vmem:[#allocation81_spill] sm:$0xff] %v24507_v59  ;;  %v24527_v4 = vld [vmem:[#allocation2 + $0x140] sm:$0xff] }
 0x5e2   : > { %11275 = vst.msk [vmem:[#allocation2 + $0x181] sm:$0xff] %vm368_vm1, %v11243_v56  ;;  %11279 = vst.msk [vmem:[#allocation2 + $0x199] sm:$0xff] %vm368_vm1, %v11243_v56  ;;  %v24498_v10 = vld [vmem:[#allocation2 + $0x151] sm:$0xff]  ;;  %v24500_v13 = vld [vmem:[#allocation2 + $0x120] sm:$0xff] }
 0x5e3   : > { %11313 = vst.msk [vmem:[#allocation2 + $0x150] sm:$0x1] %vm424_vm2, %v11295_v63  ;;  %18934 = vmatmul.mubr.msk.f32.gmra.mxu1 %vm368_vm1, %v24489_v48  ;;  %18978 = vmatmul.mubr.msk.f32.gmra.mxu0 %vm368_vm1, %v24491_v1  ;;  %26743 = vst [vmem:[#allocation61_spill] sm:$0xff] %v24500_v13  ;;  %v12068_v63 = vld [vmem:[#allocation2 + $0x2] sm:$0xff] }
 0x5e4   : > { %v11332_v32 = vld [vmem:[#allocation2 + $0x178] sm:$0x1]  ;;  %18936 = vmatprep.mubr.msk.f32.mxu1 %vm368_vm1, %v24498_v10  ;;  %18980 = vmatprep.mubr.msk.f32.mxu0 %vm368_vm1, %v24500_v13  ;;  %26749 = vst [vmem:[#allocation6_spill] sm:$0xff] %v24527_v4 }
 0x5e5   : > { %11350 = vst.msk [vmem:[#allocation2 + $0x179] sm:$0x1] %vm424_vm2, %v11332_v32  ;;  %v11296_v55 = vld [vmem:[#allocation2 + $0x169] sm:$0x1]  ;;  %v24525_v39 = vld [vmem:[#allocation2 + $0x171] sm:$0xff] }
 0x5e6   : > { %11314 = vst.msk [vmem:[#allocation2 + $0x168] sm:$0x1] %vm424_vm2, %v11296_v55  ;;  %v24516_v29 = vld [vmem:[#allocation2 + $0x169] sm:$0xff]  ;;  %v24518_v60 = vld [vmem:[#allocation2 + $0x138] sm:$0xff]  ;;  %26748 = vst [vmem:[#allocation29_spill] sm:$0xff] %v24525_v39 }
 0x5e7   : > { %18937 = vmatmul.mubr.msk.f32.gmra.mxu1 %vm368_vm1, %v24507_v59  ;;  %18981 = vmatmul.mubr.msk.f32.gmra.mxu0 %vm368_vm1, %v24509_v61  ;;  %26746 = vst [vmem:[#allocation58_spill] sm:$0xff] %v24516_v29  ;;  %26747 = vst [vmem:[#allocation22_spill] sm:$0xff] %v24518_v60  ;;  %v11333_v11 = vld [vmem:[#allocation2 + $0x190] sm:$0x1]  ;;  %v11334_v32 = vld [vmem:[#allocation2 + $0x1a8] sm:$0x1] }
 0x5e8   : > { %18939 = vmatprep.mubr.msk.f32.mxu1 %vm368_vm1, %v24516_v29  ;;  %18983 = vmatprep.mubr.msk.f32.mxu0 %vm368_vm1, %v24518_v60  ;;  %11351 = vst.msk [vmem:[#allocation2 + $0x191] sm:$0x1] %vm424_vm2, %v11333_v11  ;;  %v24540_v55 = vld [vmem:[#allocation2 + $0x158] sm:$0xff]  ;;  %v12069_v11 = vld [vmem:[#allocation2 + $0xa] sm:$0xff]  ;;  %11352 = vst.msk [vmem:[#allocation2 + $0x1a9] sm:$0x1] %vm424_vm2, %v11334_v32 }
 0x5e9   : > { %v11297_v46 = vld [vmem:[#allocation2 + $0x181] sm:$0x1]  ;;  %v11298_v12 = vld [vmem:[#allocation2 + $0x199] sm:$0x1]  ;;  %v24563_v32 = vld [vmem:[#allocation2 + $0x170] sm:$0xff] }
 0x5ea   : > { %11315 = vst.msk [vmem:[#allocation2 + $0x180] sm:$0x1] %vm424_vm2, %v11297_v46  ;;  %v24534_v56 = vld [vmem:[#allocation2 + $0x150] sm:$0xff]  ;;  %11316 = vst.msk [vmem:[#allocation2 + $0x198] sm:$0x1] %vm424_vm2, %v11298_v12 }
 0x5eb   : > { %18940 = vmatmul.mubr.msk.f32.gmra.mxu1 %vm368_vm1, %v24525_v39  ;;  %18984 = vmatmul.mubr.msk.f32.gmra.mxu0 %vm368_vm1, %v24527_v4  ;;  %26750 = vst [vmem:[#allocation95_spill] sm:$0xff] %v24534_v56  ;;  %v24545_v46 = vld [vmem:[%s25804_s7 + $0x18] sm:$0xf]  ;;  %v24565_v39 = vld [vmem:[#allocation2 + $0x22] sm:$0xff]  ;;  %v24583_v29 = vld [vmem:[#allocation2 + $0x4a] sm:$0xff] }
 0x5ec   : > { %18986 = vmatprep.mubr.msk.f32.mxu0 %vm368_vm1, %v24534_v56  ;;  %18994 = vmatprep.mubr.msk.f32.mxu1 %vm368_vm1, %v12068_v63  ;;  %v24557_v63 = vld [vmem:[#allocation2 + $0x1a] sm:$0xff] }
 0x5ed   : > { %v24551_v12 = vld [vmem:[#allocation2 + $0x168] sm:$0xff]  ;;  %v24588_v59 = vld [vmem:[%s25804_s7 + $0x1c] sm:$0xf] }
 0x5ef   : > { %18987 = vmatmul.mubr.msk.f32.gmra.mxu0 %vm368_vm1, %v24540_v55  ;;  %18995 = vmatmul.mubr.msk.f32.vlgmr.msra.gmra.mxu1 %vm368_vm1, %v12069_v11  ;;  %v24577_v11 = vld [vmem:[#allocation2 + $0x3a] sm:$0xff] }
 0x5f0   : > { %19093 = vmatpush3.msk.msra.mxu1 %vm642_vm0, %v24082_v3  ;;  %18989 = vmatprep.mubr.msk.f32.mxu0 %vm368_vm1, %v24551_v12  ;;  %v24571_v3 = vld [vmem:[#allocation2 + $0x32] sm:$0xff] }
 0x5f1   : > { %18997 = vmatprep.mubr.msk.f32.mxu1 %vm368_vm1, %v24557_v63  ;;  %19192 = vmatprep.subr.msk.mxu1 %vm642_vm0, %v24545_v46 }
 0x5f3   : > { %18990 = vmatmul.mubr.msk.f32.gmra.mxu0 %vm368_vm1, %v24563_v32  ;;  %18998 = vmatmul.mubr.msk.f32.gmra.mxu1 %vm368_vm1, %v24565_v39 }
 0x5f4   : > { %19000 = vmatprep.mubr.msk.f32.mxu1 %vm368_vm1, %v24571_v3  ;;  %19044 = vmatprep.mubr.msk.f32.mxu0 %vm368_vm1, %v24165_v19  ;;  %v24596_v19 = vld [vmem:[#allocation2 + $0x52] sm:$0xff] }
 0x5f7   : > { %19001 = vmatmul.mubr.msk.f32.gmra.mxu1 %vm368_vm1, %v24577_v11  ;;  %19045 = vmatmul.mubr.msk.f32.vlgmr.msra.gmra.mxu0 %vm368_vm1, %v24187_v35  ;;  %v24604_v35 = vld [vmem:[#allocation2 + $0x62] sm:$0xff] }
 0x5f8   : > { %19003 = vmatprep.mubr.msk.f32.mxu1 %vm368_vm1, %v24583_v29  ;;  %19047 = vmatprep.mubr.msk.f32.mxu0 %vm368_vm1, %v24204_v14  ;;  %v24616_v14 = vld [vmem:[#allocation2 + $0x7a] sm:$0xff] }
 0x5f9   : > { %19143 = vmatpush3.msk.msra.mxu0 %vm642_vm0, %v24152_v7  ;;  %v24610_v7 = vld [vmem:[#allocation2 + $0x6a] sm:$0xff] }
 0x5fa   : > { %19242 = vmatprep.subr.msk.mxu0 %vm642_vm0, %v24588_v59 }
 0x5fb   : > { %19004 = vmatmul.mubr.msk.f32.gmra.mxu1 %vm368_vm1, %v24596_v19  ;;  %19048 = vmatmul.mubr.msk.f32.gmra.mxu0 %vm368_vm1, %v24224_v53  ;;  %v24622_v53 = vld [vmem:[#allocation2 + $0x82] sm:$0xff] }
 0x5fc   : > { %19006 = vmatprep.mubr.msk.f32.mxu1 %vm368_vm1, %v24604_v35  ;;  %19050 = vmatprep.mubr.msk.f32.mxu0 %vm368_vm1, %v24239_v28  ;;  %v24628_v28 = vld [vmem:[#allocation2 + $0x92] sm:$0xff] }
 0x5ff   : > { %19007 = vmatmul.mubr.msk.f32.gmra.mxu1 %vm368_vm1, %v24610_v7  ;;  %19051 = vmatmul.mubr.msk.f32.gmra.mxu0 %vm368_vm1, %v24259_v5  ;;  %v24634_v5 = vld [vmem:[#allocation2 + $0x9a] sm:$0xff] }
 0x600   : > { %19009 = vmatprep.mubr.msk.f32.mxu1 %vm368_vm1, %v24616_v14  ;;  %19053 = vmatprep.mubr.msk.f32.mxu0 %vm368_vm1, %v24274_v2  ;;  %v24640_v2 = vld [vmem:[#allocation2 + $0xaa] sm:$0xff] }
 0x603   : > { %19010 = vmatmul.mubr.msk.f32.gmra.mxu1 %vm368_vm1, %v24622_v53  ;;  %19054 = vmatmul.mubr.msk.f32.gmra.mxu0 %vm368_vm1, %v24294_v18  ;;  %v24646_v18 = vld [vmem:[#allocation2 + $0xb2] sm:$0xff] }
 0x604   : > { %19012 = vmatprep.mubr.msk.f32.mxu1 %vm368_vm1, %v24628_v28  ;;  %19056 = vmatprep.mubr.msk.f32.mxu0 %vm368_vm1, %v24309_v45  ;;  %v24652_v45 = vld [vmem:[#allocation2 + $0xc2] sm:$0xff] }
 0x607   : > { %19013 = vmatmul.mubr.msk.f32.gmra.mxu1 %vm368_vm1, %v24634_v5  ;;  %19057 = vmatmul.mubr.msk.f32.gmra.mxu0 %vm368_vm1, %v24329_v15  ;;  %v24658_v15 = vld [vmem:[#allocation2 + $0xca] sm:$0xff] }
 0x608   : > { %19015 = vmatprep.mubr.msk.f32.mxu1 %vm368_vm1, %v24640_v2  ;;  %19059 = vmatprep.mubr.msk.f32.mxu0 %vm368_vm1, %v24344_v8  ;;  %v24664_v8 = vld [vmem:[#allocation2 + $0xda] sm:$0xff] }
 0x60b   : > { %19016 = vmatmul.mubr.msk.f32.gmra.mxu1 %vm368_vm1, %v24646_v18  ;;  %19060 = vmatmul.mubr.msk.f32.gmra.mxu0 %vm368_vm1, %v24364_v20  ;;  %v24670_v20 = vld [vmem:[#allocation2 + $0xe2] sm:$0xff] }
 0x60c   : > { %19018 = vmatprep.mubr.msk.f32.mxu1 %vm368_vm1, %v24652_v45  ;;  %19062 = vmatprep.mubr.msk.f32.mxu0 %vm368_vm1, %v24377_v0  ;;  %v24676_v0 = vld [vmem:[#allocation2 + $0xf2] sm:$0xff] }
 0x60f   : > { %19019 = vmatmul.mubr.msk.f32.gmra.mxu1 %vm368_vm1, %v24658_v15  ;;  %19063 = vmatmul.mubr.msk.f32.gmra.mxu0 %vm368_vm1, %v24395_v58  ;;  %v24682_v58 = vld [vmem:[#allocation2 + $0xfa] sm:$0xff] }
 0x610   : > { %19021 = vmatprep.mubr.msk.f32.mxu1 %vm368_vm1, %v24664_v8  ;;  %19065 = vmatprep.mubr.msk.f32.mxu0 %vm368_vm1, %v24408_v51  ;;  %v24688_v51 = vld [vmem:[#allocation2 + $0x10a] sm:$0xff] }
 0x613   : > { %19022 = vmatmul.mubr.msk.f32.gmra.mxu1 %vm368_vm1, %v24670_v20  ;;  %19066 = vmatmul.mubr.msk.f32.gmra.mxu0 %vm368_vm1, %v24424_v6  ;;  %v24694_v6 = vld [vmem:[#allocation2 + $0x112] sm:$0xff] }
 0x614   : > { %19024 = vmatprep.mubr.msk.f32.mxu1 %vm368_vm1, %v24676_v0  ;;  %19068 = vmatprep.mubr.msk.f32.mxu0 %vm368_vm1, %v24434_v54  ;;  %v24700_v54 = vld [vmem:[#allocation2 + $0x122] sm:$0xff] }
 0x617   : > { %19025 = vmatmul.mubr.msk.f32.gmra.mxu1 %vm368_vm1, %v24682_v58  ;;  %19069 = vmatmul.mubr.msk.f32.gmra.mxu0 %vm368_vm1, %v24447_v17  ;;  %v24706_v17 = vld [vmem:[#allocation2 + $0x12a] sm:$0xff] }
 0x618   : > { %19027 = vmatprep.mubr.msk.f32.mxu1 %vm368_vm1, %v24688_v51  ;;  %19071 = vmatprep.mubr.msk.f32.mxu0 %vm368_vm1, %v24456_v50  ;;  %v24712_v50 = vld [vmem:[#allocation2 + $0x13a] sm:$0xff] }
 0x61b   : > { %19028 = vmatmul.mubr.msk.f32.gmra.mxu1 %vm368_vm1, %v24694_v6  ;;  %19072 = vmatmul.mubr.msk.f32.gmra.mxu0 %vm368_vm1, %v24469_v30  ;;  %v24718_v30 = vld [vmem:[#allocation2 + $0x142] sm:$0xff] }
 0x61c   : > { %19030 = vmatprep.mubr.msk.f32.mxu1 %vm368_vm1, %v24700_v54  ;;  %19074 = vmatprep.mubr.msk.f32.mxu0 %vm368_vm1, %v24478_v40  ;;  %v24724_v40 = vld [vmem:[#allocation2 + $0x152] sm:$0xff] }
 0x61f   : > { %19031 = vmatmul.mubr.msk.f32.gmra.mxu1 %vm368_vm1, %v24706_v17  ;;  %19075 = vmatmul.mubr.msk.f32.gmra.mxu0 %vm368_vm1, %v24491_v1  ;;  %v24730_v1 = vld [vmem:[#allocation2 + $0x15a] sm:$0xff] }
 0x620   : > { %19033 = vmatprep.mubr.msk.f32.mxu1 %vm368_vm1, %v24712_v50  ;;  %19077 = vmatprep.mubr.msk.f32.mxu0 %vm368_vm1, %v24500_v13  ;;  %v24736_v13 = vld [vmem:[#allocation2 + $0x16a] sm:$0xff] }
 0x623   : > { %19034 = vmatmul.mubr.msk.f32.gmra.mxu1 %vm368_vm1, %v24718_v30  ;;  %19078 = vmatmul.mubr.msk.f32.gmra.mxu0 %vm368_vm1, %v24509_v61  ;;  %v24742_v61 = vld [vmem:[#allocation2 + $0x172] sm:$0xff] }
 0x624   : > { %19036 = vmatprep.mubr.msk.f32.mxu1 %vm368_vm1, %v24724_v40  ;;  %19080 = vmatprep.mubr.msk.f32.mxu0 %vm368_vm1, %v24518_v60  ;;  %v24754_v60 = vld [vmem:[%s25804_s7 + $0x20] sm:$0xf] }
 0x627   : > { %19037 = vmatmul.mubr.msk.f32.gmra.mxu1 %vm368_vm1, %v24730_v1  ;;  %19081 = vmatmul.mubr.msk.f32.gmra.mxu0 %vm368_vm1, %v24527_v4  ;;  %v19480_v4 = vld [vmem:[#allocation2 + $0x19] sm:$0xff] }
 0x628   : > { %19039 = vmatprep.mubr.msk.f32.mxu1 %vm368_vm1, %v24736_v13  ;;  %19083 = vmatprep.mubr.msk.f32.mxu0 %vm368_vm1, %v24534_v56  ;;  %v24760_v56 = vld [vmem:[#allocation2 + $0x180] sm:$0xff] }
 0x62b   : > { %19040 = vmatmul.mubr.msk.f32.gmra.mxu1 %vm368_vm1, %v24742_v61  ;;  %19084 = vmatmul.mubr.msk.f32.gmra.mxu0 %vm368_vm1, %v24540_v55 }
 0x62c   : > { %19086 = vmatprep.mubr.msk.f32.mxu0 %vm368_vm1, %v24551_v12  ;;  %19094 = vmatprep.mubr.msk.f32.mxu1 %vm368_vm1, %v19480_v4  ;;  %v24770_v4 = vld [vmem:[#allocation2 + $0x188] sm:$0xff] }
 0x62f   : > { %19087 = vmatmul.mubr.msk.f32.gmra.mxu0 %vm368_vm1, %v24563_v32  ;;  %19095 = vmatmul.mubr.msk.f32.vlgmr.msra.gmra.mxu1 %vm368_vm1, %v24116_v25  ;;  %v26751_v25 = vld [vmem:[#allocation81_spill] sm:$0xff] }
 0x630   : > { %19193 = vmatpush3.msk.msra.mxu1 %vm642_vm0, %v24545_v46  ;;  %19089 = vmatprep.mubr.msk.f32.mxu0 %vm368_vm1, %v24760_v56  ;;  %v26765_v46 = vld [vmem:[#allocation102_spill] sm:$0xff] }
 0x631   : > { %19097 = vmatprep.mubr.msk.f32.mxu1 %vm368_vm1, %v24129_v24  ;;  %19292 = vmatprep.subr.msk.mxu1 %vm642_vm0, %v24754_v60  ;;  %v26752_v24 = vld [vmem:[#allocation58_spill] sm:$0xff] }
 0x633   : > { %19090 = vmatmul.mubr.msk.f32.gmra.mxu0 %vm368_vm1, %v24770_v4  ;;  %19098 = vmatmul.mubr.msk.f32.gmra.mxu1 %vm368_vm1, %v24146_v27  ;;  %v26753_v27 = vld [vmem:[#allocation29_spill] sm:$0xff] }
 0x634   : > { %19100 = vmatprep.mubr.msk.f32.mxu1 %vm368_vm1, %v24163_v38  ;;  %19144 = vmatprep.mubr.msk.f32.mxu0 %vm368_vm1, %v24557_v63  ;;  %v24882_v38 = vld [vmem:[#allocation2 + $0x181] sm:$0xff]  ;;  %v14026_v63 = vld [vmem:[#allocation2 + $0x91] sm:$0xff] }
 0x637   : > { %19101 = vmatmul.mubr.msk.f32.gmra.mxu1 %vm368_vm1, %v24185_v21  ;;  %19145 = vmatmul.mubr.msk.f32.vlgmr.msra.gmra.mxu0 %vm368_vm1, %v24565_v39  ;;  %v24888_v21 = vld [vmem:[#allocation2 + $0x189] sm:$0xff] }
 0x638   : > { %19103 = vmatprep.mubr.msk.f32.mxu1 %vm368_vm1, %v24202_v44  ;;  %19147 = vmatprep.mubr.msk.f32.mxu0 %vm368_vm1, %v24571_v3  ;;  %v26754_v44 = vld [vmem:[#allocation80_spill] sm:$0xff] }
 0x639   : > { %19243 = vmatpush3.msk.msra.mxu0 %vm642_vm0, %v24588_v59 }
 0x63b   : > { %19104 = vmatmul.mubr.msk.f32.gmra.mxu1 %vm368_vm1, %v24222_v37  ;;  %19148 = vmatmul.mubr.msk.f32.gmra.mxu0 %vm368_vm1, %v24577_v11 }
 0x63c   : > { %19106 = vmatprep.mubr.msk.f32.mxu1 %vm368_vm1, %v24237_v41  ;;  %19150 = vmatprep.mubr.msk.f32.mxu0 %vm368_vm1, %v24583_v29  ;;  %v24902_v41 = vld [vmem:[#allocation2 + $0x182] sm:$0xff] }
 0x63f   : > { %19107 = vmatmul.mubr.msk.f32.gmra.mxu1 %vm368_vm1, %v24257_v26  ;;  %19151 = vmatmul.mubr.msk.f32.gmra.mxu0 %vm368_vm1, %v24596_v19 }
 0x640   : > { %19109 = vmatprep.mubr.msk.f32.mxu1 %vm368_vm1, %v24272_v52  ;;  %19153 = vmatprep.mubr.msk.f32.mxu0 %vm368_vm1, %v24604_v35 }
 0x643   : > { %19110 = vmatmul.mubr.msk.f32.gmra.mxu1 %vm368_vm1, %v24292_v62  ;;  %19154 = vmatmul.mubr.msk.f32.gmra.mxu0 %vm368_vm1, %v24610_v7  ;;  %v14018_v62 = vld [vmem:[#allocation2 + $0x31] sm:$0xff] }
 0x644   : > { %19112 = vmatprep.mubr.msk.f32.mxu1 %vm368_vm1, %v24307_v9  ;;  %19156 = vmatprep.mubr.msk.f32.mxu0 %vm368_vm1, %v24616_v14 }
 0x647   : > { %19113 = vmatmul.mubr.msk.f32.gmra.mxu1 %vm368_vm1, %v24327_v47  ;;  %19157 = vmatmul.mubr.msk.f32.gmra.mxu0 %vm368_vm1, %v24622_v53  ;;  %v26755_v53 = vld [vmem:[#allocation99_spill] sm:$0xff] }
 0x648   : > { %19115 = vmatprep.mubr.msk.f32.mxu1 %vm368_vm1, %v24342_v49  ;;  %19159 = vmatprep.mubr.msk.f32.mxu0 %vm368_vm1, %v24628_v28  ;;  %v26756_v28 = vld [vmem:[#allocation77_spill] sm:$0xff]  ;;  %v26759_v49 = vld [vmem:[#allocation8_spill] sm:$0xff] }
 0x64b   : > { %19116 = vmatmul.mubr.msk.f32.gmra.mxu1 %vm368_vm1, %v24362_v31  ;;  %19160 = vmatmul.mubr.msk.f32.gmra.mxu0 %vm368_vm1, %v24634_v5  ;;  %v24910_v5 = vld [vmem:[#allocation2 + $0x18a] sm:$0xff] }
 0x64c   : > { %19118 = vmatprep.mubr.msk.f32.mxu1 %vm368_vm1, %v24375_v57  ;;  %19162 = vmatprep.mubr.msk.f32.mxu0 %vm368_vm1, %v24640_v2  ;;  %v26757_v2 = vld [vmem:[#allocation51_spill] sm:$0xff] }
 0x64f   : > { %19119 = vmatmul.mubr.msk.f32.gmra.mxu1 %vm368_vm1, %v24393_v23  ;;  %19163 = vmatmul.mubr.msk.f32.gmra.mxu0 %vm368_vm1, %v24646_v18  ;;  %v26758_v18 = vld [vmem:[#allocation11_spill] sm:$0xff] }
 0x650   : > { %19121 = vmatprep.mubr.msk.f32.mxu1 %vm368_vm1, %v24406_v33  ;;  %19165 = vmatprep.mubr.msk.f32.mxu0 %vm368_vm1, %v24652_v45  ;;  %v14019_v45 = vld [vmem:[#allocation2 + $0x39] sm:$0xff] }
 0x653   : > { %19122 = vmatmul.mubr.msk.f32.gmra.mxu1 %vm368_vm1, %v24422_v34  ;;  %19166 = vmatmul.mubr.msk.f32.gmra.mxu0 %vm368_vm1, %v24658_v15  ;;  %v26761_v34 = vld [vmem:[#allocation52_spill] sm:$0xff] }
 0x654   : > { %19124 = vmatprep.mubr.msk.f32.mxu1 %vm368_vm1, %v24432_v43  ;;  %19168 = vmatprep.mubr.msk.f32.mxu0 %vm368_vm1, %v24664_v8  ;;  %v14020_v8 = vld [vmem:[#allocation2 + $0x49] sm:$0xff] }
 0x657   : > { %19125 = vmatmul.mubr.msk.f32.gmra.mxu1 %vm368_vm1, %v24445_v22  ;;  %19169 = vmatmul.mubr.msk.f32.gmra.mxu0 %vm368_vm1, %v24670_v20  ;;  %v26760_v20 = vld [vmem:[#allocation13_spill] sm:$0xff] }
 0x658   : > { %19127 = vmatprep.mubr.msk.f32.mxu1 %vm368_vm1, %v24454_v36  ;;  %19171 = vmatprep.mubr.msk.f32.mxu0 %vm368_vm1, %v24676_v0 }
 0x65b   : > { %19128 = vmatmul.mubr.msk.f32.gmra.mxu1 %vm368_vm1, %v24467_v16  ;;  %19172 = vmatmul.mubr.msk.f32.gmra.mxu0 %vm368_vm1, %v24682_v58  ;;  %v14021_v58 = vld [vmem:[#allocation2 + $0x51] sm:$0xff] }
 0x65c   : > { %19130 = vmatprep.mubr.msk.f32.mxu1 %vm368_vm1, %v24476_v42  ;;  %19174 = vmatprep.mubr.msk.f32.mxu0 %vm368_vm1, %v24688_v51  ;;  %v26763_v42 = vld [vmem:[#allocation93_spill] sm:$0xff] }
 0x65f   : > { %19131 = vmatmul.mubr.msk.f32.gmra.mxu1 %vm368_vm1, %v24489_v48  ;;  %19175 = vmatmul.mubr.msk.f32.gmra.mxu0 %vm368_vm1, %v24694_v6  ;;  %v14022_v6 = vld [vmem:[#allocation2 + $0x61] sm:$0xff] }
 0x660   : > { %19133 = vmatprep.mubr.msk.f32.mxu1 %vm368_vm1, %v24498_v10  ;;  %19177 = vmatprep.mubr.msk.f32.mxu0 %vm368_vm1, %v24700_v54  ;;  %v26762_v54 = vld [vmem:[#allocation70_spill] sm:$0xff] }
 0x663   : > { %19134 = vmatmul.mubr.msk.f32.gmra.mxu1 %vm368_vm1, %v26751_v25  ;;  %19178 = vmatmul.mubr.msk.f32.gmra.mxu0 %vm368_vm1, %v24706_v17  ;;  %v26766_v25 = vld [vmem:[#allocation14_spill] sm:$0xff] }
 0x664   : > { %19136 = vmatprep.mubr.msk.f32.mxu1 %vm368_vm1, %v26752_v24  ;;  %19180 = vmatprep.mubr.msk.f32.mxu0 %vm368_vm1, %v24712_v50  ;;  %v14023_v50 = vld [vmem:[#allocation2 + $0x69] sm:$0xff] }
 0x666   : > { %v18896_v37 = vpop.f32.mrf.mxu1 }
 0x667   : > { %19137 = vmatmul.mubr.msk.f32.gmra.mxu1 %vm368_vm1, %v26753_v27  ;;  %19181 = vmatmul.mubr.msk.f32.gmra.mxu0 %vm368_vm1, %v24718_v30 }
 0x668   : > { %19139 = vmatprep.mubr.msk.f32.mxu1 %vm368_vm1, %v24882_v38  ;;  %19183 = vmatprep.mubr.msk.f32.mxu0 %vm368_vm1, %v24724_v40  ;;  %v11585_v26 = vpop.f32.mrf.mxu1  ;;  %v14024_v40 = vld [vmem:[#allocation2 + $0x79] sm:$0xff] }
 0x66a   : > { %v18899_v52 = vpop.f32.mrf.mxu1 }
 0x66b   : > { %19140 = vmatmul.mubr.msk.f32.gmra.mxu1 %vm368_vm1, %v24888_v21  ;;  %19184 = vmatmul.mubr.msk.f32.gmra.mxu0 %vm368_vm1, %v24730_v1  ;;  %v26764_v1 = vld [vmem:[#allocation7_spill] sm:$0xff] }
 0x66c   : > { %19186 = vmatprep.mubr.msk.f32.mxu0 %vm368_vm1, %v24736_v13  ;;  %19194 = vmatprep.mubr.msk.f32.mxu1 %vm368_vm1, %v26754_v44  ;;  %v11595_v9 = vpop.f32.mrf.mxu1 }
 0x66f   : > { %19187 = vmatmul.mubr.msk.f32.gmra.mxu0 %vm368_vm1, %v24742_v61  ;;  %19195 = vmatmul.mubr.msk.f32.vlgmr.msra.gmra.mxu1 %vm368_vm1, %v26755_v53  ;;  %v18902_v47 = vpop.f32.mrf.mxu1  ;;  %v18946_v15 = vpop.f32.mrf.mxu0  ;;  %v14025_v61 = vld [vmem:[#allocation2 + $0x81] sm:$0xff] }
 0x670   : > { %19293 = vmatpush3.msk.msra.mxu1 %vm642_vm0, %v24754_v60  ;;  %19189 = vmatprep.mubr.msk.f32.mxu0 %vm368_vm1, %v24902_v41  ;;  %v24922_v31 = vadd.f32 %v18946_v15, %v18896_v37  ;;  %v14027_v37 = vld [vmem:[#allocation2 + $0x99] sm:$0xff] }
 0x671   : > { %19197 = vmatprep.mubr.msk.f32.mxu1 %vm368_vm1, %v26756_v28  ;;  %v11605_v57 = vpop.f32.mrf.mxu1  ;;  %v11909_v0 = vpop.f32.mrf.mxu0 }
 0x672   : > { %v24927_v23 = vadd.f32 %v11909_v0, %v11585_v26  ;;  %v26767_v26 = vld [vmem:[#allocation64_spill] sm:$0xff]  ;;  %v26770_v0 = vld [vmem:[#allocation35_spill] sm:$0xff] }
 0x673   : > { %19190 = vmatmul.mubr.msk.f32.gmra.mxu0 %vm368_vm1, %v24910_v5  ;;  %19198 = vmatmul.mubr.msk.f32.gmra.mxu1 %vm368_vm1, %v26757_v2 }
 0x674   : > { %19200 = vmatprep.mubr.msk.f32.mxu1 %vm368_vm1, %v26758_v18  ;;  %19244 = vmatprep.mubr.msk.f32.mxu0 %vm368_vm1, %v14018_v62  ;;  %v18905_v33 = vpop.f32.mrf.mxu1  ;;  %v26768_v62 = vld [vmem:[#allocation23_spill] sm:$0xff] }
 0x676   : > { %v18949_v51 = vpop.f32.mrf.mxu0  ;;  %v11615_v22 = vpop.f32.mrf.mxu1 }
 0x677   : > { %19201 = vmatmul.mubr.msk.f32.gmra.mxu1 %vm368_vm1, %v26759_v49  ;;  %19245 = vmatmul.mubr.msk.f32.vlgmr.msra.gmra.mxu0 %vm368_vm1, %v14019_v45  ;;  %v24932_v43 = vadd.f32 %v18949_v51, %v18899_v52  ;;  %v14028_v52 = vld [vmem:[#allocation2 + $0xa9] sm:$0xff] }
 0x678   : > { %19203 = vmatprep.mubr.msk.f32.mxu1 %vm368_vm1, %v26760_v20  ;;  %19247 = vmatprep.mubr.msk.f32.mxu0 %vm368_vm1, %v14020_v8  ;;  %v11919_v17 = vpop.f32.mrf.mxu0  ;;  %v26769_v8 = vld [vmem:[#allocation54_spill] sm:$0xff] }
 0x679   : > { %v24937_v36 = vadd.f32 %v11919_v17, %v11595_v9  ;;  %v18908_v16 = vpop.f32.mrf.mxu1  ;;  %v14030_v20 = vld [vmem:[#allocation2 + $0xc1] sm:$0xff]  ;;  %v14032_v17 = vld [vmem:[#allocation2 + $0xd9] sm:$0xff] }
 0x67a   : > { %v18952_v30 = vpop.f32.mrf.mxu0 }
 0x67b   : > { %19204 = vmatmul.mubr.msk.f32.gmra.mxu1 %vm368_vm1, %v26761_v34  ;;  %19248 = vmatmul.mubr.msk.f32.gmra.mxu0 %vm368_vm1, %v14021_v58  ;;  %v24942_v48 = vadd.f32 %v18952_v30, %v18902_v47  ;;  %v11625_v10 = vpop.f32.mrf.mxu1  ;;  %v14029_v47 = vld [vmem:[#allocation2 + $0xb1] sm:$0xff]  ;;  %v14031_v34 = vld [vmem:[#allocation2 + $0xc9] sm:$0xff] }
 0x67c   : > { %19206 = vmatprep.mubr.msk.f32.mxu1 %vm368_vm1, %v26762_v54  ;;  %19250 = vmatprep.mubr.msk.f32.mxu0 %vm368_vm1, %v14022_v6  ;;  %v11929_v13 = vpop.f32.mrf.mxu0 }
 0x67d   : > { %v24947_v59 = vadd.f32 %v11929_v13, %v11605_v57  ;;  %v18911_v60 = vpop.f32.mrf.mxu1 }
 0x67e   : > { %v18955_v39 = vpop.f32.mrf.mxu0 }
 0x67f   : > { %19207 = vmatmul.mubr.msk.f32.gmra.mxu1 %vm368_vm1, %v26763_v42  ;;  %19251 = vmatmul.mubr.msk.f32.gmra.mxu0 %vm368_vm1, %v14023_v50  ;;  %v24952_v7 = vadd.f32 %v18955_v39, %v18905_v33  ;;  %v11635_v24 = vpop.f32.mrf.mxu1 }
 0x680   : > { %19209 = vmatprep.mubr.msk.f32.mxu1 %vm368_vm1, %v26764_v1  ;;  %19253 = vmatprep.mubr.msk.f32.mxu0 %vm368_vm1, %v14024_v40  ;;  %v11939_v27 = vpop.f32.mrf.mxu0  ;;  %v14033_v1 = vld [vmem:[#allocation2 + $0xe1] sm:$0xff] }
 0x681   : > { %v24957_v44 = vadd.f32 %v11939_v27, %v11615_v22  ;;  %v26771_v22 = vld [vmem:[#allocation15_spill] sm:$0xff]  ;;  %v14035_v27 = vld [vmem:[#allocation2 + $0xf9] sm:$0xff] }
 0x682   : > { %v18914_v53 = vpop.f32.mrf.mxu1 }
 0x683   : > { %19210 = vmatmul.mubr.msk.f32.gmra.mxu1 %vm368_vm1, %v26765_v46  ;;  %19254 = vmatmul.mubr.msk.f32.gmra.mxu0 %vm368_vm1, %v14025_v61  ;;  %v18958_v28 = vpop.f32.mrf.mxu0  ;;  %v26773_v61 = vld [vmem:[#allocation17_spill] sm:$0xff] }
 0x684   : > { %19212 = vmatprep.mubr.msk.f32.mxu1 %vm368_vm1, %v26766_v25  ;;  %19256 = vmatprep.mubr.msk.f32.mxu0 %vm368_vm1, %v14026_v63  ;;  %v24962_v2 = vadd.f32 %v18958_v28, %v18908_v16  ;;  %v11645_v18 = vpop.f32.mrf.mxu1  ;;  %v26772_v16 = vld [vmem:[#allocation55_spill] sm:$0xff]  ;;  %v26774_v46 = vld [vmem:[#allocation61_spill] sm:$0xff] }
 0x685   : > { %v11949_v9 = vpop.f32.mrf.mxu0  ;;  %v26775_v28 = vld [vmem:[#allocation63_spill] sm:$0xff] }
 0x686   : > { %v24967_v45 = vadd.f32 %v11949_v9, %v11625_v10 }
 0x687   : > { %19213 = vmatmul.mubr.msk.f32.gmra.mxu1 %vm368_vm1, %v26767_v26  ;;  %19257 = vmatmul.mubr.msk.f32.gmra.mxu0 %vm368_vm1, %v14027_v37  ;;  %v18917_v15 = vpop.f32.mrf.mxu1  ;;  %v14036_v26 = vld [vmem:[#allocation2 + $0x109] sm:$0xff] }
 0x688   : > { %19215 = vmatprep.mubr.msk.f32.mxu1 %vm368_vm1, %v26768_v62  ;;  %19259 = vmatprep.mubr.msk.f32.mxu0 %vm368_vm1, %v14028_v52  ;;  %v18961_v49 = vpop.f32.mrf.mxu0  ;;  %v26776_v62 = vld [vmem:[#allocation22_spill] sm:$0xff] }
 0x689   : > { %v24972_v57 = vadd.f32 %v18961_v49, %v18911_v60  ;;  %v11655_v58 = vpop.f32.mrf.mxu1  ;;  %v14034_v60 = vld [vmem:[#allocation2 + $0xf1] sm:$0xff] }
 0x68a   : > { %v11959_v33 = vpop.f32.mrf.mxu0 }
 0x68b   : > { %19216 = vmatmul.mubr.msk.f32.gmra.mxu1 %vm368_vm1, %v26769_v8  ;;  %19260 = vmatmul.mubr.msk.f32.gmra.mxu0 %vm368_vm1, %v14029_v47  ;;  %v24977_v51 = vadd.f32 %v11959_v33, %v11635_v24  ;;  %v26778_v33 = vld [vmem:[#allocation95_spill] sm:$0xff] }
 0x68c   : > { %19218 = vmatprep.mubr.msk.f32.mxu1 %vm368_vm1, %v26770_v0  ;;  %19262 = vmatprep.mubr.msk.f32.mxu0 %vm368_vm1, %v14030_v20  ;;  %v18920_v6 = vpop.f32.mrf.mxu1  ;;  %v26777_v20 = vld [vmem:[#allocation6_spill] sm:$0xff] }
 0x68d   : > { %v14038_v0 = vld [vmem:[#allocation2 + $0x121] sm:$0xff] }
 0x68e   : > { %v11665_v30 = vpop.f32.mrf.mxu1 }
 0x68f   : > { %v18964_v54 = vpop.f32.mrf.mxu0  ;;  %19219 = vmatmul.mubr.msk.f32.gmra.mxu1 %vm368_vm1, %v26771_v22  ;;  %19263 = vmatmul.mubr.msk.f32.gmra.mxu0 %vm368_vm1, %v14031_v34  ;;  %v14039_v22 = vld [vmem:[#allocation2 + $0x129] sm:$0xff] }
 0x690   : > { %v24982_v50 = vadd.f32 %v18964_v54, %v18914_v53  ;;  %19221 = vmatprep.mubr.msk.f32.mxu1 %vm368_vm1, %v26772_v16  ;;  %19265 = vmatprep.mubr.msk.f32.mxu0 %vm368_vm1, %v14032_v17 }
 0x691   : > { %v11969_v42 = vpop.f32.mrf.mxu0 }
 0x692   : > { %v24987_v40 = vadd.f32 %v11969_v42, %v11645_v18 }
 0x693   : > { %v18923_v10 = vpop.f32.mrf.mxu1  ;;  %v18967_v13 = vpop.f32.mrf.mxu0  ;;  %19222 = vmatmul.mubr.msk.f32.gmra.mxu1 %vm368_vm1, %v26773_v61  ;;  %19266 = vmatmul.mubr.msk.f32.gmra.mxu0 %vm368_vm1, %v14033_v1  ;;  %v14041_v61 = vld [vmem:[#allocation2 + $0x141] sm:$0xff] }
 0x694   : > { %v24992_v39 = vadd.f32 %v18967_v13, %v18917_v15  ;;  %19224 = vmatprep.mubr.msk.f32.mxu1 %vm368_vm1, %v26774_v46  ;;  %19268 = vmatprep.mubr.msk.f32.mxu0 %vm368_vm1, %v14034_v60  ;;  %v14037_v15 = vld [vmem:[#allocation2 + $0x111] sm:$0xff] }
 0x695   : > { %v11675_v63 = vpop.f32.mrf.mxu1  ;;  %v11979_v25 = vpop.f32.mrf.mxu0 }
 0x696   : > { %v24997_v24 = vadd.f32 %v11979_v25, %v11655_v58 }
 0x697   : > { %v18926_v37 = vpop.f32.mrf.mxu1  ;;  %v18970_v53 = vpop.f32.mrf.mxu0  ;;  %19225 = vmatmul.mubr.msk.f32.gmra.mxu1 %vm368_vm1, %v26775_v28  ;;  %19269 = vmatmul.mubr.msk.f32.gmra.mxu0 %vm368_vm1, %v14035_v27 }
 0x698   : > { %v25002_v52 = vadd.f32 %v18970_v53, %v18920_v6  ;;  %19227 = vmatprep.mubr.msk.f32.mxu1 %vm368_vm1, %v26776_v62  ;;  %19271 = vmatprep.mubr.msk.f32.mxu0 %vm368_vm1, %v14036_v26  ;;  %v14044_v26 = vld [vmem:[#allocation2 + $0x169] sm:$0xff] }
 0x699   : > { %v11685_v18 = vpop.f32.mrf.mxu1  ;;  %v11989_v9 = vpop.f32.mrf.mxu0 }
 0x69a   : > { %v25007_v47 = vadd.f32 %v11989_v9, %v11665_v30  ;;  %v14040_v30 = vld [vmem:[#allocation2 + $0x139] sm:$0xff] }
 0x69b   : > { %v18929_v49 = vpop.f32.mrf.mxu1  ;;  %v18973_v8 = vpop.f32.mrf.mxu0  ;;  %19228 = vmatmul.mubr.msk.f32.gmra.mxu1 %vm368_vm1, %v26777_v20  ;;  %19272 = vmatmul.mubr.msk.f32.gmra.mxu0 %vm368_vm1, %v14037_v15  ;;  %v13659_v15 = vld [vmem:[#allocation2 + $0x1a0] sm:$0xff] }
 0x69c   : > { %v25012_v58 = vadd.f32 %v18973_v8, %v18923_v10  ;;  %19230 = vmatprep.mubr.msk.f32.mxu1 %vm368_vm1, %v26778_v33  ;;  %19274 = vmatprep.mubr.msk.f32.mxu0 %vm368_vm1, %v14038_v0 }
 0x69d   : > { %v11695_v34 = vpop.f32.mrf.mxu1  ;;  %v11999_v6 = vpop.f32.mrf.mxu0 }
 0x69e   : > { %v25017_v54 = vadd.f32 %v11999_v6, %v11675_v63 }
 0x69f   : > { %v18932_v17 = vpop.f32.mrf.mxu1  ;;  %v18976_v16 = vpop.f32.mrf.mxu0  ;;  %19231 = vmatmul.mubr.msk.f32.gmra.mxu1 %vm368_vm1, %v24540_v55  ;;  %19275 = vmatmul.mubr.msk.f32.gmra.mxu0 %vm368_vm1, %v14039_v22  ;;  %v14042_v55 = vld [vmem:[#allocation2 + $0x151] sm:$0xff] }
 0x6a0   : > { %v25022_v42 = vadd.f32 %v18976_v16, %v18926_v37  ;;  %19233 = vmatprep.mubr.msk.f32.mxu1 %vm368_vm1, %v24551_v12  ;;  %19277 = vmatprep.mubr.msk.f32.mxu0 %vm368_vm1, %v14040_v30  ;;  %v14043_v37 = vld [vmem:[#allocation2 + $0x159] sm:$0xff] }
 0x6a1   : > { %v11705_v1 = vpop.f32.mrf.mxu1  ;;  %v12009_v10 = vpop.f32.mrf.mxu0 }
 0x6a2   : > { %v25027_v13 = vadd.f32 %v12009_v10, %v11685_v18 }
 0x6a3   : > { %v18935_v60 = vpop.f32.mrf.mxu1  ;;  %v18979_v46 = vpop.f32.mrf.mxu0  ;;  %19234 = vmatmul.mubr.msk.f32.gmra.mxu1 %vm368_vm1, %v24563_v32  ;;  %19278 = vmatmul.mubr.msk.f32.gmra.mxu0 %vm368_vm1, %v14041_v61  ;;  %v13658_v32 = vld [vmem:[#allocation2 + $0x198] sm:$0xff] }
 0x6a4   : > { %v25032_v63 = vadd.f32 %v18979_v46, %v18929_v49  ;;  %19236 = vmatprep.mubr.msk.f32.mxu1 %vm368_vm1, %v24760_v56  ;;  %19280 = vmatprep.mubr.msk.f32.mxu0 %vm368_vm1, %v14042_v55  ;;  %v14045_v49 = vld [vmem:[#allocation2 + $0x171] sm:$0xff] }
 0x6a5   : > { %v11715_v12 = vpop.f32.mrf.mxu1  ;;  %v12019_v25 = vpop.f32.mrf.mxu0 }
 0x6a6   : > { %v25037_v27 = vadd.f32 %v12019_v25, %v11695_v34 }
 0x6a7   : > { %v18938_v53 = vpop.f32.mrf.mxu1  ;;  %v18982_v28 = vpop.f32.mrf.mxu0  ;;  %19237 = vmatmul.mubr.msk.f32.gmra.mxu1 %vm368_vm1, %v24770_v4  ;;  %19281 = vmatmul.mubr.msk.f32.gmra.mxu0 %vm368_vm1, %v14043_v37 }
 0x6a8   : > { %v25042_v62 = vadd.f32 %v18982_v28, %v18932_v17  ;;  %19239 = vmatprep.mubr.msk.f32.mxu1 %vm368_vm1, %v13658_v32  ;;  %19283 = vmatprep.mubr.msk.f32.mxu0 %vm368_vm1, %v14044_v26  ;;  %v14048_v17 = vld [vmem:[#allocation2 + $0x199] sm:$0xff]  ;;  %v14415_v26 = vld [vmem:[#allocation2 + $0x82] sm:$0xff] }
 0x6a9   : > { %v11725_v56 = vpop.f32.mrf.mxu1  ;;  %v12029_v18 = vpop.f32.mrf.mxu0 }
 0x6aa   : > { %v25046_v9 = vadd.f32 %v12029_v18, %v11705_v1  ;;  %v14416_v18 = vld [vmem:[#allocation2 + $0x92] sm:$0xff] }
 0x6ab   : > { %v18941_v8 = vpop.f32.mrf.mxu1  ;;  %v18985_v20 = vpop.f32.mrf.mxu0  ;;  %19240 = vmatmul.mubr.msk.f32.gmra.mxu1 %vm368_vm1, %v13659_v15  ;;  %19284 = vmatmul.mubr.msk.f32.gmra.mxu0 %vm368_vm1, %v14045_v49 }
 0x6ac   : > { %v25050_v4 = vadd.f32 %v18985_v20, %v18935_v60  ;;  %19286 = vmatprep.mubr.msk.f32.mxu0 %vm368_vm1, %v24882_v38  ;;  %19294 = vmatprep.mubr.msk.f32.mxu1 %vm368_vm1, %v24571_v3 }
 0x6ad   : > { %v11735_v0 = vpop.f32.mrf.mxu1  ;;  %v12039_v33 = vpop.f32.mrf.mxu0 }
 0x6ae   : > { %v25056_v34 = vadd.f32 %v12039_v33, %v11715_v12  ;;  %v14413_v12 = vld [vmem:[#allocation2 + $0x6a] sm:$0xff] }
 0x6af   : > { %v18988_v6 = vpop.f32.mrf.mxu0  ;;  %v18996_v22 = vpop.f32.mrf.mxu1  ;;  %19287 = vmatmul.mubr.msk.f32.gmra.mxu0 %vm368_vm1, %v24888_v21  ;;  %19295 = vmatmul.mubr.msk.f32.vlgmr.msra.gmra.mxu1 %vm368_vm1, %v24577_v11  ;;  %v14049_v21 = vld [vmem:[#allocation2 + $0x1a1] sm:$0xff] }
 0x6b0   : > { %v25062_v16 = vadd.f32 %v18988_v6, %v18938_v53  ;;  %v12427_v38 = vadd.f32 %v18996_v22, %v24922_v31  ;;  %19289 = vmatprep.mubr.msk.f32.mxu0 %vm368_vm1, %v14048_v17  ;;  %19297 = vmatprep.mubr.msk.f32.mxu1 %vm368_vm1, %v24583_v29  ;;  %v14418_v6 = vld [vmem:[#allocation2 + $0xaa] sm:$0xff] }
 0x6b1   : > { %v12049_v3 = vpop.f32.mrf.mxu0  ;;  %v12267_v30 = vpop.f32.mrf.mxu1 }
 0x6b2   : > { %v25068_v1 = vadd.f32 %v12049_v3, %v11725_v56  ;;  %v12426_v10 = vadd.f32 %v12267_v30, %v24927_v23 }
 0x6b3   : > { %v18991_v61 = vpop.f32.mrf.mxu0  ;;  %v18999_v60 = vpop.f32.mrf.mxu1  ;;  %19290 = vmatmul.mubr.msk.f32.gmra.mxu0 %vm368_vm1, %v14049_v21  ;;  %19298 = vmatmul.mubr.msk.f32.gmra.mxu1 %vm368_vm1, %v24596_v19 }
 0x6b4   : > { %v25074_v11 = vadd.f32 %v18991_v61, %v18941_v8  ;;  %v12429_v31 = vadd.f32 %v18999_v60, %v24932_v43  ;;  %19300 = vmatprep.mubr.msk.f32.mxu1 %vm368_vm1, %v24604_v35  ;;  %v14420_v61 = vld [vmem:[#allocation2 + $0xc2] sm:$0xff] }
 0x6b5   : > { %v12059_v29 = vpop.f32.mrf.mxu0  ;;  %v12277_v46 = vpop.f32.mrf.mxu1 }
 0x6b6   : > { %v25079_v55 = vadd.f32 %v12059_v29, %v11735_v0  ;;  %v12428_v23 = vadd.f32 %v12277_v46, %v24937_v36 }
 0x6b7   : > { %v19002_v25 = vpop.f32.mrf.mxu1  ;;  %v19046_v37 = vpop.f32.mrf.mxu0  ;;  %19301 = vmatmul.mubr.msk.f32.gmra.mxu1 %vm368_vm1, %v14413_v12 }
 0x6b8   : > { %v12431_v19 = vadd.f32 %v19002_v25, %v24942_v48  ;;  %v25084_v53 = vadd.f32 %v19046_v37, %v12427_v38  ;;  %19303 = vmatprep.mubr.msk.f32.mxu1 %vm368_vm1, %v24616_v14  ;;  %v14422_v37 = vld [vmem:[#allocation2 + $0xda] sm:$0xff] }
 0x6b9   : > { %v12287_v43 = vpop.f32.mrf.mxu1  ;;  %v12657_v35 = vpop.f32.mrf.mxu0 }
 0x6ba   : > { %v12430_v28 = vadd.f32 %v12287_v43, %v24947_v59  ;;  %v25089_v32 = vadd.f32 %v12657_v35, %v12426_v10  ;;  %v14417_v59 = vld [vmem:[#allocation2 + $0x9a] sm:$0xff] }
 0x6bb   : > { %v19005_v36 = vpop.f32.mrf.mxu1  ;;  %v19049_v56 = vpop.f32.mrf.mxu0  ;;  %19304 = vmatmul.mubr.msk.f32.gmra.mxu1 %vm368_vm1, %v14415_v26 }
 0x6bc   : > { %v12433_v15 = vadd.f32 %v19005_v36, %v24952_v7  ;;  %v25093_v48 = vadd.f32 %v19049_v56, %v12429_v31  ;;  %19306 = vmatprep.mubr.msk.f32.mxu1 %vm368_vm1, %v14416_v18  ;;  %v14424_v18 = vld [vmem:[#allocation2 + $0xf2] sm:$0xff] }
 0x6bd   : > { %v12297_v49 = vpop.f32.mrf.mxu1  ;;  %v12667_v14 = vpop.f32.mrf.mxu0 }
 0x6be   : > { %v12432_v8 = vadd.f32 %v12297_v49, %v24957_v44  ;;  %v25097_v20 = vadd.f32 %v12667_v14, %v12428_v23  ;;  %v14419_v44 = vld [vmem:[#allocation2 + $0xb2] sm:$0xff] }
 0x6bf   : > { %v19008_v0 = vpop.f32.mrf.mxu1  ;;  %v19052_v33 = vpop.f32.mrf.mxu0  ;;  %19307 = vmatmul.mubr.msk.f32.gmra.mxu1 %vm368_vm1, %v14417_v59 }
 0x6c0   : > { %v12435_v22 = vadd.f32 %v19008_v0, %v24962_v2  ;;  %v25101_v17 = vadd.f32 %v19052_v33, %v12431_v19  ;;  %19309 = vmatprep.mubr.msk.f32.mxu1 %vm368_vm1, %v14418_v6  ;;  %v14426_v6 = vld [vmem:[#allocation2 + $0x10a] sm:$0xff] }
 0x6c1   : > { %v12307_v7 = vpop.f32.mrf.mxu1  ;;  %v12677_v38 = vpop.f32.mrf.mxu0 }
 0x6c2   : > { %v12434_v3 = vadd.f32 %v12307_v7, %v24967_v45  ;;  %v25105_v30 = vadd.f32 %v12677_v38, %v12430_v28  ;;  %v14421_v45 = vld [vmem:[#allocation2 + $0xca] sm:$0xff] }
 0x6c3   : > { %v19011_v10 = vpop.f32.mrf.mxu1  ;;  %v19055_v21 = vpop.f32.mrf.mxu0  ;;  %19310 = vmatmul.mubr.msk.f32.gmra.mxu1 %vm368_vm1, %v14419_v44 }
 0x6c4   : > { %v12437_v60 = vadd.f32 %v19011_v10, %v24972_v57  ;;  %v25109_v31 = vadd.f32 %v19055_v21, %v12433_v15  ;;  %19312 = vmatprep.mubr.msk.f32.mxu1 %vm368_vm1, %v14420_v61  ;;  %v14428_v61 = vld [vmem:[#allocation2 + $0x122] sm:$0xff] }
 0x6c5   : > { %v12317_v2 = vpop.f32.mrf.mxu1  ;;  %v12687_v29 = vpop.f32.mrf.mxu0 }
 0x6c6   : > { %v12436_v46 = vadd.f32 %v12317_v2, %v24977_v51  ;;  %v25113_v23 = vadd.f32 %v12687_v29, %v12432_v8  ;;  %v14423_v51 = vld [vmem:[#allocation2 + $0xe2] sm:$0xff] }
 0x6c7   : > { %v19014_v12 = vpop.f32.mrf.mxu1  ;;  %v19058_v25 = vpop.f32.mrf.mxu0  ;;  %19313 = vmatmul.mubr.msk.f32.gmra.mxu1 %vm368_vm1, %v14421_v45 }
 0x6c8   : > { %v12439_v19 = vadd.f32 %v19014_v12, %v24982_v50  ;;  %v25117_v43 = vadd.f32 %v19058_v25, %v12435_v22  ;;  %19315 = vmatprep.mubr.msk.f32.mxu1 %vm368_vm1, %v14422_v37  ;;  %v14430_v37 = vld [vmem:[#allocation2 + $0x13a] sm:$0xff] }
 0x6c9   : > { %v12327_v57 = vpop.f32.mrf.mxu1  ;;  %v12697_v35 = vpop.f32.mrf.mxu0 }
 0x6ca   : > { %v12438_v28 = vadd.f32 %v12327_v57, %v24987_v40  ;;  %v25121_v26 = vadd.f32 %v12697_v35, %v12434_v3  ;;  %v14425_v40 = vld [vmem:[#allocation2 + $0xfa] sm:$0xff] }
 0x6cb   : > { %v19017_v36 = vpop.f32.mrf.mxu1  ;;  %v19061_v56 = vpop.f32.mrf.mxu0  ;;  %19316 = vmatmul.mubr.msk.f32.gmra.mxu1 %vm368_vm1, %v14423_v51 }
 0x6cc   : > { %v12441_v15 = vadd.f32 %v19017_v36, %v24992_v39  ;;  %v25125_v49 = vadd.f32 %v19061_v56, %v12437_v60  ;;  %19318 = vmatprep.mubr.msk.f32.mxu1 %vm368_vm1, %v14424_v18  ;;  %v14432_v18 = vld [vmem:[#allocation2 + $0x152] sm:$0xff] }
 0x6cd   : > { %v12337_v50 = vpop.f32.mrf.mxu1  ;;  %v12707_v14 = vpop.f32.mrf.mxu0 }
 0x6ce   : > { %v12440_v8 = vadd.f32 %v12337_v50, %v24997_v24  ;;  %v25129_v59 = vadd.f32 %v12707_v14, %v12436_v46  ;;  %v14427_v24 = vld [vmem:[#allocation2 + $0x112] sm:$0xff] }
 0x6cf   : > { %v19020_v0 = vpop.f32.mrf.mxu1  ;;  %v19064_v33 = vpop.f32.mrf.mxu0  ;;  %19319 = vmatmul.mubr.msk.f32.gmra.mxu1 %vm368_vm1, %v14425_v40 }
 0x6d0   : > { %v12443_v22 = vadd.f32 %v19020_v0, %v25002_v52  ;;  %v25133_v7 = vadd.f32 %v19064_v33, %v12439_v19  ;;  %19321 = vmatprep.mubr.msk.f32.mxu1 %vm368_vm1, %v14426_v6  ;;  %v14434_v6 = vld [vmem:[#allocation2 + $0x16a] sm:$0xff] }
 0x6d1   : > { %v12347_v39 = vpop.f32.mrf.mxu1  ;;  %v12717_v38 = vpop.f32.mrf.mxu0 }
 0x6d2   : > { %v12442_v3 = vadd.f32 %v12347_v39, %v25007_v47  ;;  %v25137_v44 = vadd.f32 %v12717_v38, %v12438_v28  ;;  %v14429_v47 = vld [vmem:[#allocation2 + $0x12a] sm:$0xff] }
 0x6d3   : > { %v19023_v10 = vpop.f32.mrf.mxu1  ;;  %v19067_v21 = vpop.f32.mrf.mxu0  ;;  %19322 = vmatmul.mubr.msk.f32.gmra.mxu1 %vm368_vm1, %v14427_v24 }
 0x6d4   : > { %v12445_v60 = vadd.f32 %v19023_v10, %v25012_v58  ;;  %v25141_v2 = vadd.f32 %v19067_v21, %v12441_v15  ;;  %19324 = vmatprep.mubr.msk.f32.mxu1 %vm368_vm1, %v14428_v61 }
 0x6d5   : > { %v12357_v52 = vpop.f32.mrf.mxu1  ;;  %v12727_v29 = vpop.f32.mrf.mxu0 }
 0x6d6   : > { %v12444_v46 = vadd.f32 %v12357_v52, %v25017_v54  ;;  %v25145_v45 = vadd.f32 %v12727_v29, %v12440_v8  ;;  %v14431_v54 = vld [vmem:[#allocation2 + $0x142] sm:$0xff] }
 0x6d7   : > { %v19026_v12 = vpop.f32.mrf.mxu1  ;;  %v19070_v25 = vpop.f32.mrf.mxu0  ;;  %19325 = vmatmul.mubr.msk.f32.gmra.mxu1 %vm368_vm1, %v14429_v47 }
 0x6d8   : > { %v12447_v19 = vadd.f32 %v19026_v12, %v25022_v42  ;;  %v25149_v57 = vadd.f32 %v19070_v25, %v12443_v22  ;;  %19327 = vmatprep.mubr.msk.f32.mxu1 %vm368_vm1, %v14430_v37  ;;  %v14438_v12 = vld [vmem:[#allocation2 + $0x19a] sm:$0xff] }
 0x6d9   : > { %v12367_v58 = vpop.f32.mrf.mxu1  ;;  %v12737_v35 = vpop.f32.mrf.mxu0 }
 0x6da   : > { %v12446_v28 = vadd.f32 %v12367_v58, %v25027_v13  ;;  %v25153_v51 = vadd.f32 %v12737_v35, %v12442_v3  ;;  %v14433_v13 = vld [vmem:[#allocation2 + $0x15a] sm:$0xff] }
 0x6db   : > { %v19029_v36 = vpop.f32.mrf.mxu1  ;;  %v19073_v56 = vpop.f32.mrf.mxu0  ;;  %19328 = vmatmul.mubr.msk.f32.gmra.mxu1 %vm368_vm1, %v14431_v54 }
 0x6dc   : > { %v12449_v15 = vadd.f32 %v19029_v36, %v25032_v63  ;;  %v25157_v50 = vadd.f32 %v19073_v56, %v12445_v60  ;;  %19330 = vmatprep.mubr.msk.f32.mxu1 %vm368_vm1, %v14432_v18 }
 0x6dd   : > { %v12377_v42 = vpop.f32.mrf.mxu1  ;;  %v12747_v14 = vpop.f32.mrf.mxu0 }
 0x6de   : > { %v12448_v8 = vadd.f32 %v12377_v42, %v25037_v27  ;;  %v25161_v40 = vadd.f32 %v12747_v14, %v12444_v46  ;;  %v14435_v27 = vld [vmem:[#allocation2 + $0x172] sm:$0xff] }
 0x6df   : > { %v19032_v0 = vpop.f32.mrf.mxu1  ;;  %v19076_v33 = vpop.f32.mrf.mxu0  ;;  %19331 = vmatmul.mubr.msk.f32.gmra.mxu1 %vm368_vm1, %v14433_v13 }
 0x6e0   : > { %v12451_v22 = vadd.f32 %v19032_v0, %v25042_v62  ;;  %v25165_v39 = vadd.f32 %v19076_v33, %v12447_v19  ;;  %19333 = vmatprep.mubr.msk.f32.mxu1 %vm368_vm1, %v14434_v6 }
 0x6e1   : > { %v12387_v63 = vpop.f32.mrf.mxu1  ;;  %v12757_v38 = vpop.f32.mrf.mxu0 }
 0x6e2   : > { %v12450_v3 = vadd.f32 %v12387_v63, %v25046_v9  ;;  %v25169_v24 = vadd.f32 %v12757_v38, %v12446_v28 }
 0x6e3   : > { %v19035_v10 = vpop.f32.mrf.mxu1  ;;  %v19079_v21 = vpop.f32.mrf.mxu0  ;;  %19334 = vmatmul.mubr.msk.f32.gmra.mxu1 %vm368_vm1, %v14435_v27 }
 0x6e4   : > { %v12453_v61 = vadd.f32 %v19035_v10, %v25050_v4  ;;  %v25173_v60 = vadd.f32 %v19079_v21, %v12449_v15  ;;  %19336 = vmatprep.mubr.msk.f32.mxu1 %vm368_vm1, %v24902_v41 }
 0x6e5   : > { %v12397_v62 = vpop.f32.mrf.mxu1  ;;  %v12767_v52 = vpop.f32.mrf.mxu0 }
 0x6e6   : > { %v12452_v29 = vadd.f32 %v12397_v62, %v25056_v34  ;;  %v25178_v46 = vadd.f32 %v12767_v52, %v12448_v8  ;;  %v14439_v34 = vld [vmem:[#allocation2 + $0x1a2] sm:$0xff] }
 0x6e7   : > { %v19038_v9 = vpop.f32.mrf.mxu1  ;;  %v19082_v47 = vpop.f32.mrf.mxu0  ;;  %19337 = vmatmul.mubr.msk.f32.gmra.mxu1 %vm368_vm1, %v24910_v5 }
 0x6e8   : > { %v12455_v25 = vadd.f32 %v19038_v9, %v25062_v16  ;;  %v25183_v4 = vadd.f32 %v19082_v47, %v12451_v22  ;;  %19339 = vmatprep.mubr.msk.f32.mxu1 %vm368_vm1, %v14438_v12 }
 0x6e9   : > { %v12407_v37 = vpop.f32.mrf.mxu1  ;;  %v12777_v41 = vpop.f32.mrf.mxu0 }
 0x6ea   : > { %v12454_v19 = vadd.f32 %v12407_v37, %v25068_v1  ;;  %v25187_v58 = vadd.f32 %v12777_v41, %v12450_v3 }
 0x6eb   : > { %v19041_v35 = vpop.f32.mrf.mxu1  ;;  %v19085_v28 = vpop.f32.mrf.mxu0  ;;  %19340 = vmatmul.mubr.msk.f32.gmra.mxu1 %vm368_vm1, %v14439_v34 }
 0x6ec   : > { %v12457_v5 = vadd.f32 %v19041_v35, %v25074_v11  ;;  %v25191_v54 = vadd.f32 %v19085_v28, %v12453_v61 }
 0x6ed   : > { %v12417_v16 = vpop.f32.mrf.mxu1  ;;  %v12787_v36 = vpop.f32.mrf.mxu0 }
 0x6ee   : > { %v12456_v56 = vadd.f32 %v12417_v16, %v25079_v55  ;;  %v25194_v18 = vadd.f32 %v12787_v36, %v12452_v29 }
 0x6ef   : > { %v19088_v15 = vpop.f32.mrf.mxu0  ;;  %v19096_v42 = vpop.f32.mrf.mxu1 }
 0x6f0   : > { %v25196_v1 = vadd.f32 %v19088_v15, %v12455_v25  ;;  %v25199_v14 = vadd.f32 %v19096_v42, %v25084_v53 }
 0x6f1   : > { %v12797_v8 = vpop.f32.mrf.mxu0  ;;  %v13047_v13 = vpop.f32.mrf.mxu1 }
 0x6f2   : > { %v25201_v0 = vadd.f32 %v12797_v8, %v12454_v19  ;;  %v25204_v11 = vadd.f32 %v13047_v13, %v25089_v32 }
 0x6f3   : > { %v19091_v33 = vpop.f32.mrf.mxu0  ;;  %v19099_v6 = vpop.f32.mrf.mxu1 }
 0x6f4   : > { %v25206_v22 = vadd.f32 %v19091_v33, %v12457_v5  ;;  %v25209_v55 = vadd.f32 %v19099_v6, %v25093_v48 }
 0x6f5   : > { %v12807_v63 = vpop.f32.mrf.mxu0  ;;  %v13057_v38 = vpop.f32.mrf.mxu1 }
 0x6f6   : > { %v25211_v3 = vadd.f32 %v12807_v63, %v12456_v56  ;;  %v25214_v53 = vadd.f32 %v13057_v38, %v25097_v20 }
 0x6f7   : > { %v19102_v27 = vpop.f32.mrf.mxu1  ;;  %v25216_v10 = vpop.f32.mrf.mxu0 }
 0x6f8   : > { %v25219_v32 = vadd.f32 %v19102_v27, %v25101_v17 }
 0x6f9   : > { %v13067_v21 = vpop.f32.mrf.mxu1  ;;  %v25221_v61 = vpop.f32.mrf.mxu0 }
 0x6fa   : > { %v25224_v62 = vadd.f32 %v13067_v21, %v25105_v30 }
 0x6fb   : > { %v19105_v48 = vpop.f32.mrf.mxu1  ;;  %v25226_v52 = vpop.f32.mrf.mxu0 }
 0x6fc   : > { %v25229_v29 = vadd.f32 %v19105_v48, %v25109_v31 }
 0x6fd   : > { %v13077_v20 = vpop.f32.mrf.mxu1  ;;  %v25231_v9 = vpop.f32.mrf.mxu0 }
 0x6fe   : > { %v25234_v47 = vadd.f32 %v13077_v20, %v25113_v23 }
 0x6ff   : > { %v19108_v17 = vpop.f32.mrf.mxu1  ;;  %v25236_v12 = vpop.f32.mrf.mxu0 }
 0x700   : > { %v25239_v25 = vadd.f32 %v19108_v17, %v25117_v43 }
 0x701   : > { %v13087_v30 = vpop.f32.mrf.mxu1  ;;  %v25241_v37 = vpop.f32.mrf.mxu0 }
 0x702   : > { %v25244_v41 = vadd.f32 %v13087_v30, %v25121_v26 }
 0x703   : > { %v19111_v31 = vpop.f32.mrf.mxu1  ;;  %v25246_v19 = vpop.f32.mrf.mxu0 }
 0x704   : > { %v25249_v34 = vadd.f32 %v19111_v31, %v25125_v49 }
 0x705   : > { %v13097_v23 = vpop.f32.mrf.mxu1  ;;  %v25251_v35 = vpop.f32.mrf.mxu0 }
 0x706   : > { %v25254_v28 = vadd.f32 %v13097_v23, %v25129_v59 }
 0x707   : > { %v19114_v43 = vpop.f32.mrf.mxu1  ;;  %v25256_v5 = vpop.f32.mrf.mxu0 }
 0x708   : > { %v25259_v16 = vadd.f32 %v19114_v43, %v25133_v7 }
 0x709   : > { %v13107_v26 = vpop.f32.mrf.mxu1  ;;  %v25261_v36 = vpop.f32.mrf.mxu0 }
 0x70a   : > { %v25264_v56 = vadd.f32 %v13107_v26, %v25137_v44 }
 0x70b   : > { %v19117_v49 = vpop.f32.mrf.mxu1  ;;  %v25266_v15 = vpop.f32.mrf.mxu0 }
 0x70c   : > { %v25269_v42 = vadd.f32 %v19117_v49, %v25141_v2 }
 0x70d   : > { %v13117_v59 = vpop.f32.mrf.mxu1  ;;  %v25271_v8 = vpop.f32.mrf.mxu0 }
 0x70e   : > { %v25274_v13 = vadd.f32 %v13117_v59, %v25145_v45 }
 0x70f   : > { %v19120_v7 = vpop.f32.mrf.mxu1  ;;  %v25276_v33 = vpop.f32.mrf.mxu0 }
 0x710   : > { %v25279_v6 = vadd.f32 %v19120_v7, %v25149_v57 }
 0x711   : > { %v13127_v44 = vpop.f32.mrf.mxu1  ;;  %v25281_v63 = vpop.f32.mrf.mxu0 }
 0x712   : > { %v25284_v38 = vadd.f32 %v13127_v44, %v25153_v51 }
 0x713   : > { %v19123_v2 = vpop.f32.mrf.mxu1  ;;  %v25286_v27 = vpop.f32.mrf.mxu0 }
 0x714   : > { %v25289_v21 = vadd.f32 %v19123_v2, %v25157_v50 }
 0x715   : > { %v13137_v45 = vpop.f32.mrf.mxu1  ;;  %v25291_v48 = vpop.f32.mrf.mxu0 }
 0x716   : > { %v25294_v20 = vadd.f32 %v13137_v45, %v25161_v40 }
 0x717   : > { %v19126_v57 = vpop.f32.mrf.mxu1  ;;  %v25296_v17 = vpop.f32.mrf.mxu0 }
 0x718   : > { %v25299_v30 = vadd.f32 %v19126_v57, %v25165_v39 }
 0x719   : > { %v13147_v51 = vpop.f32.mrf.mxu1  ;;  %v25301_v31 = vpop.f32.mrf.mxu0 }
 0x71a   : > { %v25304_v23 = vadd.f32 %v13147_v51, %v25169_v24 }
 0x71b   : > { %v19129_v50 = vpop.f32.mrf.mxu1  ;;  %v25306_v43 = vpop.f32.mrf.mxu0 }
 0x71c   : > { %v25309_v26 = vadd.f32 %v19129_v50, %v25173_v60 }
 0x71d   : > { %v13157_v40 = vpop.f32.mrf.mxu1  ;;  %v25311_v49 = vpop.f32.mrf.mxu0 }
 0x71e   : > { %v25314_v59 = vadd.f32 %v13157_v40, %v25178_v46 }
 0x71f   : > { %v19132_v39 = vpop.f32.mrf.mxu1  ;;  %v25316_v7 = vpop.f32.mrf.mxu0 }
 0x720   : > { %26779 = vst [vmem:[#allocation87_spill] sm:$0xff] %v25314_v59  ;;  %v25319_v44 = vadd.f32 %v19132_v39, %v25183_v4 }
 0x721   : > { %v13167_v24 = vpop.f32.mrf.mxu1  ;;  %v25321_v2 = vpop.f32.mrf.mxu0 }
 0x722   : > { %26780 = vst [vmem:[#allocation31_spill] sm:$0xff] %v25319_v44  ;;  %v25324_v45 = vadd.f32 %v13167_v24, %v25187_v58 }
 0x723   : > { %v19135_v60 = vpop.f32.mrf.mxu1  ;;  %v25326_v57 = vpop.f32.mrf.mxu0 }
 0x724   : > { %26781 = vst [vmem:[#allocation100_spill] sm:$0xff] %v25324_v45  ;;  %v13233_v51 = vadd.f32 %v19135_v60, %v25191_v54 }
 0x725   : > { %v13177_v50 = vpop.f32.mrf.mxu1  ;;  %v25329_v46 = vpop.f32.mrf.mxu0 }
 0x726   : > { %26782 = vst [vmem:[#allocation86_spill] sm:$0xff] %v25329_v46  ;;  %v25332_v40 = vadd.f32 %v13177_v50, %v25194_v18 }
 0x727   : > { %v19138_v59 = vpop.f32.mrf.mxu1  ;;  %v25334_v4 = vpop.f32.mrf.mxu0 }
 0x728   : > { %26783 = vst [vmem:[#allocation48_spill] sm:$0xff] %v25332_v40  ;;  %v25337_v39 = vadd.f32 %v19138_v59, %v25196_v1 }
 0x729   : > { %v13187_v44 = vpop.f32.mrf.mxu1  ;;  %v25339_v58 = vpop.f32.mrf.mxu0 }
 0x72a   : > { %26784 = vst [vmem:[#allocation43_spill] sm:$0xff] %v25337_v39  ;;  %v25342_v24 = vadd.f32 %v13187_v44, %v25201_v0 }
 0x72b   : > { %v19141_v45 = vpop.f32.mrf.mxu1  ;;  %v19185_v54 = vpop.f32.mrf.mxu0 }
 0x72c   : > { %26785 = vst [vmem:[#allocation105_spill] sm:$0xff] %v25342_v24  ;;  %v25345_v60 = vadd.f32 %v19141_v45, %v25206_v22  ;;  %v13623_v46 = vadd.f32 %v19185_v54, %v13233_v51 }
 0x72d   : > { %v13197_v18 = vpop.f32.mrf.mxu1  ;;  %v25347_v50 = vpop.f32.mrf.mxu0 }
 0x72e   : > { %26786 = vst [vmem:[#allocation24_spill] sm:$0xff] %v25345_v60  ;;  %26787 = vst [vmem:[#allocation72_spill] sm:$0xff] %v25347_v50  ;;  %v25350_v40 = vadd.f32 %v13197_v18, %v25211_v3 }
 0x72f   : > { %v25352_v1 = vpop.f32.mrf.mxu0  ;;  %v25354_v59 = vpop.f32.mrf.mxu1 }
 0x730   : > { %26788 = vst [vmem:[#allocation78_spill] sm:$0xff] %v25350_v40  ;;  %26789 = vst [vmem:[#allocation85_spill] sm:$0xff] %v25352_v1 }
 0x731   : > { %v25356_v39 = vpop.f32.mrf.mxu0  ;;  %v25358_v0 = vpop.f32.mrf.mxu1 }
 0x732   : > { %26790 = vst [vmem:[#allocation96_spill] sm:$0xff] %v25356_v39 }
 0x733   : > { %v25360_v44 = vpop.f32.mrf.mxu0  ;;  %v25362_v24 = vpop.f32.mrf.mxu1 }
 0x734   : > { %26791 = vst [vmem:[#allocation79_spill] sm:$0xff] %v25360_v44 }
 0x735   : > { %v25364_v22 = vpop.f32.mrf.mxu0  ;;  %v25366_v45 = vpop.f32.mrf.mxu1 }
 0x736   : > { %26792 = vst [vmem:[#allocation38_spill] sm:$0xff] %v25364_v22  ;;  %26793 = vst [vmem:[#allocation46_spill] sm:$0xff] %v25366_v45 }
 0x737   : > { %v25368_v51 = vpop.f32.mrf.mxu1  ;;  %v25370_v3 = vpop.f32.mrf.mxu0 }
 0x738   : > { %26794 = vst [vmem:[#allocation21_spill] sm:$0xff] %v25368_v51 }
 0x739   : > { %v25372_v54 = vpop.f32.mrf.mxu1  ;;  %v25374_v18 = vpop.f32.mrf.mxu0 }
 0x73a   : > { %26795 = vst [vmem:[#allocation28_spill] sm:$0xff] %v25372_v54  ;;  %26796 = vst [vmem:[#allocation30_spill] sm:$0xff] %v25374_v18 }
 0x73b   : > { %v25376_v40 = vpop.f32.mrf.mxu1  ;;  %v25378_v60 = vpop.f32.mrf.mxu0 }
 0x73c   : > { %26797 = vst [vmem:[#allocation84_spill] sm:$0xff] %v25376_v40  ;;  %26798 = vst [vmem:[#allocation62_spill] sm:$0xff] %v25378_v60 }
 0x73d   : > { %v25380_v39 = vpop.f32.mrf.mxu1  ;;  %v25382_v44 = vpop.f32.mrf.mxu0 }
 0x73e   : > { %26799 = vst [vmem:[#allocation57_spill] sm:$0xff] %v25380_v39  ;;  %26800 = vst [vmem:[#allocation26_spill] sm:$0xff] %v25382_v44 }
 0x73f   : > { %v25384_v1 = vpop.f32.mrf.mxu1  ;;  %v25386_v22 = vpop.f32.mrf.mxu0 }
 0x740   : > { %26801 = vst [vmem:[#allocation101_spill] sm:$0xff] %v25384_v1  ;;  %26802 = vst [vmem:[#allocation18_spill] sm:$0xff] %v25386_v22 }
 0x741   : > { %v25388_v45 = vpop.f32.mrf.mxu1  ;;  %v25390_v51 = vpop.f32.mrf.mxu0 }
 0x742   : > { %26803 = vst [vmem:[#allocation5_spill] sm:$0xff] %v25388_v45  ;;  %26804 = vst [vmem:[#allocation16_spill] sm:$0xff] %v25390_v51 }
 0x743   : > { %v25392_v50 = vpop.f32.mrf.mxu1  ;;  %v25394_v54 = vpop.f32.mrf.mxu0 }
 0x744   : > { %26805 = vst [vmem:[#allocation10_spill] sm:$0xff] %v25392_v50  ;;  %26806 = vst [vmem:[#allocation74_spill] sm:$0xff] %v25394_v54 }
 0x745   : > { %v25396_v18 = vpop.f32.mrf.mxu1  ;;  %v25398_v40 = vpop.f32.mrf.mxu0 }
 0x746   : > { %26807 = vst [vmem:[#allocation60_spill] sm:$0xff] %v25396_v18  ;;  %26808 = vst [vmem:[#allocation66_spill] sm:$0xff] %v25398_v40 }
 0x747   : > { %v25400_v60 = vpop.f32.mrf.mxu1  ;;  %v25404_v44 = vpop.f32.mrf.mxu0 }
 0x748   : > { %26809 = vst [vmem:[#allocation45_spill] sm:$0xff] %v25400_v60  ;;  %26811 = vst [vmem:[#allocation36_spill] sm:$0xff] %v25404_v44 }
 0x749   : > { %v25402_v39 = vpop.f32.mrf.mxu1  ;;  %v25410_v45 = vpop.f32.mrf.mxu0 }
 0x74a   : > { %26810 = vst [vmem:[#allocation47_spill] sm:$0xff] %v25402_v39  ;;  %26814 = vst [vmem:[#allocation67_spill] sm:$0xff] %v25410_v45 }
 0x74b   : > { %v25406_v1 = vpop.f32.mrf.mxu1  ;;  %v25416_v54 = vpop.f32.mrf.mxu0 }
 0x74c   : > { %26812 = vst [vmem:[#allocation65_spill] sm:$0xff] %v25406_v1  ;;  %26817 = vst [vmem:[#allocation59_spill] sm:$0xff] %v25416_v54 }
 0x74d   : > { %v25408_v22 = vpop.f32.mrf.mxu1  ;;  %v25422_v60 = vpop.f32.mrf.mxu0 }
 0x74e   : > { %26813 = vst [vmem:[#allocation42_spill] sm:$0xff] %v25408_v22  ;;  %26820 = vst [vmem:[#allocation90_spill] sm:$0xff] %v25422_v60 }
 0x74f   : > { %v25412_v51 = vpop.f32.mrf.mxu1  ;;  %v25428_v1 = vpop.f32.mrf.mxu0 }
 0x750   : > { %26815 = vst [vmem:[#allocation12_spill] sm:$0xff] %v25412_v51  ;;  %26823 = vst [vmem:[#allocation50_spill] sm:$0xff] %v25428_v1 }
 0x751   : > { %v25414_v50 = vpop.f32.mrf.mxu1  ;;  %v25434_v51 = vpop.f32.mrf.mxu0 }
 0x752   : > { %26816 = vst [vmem:[#allocation44_spill] sm:$0xff] %v25414_v50 }
 0x753   : > { %v25418_v18 = vpop.f32.mrf.mxu1 }
 0x754   : > { %26818 = vst [vmem:[#allocation103_spill] sm:$0xff] %v25418_v18  ;;  %v25440_v18 = vpop.f32.mrf.mxu0 }
 0x755   : > { %v25420_v40 = vpop.f32.mrf.mxu1 }
 0x756   : > { %26819 = vst [vmem:[#allocation9_spill] sm:$0xff] %v25420_v40 }
 0x757   : > { %v25424_v39 = vpop.f32.mrf.mxu1 }
 0x758   : > { %26821 = vst [vmem:[#allocation82_spill] sm:$0xff] %v25424_v39 }
 0x759   : > { %v25426_v44 = vpop.f32.mrf.mxu1 }
 0x75a   : > { %26822 = vst [vmem:[#allocation75_spill] sm:$0xff] %v25426_v44  ;;  %v25446_v44 = vpop.f32.mrf.mxu0 }
 0x75b   : > { %v25430_v22 = vpop.f32.mrf.mxu1 }
 0x75c   : > { %26824 = vst [vmem:[#allocation89_spill] sm:$0xff] %v25430_v22  ;;  %v13596_v22 = vadd.f32 %v25221_v61, %v25204_v11  ;;  %v13602_v11 = vadd.f32 %v25251_v35, %v25234_v47  ;;  %v25476_v61 = vpop.f32.mrf.mxu0  ;;  %v25517_v35 = vadd.f32 %v25316_v7, %v25299_v30  ;;  %v26834_v30 = vld [vmem:[#allocation48_spill] sm:$0xff]  ;;  %v26838_v7 = vld [vmem:[#allocation105_spill] sm:$0xff] }
 0x75d   : > { %v25432_v45 = vpop.f32.mrf.mxu1 }
 0x75e   : > { %26825 = vst [vmem:[#allocation108_spill] sm:$0xff] %v25432_v45  ;;  %v13597_v45 = vadd.f32 %v25216_v10, %v25199_v14  ;;  %v13603_v14 = vadd.f32 %v25246_v19, %v25229_v29  ;;  %v13607_v10 = vadd.f32 %v25266_v15, %v25249_v34  ;;  %v25486_v29 = vadd.f32 %v25281_v63, %v25264_v56  ;;  %v26829_v56 = vld [vmem:[#allocation87_spill] sm:$0xff]  ;;  %v26830_v15 = vld [vmem:[#allocation86_spill] sm:$0xff] }
 0x75f   : > { %v25436_v50 = vpop.f32.mrf.mxu1  ;;  %v25513_v34 = vadd.f32 %v25311_v49, %v25294_v20  ;;  %v25539_v63 = vld [vmem:[#allocation3] ss:$0 sm:$0xff] }
 0x760   : > { %26826 = vst [vmem:[#allocation56_spill] sm:$0xff] %v25436_v50  ;;  %v13598_v50 = vadd.f32 %v25231_v9, %v25214_v53  ;;  %v13604_v53 = vadd.f32 %v25261_v36, %v25244_v41  ;;  %v25490_v9 = vadd.f32 %v25286_v27, %v25269_v42  ;;  %v13987_v47 = vadd.f32 %v25354_v59, %v13597_v45 }
 0x761   : > { %v25438_v54 = vpop.f32.mrf.mxu1  ;;  %v25507_v41 = vadd.f32 %v25306_v43, %v25289_v21  ;;  %v25527_v36 = vadd.f32 %v25326_v57, %v25309_v26  ;;  %v25531_v42 = vadd.f32 %v26830_v15, %v26829_v56  ;;  %v26836_v43 = vld [vmem:[#allocation43_spill] sm:$0xff]  ;;  %v26837_v26 = vld [vmem:[#allocation85_spill] sm:$0xff] }
 0x762   : > { %26827 = vst [vmem:[#allocation20_spill] sm:$0xff] %v25438_v54  ;;  %v13599_v54 = vadd.f32 %v25226_v52, %v25209_v55  ;;  %v13605_v55 = vadd.f32 %v25256_v5, %v25239_v25  ;;  %v25482_v52 = vadd.f32 %v25276_v33, %v25259_v16  ;;  %v25499_v25 = vadd.f32 %v25296_v17, %v25279_v6  ;;  %v25537_v33 = vpop.f32.mrf.mxu0  ;;  %v26846_v15 = vld [vmem:[#allocation21_spill] sm:$0xff] }
 0x763   : > { %v19235_v40 = vpop.f32.mrf.mxu1  ;;  %v14377_v5 = vadd.f32 %v25370_v3, %v13987_v47  ;;  %v25523_v16 = vadd.f32 %v25321_v2, %v25304_v23  ;;  %v25553_v49 = vadd.f32 %v26837_v26, %v26836_v43  ;;  %v26839_v2 = vld [vmem:[#allocation96_spill] sm:$0xff]  ;;  %v26844_v3 = vld [vmem:[#allocation62_spill] sm:$0xff]  ;;  %v26849_v26 = vld [vmem:[#allocation57_spill] sm:$0xff] }
 0x764   : > { %v25442_v60 = vadd.f32 %v19235_v40, %v13623_v46  ;;  %v13601_v40 = vadd.f32 %v25236_v12, %v25219_v32  ;;  %v13606_v32 = vadd.f32 %v25271_v8, %v25254_v28  ;;  %v25495_v12 = vadd.f32 %v25291_v48, %v25274_v13  ;;  %v26831_v8 = vld [vmem:[#allocation31_spill] sm:$0xff]  ;;  %v26833_v48 = vld [vmem:[#allocation30_spill] sm:$0xff] }
 0x765   : > { %v25444_v39 = vpop.f32.mrf.mxu1  ;;  %v13986_v28 = vadd.f32 %v25358_v0, %v13596_v22  ;;  %v25535_v13 = vadd.f32 %v25334_v4, %v26831_v8  ;;  %v13989_v21 = vadd.f32 %v25362_v24, %v13599_v54  ;;  %v25557_v57 = vadd.f32 %v26839_v2, %v26838_v7  ;;  %v26840_v4 = vld [vmem:[#allocation24_spill] sm:$0xff]  ;;  %v26842_v0 = vld [vmem:[#allocation78_spill] sm:$0xff] }
 0x766   : > { %26828 = vst [vmem:[#allocation25_spill] sm:$0xff] %v25442_v60  ;;  %v13600_v60 = vadd.f32 %v25241_v37, %v25224_v62  ;;  %v25503_v37 = vadd.f32 %v25301_v31, %v25284_v38  ;;  %v26832_v38 = vld [vmem:[#allocation100_spill] sm:$0xff]  ;;  %v26843_v22 = vld [vmem:[#allocation38_spill] sm:$0xff]  ;;  %v13991_v8 = vadd.f32 %v26846_v15, %v13601_v40  ;;  %v13992_v7 = vadd.f32 %v26849_v26, %v13602_v11  ;;  %v26853_v40 = vld [vmem:[#allocation5_spill] sm:$0xff] }
 0x767   : > { %v25448_v1 = vpop.f32.mrf.mxu1  ;;  %v25543_v27 = vadd.f32 %v25339_v58, %v26832_v38  ;;  %v14376_v20 = vadd.f32 %v26833_v48, %v13986_v28  ;;  %v26835_v31 = vld [vmem:[#allocation72_spill] sm:$0xff]  ;;  %v26841_v58 = vld [vmem:[#allocation79_spill] sm:$0xff]  ;;  %v25565_v45 = vadd.f32 %v26843_v22, %v26842_v0  ;;  %v14379_v54 = vadd.f32 %v26844_v3, %v13989_v21  ;;  %v26855_v11 = vld [vmem:[#allocation10_spill] sm:$0xff] }
 0x768   : > { %v25549_v23 = vadd.f32 %v26835_v31, %v26834_v30  ;;  %v25561_v59 = vadd.f32 %v26841_v58, %v26840_v4  ;;  %v26848_v48 = vld [vmem:[#allocation84_spill] sm:$0xff]  ;;  %v25573_v31 = vpop.f32.mrf.mxu0  ;;  %v26850_v58 = vld [vmem:[#allocation26_spill] sm:$0xff]  ;;  %v13994_v22 = vadd.f32 %v26853_v40, %v13604_v53 }
 0x769   : > { %v25458_v46 = vpop.f32.mrf.mxu1  ;;  %v13993_v30 = vadd.f32 %v26848_v48, %v13603_v14  ;;  %v26854_v3 = vld [vmem:[#allocation16_spill] sm:$0xff]  ;;  %v26856_v48 = vld [vmem:[#allocation74_spill] sm:$0xff] }
 0x76b   : > { %v25478_v62 = vpop.f32.mrf.mxu1 }
 0x76d   : > { %v25509_v19 = vpop.f32.mrf.mxu1 }
 0x76f   : > { %v19296_v6 = vpop.f32.mrf.mxu1 }
 0x770   : > { %v14767_v17 = vadd.f32 %v19296_v6, %v14377_v5  ;;  %v26845_v5 = vld [vmem:[#allocation46_spill] sm:$0xff]  ;;  %v26847_v6 = vld [vmem:[#allocation28_spill] sm:$0xff] }
 0x771   : > { %v14607_v24 = vpop.f32.mrf.mxu1  ;;  %v13988_v56 = vadd.f32 %v26845_v5, %v13598_v50  ;;  %v13990_v38 = vadd.f32 %v26847_v6, %v13600_v60  ;;  %v26852_v50 = vld [vmem:[#allocation18_spill] sm:$0xff] }
 0x772   : > { %v14806_v47 = vadd.f32 %v25539_v63, %v14767_v17  ;;  %v14766_v28 = vadd.f32 %v14607_v24, %v14376_v20  ;;  %v26851_v20 = vld [vmem:[#allocation101_spill] sm:$0xff]  ;;  %v14381_v0 = vadd.f32 %v26852_v50, %v13991_v8 }
 0x773   : > { %v19299_v43 = vpop.f32.mrf.mxu1  ;;  %v14378_v17 = vadd.f32 %v26850_v58, %v13988_v56  ;;  %v13995_v24 = vadd.f32 %v26851_v20, %v13605_v55  ;;  %v14380_v14 = vadd.f32 %v26854_v3, %v13990_v38  ;;  %v25586_v56 = vpop.f32.mrf.mxu0  ;;  %v26858_v20 = vld [vmem:[#allocation66_spill] sm:$0xff] }
 0x774   : > { %v14838_v2 = vsub.f32 0.0, %v14806_v47  ;;  %v14805_v4 = vadd.f32 %v25539_v63, %v14766_v28  ;;  %v14769_v21 = vadd.f32 %v19299_v43, %v14379_v54  ;;  %v13997_v47 = vadd.f32 %v26855_v11, %v13607_v10  ;;  %v26857_v54 = vld [vmem:[#allocation60_spill] sm:$0xff] }
 0x775   : > { %v14617_v60 = vpop.f32.mrf.mxu1  ;;  %v14383_v28 = vadd.f32 %v26856_v48, %v13993_v30  ;;  %v13996_v43 = vadd.f32 %v26857_v54, %v13606_v32  ;;  %v14382_v38 = vadd.f32 %v26858_v20, %v13992_v7  ;;  %v26863_v7 = vld [vmem:[#allocation65_spill] sm:$0xff] }
 0x776   : > { %v14871_v5 = vmul.f32 1.442695, %v14838_v2  ;;  %v14837_v15 = vsub.f32 0.0, %v14805_v4  ;;  %v14808_v6 = vadd.f32 %v25539_v63, %v14769_v21  ;;  %v14768_v55 = vadd.f32 %v14617_v60, %v14378_v17  ;;  %v26859_v2 = vld [vmem:[#allocation45_spill] sm:$0xff]  ;;  %v26860_v21 = vld [vmem:[#allocation36_spill] sm:$0xff]  ;;  %v26861_v60 = vld [vmem:[#allocation47_spill] sm:$0xff] }
 0x777   : > { %v19302_v26 = vpop.f32.mrf.mxu1  ;;  %v13999_v4 = vadd.f32 %v26859_v2, %v25482_v52  ;;  %v14385_v50 = vadd.f32 %v26860_v21, %v13995_v24  ;;  %v13998_v3 = vadd.f32 %v26861_v60, %v25486_v29  ;;  %v26866_v29 = vld [vmem:[#allocation90_spill] sm:$0xff] }
 0x778   : > { %19350 = vpow2.f32 %v14871_v5  ;;  %v14869_v8 = vmul.f32 1.442695, %v14837_v15  ;;  %v14840_v53 = vsub.f32 0.0, %v14808_v6  ;;  %v14771_v58 = vadd.f32 %v19302_v26, %v14381_v0  ;;  %v26862_v5 = vld [vmem:[#allocation67_spill] sm:$0xff]  ;;  %v25599_v6 = vpop.f32.mrf.mxu0 }
 0x779   : > { %v14807_v10 = vadd.f32 %v25539_v63, %v14768_v55  ;;  %v14627_v30 = vpop.f32.mrf.mxu1  ;;  %v14384_v0 = vadd.f32 %v26862_v5, %v13994_v22  ;;  %v14001_v15 = vadd.f32 %v26863_v7, %v25490_v9  ;;  %v26864_v55 = vld [vmem:[#allocation59_spill] sm:$0xff]  ;;  %v14388_v7 = vadd.f32 %v25434_v51, %v13998_v3 }
 0x77a   : > { %19352 = vpow2.f32 %v14869_v8  ;;  %v14875_v32 = vmul.f32 1.442695, %v14840_v53  ;;  %v14810_v40 = vadd.f32 %v25539_v63, %v14771_v58  ;;  %v14770_v17 = vadd.f32 %v14627_v30, %v14380_v14  ;;  %v26865_v14 = vld [vmem:[#allocation42_spill] sm:$0xff] }
 0x77b   : > { %v14839_v52 = vsub.f32 0.0, %v14807_v10  ;;  %v19305_v24 = vpop.f32.mrf.mxu1  ;;  %v14387_v26 = vadd.f32 %v26864_v55, %v13997_v47  ;;  %v14000_v8 = vadd.f32 %v26865_v14, %v25495_v12  ;;  %v14386_v53 = vadd.f32 %v26866_v29, %v13996_v43  ;;  %v26867_v10 = vld [vmem:[#allocation12_spill] sm:$0xff]  ;;  %v26872_v29 = vld [vmem:[#allocation82_spill] sm:$0xff] }
 0x77c   : > { %19354 = vpow2.f32 %v14875_v32  ;;  %v14842_v11 = vsub.f32 0.0, %v14810_v40  ;;  %v14809_v48 = vadd.f32 %v25539_v63, %v14770_v17  ;;  %v14773_v54 = vadd.f32 %v19305_v24, %v14383_v28  ;;  %v26868_v32 = vld [vmem:[#allocation50_spill] sm:$0xff]  ;;  %v26869_v28 = vld [vmem:[#allocation44_spill] sm:$0xff]  ;;  %v25612_v17 = vpop.f32.mrf.mxu0 }
 0x77d   : > { %v14873_v22 = vmul.f32 1.442695, %v14839_v52  ;;  %v14637_v58 = vpop.f32.mrf.mxu1  ;;  %v14003_v30 = vadd.f32 %v26867_v10, %v25499_v25  ;;  %v14389_v40 = vadd.f32 %v26868_v32, %v13999_v4  ;;  %v14002_v47 = vadd.f32 %v26869_v28, %v25503_v37 }
 0x77e   : > { %v14879_v20 = vmul.f32 1.442695, %v14842_v11  ;;  %v14841_v9 = vsub.f32 0.0, %v14809_v48  ;;  %v14812_v2 = vadd.f32 %v25539_v63, %v14773_v54  ;;  %v14772_v21 = vadd.f32 %v14637_v58, %v14382_v38  ;;  %v26870_v38 = vld [vmem:[#allocation103_spill] sm:$0xff]  ;;  %v26871_v54 = vld [vmem:[#allocation9_spill] sm:$0xff]  ;;  %v25624_v51 = vpop.f32.mrf.mxu0 }
 0x77f   : > { %19356 = vpow2.f32 %v14873_v22  ;;  %v19308_v12 = vpop.f32.mrf.mxu1  ;;  %v14005_v52 = vadd.f32 %v26870_v38, %v25507_v41  ;;  %v14391_v25 = vadd.f32 %v25440_v18, %v14001_v15  ;;  %v14004_v55 = vadd.f32 %v26871_v54, %v25513_v34  ;;  %v26873_v34 = vld [vmem:[#allocation75_spill] sm:$0xff] }
 0x780   : > { %19358 = vpow2.f32 %v14879_v20  ;;  %v14877_v43 = vmul.f32 1.442695, %v14841_v9  ;;  %v14844_v60 = vsub.f32 0.0, %v14812_v2  ;;  %v14811_v5 = vadd.f32 %v25539_v63, %v14772_v21 }
 0x781   : > { %v14775_v4 = vadd.f32 %v19308_v12, %v14385_v50  ;;  %v14647_v24 = vpop.f32.mrf.mxu1  ;;  %v14390_v14 = vadd.f32 %v25446_v44, %v14000_v8  ;;  %v14007_v22 = vadd.f32 %v26872_v29, %v25517_v35  ;;  %v14006_v44 = vadd.f32 %v26873_v34, %v25523_v16 }
 0x782   : > { %19360 = vpow2.f32 %v14877_v43  ;;  %v14883_v37 = vmul.f32 1.442695, %v14844_v60  ;;  %v14843_v11 = vsub.f32 0.0, %v14811_v5  ;;  %v14774_v48 = vadd.f32 %v14647_v24, %v14384_v0  ;;  %v26875_v5 = vld [vmem:[#allocation108_spill] sm:$0xff] }
 0x783   : > { %v14814_v41 = vadd.f32 %v25539_v63, %v14775_v4  ;;  %v19311_v3 = vpop.f32.mrf.mxu1  ;;  %v25629_v0 = vadd.f32 %v25476_v61, %v14003_v30  ;;  %v25634_v8 = vadd.f32 %v25537_v33, %v14002_v47  ;;  %v25640_v61 = vadd.f32 %v25573_v31, %v14005_v52  ;;  %v25642_v30 = vpop.f32.mrf.mxu0 }
 0x784   : > { %19362 = vpow2.f32 %v14883_v37  ;;  %v14881_v18 = vmul.f32 1.442695, %v14843_v11  ;;  %v14813_v50 = vadd.f32 %v25539_v63, %v14774_v48  ;;  %v14777_v15 = vadd.f32 %v19311_v3, %v14387_v26  ;;  %v26874_v26 = vld [vmem:[#allocation89_spill] sm:$0xff] }
 0x785   : > { %v19351_v58 = vpop.eup %19350  ;;  %v14846_v35 = vsub.f32 0.0, %v14814_v41  ;;  %v14657_v20 = vpop.f32.mrf.mxu1  ;;  %v14009_v32 = vadd.f32 %v26874_v26, %v25527_v36  ;;  %v25646_v38 = vadd.f32 %v26875_v5, %v25531_v42  ;;  %v26876_v41 = vld [vmem:[#allocation56_spill] sm:$0xff] }
 0x786   : > { %v14934_v9 = vadd.f32 1.0, %v19351_v58  ;;  %19364 = vpow2.f32 %v14881_v18  ;;  %v14845_v2 = vsub.f32 0.0, %v14813_v50  ;;  %v14816_v21 = vadd.f32 %v25539_v63, %v14777_v15  ;;  %v25652_v11 = vpop.f32.mrf.mxu0 }
 0x787   : > { %v19353_v10 = vpop.eup %19352  ;;  %v14887_v16 = vmul.f32 1.442695, %v14846_v35  ;;  %v14776_v28 = vadd.f32 %v14657_v20, %v14386_v53  ;;  %v19314_v33 = vpop.f32.mrf.mxu1  ;;  %v25650_v53 = vadd.f32 %v25586_v56, %v14004_v55 }
 0x788   : > { %19366 = vrcp.f32 %v14934_v9  ;;  %v14933_v47 = vadd.f32 1.0, %v19353_v10  ;;  %v14885_v12 = vmul.f32 1.442695, %v14845_v2  ;;  %v14848_v43 = vsub.f32 0.0, %v14816_v21  ;;  %v25666_v10 = vpop.f32.mrf.mxu0 }
 0x789   : > { %v19355_v60 = vpop.eup %19354  ;;  %19368 = vpow2.f32 %v14887_v16  ;;  %v14815_v36 = vadd.f32 %v25539_v63, %v14776_v28  ;;  %v14779_v4 = vadd.f32 %v19314_v33, %v14389_v40  ;;  %v14667_v31 = vpop.f32.mrf.mxu1  ;;  %v25657_v40 = vadd.f32 %v26876_v41, %v25535_v13  ;;  %v26877_v13 = vld [vmem:[#allocation20_spill] sm:$0xff] }
 0x78a   : > { %19370 = vrcp.f32 %v14933_v47  ;;  %v14936_v52 = vadd.f32 1.0, %v19355_v60  ;;  %v14891_v24 = vmul.f32 1.442695, %v14848_v43  ;;  %v14778_v37 = vadd.f32 %v14667_v31, %v14388_v7 }
 0x78b   : > { %19372 = vpow2.f32 %v14885_v12  ;;  %v14847_v48 = vsub.f32 0.0, %v14815_v36  ;;  %v14818_v42 = vadd.f32 %v25539_v63, %v14779_v4  ;;  %v19317_v54 = vpop.f32.mrf.mxu1  ;;  %v14397_v2 = vadd.f32 %v25599_v6, %v14007_v22 }
 0x78c   : > { %v19357_v29 = vpop.eup %19356  ;;  %19374 = vrcp.f32 %v14936_v52  ;;  %v14817_v3 = vadd.f32 %v25539_v63, %v14778_v37  ;;  %v14781_v7 = vadd.f32 %v19317_v54, %v14391_v25  ;;  %v25664_v21 = vadd.f32 %v26877_v13, %v25543_v27 }
 0x78d   : > { %v19359_v18 = vpop.eup %19358  ;;  %v14935_v56 = vadd.f32 1.0, %v19357_v29  ;;  %19376 = vpow2.f32 %v14891_v24  ;;  %v14889_v55 = vmul.f32 1.442695, %v14847_v48  ;;  %v14850_v50 = vsub.f32 0.0, %v14818_v42  ;;  %v14677_v15 = vpop.f32.mrf.mxu1 }
 0x78e   : > { %v14938_v58 = vadd.f32 1.0, %v19359_v18  ;;  %v14849_v34 = vsub.f32 0.0, %v14817_v3  ;;  %v14820_v35 = vadd.f32 %v25539_v63, %v14781_v7  ;;  %v14780_v20 = vadd.f32 %v14677_v15, %v14390_v14 }
 0x78f   : > { %v19361_v9 = vpop.eup %19360  ;;  %19378 = vrcp.f32 %v14935_v56  ;;  %v14895_v25 = vmul.f32 1.442695, %v14850_v50  ;;  %v19320_v26 = vpop.f32.mrf.mxu1  ;;  %v14396_v16 = vadd.f32 %v25612_v17, %v14006_v44  ;;  %v25672_v12 = vadd.f32 %v25624_v51, %v14009_v32 }
 0x790   : > { %19380 = vrcp.f32 %v14938_v58  ;;  %v14937_v28 = vadd.f32 1.0, %v19361_v9  ;;  %v14852_v33 = vsub.f32 0.0, %v14820_v35  ;;  %v14893_v14 = vmul.f32 1.442695, %v14849_v34  ;;  %v25682_v17 = vpop.f32.mrf.mxu0 }
 0x791   : > { %v19363_v47 = vpop.eup %19362  ;;  %19382 = vpow2.f32 %v14889_v55  ;;  %v14819_v6 = vadd.f32 %v25539_v63, %v14780_v20  ;;  %v14783_v22 = vadd.f32 %v19320_v26, %v25629_v0  ;;  %v14687_v27 = vpop.f32.mrf.mxu1  ;;  %v25689_v52 = vadd.f32 %v25444_v39, %v25549_v23 }
 0x792   : > { %19384 = vrcp.f32 %v14937_v28  ;;  %v14940_v43 = vadd.f32 1.0, %v19363_v47  ;;  %v14782_v60 = vadd.f32 %v14687_v27, %v25634_v8  ;;  %v14899_v0 = vmul.f32 1.442695, %v14852_v33  ;;  %v25697_v39 = vpop.f32.mrf.mxu0 }
 0x793   : > { %v19365_v5 = vpop.eup %19364  ;;  %19386 = vpow2.f32 %v14895_v25  ;;  %v14851_v44 = vsub.f32 0.0, %v14819_v6  ;;  %v14822_v51 = vadd.f32 %v25539_v63, %v14783_v22  ;;  %v19323_v32 = vpop.f32.mrf.mxu1  ;;  %v14398_v3 = vadd.f32 %v25642_v30, %v25646_v38 }
 0x794   : > { %19388 = vrcp.f32 %v14940_v43  ;;  %v14939_v36 = vadd.f32 1.0, %v19365_v5  ;;  %v14821_v8 = vadd.f32 %v25539_v63, %v14782_v60  ;;  %v14785_v4 = vadd.f32 %v19323_v32, %v25640_v61  ;;  %v19288_v26 = vpop.f32.mrf.mxu0 }
 0x795   : > { %v19367_v31 = vpop.eup %19366  ;;  %19390 = vpow2.f32 %v14893_v14  ;;  %v14897_v24 = vmul.f32 1.442695, %v14851_v44  ;;  %v14854_v37 = vsub.f32 0.0, %v14822_v51  ;;  %v14697_v48 = vpop.f32.mrf.mxu1  ;;  %v25704_v58 = vadd.f32 %v25448_v1, %v25553_v49 }
 0x796   : > { %v19369_v42 = vpop.eup %19368  ;;  %15031 = vst.msk [vmem:[%s25680_s19 + $0x8] sm:$0xff] %vm15029_vm3, %v19367_v31  ;;  %19392 = vrcp.f32 %v14939_v36  ;;  %v14853_v54 = vsub.f32 0.0, %v14821_v8  ;;  %v14824_v29 = vadd.f32 %v25539_v63, %v14785_v4  ;;  %v14784_v41 = vadd.f32 %v14697_v48, %v25650_v53  ;;  %v26878_v31 = vld [vmem:[#allocation25_spill] sm:$0xff] }
 0x797   : > { %v19371_v61 = vpop.eup %19370  ;;  %v14942_v23 = vadd.f32 1.0, %v19369_v42  ;;  %19394 = vpow2.f32 %v14899_v0  ;;  %v14903_v7 = vmul.f32 1.442695, %v14854_v37  ;;  %v19326_v18 = vpop.f32.mrf.mxu1  ;;  %v14401_v25 = vadd.f32 %v25652_v11, %v25657_v40 }
 0x798   : > { %v19373_v56 = vpop.eup %19372  ;;  %15030 = vst.msk [vmem:[%s25680_s19] sm:$0xff] %vm15029_vm3, %v19371_v61  ;;  %19396 = vpow2.f32 %v14897_v24  ;;  %v14901_v55 = vmul.f32 1.442695, %v14853_v54  ;;  %v14856_v50 = vsub.f32 0.0, %v14824_v29  ;;  %v14823_v15 = vadd.f32 %v25539_v63, %v14784_v41 }
 0x799   : > { %v19375_v53 = vpop.eup %19374  ;;  %19398 = vrcp.f32 %v14942_v23  ;;  %v14941_v30 = vadd.f32 1.0, %v19373_v56  ;;  %v14787_v38 = vadd.f32 %v19326_v18, %v14397_v2  ;;  %v14707_v34 = vpop.f32.mrf.mxu1  ;;  %v14400_v11 = vadd.f32 %v25666_v10, %v25664_v21 }
 0x79a   : > { %v19377_v35 = vpop.eup %19376  ;;  %15033 = vst.msk [vmem:[%s25680_s19 + $0x18] sm:$0xff] %vm15029_vm3, %v19375_v53  ;;  %19400 = vpow2.f32 %v14903_v7  ;;  %v14907_v20 = vmul.f32 1.442695, %v14856_v50  ;;  %v14855_v9 = vsub.f32 0.0, %v14823_v15  ;;  %v14786_v13 = vadd.f32 %v14707_v34, %v14396_v16 }
 0x79b   : > { %19402 = vrcp.f32 %v14941_v30  ;;  %v14944_v28 = vadd.f32 1.0, %v19377_v35  ;;  %v14826_v1 = vadd.f32 %v25539_v63, %v14787_v38  ;;  %v19329_v49 = vpop.f32.mrf.mxu1  ;;  %v14014_v16 = vadd.f32 %v25458_v46, %v25557_v57  ;;  %v14357_v57 = vpop.f32.mrf.mxu0 }
 0x79c   : > { %v19379_v2 = vpop.eup %19378  ;;  %19404 = vpow2.f32 %v14901_v55  ;;  %v14905_v33 = vmul.f32 1.442695, %v14855_v9  ;;  %v14825_v47 = vadd.f32 %v25539_v63, %v14786_v13  ;;  %v14789_v14 = vadd.f32 %v19329_v49, %v25672_v12 }
 0x79d   : > { %v19381_v6 = vpop.eup %19380  ;;  %15032 = vst.msk [vmem:[%s25680_s19 + $0x10] sm:$0xff] %vm15029_vm3, %v19379_v2  ;;  %19406 = vrcp.f32 %v14944_v28  ;;  %v14858_v40 = vsub.f32 0.0, %v14826_v1  ;;  %v14717_v22 = vpop.f32.mrf.mxu1  ;;  %v14017_v46 = vadd.f32 %v25478_v62, %v25561_v59  ;;  %v14403_v24 = vadd.f32 %v25682_v17, %v26878_v31 }
 0x79e   : > { %v19383_v27 = vpop.eup %19382  ;;  %15035 = vst.msk [vmem:[%s25680_s19 + $0x28] sm:$0xff] %vm15029_vm3, %v19381_v6  ;;  %19408 = vpow2.f32 %v14907_v20  ;;  %v14857_v43 = vsub.f32 0.0, %v14825_v47  ;;  %v14828_v12 = vadd.f32 %v25539_v63, %v14789_v14  ;;  %v14788_v60 = vadd.f32 %v14717_v22, %v14398_v3  ;;  %v19291_v17 = vpop.f32.mrf.mxu0 }
 0x79f   : > { %v19385_v5 = vpop.eup %19384  ;;  %v14943_v21 = vadd.f32 1.0, %v19383_v27  ;;  %19410 = vpow2.f32 %v14905_v33  ;;  %v14911_v10 = vmul.f32 1.442695, %v14858_v40  ;;  %v19332_v0 = vpop.f32.mrf.mxu1  ;;  %v14016_v62 = vadd.f32 %v25509_v19, %v25565_v45 }
 0x7a0   : > { %v19387_v44 = vpop.eup %19386  ;;  %15034 = vst.msk [vmem:[%s25680_s19 + $0x20] sm:$0xff] %vm15029_vm3, %v19385_v5  ;;  %v14909_v51 = vmul.f32 1.442695, %v14857_v43  ;;  %v14860_v32 = vsub.f32 0.0, %v14828_v12  ;;  %v14827_v36 = vadd.f32 %v25539_v63, %v14788_v60  ;;  %v14791_v8 = vadd.f32 %v19332_v0, %v14401_v25  ;;  %v14367_v35 = vpop.f32.mrf.mxu0 }
 0x7a1   : > { %v19389_v4 = vpop.eup %19388  ;;  %19412 = vrcp.f32 %v14943_v21  ;;  %v14946_v59 = vadd.f32 1.0, %v19387_v44  ;;  %v14727_v37 = vpop.f32.mrf.mxu1  ;;  %v14402_v61 = vadd.f32 %v25697_v39, %v25689_v52  ;;  %v14405_v7 = vadd.f32 %v19288_v26, %v25704_v58 }
 0x7a2   : > { %v19391_v48 = vpop.eup %19390  ;;  %15037 = vst.msk [vmem:[%s25680_s19 + $0x38] sm:$0xff] %vm15029_vm3, %v19389_v4  ;;  %19414 = vpow2.f32 %v14911_v10  ;;  %v14915_v42 = vmul.f32 1.442695, %v14860_v32  ;;  %v14859_v54 = vsub.f32 0.0, %v14827_v36  ;;  %v14830_v29 = vadd.f32 %v25539_v63, %v14791_v8 }
 0x7a3   : > { %v19393_v41 = vpop.eup %19392  ;;  %19416 = vrcp.f32 %v14946_v59  ;;  %v14945_v3 = vadd.f32 1.0, %v19391_v48  ;;  %v14790_v19 = vadd.f32 %v14727_v37, %v14400_v11  ;;  %v19335_v45 = vpop.f32.mrf.mxu1  ;;  %v14404_v30 = vadd.f32 %v14357_v57, %v14014_v16 }
 0x7a4   : > { %v19395_v23 = vpop.eup %19394  ;;  %15036 = vst.msk [vmem:[%s25680_s19 + $0x30] sm:$0xff] %vm15029_vm3, %v19393_v41  ;;  %19418 = vpow2.f32 %v14909_v51  ;;  %v14862_v18 = vsub.f32 0.0, %v14830_v29  ;;  %v14793_v56 = vadd.f32 %v19335_v45, %v14403_v24  ;;  %v14913_v15 = vmul.f32 1.442695, %v14859_v54 }
 0x7a5   : > { %v19397_v55 = vpop.eup %19396  ;;  %19420 = vrcp.f32 %v14945_v3  ;;  %v14948_v50 = vadd.f32 1.0, %v19395_v23  ;;  %v14829_v52 = vadd.f32 %v25539_v63, %v14790_v19  ;;  %v14737_v39 = vpop.f32.mrf.mxu1  ;;  %v14407_v33 = vadd.f32 %v19291_v17, %v14017_v46 }
 0x7a6   : > { %v19399_v53 = vpop.eup %19398  ;;  %v14947_v38 = vadd.f32 1.0, %v19397_v55  ;;  %19422 = vpow2.f32 %v14915_v42  ;;  %v14832_v34 = vadd.f32 %v25539_v63, %v14793_v56  ;;  %v14919_v20 = vmul.f32 1.442695, %v14862_v18 }
 0x7a7   : > { %v19401_v58 = vpop.eup %19400  ;;  %15039 = vst.msk [vmem:[%s25680_s19 + $0x48] sm:$0xff] %vm15029_vm3, %v19399_v53  ;;  %19424 = vrcp.f32 %v14948_v50  ;;  %v14861_v9 = vsub.f32 0.0, %v14829_v52  ;;  %v14792_v13 = vadd.f32 %v14737_v39, %v14402_v61  ;;  %v19338_v25 = vpop.f32.mrf.mxu1  ;;  %v14406_v11 = vadd.f32 %v14367_v35, %v14016_v62 }
 0x7a8   : > { %v19403_v26 = vpop.eup %19402  ;;  %19426 = vrcp.f32 %v14947_v38  ;;  %v14950_v28 = vadd.f32 1.0, %v19401_v58  ;;  %v14864_v1 = vsub.f32 0.0, %v14832_v34  ;;  %v14795_v49 = vadd.f32 %v19338_v25, %v14405_v7 }
 0x7a9   : > { %v19405_v2 = vpop.eup %19404  ;;  %15038 = vst.msk [vmem:[%s25680_s19 + $0x40] sm:$0xff] %vm15029_vm3, %v19403_v26  ;;  %19428 = vpow2.f32 %v14913_v15  ;;  %v14917_v47 = vmul.f32 1.442695, %v14861_v9  ;;  %v14831_v14 = vadd.f32 %v25539_v63, %v14792_v13  ;;  %v14747_v6 = vpop.f32.mrf.mxu1 }
 0x7aa   : > { %v19407_v16 = vpop.eup %19406  ;;  %19430 = vrcp.f32 %v14950_v28  ;;  %v14949_v40 = vadd.f32 1.0, %v19405_v2  ;;  %v14834_v22 = vadd.f32 %v25539_v63, %v14795_v49  ;;  %v14923_v43 = vmul.f32 1.442695, %v14864_v1 }
 0x7ab   : > { %v19409_v27 = vpop.eup %19408  ;;  %15041 = vst.msk [vmem:[%s25680_s19 + $0x58] sm:$0xff] %vm15029_vm3, %v19407_v16  ;;  %19432 = vpow2.f32 %v14919_v20  ;;  %v14863_v12 = vsub.f32 0.0, %v14831_v14  ;;  %v14794_v60 = vadd.f32 %v14747_v6, %v14404_v30  ;;  %v19341_v5 = vpop.f32.mrf.mxu1 }
 0x7ac   : > { %v19411_v46 = vpop.eup %19410  ;;  %19434 = vrcp.f32 %v14949_v40  ;;  %v14952_v57 = vadd.f32 1.0, %v19409_v27  ;;  %v14866_v21 = vsub.f32 0.0, %v14834_v22  ;;  %v14797_v10 = vadd.f32 %v19341_v5, %v14407_v33 }
 0x7ad   : > { %v14951_v0 = vadd.f32 1.0, %v19411_v46  ;;  %19436 = vpow2.f32 %v14917_v47  ;;  %v14921_v44 = vmul.f32 1.442695, %v14863_v12  ;;  %v14833_v51 = vadd.f32 %v25539_v63, %v14794_v60  ;;  %v14757_v32 = vpop.f32.mrf.mxu1 }
 0x7ae   : > { %v19413_v36 = vpop.eup %19412  ;;  %19438 = vrcp.f32 %v14952_v57  ;;  %v14836_v8 = vadd.f32 %v25539_v63, %v14797_v10  ;;  %v14796_v4 = vadd.f32 %v14757_v32, %v14406_v11  ;;  %v14927_v24 = vmul.f32 1.442695, %v14866_v21 }
 0x7af   : > { %v19415_v31 = vpop.eup %19414  ;;  %15040 = vst.msk [vmem:[%s25680_s19 + $0x50] sm:$0xff] %vm15029_vm3, %v19413_v36  ;;  %19440 = vrcp.f32 %v14951_v0  ;;  %v14865_v62 = vsub.f32 0.0, %v14833_v51 }
 0x7b0   : > { %v19417_v59 = vpop.eup %19416  ;;  %v14954_v37 = vadd.f32 1.0, %v19415_v31  ;;  %19442 = vpow2.f32 %v14923_v43  ;;  %v14868_v48 = vsub.f32 0.0, %v14836_v8  ;;  %v14835_v42 = vadd.f32 %v25539_v63, %v14796_v4 }
 0x7b1   : > { %v19419_v54 = vpop.eup %19418  ;;  %15043 = vst.msk [vmem:[%s25680_s19 + $0x68] sm:$0xff] %vm15029_vm3, %v19417_v59  ;;  %19444 = vpow2.f32 %v14921_v44  ;;  %v14925_v29 = vmul.f32 1.442695, %v14865_v62 }
 0x7b2   : > { %v19421_v41 = vpop.eup %19420  ;;  %19446 = vrcp.f32 %v14954_v37  ;;  %v14953_v61 = vadd.f32 1.0, %v19419_v54  ;;  %v14867_v17 = vsub.f32 0.0, %v14835_v42  ;;  %v14931_v19 = vmul.f32 1.442695, %v14868_v48 }
 0x7b3   : > { %v19423_v3 = vpop.eup %19422  ;;  %15042 = vst.msk [vmem:[%s25680_s19 + $0x60] sm:$0xff] %vm15029_vm3, %v19421_v41  ;;  %19448 = vpow2.f32 %v14927_v24 }
 0x7b4   : > { %v19425_v45 = vpop.eup %19424  ;;  %19450 = vrcp.f32 %v14953_v61  ;;  %v14956_v63 = vadd.f32 1.0, %v19423_v3  ;;  %v14929_v23 = vmul.f32 1.442695, %v14867_v17 }
 0x7b5   : > { %v19427_v7 = vpop.eup %19426  ;;  %15045 = vst.msk [vmem:[%s25680_s19 + $0x78] sm:$0xff] %vm15029_vm3, %v19425_v45  ;;  %19452 = vpow2.f32 %v14925_v29 }
 0x7b6   : > { %v19429_v18 = vpop.eup %19428  ;;  %15044 = vst.msk [vmem:[%s25680_s19 + $0x70] sm:$0xff] %vm15029_vm3, %v19427_v7  ;;  %19454 = vrcp.f32 %v14956_v63 }
 0x7b7   : > { %v19431_v56 = vpop.eup %19430  ;;  %v14955_v55 = vadd.f32 1.0, %v19429_v18  ;;  %19456 = vpow2.f32 %v14931_v19 }
 0x7b8   : > { %v19433_v50 = vpop.eup %19432  ;;  %15047 = vst.msk [vmem:[%s25680_s19 + $0x88] sm:$0xff] %vm15029_vm3, %v19431_v56  ;;  %19458 = vpow2.f32 %v14929_v23 }
 0x7b9   : > { %v19435_v15 = vpop.eup %19434  ;;  %19460 = vrcp.f32 %v14955_v55  ;;  %v14958_v52 = vadd.f32 1.0, %v19433_v50 }
 0x7ba   : > { %v19437_v39 = vpop.eup %19436  ;;  %15046 = vst.msk [vmem:[%s25680_s19 + $0x80] sm:$0xff] %vm15029_vm3, %v19435_v15 }
 0x7bb   : > { %v19439_v53 = vpop.eup %19438  ;;  %19462 = vrcp.f32 %v14958_v52  ;;  %v14957_v30 = vadd.f32 1.0, %v19437_v39 }
 0x7bc   : > { %v19441_v38 = vpop.eup %19440  ;;  %15049 = vst.msk [vmem:[%s25680_s19 + $0x98] sm:$0xff] %vm15029_vm3, %v19439_v53 }
 0x7bd   : > { %v19443_v34 = vpop.eup %19442  ;;  %15048 = vst.msk [vmem:[%s25680_s19 + $0x90] sm:$0xff] %vm15029_vm3, %v19441_v38  ;;  %19464 = vrcp.f32 %v14957_v30 }
 0x7be   : > { %v19445_v58 = vpop.eup %19444  ;;  %v14960_v35 = vadd.f32 1.0, %v19443_v34 }
 0x7bf   : > { %v19447_v20 = vpop.eup %19446  ;;  %v14959_v9 = vadd.f32 1.0, %v19445_v58 }
 0x7c0   : > { %v19449_v13 = vpop.eup %19448  ;;  %15051 = vst.msk [vmem:[%s25680_s19 + $0xa8] sm:$0xff] %vm15029_vm3, %v19447_v20  ;;  %19466 = vrcp.f32 %v14960_v35 }
 0x7c1   : > { %v19451_v25 = vpop.eup %19450  ;;  %19468 = vrcp.f32 %v14959_v9  ;;  %v14962_v26 = vadd.f32 1.0, %v19449_v13 }
 0x7c2   : > { %v19453_v28 = vpop.eup %19452  ;;  %15050 = vst.msk [vmem:[%s25680_s19 + $0xa0] sm:$0xff] %vm15029_vm3, %v19451_v25 }
 0x7c3   : > { %v19455_v1 = vpop.eup %19454  ;;  %19470 = vrcp.f32 %v14962_v26  ;;  %v14961_v49 = vadd.f32 1.0, %v19453_v28 }
 0x7c4   : > { %v19457_v2 = vpop.eup %19456  ;;  %15053 = vst.msk [vmem:[%s25680_s19 + $0xb8] sm:$0xff] %vm15029_vm3, %v19455_v1 }
 0x7c5   : > { %v19459_v33 = vpop.eup %19458  ;;  %19472 = vrcp.f32 %v14961_v49  ;;  %v14964_v47 = vadd.f32 1.0, %v19457_v2 }
 0x7c6   : > { %v19461_v14 = vpop.eup %19460  ;;  %v14963_v6 = vadd.f32 1.0, %v19459_v33 }
 0x7c7   : > { %15052 = vst.msk [vmem:[%s25680_s19 + $0xb0] sm:$0xff] %vm15029_vm3, %v19461_v14  ;;  %19474 = vrcp.f32 %v14964_v47 }
 0x7c8   : > { %v19463_v16 = vpop.eup %19462  ;;  %19476 = vrcp.f32 %v14963_v6 }
 0x7c9   : > { %15055 = vst.msk [vmem:[%s25680_s19 + $0xc8] sm:$0xff] %vm15029_vm3, %v19463_v16 }
 0x7ca   : > { %v19465_v11 = vpop.eup %19464 }
 0x7cb   : > { %15054 = vst.msk [vmem:[%s25680_s19 + $0xc0] sm:$0xff] %vm15029_vm3, %v19465_v11 }
 0x7cd   : > { %v19467_v40 = vpop.eup %19466 }
 0x7ce   : > { %v19469_v22 = vpop.eup %19468  ;;  %15057 = vst.msk [vmem:[%s25680_s19 + $0xd8] sm:$0xff] %vm15029_vm3, %v19467_v40 }
 0x7cf   : > { %15056 = vst.msk [vmem:[%s25680_s19 + $0xd0] sm:$0xff] %vm15029_vm3, %v19469_v22 }
 0x7d0   : > { %v19471_v27 = vpop.eup %19470 }
 0x7d1   : > { %15059 = vst.msk [vmem:[%s25680_s19 + $0xe8] sm:$0xff] %vm15029_vm3, %v19471_v27 }
 0x7d2   : > { %v19473_v43 = vpop.eup %19472 }
 0x7d3   : > { %15058 = vst.msk [vmem:[%s25680_s19 + $0xe0] sm:$0xff] %vm15029_vm3, %v19473_v43 }
 0x7d4   : > { %v19475_v12 = vpop.eup %19474 }
 0x7d5   : > { %v19477_v60 = vpop.eup %19476  ;;  %15061 = vst.msk [vmem:[%s25680_s19 + $0xf8] sm:$0xff] %vm15029_vm3, %v19475_v12 }
 0x7d6   : > { %15060 = vst.msk [vmem:[%s25680_s19 + $0xf0] sm:$0xff] %vm15029_vm3, %v19477_v60 }
 0x7d7 PF: > { %s21_s11 = sadd.s32 1, %s19487_s11  }
 0x7d8   : > { %p18_p4 = scmp.ge.s32.totalorder %s21_s11, 4  }
 0x7da   :  { %20 = sbr.rel (!%p18_p4) target bundleno = 3 (0x3), region = 121 }

</bundles_post_ra>
